<compile_context>
chip_gen: v6e
topology: v6e:2x2x1
jax: 0.10.0
libtpu: 0.0.40
codegen_flags: <defaults>
</compile_context>

<pallas_src>
import functools
import math

import jax
import jax.numpy as jnp
from jax.experimental import pallas as pl
from jax.experimental.pallas import tpu as pltpu


def _gru_encoder_kernel(src_ref, bio_ref, tab_ref, blin_ref,
                        wih0_ref, wihr_ref, bih_ref, whh_ref, bhh_ref,
                        out_ref, hid_ref,
                        gibuf, fbuf, bbuf,
                        *, T, B, L, V, H):
    f32 = jnp.float32
    TB = T * B
    D = tab_ref.shape[1]
    H3 = 3 * H

    # ---- Embedding gather fused with the 2D->D Linear ---------------------
    # tab = [emb @ Wlin[:D] ; emb @ Wlin[D:2D]]  (done in the wrapper), so one
    # [TB, 2V] one-hot matmul realizes both gathers AND the Linear.
    # Note: out-of-range token ids yield a zero row (PyTorch would raise).
    lane = jax.lax.broadcasted_iota(jnp.int32, (TB, 2 * V), 1)
    oh = (jnp.where(lane == src_ref[...], 1.0, 0.0)
          + jnp.where(lane == bio_ref[...] + V, 1.0, 0.0))          # [TB, 2V]
    x = jnp.dot(oh, tab_ref[...], preferred_element_type=f32) + blin_ref[...]  # [TB, D]

    # ---- Bidirectional multi-layer GRU -------------------------------------
    for l in range(L):
        bih = bih_ref[l:l + 1, :]                              # [1, 6H]
        bhh_f = bhh_ref[2 * l:2 * l + 1, :]                    # [1, 3H]
        bhh_b = bhh_ref[2 * l + 1:2 * l + 2, :]
        whh_f = whh_ref[2 * l * H:(2 * l + 1) * H, :]          # [H, 3H]
        whh_b = whh_ref[(2 * l + 1) * H:(2 * l + 2) * H, :]

        # Hoisted input transform: one batched matmul over all T*B rows and
        # both directions (cols 0:3H = forward gates, 3H:6H = backward gates).
        if l == 0:
            gi_all = jnp.dot(x, wih0_ref[...], preferred_element_type=f32) + bih
        else:
            w = wihr_ref[(l - 1) * 2 * H:l * 2 * H, :]         # [2H, 6H]
            gi_all = (jnp.dot(fbuf[...], w[0:H, :], preferred_element_type=f32)
                      + jnp.dot(bbuf[...], w[H:2 * H, :], preferred_element_type=f32)
                      + bih)                                   # [TB, 6H]
        gibuf[...] = gi_all                                    # single full-tile store

        # Fused bidirectional recurrence: forward steps time t while backward
        # steps time T-1-t, so the two independent latency chains overlap.
        # T is small & static -> fully unrolled (static-index loads/stores).
        h_f = jnp.zeros((B, H), f32)
        h_b = jnp.zeros((B, H), f32)
        for t in range(T):
            tb = T - 1 - t
            g_f = gibuf[t * B:(t + 1) * B, :]                  # [B, 6H]
            g_b = gibuf[tb * B:(tb + 1) * B, :]

            gh_f = jnp.dot(h_f, whh_f, preferred_element_type=f32) + bhh_f
            gh_b = jnp.dot(h_b, whh_b, preferred_element_type=f32) + bhh_b

            r_f = jax.nn.sigmoid(g_f[:, 0:H] + gh_f[:, 0:H])
            z_f = jax.nn.sigmoid(g_f[:, H:2 * H] + gh_f[:, H:2 * H])
            n_f = jnp.tanh(g_f[:, 2 * H:H3] + r_f * gh_f[:, 2 * H:H3])
            h_f = (1.0 - z_f) * n_f + z_f * h_f

            r_b = jax.nn.sigmoid(g_b[:, H3:H3 + H] + gh_b[:, 0:H])
            z_b = jax.nn.sigmoid(g_b[:, H3 + H:H3 + 2 * H] + gh_b[:, H:2 * H])
            n_b = jnp.tanh(g_b[:, H3 + 2 * H:2 * H3] + r_b * gh_b[:, 2 * H:H3])
            h_b = (1.0 - z_b) * n_b + z_b * h_b

            # Stores are off the h->h critical path; scheduler hides them.
            fbuf[t * B:(t + 1) * B, :] = h_f
            bbuf[tb * B:(tb + 1) * B, :] = h_b

        hid_ref[2 * l * B:(2 * l + 1) * B, :] = h_f            # fwd final state
        hid_ref[(2 * l + 1) * B:(2 * l + 2) * B, :] = h_b      # bwd final state (time 0)
        # TODO(synk): inter-layer dropout(0.3) omitted (eval-mode identity).

    out_ref[...] = fbuf[...] + bbuf[...]                       # sum of directions


def _prepare_fused_params(params):
    """Weight-only rearrangement (cacheable): fold the Linear into the
    embedding table and fuse forward/backward W_ih into [*, 6H] blocks."""
    emb, wlin, blin = params["emb"], params["wlin"], params["blin"]
    D = emb.shape[1]
    H = params["whh0"].shape[1] // 3
    L = params["bihr"].shape[0] // 2 + 1

    # Linear folded into the embedding table: [2V, D].
    tab = jnp.concatenate([emb @ wlin[0:D, :], emb @ wlin[D:2 * D, :]], axis=0)

    # Direction-fused input weights: cols 0:3H forward, 3H:6H backward.
    wih0 = jnp.concatenate([params["wih0"][0:D, :],
                            params["wih0"][D:2 * D, :]], axis=1)       # [D, 6H]
    if L > 1:
        blocks = []
        for l in range(1, L):
            i_f = (l - 1) * 2
            i_b = i_f + 1
            w_f = params["wihr"][i_f * 2 * H:(i_f + 1) * 2 * H, :]      # [2H, 3H]
            w_b = params["wihr"][i_b * 2 * H:(i_b + 1) * 2 * H, :]
            blocks.append(jnp.concatenate([w_f, w_b], axis=1))          # [2H, 6H]
        wihr = jnp.concatenate(blocks, axis=0)                          # [(L-1)*2H, 6H]
    else:
        wihr = jnp.zeros((2 * H, 6 * H), jnp.float32)                   # unused dummy

    # Direction-fused input biases: [L, 6H].
    bih0 = jnp.concatenate([params["bih0"][0], params["bih0"][1]])[None, :]
    if L > 1:
        bih = jnp.concatenate([bih0, params["bihr"].reshape(L - 1, 6 * H)], axis=0)
    else:
        bih = bih0

    # Hidden weights/biases stay per-direction (r,z,n column order).
    if L > 1:
        whh = jnp.concatenate([params["whh0"], params["whhr"]], axis=0)  # [2L*H, 3H]
        bhh = jnp.concatenate([params["bhh0"], params["bhhr"]], axis=0)  # [2L, 3H]
    else:
        whh, bhh = params["whh0"], params["bhh0"]

    return dict(tab=tab, blin=blin, wih0=wih0, wihr=wihr, bih=bih, whh=whh, bhh=bhh)


def gru_encoder_forward(src, src1_bio, params):
    """src, src1_bio: [T, B] int32 token ids (seq-major, batch_first=False).
    Returns (outputs [T, B, H], hidden [2*n_layers, B, H])."""
    T, B = src.shape
    V = params["emb"].shape[0]
    H = params["whh0"].shape[1] // 3
    L = params["bihr"].shape[0] // 2 + 1
    TB = T * B

    fused = _prepare_fused_params(params)

    vmem = pl.BlockSpec(memory_space=pltpu.MemorySpace.VMEM)
    kernel = functools.partial(_gru_encoder_kernel, T=T, B=B, L=L, V=V, H=H)

    out2d, hid2d = pl.pallas_call(
        kernel,
        out_shape=(jax.ShapeDtypeStruct((TB, H), jnp.float32),
                   jax.ShapeDtypeStruct((2 * L * B, H), jnp.float32)),
        in_specs=[vmem] * 9,
        out_specs=(vmem, vmem),
        scratch_shapes=[pltpu.VMEM((TB, 6 * H), jnp.float32),   # gibuf
                        pltpu.VMEM((TB, H), jnp.float32),       # fbuf
                        pltpu.VMEM((TB, H), jnp.float32)],      # bbuf
    )(src.reshape(TB, 1).astype(jnp.int32),
      src1_bio.reshape(TB, 1).astype(jnp.int32),
      fused["tab"], fused["blin"], fused["wih0"], fused["wihr"],
      fused["bih"], fused["whh"], fused["bhh"])

    return out2d.reshape(T, B, H), hid2d.reshape(2 * L, B, H)


def init_params(key, n_src_vocab, d_model, hidden_size, n_layers):
    """Deterministic synthetic init matching the PyTorch layer shapes/defaults.
    Gate column order follows PyTorch GRU: (r, z, n)."""
    V, D, H, L = n_src_vocab, d_model, hidden_size, n_layers
    keys = iter(jax.random.split(key, 3 + 8 * L))

    def u(shape, bound):
        return jax.random.uniform(next(keys), shape, jnp.float32, -bound, bound)

    # Embedding weight (original loads a pretrained tensor; synthesized here).
    emb = jax.random.normal(next(keys), (V, D), jnp.float32)

    lb = 1.0 / math.sqrt(2 * D)
    wlin = u((D, 2 * D), lb)              # nn.Linear(2D, D) weight  [out, in]
    blin = u((D,), lb)

    gb = 1.0 / math.sqrt(H)
    wih0, whh0, bih0, bhh0 = [], [], [], []
    wihr, whhr, bihr, bhhr = [], [], [], []
    for l in range(L):
        in_size = D if l == 0 else 2 * H
        for d in range(2):                 # forward, backward directions
            w_ih = u((3 * H, in_size), gb)
            w_hh = u((3 * H, H), gb)
            b_ih = u((3 * H,), gb)
            b_hh = u((3 * H,), gb)
            if l == 0:
                wih0.append(w_ih.T); whh0.append(w_hh.T)
                bih0.append(b_ih);   bhh0.append(b_hh)
            else:
                wihr.append(w_ih.T); whhr.append(w_hh.T)
                bihr.append(b_ih);   bhhr.append(b_hh)

    return dict(
        emb=emb,
        wlin=wlin.T,                          # [2D, D]  (pre-transposed: x @ W)
        blin=blin[None, :],                   # [1, D]
        wih0=jnp.concatenate(wih0, axis=0),   # [2*D, 3H]
        whh0=jnp.concatenate(whh0, axis=0),   # [2*H, 3H]
        bih0=jnp.stack(bih0),                 # [2, 3H]
        bhh0=jnp.stack(bhh0),                 # [2, 3H]
        wihr=jnp.concatenate(wihr, axis=0),   # [(L-1)*2*2H, 3H]
        whhr=jnp.concatenate(whhr, axis=0),   # [(L-1)*2*H, 3H]
        bihr=jnp.stack(bihr),                 # [(L-1)*2, 3H]
        bhhr=jnp.stack(bhhr),                 # [(L-1)*2, 3H]
    )


def reference(src, bio, p):
    """Pure-JAX reference of the same forward pass (for a sanity check)."""
    T, B = src.shape
    emb = p["emb"]
    D = emb.shape[1]
    H = p["whh0"].shape[0] // 2
    L = p["bihr"].shape[0] // 2 + 1

    x = jnp.concatenate([emb[src], emb[bio]], axis=-1) @ p["wlin"] + p["blin"]  # [T,B,D]

    def run_dir(xs, wih, whh, bih, bhh, reverse):
        def step(h, x_t):
            gi = x_t @ wih + bih
            gh = h @ whh + bhh
            r = jax.nn.sigmoid(gi[:, :H] + gh[:, :H])
            z = jax.nn.sigmoid(gi[:, H:2 * H] + gh[:, H:2 * H])
            n = jnp.tanh(gi[:, 2 * H:] + r * gh[:, 2 * H:])
            h_new = (1.0 - z) * n + z * h
            return h_new, h_new
        seq = xs[::-1] if reverse else xs
        h_last, outs = jax.lax.scan(step, jnp.zeros((B, H), jnp.float32), seq)
        if reverse:
            outs = outs[::-1]
        return outs, h_last

    layer_in = x
    hid = []
    for l in range(L):
        outs_d = []
        for d in range(2):
            if l == 0:
                wih = p["wih0"][d * D:(d + 1) * D]
                whh = p["whh0"][d * H:(d + 1) * H]
                bih = p["bih0"][d]
                bhh = p["bhh0"][d]
            else:
                i = (l - 1) * 2 + d
                wih = p["wihr"][i * 2 * H:(i + 1) * 2 * H]
                whh = p["whhr"][i * H:(i + 1) * H]
                bih = p["bihr"][i]
                bhh = p["bhhr"][i]
            o, h_last = run_dir(layer_in, wih, whh, bih, bhh, reverse=(d == 1))
            outs_d.append(o)
            hid.append(h_last)
        layer_in = jnp.concatenate(outs_d, axis=-1)

    outputs = layer_in[:, :, :H] + layer_in[:, :, H:]
    return outputs, jnp.stack(hid)


if __name__ == "__main__":
    # Small shapes consistent with the module (d_model == hidden_size, 4 layers,
    # bidirectional): seq T=8, batch B=2, vocab V=64, d_model = hidden = 32.
    T, B, V, D, H, L = 8, 2, 64, 32, 32, 4

    key = jax.random.PRNGKey(0)
    kp, ks, kb = jax.random.split(key, 3)

    params = init_params(kp, V, D, H, L)
    src = jax.random.randint(ks, (T, B), 0, V, dtype=jnp.int32)
    src1_bio = jax.random.randint(kb, (T, B), 0, V, dtype=jnp.int32)

    outputs, hidden = gru_encoder_forward(src, src1_bio, params)
    jax.block_until_ready((outputs, hidden))

    ref_out, ref_hid = reference(src, src1_bio, params)
    assert outputs.shape == (T, B, H)
    assert hidden.shape == (2 * L, B, H)
    assert jnp.allclose(outputs, ref_out, rtol=1e-3, atol=1e-3), "outputs mismatch vs JAX reference"
    assert jnp.allclose(hidden, ref_hid, rtol=1e-3, atol=1e-3), "hidden mismatch vs JAX reference"

    print("KERNEL_OK")
</pallas_src>

<mosaic_0001>
module attributes {stable_mosaic.version = 11 : i64} {
  func.func @_gru_encoder_kernel(%arg0: memref<16x1xi32, #tpu.memory_space<vmem>>, %arg1: memref<16x1xi32, #tpu.memory_space<vmem>>, %arg2: memref<128x32xf32, #tpu.memory_space<vmem>>, %arg3: memref<1x32xf32, #tpu.memory_space<vmem>>, %arg4: memref<32x192xf32, #tpu.memory_space<vmem>>, %arg5: memref<192x192xf32, #tpu.memory_space<vmem>>, %arg6: memref<4x192xf32, #tpu.memory_space<vmem>>, %arg7: memref<256x96xf32, #tpu.memory_space<vmem>>, %arg8: memref<8x96xf32, #tpu.memory_space<vmem>>, %arg9: memref<16x32xf32, #tpu.memory_space<vmem>>, %arg10: memref<16x32xf32, #tpu.memory_space<vmem>>, %arg11: memref<16x192xf32, #tpu.memory_space<vmem>>, %arg12: memref<16x32xf32, #tpu.memory_space<vmem>>, %arg13: memref<16x32xf32, #tpu.memory_space<vmem>>) attributes {dimension_semantics = [], scalar_prefetch = 0 : i64, scratch_operands = 3 : i64, tpu.core_type = #tpu.core_type<tc>} {
    %0 = tpu.iota {dimensions = array<i32: 1>} : vector<16x128xi32>
    %c0 = arith.constant 0 : index
    %c0_0 = arith.constant 0 : index
    %1 = vector.load %arg0[%c0, %c0_0] : memref<16x1xi32, #tpu.memory_space<vmem>>, vector<16x1xi32>
    %2 = vector.broadcast %1 : vector<16x1xi32> to vector<16x128xi32>
    %3 = arith.cmpi eq, %0, %2 : vector<16x128xi32>
    %cst = arith.constant 1.000000e+00 : f32
    %cst_1 = arith.constant 0.000000e+00 : f32
    %4 = vector.broadcast %cst : f32 to vector<16x128xf32>
    %5 = vector.broadcast %cst_1 : f32 to vector<16x128xf32>
    %6 = arith.select %3, %4, %5 : vector<16x128xi1>, vector<16x128xf32>
    %c0_2 = arith.constant 0 : index
    %c0_3 = arith.constant 0 : index
    %7 = vector.load %arg1[%c0_2, %c0_3] : memref<16x1xi32, #tpu.memory_space<vmem>>, vector<16x1xi32>
    %c64_i32 = arith.constant 64 : i32
    %8 = vector.broadcast %c64_i32 : i32 to vector<16x1xi32>
    %9 = arith.addi %7, %8 : vector<16x1xi32>
    %10 = vector.broadcast %9 : vector<16x1xi32> to vector<16x128xi32>
    %11 = arith.cmpi eq, %0, %10 : vector<16x128xi32>
    %cst_4 = arith.constant 1.000000e+00 : f32
    %cst_5 = arith.constant 0.000000e+00 : f32
    %12 = vector.broadcast %cst_4 : f32 to vector<16x128xf32>
    %13 = vector.broadcast %cst_5 : f32 to vector<16x128xf32>
    %14 = arith.select %11, %12, %13 : vector<16x128xi1>, vector<16x128xf32>
    %15 = arith.addf %6, %14 : vector<16x128xf32>
    %c0_6 = arith.constant 0 : index
    %c0_7 = arith.constant 0 : index
    %16 = vector.load %arg2[%c0_6, %c0_7] : memref<128x32xf32, #tpu.memory_space<vmem>>, vector<128x32xf32>
    %cst_8 = arith.constant dense<0.000000e+00> : vector<16x32xf32>
    %17 = tpu.matmul %15, %16, %cst_8 {dimension_numbers = #tpu.dot_dimension_numbers<[1], [0], [0], [1], [0, 0, 1, 1], [], []>} : vector<16x128xf32>, vector<128x32xf32>, vector<16x32xf32> -> vector<16x32xf32>
    %c0_9 = arith.constant 0 : index
    %c0_10 = arith.constant 0 : index
    %18 = vector.load %arg3[%c0_9, %c0_10] : memref<1x32xf32, #tpu.memory_space<vmem>>, vector<1x32xf32>
    %19 = vector.broadcast %18 : vector<1x32xf32> to vector<16x32xf32>
    %20 = arith.addf %17, %19 : vector<16x32xf32>
    %c0_11 = arith.constant 0 : index
    %c0_12 = arith.constant 0 : index
    %21 = vector.load %arg6[%c0_11, %c0_12] : memref<4x192xf32, #tpu.memory_space<vmem>>, vector<1x192xf32>
    %c0_13 = arith.constant 0 : index
    %c0_14 = arith.constant 0 : index
    %22 = vector.load %arg8[%c0_13, %c0_14] : memref<8x96xf32, #tpu.memory_space<vmem>>, vector<1x96xf32>
    %c1 = arith.constant 1 : index
    %c0_15 = arith.constant 0 : index
    %23 = vector.load %arg8[%c1, %c0_15] : memref<8x96xf32, #tpu.memory_space<vmem>>, vector<1x96xf32>
    %c0_16 = arith.constant 0 : index
    %c0_17 = arith.constant 0 : index
    %24 = vector.load %arg7[%c0_16, %c0_17] : memref<256x96xf32, #tpu.memory_space<vmem>>, vector<32x96xf32>
    %c32 = arith.constant 32 : index
    %c0_18 = arith.constant 0 : index
    %25 = vector.load %arg7[%c32, %c0_18] : memref<256x96xf32, #tpu.memory_space<vmem>>, vector<32x96xf32>
    %c0_19 = arith.constant 0 : index
    %c0_20 = arith.constant 0 : index
    %26 = vector.load %arg4[%c0_19, %c0_20] : memref<32x192xf32, #tpu.memory_space<vmem>>, vector<32x192xf32>
    %cst_21 = arith.constant dense<0.000000e+00> : vector<16x192xf32>
    %27 = tpu.matmul %20, %26, %cst_21 {dimension_numbers = #tpu.dot_dimension_numbers<[1], [0], [0], [1], [0, 0, 1, 1], [], []>} : vector<16x32xf32>, vector<32x192xf32>, vector<16x192xf32> -> vector<16x192xf32>
    %28 = vector.broadcast %21 : vector<1x192xf32> to vector<16x192xf32>
    %29 = arith.addf %27, %28 : vector<16x192xf32>
    %c0_22 = arith.constant 0 : index
    %c0_23 = arith.constant 0 : index
    %30 = vector.load %arg11[%c0_22, %c0_23] : memref<16x192xf32, #tpu.memory_space<vmem>>, vector<16x192xf32>
    tpu.vector_store %arg11[%c0_22, %c0_23], %29 {strides = array<i32>} : memref<16x192xf32, #tpu.memory_space<vmem>>, vector<16x192xf32>,
    %cst_24 = arith.constant 0.000000e+00 : f32
    %31 = vector.broadcast %cst_24 : f32 to vector<2x32xf32>
    %cst_25 = arith.constant 0.000000e+00 : f32
    %32 = vector.broadcast %cst_25 : f32 to vector<2x32xf32>
    %c0_26 = arith.constant 0 : index
    %c0_27 = arith.constant 0 : index
    %33 = vector.load %arg11[%c0_26, %c0_27] : memref<16x192xf32, #tpu.memory_space<vmem>>, vector<2x192xf32>
    %c14 = arith.constant 14 : index
    %c0_28 = arith.constant 0 : index
    %34 = vector.load %arg11[%c14, %c0_28] : memref<16x192xf32, #tpu.memory_space<vmem>>, vector<2x192xf32>
    %cst_29 = arith.constant dense<0.000000e+00> : vector<2x96xf32>
    %35 = tpu.matmul %31, %24, %cst_29 {dimension_numbers = #tpu.dot_dimension_numbers<[1], [0], [0], [1], [0, 0, 1, 1], [], []>} : vector<2x32xf32>, vector<32x96xf32>, vector<2x96xf32> -> vector<2x96xf32>
    %36 = vector.broadcast %22 : vector<1x96xf32> to vector<2x96xf32>
    %37 = arith.addf %35, %36 : vector<2x96xf32>
    %cst_30 = arith.constant dense<0.000000e+00> : vector<2x96xf32>
    %38 = tpu.matmul %32, %25, %cst_30 {dimension_numbers = #tpu.dot_dimension_numbers<[1], [0], [0], [1], [0, 0, 1, 1], [], []>} : vector<2x32xf32>, vector<32x96xf32>, vector<2x96xf32> -> vector<2x96xf32>
    %39 = vector.broadcast %23 : vector<1x96xf32> to vector<2x96xf32>
    %40 = arith.addf %38, %39 : vector<2x96xf32>
    %41 = vector.extract_strided_slice %33 {offsets = [0, 0], sizes = [2, 32], strides = [1, 1]} : vector<2x192xf32> to vector<2x32xf32>
    %42 = vector.extract_strided_slice %37 {offsets = [0, 0], sizes = [2, 32], strides = [1, 1]} : vector<2x96xf32> to vector<2x32xf32>
    %43 = arith.addf %41, %42 : vector<2x32xf32>
    %44 = arith.negf %43 : vector<2x32xf32>
    %45 = math.exp %44 : vector<2x32xf32>
    %cst_31 = arith.constant 1.000000e+00 : f32
    %46 = vector.broadcast %cst_31 : f32 to vector<2x32xf32>
    %47 = arith.addf %46, %45 : vector<2x32xf32>
    %48 = arith.divf %46, %47 : vector<2x32xf32>
    %49 = vector.extract_strided_slice %33 {offsets = [0, 32], sizes = [2, 32], strides = [1, 1]} : vector<2x192xf32> to vector<2x32xf32>
    %50 = vector.extract_strided_slice %37 {offsets = [0, 32], sizes = [2, 32], strides = [1, 1]} : vector<2x96xf32> to vector<2x32xf32>
    %51 = arith.addf %49, %50 : vector<2x32xf32>
    %52 = arith.negf %51 : vector<2x32xf32>
    %53 = math.exp %52 : vector<2x32xf32>
    %cst_32 = arith.constant 1.000000e+00 : f32
    %54 = vector.broadcast %cst_32 : f32 to vector<2x32xf32>
    %55 = arith.addf %54, %53 : vector<2x32xf32>
    %56 = arith.divf %54, %55 : vector<2x32xf32>
    %57 = vector.extract_strided_slice %33 {offsets = [0, 64], sizes = [2, 32], strides = [1, 1]} : vector<2x192xf32> to vector<2x32xf32>
    %58 = vector.extract_strided_slice %37 {offsets = [0, 64], sizes = [2, 32], strides = [1, 1]} : vector<2x96xf32> to vector<2x32xf32>
    %59 = arith.mulf %48, %58 : vector<2x32xf32>
    %60 = arith.addf %57, %59 : vector<2x32xf32>
    %61 = math.tanh %60 : vector<2x32xf32>
    %cst_33 = arith.constant 1.000000e+00 : f32
    %62 = vector.broadcast %cst_33 : f32 to vector<2x32xf32>
    %63 = arith.subf %62, %56 : vector<2x32xf32>
    %64 = arith.mulf %63, %61 : vector<2x32xf32>
    %65 = arith.mulf %56, %31 : vector<2x32xf32>
    %66 = arith.addf %64, %65 : vector<2x32xf32>
    %67 = vector.extract_strided_slice %34 {offsets = [0, 96], sizes = [2, 32], strides = [1, 1]} : vector<2x192xf32> to vector<2x32xf32>
    %68 = vector.extract_strided_slice %40 {offsets = [0, 0], sizes = [2, 32], strides = [1, 1]} : vector<2x96xf32> to vector<2x32xf32>
    %69 = arith.addf %67, %68 : vector<2x32xf32>
    %70 = arith.negf %69 : vector<2x32xf32>
    %71 = math.exp %70 : vector<2x32xf32>
    %cst_34 = arith.constant 1.000000e+00 : f32
    %72 = vector.broadcast %cst_34 : f32 to vector<2x32xf32>
    %73 = arith.addf %72, %71 : vector<2x32xf32>
    %74 = arith.divf %72, %73 : vector<2x32xf32>
    %75 = vector.extract_strided_slice %34 {offsets = [0, 128], sizes = [2, 32], strides = [1, 1]} : vector<2x192xf32> to vector<2x32xf32>
    %76 = vector.extract_strided_slice %40 {offsets = [0, 32], sizes = [2, 32], strides = [1, 1]} : vector<2x96xf32> to vector<2x32xf32>
    %77 = arith.addf %75, %76 : vector<2x32xf32>
    %78 = arith.negf %77 : vector<2x32xf32>
    %79 = math.exp %78 : vector<2x32xf32>
    %cst_35 = arith.constant 1.000000e+00 : f32
    %80 = vector.broadcast %cst_35 : f32 to vector<2x32xf32>
    %81 = arith.addf %80, %79 : vector<2x32xf32>
    %82 = arith.divf %80, %81 : vector<2x32xf32>
    %83 = vector.extract_strided_slice %34 {offsets = [0, 160], sizes = [2, 32], strides = [1, 1]} : vector<2x192xf32> to vector<2x32xf32>
    %84 = vector.extract_strided_slice %40 {offsets = [0, 64], sizes = [2, 32], strides = [1, 1]} : vector<2x96xf32> to vector<2x32xf32>
    %85 = arith.mulf %74, %84 : vector<2x32xf32>
    %86 = arith.addf %83, %85 : vector<2x32xf32>
    %87 = math.tanh %86 : vector<2x32xf32>
    %cst_36 = arith.constant 1.000000e+00 : f32
    %88 = vector.broadcast %cst_36 : f32 to vector<2x32xf32>
    %89 = arith.subf %88, %82 : vector<2x32xf32>
    %90 = arith.mulf %89, %87 : vector<2x32xf32>
    %91 = arith.mulf %82, %32 : vector<2x32xf32>
    %92 = arith.addf %90, %91 : vector<2x32xf32>
    %c0_37 = arith.constant 0 : index
    %c0_38 = arith.constant 0 : index
    %93 = vector.load %arg12[%c0_37, %c0_38] : memref<16x32xf32, #tpu.memory_space<vmem>>, vector<2x32xf32>
    tpu.vector_store %arg12[%c0_37, %c0_38], %66 {strides = array<i32>} : memref<16x32xf32, #tpu.memory_space<vmem>>, vector<2x32xf32>,
    %c14_39 = arith.constant 14 : index
    %c0_40 = arith.constant 0 : index
    %94 = vector.load %arg13[%c14_39, %c0_40] : memref<16x32xf32, #tpu.memory_space<vmem>>, vector<2x32xf32>
    tpu.vector_store %arg13[%c14_39, %c0_40], %92 {strides = array<i32>} : memref<16x32xf32, #tpu.memory_space<vmem>>, vector<2x32xf32>,
    %c2 = arith.constant 2 : index
    %c0_41 = arith.constant 0 : index
    %95 = vector.load %arg11[%c2, %c0_41] : memref<16x192xf32, #tpu.memory_space<vmem>>, vector<2x192xf32>
    %c12 = arith.constant 12 : index
    %c0_42 = arith.constant 0 : index
    %96 = vector.load %arg11[%c12, %c0_42] : memref<16x192xf32, #tpu.memory_space<vmem>>, vector<2x192xf32>
    %cst_43 = arith.constant dense<0.000000e+00> : vector<2x96xf32>
    %97 = tpu.matmul %66, %24, %cst_43 {dimension_numbers = #tpu.dot_dimension_numbers<[1], [0], [0], [1], [0, 0, 1, 1], [], []>} : vector<2x32xf32>, vector<32x96xf32>, vector<2x96xf32> -> vector<2x96xf32>
    %98 = vector.broadcast %22 : vector<1x96xf32> to vector<2x96xf32>
    %99 = arith.addf %97, %98 : vector<2x96xf32>
    %cst_44 = arith.constant dense<0.000000e+00> : vector<2x96xf32>
    %100 = tpu.matmul %92, %25, %cst_44 {dimension_numbers = #tpu.dot_dimension_numbers<[1], [0], [0], [1], [0, 0, 1, 1], [], []>} : vector<2x32xf32>, vector<32x96xf32>, vector<2x96xf32> -> vector<2x96xf32>
    %101 = vector.broadcast %23 : vector<1x96xf32> to vector<2x96xf32>
    %102 = arith.addf %100, %101 : vector<2x96xf32>
    %103 = vector.extract_strided_slice %95 {offsets = [0, 0], sizes = [2, 32], strides = [1, 1]} : vector<2x192xf32> to vector<2x32xf32>
    %104 = vector.extract_strided_slice %99 {offsets = [0, 0], sizes = [2, 32], strides = [1, 1]} : vector<2x96xf32> to vector<2x32xf32>
    %105 = arith.addf %103, %104 : vector<2x32xf32>
    %106 = arith.negf %105 : vector<2x32xf32>
    %107 = math.exp %106 : vector<2x32xf32>
    %cst_45 = arith.constant 1.000000e+00 : f32
    %108 = vector.broadcast %cst_45 : f32 to vector<2x32xf32>
    %109 = arith.addf %108, %107 : vector<2x32xf32>
    %110 = arith.divf %108, %109 : vector<2x32xf32>
    %111 = vector.extract_strided_slice %95 {offsets = [0, 32], sizes = [2, 32], strides = [1, 1]} : vector<2x192xf32> to vector<2x32xf32>
    %112 = vector.extract_strided_slice %99 {offsets = [0, 32], sizes = [2, 32], strides = [1, 1]} : vector<2x96xf32> to vector<2x32xf32>
    %113 = arith.addf %111, %112 : vector<2x32xf32>
    %114 = arith.negf %113 : vector<2x32xf32>
    %115 = math.exp %114 : vector<2x32xf32>
    %cst_46 = arith.constant 1.000000e+00 : f32
    %116 = vector.broadcast %cst_46 : f32 to vector<2x32xf32>
    %117 = arith.addf %116, %115 : vector<2x32xf32>
    %118 = arith.divf %116, %117 : vector<2x32xf32>
    %119 = vector.extract_strided_slice %95 {offsets = [0, 64], sizes = [2, 32], strides = [1, 1]} : vector<2x192xf32> to vector<2x32xf32>
    %120 = vector.extract_strided_slice %99 {offsets = [0, 64], sizes = [2, 32], strides = [1, 1]} : vector<2x96xf32> to vector<2x32xf32>
    %121 = arith.mulf %110, %120 : vector<2x32xf32>
    %122 = arith.addf %119, %121 : vector<2x32xf32>
    %123 = math.tanh %122 : vector<2x32xf32>
    %cst_47 = arith.constant 1.000000e+00 : f32
    %124 = vector.broadcast %cst_47 : f32 to vector<2x32xf32>
    %125 = arith.subf %124, %118 : vector<2x32xf32>
    %126 = arith.mulf %125, %123 : vector<2x32xf32>
    %127 = arith.mulf %118, %66 : vector<2x32xf32>
    %128 = arith.addf %126, %127 : vector<2x32xf32>
    %129 = vector.extract_strided_slice %96 {offsets = [0, 96], sizes = [2, 32], strides = [1, 1]} : vector<2x192xf32> to vector<2x32xf32>
    %130 = vector.extract_strided_slice %102 {offsets = [0, 0], sizes = [2, 32], strides = [1, 1]} : vector<2x96xf32> to vector<2x32xf32>
    %131 = arith.addf %129, %130 : vector<2x32xf32>
    %132 = arith.negf %131 : vector<2x32xf32>
    %133 = math.exp %132 : vector<2x32xf32>
    %cst_48 = arith.constant 1.000000e+00 : f32
    %134 = vector.broadcast %cst_48 : f32 to vector<2x32xf32>
    %135 = arith.addf %134, %133 : vector<2x32xf32>
    %136 = arith.divf %134, %135 : vector<2x32xf32>
    %137 = vector.extract_strided_slice %96 {offsets = [0, 128], sizes = [2, 32], strides = [1, 1]} : vector<2x192xf32> to vector<2x32xf32>
    %138 = vector.extract_strided_slice %102 {offsets = [0, 32], sizes = [2, 32], strides = [1, 1]} : vector<2x96xf32> to vector<2x32xf32>
    %139 = arith.addf %137, %138 : vector<2x32xf32>
    %140 = arith.negf %139 : vector<2x32xf32>
    %141 = math.exp %140 : vector<2x32xf32>
    %cst_49 = arith.constant 1.000000e+00 : f32
    %142 = vector.broadcast %cst_49 : f32 to vector<2x32xf32>
    %143 = arith.addf %142, %141 : vector<2x32xf32>
    %144 = arith.divf %142, %143 : vector<2x32xf32>
    %145 = vector.extract_strided_slice %96 {offsets = [0, 160], sizes = [2, 32], strides = [1, 1]} : vector<2x192xf32> to vector<2x32xf32>
    %146 = vector.extract_strided_slice %102 {offsets = [0, 64], sizes = [2, 32], strides = [1, 1]} : vector<2x96xf32> to vector<2x32xf32>
    %147 = arith.mulf %136, %146 : vector<2x32xf32>
    %148 = arith.addf %145, %147 : vector<2x32xf32>
    %149 = math.tanh %148 : vector<2x32xf32>
    %cst_50 = arith.constant 1.000000e+00 : f32
    %150 = vector.broadcast %cst_50 : f32 to vector<2x32xf32>
    %151 = arith.subf %150, %144 : vector<2x32xf32>
    %152 = arith.mulf %151, %149 : vector<2x32xf32>
    %153 = arith.mulf %144, %92 : vector<2x32xf32>
    %154 = arith.addf %152, %153 : vector<2x32xf32>
    %c2_51 = arith.constant 2 : index
    %c0_52 = arith.constant 0 : index
    %155 = vector.load %arg12[%c2_51, %c0_52] : memref<16x32xf32, #tpu.memory_space<vmem>>, vector<2x32xf32>
    tpu.vector_store %arg12[%c2_51, %c0_52], %128 {strides = array<i32>} : memref<16x32xf32, #tpu.memory_space<vmem>>, vector<2x32xf32>,
    %c12_53 = arith.constant 12 : index
    %c0_54 = arith.constant 0 : index
    %156 = vector.load %arg13[%c12_53, %c0_54] : memref<16x32xf32, #tpu.memory_space<vmem>>, vector<2x32xf32>
    tpu.vector_store %arg13[%c12_53, %c0_54], %154 {strides = array<i32>} : memref<16x32xf32, #tpu.memory_space<vmem>>, vector<2x32xf32>,
    %c4 = arith.constant 4 : index
    %c0_55 = arith.constant 0 : index
    %157 = vector.load %arg11[%c4, %c0_55] : memref<16x192xf32, #tpu.memory_space<vmem>>, vector<2x192xf32>
    %c10 = arith.constant 10 : index
    %c0_56 = arith.constant 0 : index
    %158 = vector.load %arg11[%c10, %c0_56] : memref<16x192xf32, #tpu.memory_space<vmem>>, vector<2x192xf32>
    %cst_57 = arith.constant dense<0.000000e+00> : vector<2x96xf32>
    %159 = tpu.matmul %128, %24, %cst_57 {dimension_numbers = #tpu.dot_dimension_numbers<[1], [0], [0], [1], [0, 0, 1, 1], [], []>} : vector<2x32xf32>, vector<32x96xf32>, vector<2x96xf32> -> vector<2x96xf32>
    %160 = vector.broadcast %22 : vector<1x96xf32> to vector<2x96xf32>
    %161 = arith.addf %159, %160 : vector<2x96xf32>
    %cst_58 = arith.constant dense<0.000000e+00> : vector<2x96xf32>
    %162 = tpu.matmul %154, %25, %cst_58 {dimension_numbers = #tpu.dot_dimension_numbers<[1], [0], [0], [1], [0, 0, 1, 1], [], []>} : vector<2x32xf32>, vector<32x96xf32>, vector<2x96xf32> -> vector<2x96xf32>
    %163 = vector.broadcast %23 : vector<1x96xf32> to vector<2x96xf32>
    %164 = arith.addf %162, %163 : vector<2x96xf32>
    %165 = vector.extract_strided_slice %157 {offsets = [0, 0], sizes = [2, 32], strides = [1, 1]} : vector<2x192xf32> to vector<2x32xf32>
    %166 = vector.extract_strided_slice %161 {offsets = [0, 0], sizes = [2, 32], strides = [1, 1]} : vector<2x96xf32> to vector<2x32xf32>
    %167 = arith.addf %165, %166 : vector<2x32xf32>
    %168 = arith.negf %167 : vector<2x32xf32>
    %169 = math.exp %168 : vector<2x32xf32>
    %cst_59 = arith.constant 1.000000e+00 : f32
    %170 = vector.broadcast %cst_59 : f32 to vector<2x32xf32>
    %171 = arith.addf %170, %169 : vector<2x32xf32>
    %172 = arith.divf %170, %171 : vector<2x32xf32>
    %173 = vector.extract_strided_slice %157 {offsets = [0, 32], sizes = [2, 32], strides = [1, 1]} : vector<2x192xf32> to vector<2x32xf32>
    %174 = vector.extract_strided_slice %161 {offsets = [0, 32], sizes = [2, 32], strides = [1, 1]} : vector<2x96xf32> to vector<2x32xf32>
    %175 = arith.addf %173, %174 : vector<2x32xf32>
    %176 = arith.negf %175 : vector<2x32xf32>
    %177 = math.exp %176 : vector<2x32xf32>
    %cst_60 = arith.constant 1.000000e+00 : f32
    %178 = vector.broadcast %cst_60 : f32 to vector<2x32xf32>
    %179 = arith.addf %178, %177 : vector<2x32xf32>
    %180 = arith.divf %178, %179 : vector<2x32xf32>
    %181 = vector.extract_strided_slice %157 {offsets = [0, 64], sizes = [2, 32], strides = [1, 1]} : vector<2x192xf32> to vector<2x32xf32>
    %182 = vector.extract_strided_slice %161 {offsets = [0, 64], sizes = [2, 32], strides = [1, 1]} : vector<2x96xf32> to vector<2x32xf32>
    %183 = arith.mulf %172, %182 : vector<2x32xf32>
    %184 = arith.addf %181, %183 : vector<2x32xf32>
    %185 = math.tanh %184 : vector<2x32xf32>
    %cst_61 = arith.constant 1.000000e+00 : f32
    %186 = vector.broadcast %cst_61 : f32 to vector<2x32xf32>
    %187 = arith.subf %186, %180 : vector<2x32xf32>
    %188 = arith.mulf %187, %185 : vector<2x32xf32>
    %189 = arith.mulf %180, %128 : vector<2x32xf32>
    %190 = arith.addf %188, %189 : vector<2x32xf32>
    %191 = vector.extract_strided_slice %158 {offsets = [0, 96], sizes = [2, 32], strides = [1, 1]} : vector<2x192xf32> to vector<2x32xf32>
    %192 = vector.extract_strided_slice %164 {offsets = [0, 0], sizes = [2, 32], strides = [1, 1]} : vector<2x96xf32> to vector<2x32xf32>
    %193 = arith.addf %191, %192 : vector<2x32xf32>
    %194 = arith.negf %193 : vector<2x32xf32>
    %195 = math.exp %194 : vector<2x32xf32>
    %cst_62 = arith.constant 1.000000e+00 : f32
    %196 = vector.broadcast %cst_62 : f32 to vector<2x32xf32>
    %197 = arith.addf %196, %195 : vector<2x32xf32>
    %198 = arith.divf %196, %197 : vector<2x32xf32>
    %199 = vector.extract_strided_slice %158 {offsets = [0, 128], sizes = [2, 32], strides = [1, 1]} : vector<2x192xf32> to vector<2x32xf32>
    %200 = vector.extract_strided_slice %164 {offsets = [0, 32], sizes = [2, 32], strides = [1, 1]} : vector<2x96xf32> to vector<2x32xf32>
    %201 = arith.addf %199, %200 : vector<2x32xf32>
    %202 = arith.negf %201 : vector<2x32xf32>
    %203 = math.exp %202 : vector<2x32xf32>
    %cst_63 = arith.constant 1.000000e+00 : f32
    %204 = vector.broadcast %cst_63 : f32 to vector<2x32xf32>
    %205 = arith.addf %204, %203 : vector<2x32xf32>
    %206 = arith.divf %204, %205 : vector<2x32xf32>
    %207 = vector.extract_strided_slice %158 {offsets = [0, 160], sizes = [2, 32], strides = [1, 1]} : vector<2x192xf32> to vector<2x32xf32>
    %208 = vector.extract_strided_slice %164 {offsets = [0, 64], sizes = [2, 32], strides = [1, 1]} : vector<2x96xf32> to vector<2x32xf32>
    %209 = arith.mulf %198, %208 : vector<2x32xf32>
    %210 = arith.addf %207, %209 : vector<2x32xf32>
    %211 = math.tanh %210 : vector<2x32xf32>
    %cst_64 = arith.constant 1.000000e+00 : f32
    %212 = vector.broadcast %cst_64 : f32 to vector<2x32xf32>
    %213 = arith.subf %212, %206 : vector<2x32xf32>
    %214 = arith.mulf %213, %211 : vector<2x32xf32>
    %215 = arith.mulf %206, %154 : vector<2x32xf32>
    %216 = arith.addf %214, %215 : vector<2x32xf32>
    %c4_65 = arith.constant 4 : index
    %c0_66 = arith.constant 0 : index
    %217 = vector.load %arg12[%c4_65, %c0_66] : memref<16x32xf32, #tpu.memory_space<vmem>>, vector<2x32xf32>
    tpu.vector_store %arg12[%c4_65, %c0_66], %190 {strides = array<i32>} : memref<16x32xf32, #tpu.memory_space<vmem>>, vector<2x32xf32>,
    %c10_67 = arith.constant 10 : index
    %c0_68 = arith.constant 0 : index
    %218 = vector.load %arg13[%c10_67, %c0_68] : memref<16x32xf32, #tpu.memory_space<vmem>>, vector<2x32xf32>
    tpu.vector_store %arg13[%c10_67, %c0_68], %216 {strides = array<i32>} : memref<16x32xf32, #tpu.memory_space<vmem>>, vector<2x32xf32>,
    %c6 = arith.constant 6 : index
    %c0_69 = arith.constant 0 : index
    %219 = vector.load %arg11[%c6, %c0_69] : memref<16x192xf32, #tpu.memory_space<vmem>>, vector<2x192xf32>
    %c8 = arith.constant 8 : index
    %c0_70 = arith.constant 0 : index
    %220 = vector.load %arg11[%c8, %c0_70] : memref<16x192xf32, #tpu.memory_space<vmem>>, vector<2x192xf32>
    %cst_71 = arith.constant dense<0.000000e+00> : vector<2x96xf32>
    %221 = tpu.matmul %190, %24, %cst_71 {dimension_numbers = #tpu.dot_dimension_numbers<[1], [0], [0], [1], [0, 0, 1, 1], [], []>} : vector<2x32xf32>, vector<32x96xf32>, vector<2x96xf32> -> vector<2x96xf32>
    %222 = vector.broadcast %22 : vector<1x96xf32> to vector<2x96xf32>
    %223 = arith.addf %221, %222 : vector<2x96xf32>
    %cst_72 = arith.constant dense<0.000000e+00> : vector<2x96xf32>
    %224 = tpu.matmul %216, %25, %cst_72 {dimension_numbers = #tpu.dot_dimension_numbers<[1], [0], [0], [1], [0, 0, 1, 1], [], []>} : vector<2x32xf32>, vector<32x96xf32>, vector<2x96xf32> -> vector<2x96xf32>
    %225 = vector.broadcast %23 : vector<1x96xf32> to vector<2x96xf32>
    %226 = arith.addf %224, %225 : vector<2x96xf32>
    %227 = vector.extract_strided_slice %219 {offsets = [0, 0], sizes = [2, 32], strides = [1, 1]} : vector<2x192xf32> to vector<2x32xf32>
    %228 = vector.extract_strided_slice %223 {offsets = [0, 0], sizes = [2, 32], strides = [1, 1]} : vector<2x96xf32> to vector<2x32xf32>
    %229 = arith.addf %227, %228 : vector<2x32xf32>
    %230 = arith.negf %229 : vector<2x32xf32>
    %231 = math.exp %230 : vector<2x32xf32>
    %cst_73 = arith.constant 1.000000e+00 : f32
    %232 = vector.broadcast %cst_73 : f32 to vector<2x32xf32>
    %233 = arith.addf %232, %231 : vector<2x32xf32>
    %234 = arith.divf %232, %233 : vector<2x32xf32>
    %235 = vector.extract_strided_slice %219 {offsets = [0, 32], sizes = [2, 32], strides = [1, 1]} : vector<2x192xf32> to vector<2x32xf32>
    %236 = vector.extract_strided_slice %223 {offsets = [0, 32], sizes = [2, 32], strides = [1, 1]} : vector<2x96xf32> to vector<2x32xf32>
    %237 = arith.addf %235, %236 : vector<2x32xf32>
    %238 = arith.negf %237 : vector<2x32xf32>
    %239 = math.exp %238 : vector<2x32xf32>
    %cst_74 = arith.constant 1.000000e+00 : f32
    %240 = vector.broadcast %cst_74 : f32 to vector<2x32xf32>
    %241 = arith.addf %240, %239 : vector<2x32xf32>
    %242 = arith.divf %240, %241 : vector<2x32xf32>
    %243 = vector.extract_strided_slice %219 {offsets = [0, 64], sizes = [2, 32], strides = [1, 1]} : vector<2x192xf32> to vector<2x32xf32>
    %244 = vector.extract_strided_slice %223 {offsets = [0, 64], sizes = [2, 32], strides = [1, 1]} : vector<2x96xf32> to vector<2x32xf32>
    %245 = arith.mulf %234, %244 : vector<2x32xf32>
    %246 = arith.addf %243, %245 : vector<2x32xf32>
    %247 = math.tanh %246 : vector<2x32xf32>
    %cst_75 = arith.constant 1.000000e+00 : f32
    %248 = vector.broadcast %cst_75 : f32 to vector<2x32xf32>
    %249 = arith.subf %248, %242 : vector<2x32xf32>
    %250 = arith.mulf %249, %247 : vector<2x32xf32>
    %251 = arith.mulf %242, %190 : vector<2x32xf32>
    %252 = arith.addf %250, %251 : vector<2x32xf32>
    %253 = vector.extract_strided_slice %220 {offsets = [0, 96], sizes = [2, 32], strides = [1, 1]} : vector<2x192xf32> to vector<2x32xf32>
    %254 = vector.extract_strided_slice %226 {offsets = [0, 0], sizes = [2, 32], strides = [1, 1]} : vector<2x96xf32> to vector<2x32xf32>
    %255 = arith.addf %253, %254 : vector<2x32xf32>
    %256 = arith.negf %255 : vector<2x32xf32>
    %257 = math.exp %256 : vector<2x32xf32>
    %cst_76 = arith.constant 1.000000e+00 : f32
    %258 = vector.broadcast %cst_76 : f32 to vector<2x32xf32>
    %259 = arith.addf %258, %257 : vector<2x32xf32>
    %260 = arith.divf %258, %259 : vector<2x32xf32>
    %261 = vector.extract_strided_slice %220 {offsets = [0, 128], sizes = [2, 32], strides = [1, 1]} : vector<2x192xf32> to vector<2x32xf32>
    %262 = vector.extract_strided_slice %226 {offsets = [0, 32], sizes = [2, 32], strides = [1, 1]} : vector<2x96xf32> to vector<2x32xf32>
    %263 = arith.addf %261, %262 : vector<2x32xf32>
    %264 = arith.negf %263 : vector<2x32xf32>
    %265 = math.exp %264 : vector<2x32xf32>
    %cst_77 = arith.constant 1.000000e+00 : f32
    %266 = vector.broadcast %cst_77 : f32 to vector<2x32xf32>
    %267 = arith.addf %266, %265 : vector<2x32xf32>
    %268 = arith.divf %266, %267 : vector<2x32xf32>
    %269 = vector.extract_strided_slice %220 {offsets = [0, 160], sizes = [2, 32], strides = [1, 1]} : vector<2x192xf32> to vector<2x32xf32>
    %270 = vector.extract_strided_slice %226 {offsets = [0, 64], sizes = [2, 32], strides = [1, 1]} : vector<2x96xf32> to vector<2x32xf32>
    %271 = arith.mulf %260, %270 : vector<2x32xf32>
    %272 = arith.addf %269, %271 : vector<2x32xf32>
    %273 = math.tanh %272 : vector<2x32xf32>
    %cst_78 = arith.constant 1.000000e+00 : f32
    %274 = vector.broadcast %cst_78 : f32 to vector<2x32xf32>
    %275 = arith.subf %274, %268 : vector<2x32xf32>
    %276 = arith.mulf %275, %273 : vector<2x32xf32>
    %277 = arith.mulf %268, %216 : vector<2x32xf32>
    %278 = arith.addf %276, %277 : vector<2x32xf32>
    %c6_79 = arith.constant 6 : index
    %c0_80 = arith.constant 0 : index
    %279 = vector.load %arg12[%c6_79, %c0_80] : memref<16x32xf32, #tpu.memory_space<vmem>>, vector<2x32xf32>
    tpu.vector_store %arg12[%c6_79, %c0_80], %252 {strides = array<i32>} : memref<16x32xf32, #tpu.memory_space<vmem>>, vector<2x32xf32>,
    %c8_81 = arith.constant 8 : index
    %c0_82 = arith.constant 0 : index
    %280 = vector.load %arg13[%c8_81, %c0_82] : memref<16x32xf32, #tpu.memory_space<vmem>>, vector<2x32xf32>
    tpu.vector_store %arg13[%c8_81, %c0_82], %278 {strides = array<i32>} : memref<16x32xf32, #tpu.memory_space<vmem>>, vector<2x32xf32>,
    %c8_83 = arith.constant 8 : index
    %c0_84 = arith.constant 0 : index
    %281 = vector.load %arg11[%c8_83, %c0_84] : memref<16x192xf32, #tpu.memory_space<vmem>>, vector<2x192xf32>
    %c6_85 = arith.constant 6 : index
    %c0_86 = arith.constant 0 : index
    %282 = vector.load %arg11[%c6_85, %c0_86] : memref<16x192xf32, #tpu.memory_space<vmem>>, vector<2x192xf32>
    %cst_87 = arith.constant dense<0.000000e+00> : vector<2x96xf32>
    %283 = tpu.matmul %252, %24, %cst_87 {dimension_numbers = #tpu.dot_dimension_numbers<[1], [0], [0], [1], [0, 0, 1, 1], [], []>} : vector<2x32xf32>, vector<32x96xf32>, vector<2x96xf32> -> vector<2x96xf32>
    %284 = vector.broadcast %22 : vector<1x96xf32> to vector<2x96xf32>
    %285 = arith.addf %283, %284 : vector<2x96xf32>
    %cst_88 = arith.constant dense<0.000000e+00> : vector<2x96xf32>
    %286 = tpu.matmul %278, %25, %cst_88 {dimension_numbers = #tpu.dot_dimension_numbers<[1], [0], [0], [1], [0, 0, 1, 1], [], []>} : vector<2x32xf32>, vector<32x96xf32>, vector<2x96xf32> -> vector<2x96xf32>
    %287 = vector.broadcast %23 : vector<1x96xf32> to vector<2x96xf32>
    %288 = arith.addf %286, %287 : vector<2x96xf32>
    %289 = vector.extract_strided_slice %281 {offsets = [0, 0], sizes = [2, 32], strides = [1, 1]} : vector<2x192xf32> to vector<2x32xf32>
    %290 = vector.extract_strided_slice %285 {offsets = [0, 0], sizes = [2, 32], strides = [1, 1]} : vector<2x96xf32> to vector<2x32xf32>
    %291 = arith.addf %289, %290 : vector<2x32xf32>
    %292 = arith.negf %291 : vector<2x32xf32>
    %293 = math.exp %292 : vector<2x32xf32>
    %cst_89 = arith.constant 1.000000e+00 : f32
    %294 = vector.broadcast %cst_89 : f32 to vector<2x32xf32>
    %295 = arith.addf %294, %293 : vector<2x32xf32>
    %296 = arith.divf %294, %295 : vector<2x32xf32>
    %297 = vector.extract_strided_slice %281 {offsets = [0, 32], sizes = [2, 32], strides = [1, 1]} : vector<2x192xf32> to vector<2x32xf32>
    %298 = vector.extract_strided_slice %285 {offsets = [0, 32], sizes = [2, 32], strides = [1, 1]} : vector<2x96xf32> to vector<2x32xf32>
    %299 = arith.addf %297, %298 : vector<2x32xf32>
    %300 = arith.negf %299 : vector<2x32xf32>
    %301 = math.exp %300 : vector<2x32xf32>
    %cst_90 = arith.constant 1.000000e+00 : f32
    %302 = vector.broadcast %cst_90 : f32 to vector<2x32xf32>
    %303 = arith.addf %302, %301 : vector<2x32xf32>
    %304 = arith.divf %302, %303 : vector<2x32xf32>
    %305 = vector.extract_strided_slice %281 {offsets = [0, 64], sizes = [2, 32], strides = [1, 1]} : vector<2x192xf32> to vector<2x32xf32>
    %306 = vector.extract_strided_slice %285 {offsets = [0, 64], sizes = [2, 32], strides = [1, 1]} : vector<2x96xf32> to vector<2x32xf32>
    %307 = arith.mulf %296, %306 : vector<2x32xf32>
    %308 = arith.addf %305, %307 : vector<2x32xf32>
    %309 = math.tanh %308 : vector<2x32xf32>
    %cst_91 = arith.constant 1.000000e+00 : f32
    %310 = vector.broadcast %cst_91 : f32 to vector<2x32xf32>
    %311 = arith.subf %310, %304 : vector<2x32xf32>
    %312 = arith.mulf %311, %309 : vector<2x32xf32>
    %313 = arith.mulf %304, %252 : vector<2x32xf32>
    %314 = arith.addf %312, %313 : vector<2x32xf32>
    %315 = vector.extract_strided_slice %282 {offsets = [0, 96], sizes = [2, 32], strides = [1, 1]} : vector<2x192xf32> to vector<2x32xf32>
    %316 = vector.extract_strided_slice %288 {offsets = [0, 0], sizes = [2, 32], strides = [1, 1]} : vector<2x96xf32> to vector<2x32xf32>
    %317 = arith.addf %315, %316 : vector<2x32xf32>
    %318 = arith.negf %317 : vector<2x32xf32>
    %319 = math.exp %318 : vector<2x32xf32>
    %cst_92 = arith.constant 1.000000e+00 : f32
    %320 = vector.broadcast %cst_92 : f32 to vector<2x32xf32>
    %321 = arith.addf %320, %319 : vector<2x32xf32>
    %322 = arith.divf %320, %321 : vector<2x32xf32>
    %323 = vector.extract_strided_slice %282 {offsets = [0, 128], sizes = [2, 32], strides = [1, 1]} : vector<2x192xf32> to vector<2x32xf32>
    %324 = vector.extract_strided_slice %288 {offsets = [0, 32], sizes = [2, 32], strides = [1, 1]} : vector<2x96xf32> to vector<2x32xf32>
    %325 = arith.addf %323, %324 : vector<2x32xf32>
    %326 = arith.negf %325 : vector<2x32xf32>
    %327 = math.exp %326 : vector<2x32xf32>
    %cst_93 = arith.constant 1.000000e+00 : f32
    %328 = vector.broadcast %cst_93 : f32 to vector<2x32xf32>
    %329 = arith.addf %328, %327 : vector<2x32xf32>
    %330 = arith.divf %328, %329 : vector<2x32xf32>
    %331 = vector.extract_strided_slice %282 {offsets = [0, 160], sizes = [2, 32], strides = [1, 1]} : vector<2x192xf32> to vector<2x32xf32>
    %332 = vector.extract_strided_slice %288 {offsets = [0, 64], sizes = [2, 32], strides = [1, 1]} : vector<2x96xf32> to vector<2x32xf32>
    %333 = arith.mulf %322, %332 : vector<2x32xf32>
    %334 = arith.addf %331, %333 : vector<2x32xf32>
    %335 = math.tanh %334 : vector<2x32xf32>
    %cst_94 = arith.constant 1.000000e+00 : f32
    %336 = vector.broadcast %cst_94 : f32 to vector<2x32xf32>
    %337 = arith.subf %336, %330 : vector<2x32xf32>
    %338 = arith.mulf %337, %335 : vector<2x32xf32>
    %339 = arith.mulf %330, %278 : vector<2x32xf32>
    %340 = arith.addf %338, %339 : vector<2x32xf32>
    %c8_95 = arith.constant 8 : index
    %c0_96 = arith.constant 0 : index
    %341 = vector.load %arg12[%c8_95, %c0_96] : memref<16x32xf32, #tpu.memory_space<vmem>>, vector<2x32xf32>
    tpu.vector_store %arg12[%c8_95, %c0_96], %314 {strides = array<i32>} : memref<16x32xf32, #tpu.memory_space<vmem>>, vector<2x32xf32>,
    %c6_97 = arith.constant 6 : index
    %c0_98 = arith.constant 0 : index
    %342 = vector.load %arg13[%c6_97, %c0_98] : memref<16x32xf32, #tpu.memory_space<vmem>>, vector<2x32xf32>
    tpu.vector_store %arg13[%c6_97, %c0_98], %340 {strides = array<i32>} : memref<16x32xf32, #tpu.memory_space<vmem>>, vector<2x32xf32>,
    %c10_99 = arith.constant 10 : index
    %c0_100 = arith.constant 0 : index
    %343 = vector.load %arg11[%c10_99, %c0_100] : memref<16x192xf32, #tpu.memory_space<vmem>>, vector<2x192xf32>
    %c4_101 = arith.constant 4 : index
    %c0_102 = arith.constant 0 : index
    %344 = vector.load %arg11[%c4_101, %c0_102] : memref<16x192xf32, #tpu.memory_space<vmem>>, vector<2x192xf32>
    %cst_103 = arith.constant dense<0.000000e+00> : vector<2x96xf32>
    %345 = tpu.matmul %314, %24, %cst_103 {dimension_numbers = #tpu.dot_dimension_numbers<[1], [0], [0], [1], [0, 0, 1, 1], [], []>} : vector<2x32xf32>, vector<32x96xf32>, vector<2x96xf32> -> vector<2x96xf32>
    %346 = vector.broadcast %22 : vector<1x96xf32> to vector<2x96xf32>
    %347 = arith.addf %345, %346 : vector<2x96xf32>
    %cst_104 = arith.constant dense<0.000000e+00> : vector<2x96xf32>
    %348 = tpu.matmul %340, %25, %cst_104 {dimension_numbers = #tpu.dot_dimension_numbers<[1], [0], [0], [1], [0, 0, 1, 1], [], []>} : vector<2x32xf32>, vector<32x96xf32>, vector<2x96xf32> -> vector<2x96xf32>
    %349 = vector.broadcast %23 : vector<1x96xf32> to vector<2x96xf32>
    %350 = arith.addf %348, %349 : vector<2x96xf32>
    %351 = vector.extract_strided_slice %343 {offsets = [0, 0], sizes = [2, 32], strides = [1, 1]} : vector<2x192xf32> to vector<2x32xf32>
    %352 = vector.extract_strided_slice %347 {offsets = [0, 0], sizes = [2, 32], strides = [1, 1]} : vector<2x96xf32> to vector<2x32xf32>
    %353 = arith.addf %351, %352 : vector<2x32xf32>
    %354 = arith.negf %353 : vector<2x32xf32>
    %355 = math.exp %354 : vector<2x32xf32>
    %cst_105 = arith.constant 1.000000e+00 : f32
    %356 = vector.broadcast %cst_105 : f32 to vector<2x32xf32>
    %357 = arith.addf %356, %355 : vector<2x32xf32>
    %358 = arith.divf %356, %357 : vector<2x32xf32>
    %359 = vector.extract_strided_slice %343 {offsets = [0, 32], sizes = [2, 32], strides = [1, 1]} : vector<2x192xf32> to vector<2x32xf32>
    %360 = vector.extract_strided_slice %347 {offsets = [0, 32], sizes = [2, 32], strides = [1, 1]} : vector<2x96xf32> to vector<2x32xf32>
    %361 = arith.addf %359, %360 : vector<2x32xf32>
    %362 = arith.negf %361 : vector<2x32xf32>
    %363 = math.exp %362 : vector<2x32xf32>
    %cst_106 = arith.constant 1.000000e+00 : f32
    %364 = vector.broadcast %cst_106 : f32 to vector<2x32xf32>
    %365 = arith.addf %364, %363 : vector<2x32xf32>
    %366 = arith.divf %364, %365 : vector<2x32xf32>
    %367 = vector.extract_strided_slice %343 {offsets = [0, 64], sizes = [2, 32], strides = [1, 1]} : vector<2x192xf32> to vector<2x32xf32>
    %368 = vector.extract_strided_slice %347 {offsets = [0, 64], sizes = [2, 32], strides = [1, 1]} : vector<2x96xf32> to vector<2x32xf32>
    %369 = arith.mulf %358, %368 : vector<2x32xf32>
    %370 = arith.addf %367, %369 : vector<2x32xf32>
    %371 = math.tanh %370 : vector<2x32xf32>
    %cst_107 = arith.constant 1.000000e+00 : f32
    %372 = vector.broadcast %cst_107 : f32 to vector<2x32xf32>
    %373 = arith.subf %372, %366 : vector<2x32xf32>
    %374 = arith.mulf %373, %371 : vector<2x32xf32>
    %375 = arith.mulf %366, %314 : vector<2x32xf32>
    %376 = arith.addf %374, %375 : vector<2x32xf32>
    %377 = vector.extract_strided_slice %344 {offsets = [0, 96], sizes = [2, 32], strides = [1, 1]} : vector<2x192xf32> to vector<2x32xf32>
    %378 = vector.extract_strided_slice %350 {offsets = [0, 0], sizes = [2, 32], strides = [1, 1]} : vector<2x96xf32> to vector<2x32xf32>
    %379 = arith.addf %377, %378 : vector<2x32xf32>
    %380 = arith.negf %379 : vector<2x32xf32>
    %381 = math.exp %380 : vector<2x32xf32>
    %cst_108 = arith.constant 1.000000e+00 : f32
    %382 = vector.broadcast %cst_108 : f32 to vector<2x32xf32>
    %383 = arith.addf %382, %381 : vector<2x32xf32>
    %384 = arith.divf %382, %383 : vector<2x32xf32>
    %385 = vector.extract_strided_slice %344 {offsets = [0, 128], sizes = [2, 32], strides = [1, 1]} : vector<2x192xf32> to vector<2x32xf32>
    %386 = vector.extract_strided_slice %350 {offsets = [0, 32], sizes = [2, 32], strides = [1, 1]} : vector<2x96xf32> to vector<2x32xf32>
    %387 = arith.addf %385, %386 : vector<2x32xf32>
    %388 = arith.negf %387 : vector<2x32xf32>
    %389 = math.exp %388 : vector<2x32xf32>
    %cst_109 = arith.constant 1.000000e+00 : f32
    %390 = vector.broadcast %cst_109 : f32 to vector<2x32xf32>
    %391 = arith.addf %390, %389 : vector<2x32xf32>
    %392 = arith.divf %390, %391 : vector<2x32xf32>
    %393 = vector.extract_strided_slice %344 {offsets = [0, 160], sizes = [2, 32], strides = [1, 1]} : vector<2x192xf32> to vector<2x32xf32>
    %394 = vector.extract_strided_slice %350 {offsets = [0, 64], sizes = [2, 32], strides = [1, 1]} : vector<2x96xf32> to vector<2x32xf32>
    %395 = arith.mulf %384, %394 : vector<2x32xf32>
    %396 = arith.addf %393, %395 : vector<2x32xf32>
    %397 = math.tanh %396 : vector<2x32xf32>
    %cst_110 = arith.constant 1.000000e+00 : f32
    %398 = vector.broadcast %cst_110 : f32 to vector<2x32xf32>
    %399 = arith.subf %398, %392 : vector<2x32xf32>
    %400 = arith.mulf %399, %397 : vector<2x32xf32>
    %401 = arith.mulf %392, %340 : vector<2x32xf32>
    %402 = arith.addf %400, %401 : vector<2x32xf32>
    %c10_111 = arith.constant 10 : index
    %c0_112 = arith.constant 0 : index
    %403 = vector.load %arg12[%c10_111, %c0_112] : memref<16x32xf32, #tpu.memory_space<vmem>>, vector<2x32xf32>
    tpu.vector_store %arg12[%c10_111, %c0_112], %376 {strides = array<i32>} : memref<16x32xf32, #tpu.memory_space<vmem>>, vector<2x32xf32>,
    %c4_113 = arith.constant 4 : index
    %c0_114 = arith.constant 0 : index
    %404 = vector.load %arg13[%c4_113, %c0_114] : memref<16x32xf32, #tpu.memory_space<vmem>>, vector<2x32xf32>
    tpu.vector_store %arg13[%c4_113, %c0_114], %402 {strides = array<i32>} : memref<16x32xf32, #tpu.memory_space<vmem>>, vector<2x32xf32>,
    %c12_115 = arith.constant 12 : index
    %c0_116 = arith.constant 0 : index
    %405 = vector.load %arg11[%c12_115, %c0_116] : memref<16x192xf32, #tpu.memory_space<vmem>>, vector<2x192xf32>
    %c2_117 = arith.constant 2 : index
    %c0_118 = arith.constant 0 : index
    %406 = vector.load %arg11[%c2_117, %c0_118] : memref<16x192xf32, #tpu.memory_space<vmem>>, vector<2x192xf32>
    %cst_119 = arith.constant dense<0.000000e+00> : vector<2x96xf32>
    %407 = tpu.matmul %376, %24, %cst_119 {dimension_numbers = #tpu.dot_dimension_numbers<[1], [0], [0], [1], [0, 0, 1, 1], [], []>} : vector<2x32xf32>, vector<32x96xf32>, vector<2x96xf32> -> vector<2x96xf32>
    %408 = vector.broadcast %22 : vector<1x96xf32> to vector<2x96xf32>
    %409 = arith.addf %407, %408 : vector<2x96xf32>
    %cst_120 = arith.constant dense<0.000000e+00> : vector<2x96xf32>
    %410 = tpu.matmul %402, %25, %cst_120 {dimension_numbers = #tpu.dot_dimension_numbers<[1], [0], [0], [1], [0, 0, 1, 1], [], []>} : vector<2x32xf32>, vector<32x96xf32>, vector<2x96xf32> -> vector<2x96xf32>
    %411 = vector.broadcast %23 : vector<1x96xf32> to vector<2x96xf32>
    %412 = arith.addf %410, %411 : vector<2x96xf32>
    %413 = vector.extract_strided_slice %405 {offsets = [0, 0], sizes = [2, 32], strides = [1, 1]} : vector<2x192xf32> to vector<2x32xf32>
    %414 = vector.extract_strided_slice %409 {offsets = [0, 0], sizes = [2, 32], strides = [1, 1]} : vector<2x96xf32> to vector<2x32xf32>
    %415 = arith.addf %413, %414 : vector<2x32xf32>
    %416 = arith.negf %415 : vector<2x32xf32>
    %417 = math.exp %416 : vector<2x32xf32>
    %cst_121 = arith.constant 1.000000e+00 : f32
    %418 = vector.broadcast %cst_121 : f32 to vector<2x32xf32>
    %419 = arith.addf %418, %417 : vector<2x32xf32>
    %420 = arith.divf %418, %419 : vector<2x32xf32>
    %421 = vector.extract_strided_slice %405 {offsets = [0, 32], sizes = [2, 32], strides = [1, 1]} : vector<2x192xf32> to vector<2x32xf32>
    %422 = vector.extract_strided_slice %409 {offsets = [0, 32], sizes = [2, 32], strides = [1, 1]} : vector<2x96xf32> to vector<2x32xf32>
    %423 = arith.addf %421, %422 : vector<2x32xf32>
    %424 = arith.negf %423 : vector<2x32xf32>
    %425 = math.exp %424 : vector<2x32xf32>
    %cst_122 = arith.constant 1.000000e+00 : f32
    %426 = vector.broadcast %cst_122 : f32 to vector<2x32xf32>
    %427 = arith.addf %426, %425 : vector<2x32xf32>
    %428 = arith.divf %426, %427 : vector<2x32xf32>
    %429 = vector.extract_strided_slice %405 {offsets = [0, 64], sizes = [2, 32], strides = [1, 1]} : vector<2x192xf32> to vector<2x32xf32>
    %430 = vector.extract_strided_slice %409 {offsets = [0, 64], sizes = [2, 32], strides = [1, 1]} : vector<2x96xf32> to vector<2x32xf32>
    %431 = arith.mulf %420, %430 : vector<2x32xf32>
    %432 = arith.addf %429, %431 : vector<2x32xf32>
    %433 = math.tanh %432 : vector<2x32xf32>
    %cst_123 = arith.constant 1.000000e+00 : f32
    %434 = vector.broadcast %cst_123 : f32 to vector<2x32xf32>
    %435 = arith.subf %434, %428 : vector<2x32xf32>
    %436 = arith.mulf %435, %433 : vector<2x32xf32>
    %437 = arith.mulf %428, %376 : vector<2x32xf32>
    %438 = arith.addf %436, %437 : vector<2x32xf32>
    %439 = vector.extract_strided_slice %406 {offsets = [0, 96], sizes = [2, 32], strides = [1, 1]} : vector<2x192xf32> to vector<2x32xf32>
    %440 = vector.extract_strided_slice %412 {offsets = [0, 0], sizes = [2, 32], strides = [1, 1]} : vector<2x96xf32> to vector<2x32xf32>
    %441 = arith.addf %439, %440 : vector<2x32xf32>
    %442 = arith.negf %441 : vector<2x32xf32>
    %443 = math.exp %442 : vector<2x32xf32>
    %cst_124 = arith.constant 1.000000e+00 : f32
    %444 = vector.broadcast %cst_124 : f32 to vector<2x32xf32>
    %445 = arith.addf %444, %443 : vector<2x32xf32>
    %446 = arith.divf %444, %445 : vector<2x32xf32>
    %447 = vector.extract_strided_slice %406 {offsets = [0, 128], sizes = [2, 32], strides = [1, 1]} : vector<2x192xf32> to vector<2x32xf32>
    %448 = vector.extract_strided_slice %412 {offsets = [0, 32], sizes = [2, 32], strides = [1, 1]} : vector<2x96xf32> to vector<2x32xf32>
    %449 = arith.addf %447, %448 : vector<2x32xf32>
    %450 = arith.negf %449 : vector<2x32xf32>
    %451 = math.exp %450 : vector<2x32xf32>
    %cst_125 = arith.constant 1.000000e+00 : f32
    %452 = vector.broadcast %cst_125 : f32 to vector<2x32xf32>
    %453 = arith.addf %452, %451 : vector<2x32xf32>
    %454 = arith.divf %452, %453 : vector<2x32xf32>
    %455 = vector.extract_strided_slice %406 {offsets = [0, 160], sizes = [2, 32], strides = [1, 1]} : vector<2x192xf32> to vector<2x32xf32>
    %456 = vector.extract_strided_slice %412 {offsets = [0, 64], sizes = [2, 32], strides = [1, 1]} : vector<2x96xf32> to vector<2x32xf32>
    %457 = arith.mulf %446, %456 : vector<2x32xf32>
    %458 = arith.addf %455, %457 : vector<2x32xf32>
    %459 = math.tanh %458 : vector<2x32xf32>
    %cst_126 = arith.constant 1.000000e+00 : f32
    %460 = vector.broadcast %cst_126 : f32 to vector<2x32xf32>
    %461 = arith.subf %460, %454 : vector<2x32xf32>
    %462 = arith.mulf %461, %459 : vector<2x32xf32>
    %463 = arith.mulf %454, %402 : vector<2x32xf32>
    %464 = arith.addf %462, %463 : vector<2x32xf32>
    %c12_127 = arith.constant 12 : index
    %c0_128 = arith.constant 0 : index
    %465 = vector.load %arg12[%c12_127, %c0_128] : memref<16x32xf32, #tpu.memory_space<vmem>>, vector<2x32xf32>
    tpu.vector_store %arg12[%c12_127, %c0_128], %438 {strides = array<i32>} : memref<16x32xf32, #tpu.memory_space<vmem>>, vector<2x32xf32>,
    %c2_129 = arith.constant 2 : index
    %c0_130 = arith.constant 0 : index
    %466 = vector.load %arg13[%c2_129, %c0_130] : memref<16x32xf32, #tpu.memory_space<vmem>>, vector<2x32xf32>
    tpu.vector_store %arg13[%c2_129, %c0_130], %464 {strides = array<i32>} : memref<16x32xf32, #tpu.memory_space<vmem>>, vector<2x32xf32>,
    %c14_131 = arith.constant 14 : index
    %c0_132 = arith.constant 0 : index
    %467 = vector.load %arg11[%c14_131, %c0_132] : memref<16x192xf32, #tpu.memory_space<vmem>>, vector<2x192xf32>
    %c0_133 = arith.constant 0 : index
    %c0_134 = arith.constant 0 : index
    %468 = vector.load %arg11[%c0_133, %c0_134] : memref<16x192xf32, #tpu.memory_space<vmem>>, vector<2x192xf32>
    %cst_135 = arith.constant dense<0.000000e+00> : vector<2x96xf32>
    %469 = tpu.matmul %438, %24, %cst_135 {dimension_numbers = #tpu.dot_dimension_numbers<[1], [0], [0], [1], [0, 0, 1, 1], [], []>} : vector<2x32xf32>, vector<32x96xf32>, vector<2x96xf32> -> vector<2x96xf32>
    %470 = vector.broadcast %22 : vector<1x96xf32> to vector<2x96xf32>
    %471 = arith.addf %469, %470 : vector<2x96xf32>
    %cst_136 = arith.constant dense<0.000000e+00> : vector<2x96xf32>
    %472 = tpu.matmul %464, %25, %cst_136 {dimension_numbers = #tpu.dot_dimension_numbers<[1], [0], [0], [1], [0, 0, 1, 1], [], []>} : vector<2x32xf32>, vector<32x96xf32>, vector<2x96xf32> -> vector<2x96xf32>
    %473 = vector.broadcast %23 : vector<1x96xf32> to vector<2x96xf32>
    %474 = arith.addf %472, %473 : vector<2x96xf32>
    %475 = vector.extract_strided_slice %467 {offsets = [0, 0], sizes = [2, 32], strides = [1, 1]} : vector<2x192xf32> to vector<2x32xf32>
    %476 = vector.extract_strided_slice %471 {offsets = [0, 0], sizes = [2, 32], strides = [1, 1]} : vector<2x96xf32> to vector<2x32xf32>
    %477 = arith.addf %475, %476 : vector<2x32xf32>
    %478 = arith.negf %477 : vector<2x32xf32>
    %479 = math.exp %478 : vector<2x32xf32>
    %cst_137 = arith.constant 1.000000e+00 : f32
    %480 = vector.broadcast %cst_137 : f32 to vector<2x32xf32>
    %481 = arith.addf %480, %479 : vector<2x32xf32>
    %482 = arith.divf %480, %481 : vector<2x32xf32>
    %483 = vector.extract_strided_slice %467 {offsets = [0, 32], sizes = [2, 32], strides = [1, 1]} : vector<2x192xf32> to vector<2x32xf32>
    %484 = vector.extract_strided_slice %471 {offsets = [0, 32], sizes = [2, 32], strides = [1, 1]} : vector<2x96xf32> to vector<2x32xf32>
    %485 = arith.addf %483, %484 : vector<2x32xf32>
    %486 = arith.negf %485 : vector<2x32xf32>
    %487 = math.exp %486 : vector<2x32xf32>
    %cst_138 = arith.constant 1.000000e+00 : f32
    %488 = vector.broadcast %cst_138 : f32 to vector<2x32xf32>
    %489 = arith.addf %488, %487 : vector<2x32xf32>
    %490 = arith.divf %488, %489 : vector<2x32xf32>
    %491 = vector.extract_strided_slice %467 {offsets = [0, 64], sizes = [2, 32], strides = [1, 1]} : vector<2x192xf32> to vector<2x32xf32>
    %492 = vector.extract_strided_slice %471 {offsets = [0, 64], sizes = [2, 32], strides = [1, 1]} : vector<2x96xf32> to vector<2x32xf32>
    %493 = arith.mulf %482, %492 : vector<2x32xf32>
    %494 = arith.addf %491, %493 : vector<2x32xf32>
    %495 = math.tanh %494 : vector<2x32xf32>
    %cst_139 = arith.constant 1.000000e+00 : f32
    %496 = vector.broadcast %cst_139 : f32 to vector<2x32xf32>
    %497 = arith.subf %496, %490 : vector<2x32xf32>
    %498 = arith.mulf %497, %495 : vector<2x32xf32>
    %499 = arith.mulf %490, %438 : vector<2x32xf32>
    %500 = arith.addf %498, %499 : vector<2x32xf32>
    %501 = vector.extract_strided_slice %468 {offsets = [0, 96], sizes = [2, 32], strides = [1, 1]} : vector<2x192xf32> to vector<2x32xf32>
    %502 = vector.extract_strided_slice %474 {offsets = [0, 0], sizes = [2, 32], strides = [1, 1]} : vector<2x96xf32> to vector<2x32xf32>
    %503 = arith.addf %501, %502 : vector<2x32xf32>
    %504 = arith.negf %503 : vector<2x32xf32>
    %505 = math.exp %504 : vector<2x32xf32>
    %cst_140 = arith.constant 1.000000e+00 : f32
    %506 = vector.broadcast %cst_140 : f32 to vector<2x32xf32>
    %507 = arith.addf %506, %505 : vector<2x32xf32>
    %508 = arith.divf %506, %507 : vector<2x32xf32>
    %509 = vector.extract_strided_slice %468 {offsets = [0, 128], sizes = [2, 32], strides = [1, 1]} : vector<2x192xf32> to vector<2x32xf32>
    %510 = vector.extract_strided_slice %474 {offsets = [0, 32], sizes = [2, 32], strides = [1, 1]} : vector<2x96xf32> to vector<2x32xf32>
    %511 = arith.addf %509, %510 : vector<2x32xf32>
    %512 = arith.negf %511 : vector<2x32xf32>
    %513 = math.exp %512 : vector<2x32xf32>
    %cst_141 = arith.constant 1.000000e+00 : f32
    %514 = vector.broadcast %cst_141 : f32 to vector<2x32xf32>
    %515 = arith.addf %514, %513 : vector<2x32xf32>
    %516 = arith.divf %514, %515 : vector<2x32xf32>
    %517 = vector.extract_strided_slice %468 {offsets = [0, 160], sizes = [2, 32], strides = [1, 1]} : vector<2x192xf32> to vector<2x32xf32>
    %518 = vector.extract_strided_slice %474 {offsets = [0, 64], sizes = [2, 32], strides = [1, 1]} : vector<2x96xf32> to vector<2x32xf32>
    %519 = arith.mulf %508, %518 : vector<2x32xf32>
    %520 = arith.addf %517, %519 : vector<2x32xf32>
    %521 = math.tanh %520 : vector<2x32xf32>
    %cst_142 = arith.constant 1.000000e+00 : f32
    %522 = vector.broadcast %cst_142 : f32 to vector<2x32xf32>
    %523 = arith.subf %522, %516 : vector<2x32xf32>
    %524 = arith.mulf %523, %521 : vector<2x32xf32>
    %525 = arith.mulf %516, %464 : vector<2x32xf32>
    %526 = arith.addf %524, %525 : vector<2x32xf32>
    %c14_143 = arith.constant 14 : index
    %c0_144 = arith.constant 0 : index
    %527 = vector.load %arg12[%c14_143, %c0_144] : memref<16x32xf32, #tpu.memory_space<vmem>>, vector<2x32xf32>
    tpu.vector_store %arg12[%c14_143, %c0_144], %500 {strides = array<i32>} : memref<16x32xf32, #tpu.memory_space<vmem>>, vector<2x32xf32>,
    %c0_145 = arith.constant 0 : index
    %c0_146 = arith.constant 0 : index
    %528 = vector.load %arg13[%c0_145, %c0_146] : memref<16x32xf32, #tpu.memory_space<vmem>>, vector<2x32xf32>
    tpu.vector_store %arg13[%c0_145, %c0_146], %526 {strides = array<i32>} : memref<16x32xf32, #tpu.memory_space<vmem>>, vector<2x32xf32>,
    %c0_147 = arith.constant 0 : index
    %c0_148 = arith.constant 0 : index
    %529 = vector.load %arg10[%c0_147, %c0_148] : memref<16x32xf32, #tpu.memory_space<vmem>>, vector<2x32xf32>
    tpu.vector_store %arg10[%c0_147, %c0_148], %500 {strides = array<i32>} : memref<16x32xf32, #tpu.memory_space<vmem>>, vector<2x32xf32>,
    %c2_149 = arith.constant 2 : index
    %c0_150 = arith.constant 0 : index
    %530 = vector.load %arg10[%c2_149, %c0_150] : memref<16x32xf32, #tpu.memory_space<vmem>>, vector<2x32xf32>
    tpu.vector_store %arg10[%c2_149, %c0_150], %526 {strides = array<i32>} : memref<16x32xf32, #tpu.memory_space<vmem>>, vector<2x32xf32>,
    %c1_151 = arith.constant 1 : index
    %c0_152 = arith.constant 0 : index
    %531 = vector.load %arg6[%c1_151, %c0_152] : memref<4x192xf32, #tpu.memory_space<vmem>>, vector<1x192xf32>
    %c2_153 = arith.constant 2 : index
    %c0_154 = arith.constant 0 : index
    %532 = vector.load %arg8[%c2_153, %c0_154] : memref<8x96xf32, #tpu.memory_space<vmem>>, vector<1x96xf32>
    %c3 = arith.constant 3 : index
    %c0_155 = arith.constant 0 : index
    %533 = vector.load %arg8[%c3, %c0_155] : memref<8x96xf32, #tpu.memory_space<vmem>>, vector<1x96xf32>
    %c64 = arith.constant 64 : index
    %c0_156 = arith.constant 0 : index
    %534 = vector.load %arg7[%c64, %c0_156] : memref<256x96xf32, #tpu.memory_space<vmem>>, vector<32x96xf32>
    %c96 = arith.constant 96 : index
    %c0_157 = arith.constant 0 : index
    %535 = vector.load %arg7[%c96, %c0_157] : memref<256x96xf32, #tpu.memory_space<vmem>>, vector<32x96xf32>
    %c0_158 = arith.constant 0 : index
    %c0_159 = arith.constant 0 : index
    %536 = vector.load %arg5[%c0_158, %c0_159] : memref<192x192xf32, #tpu.memory_space<vmem>>, vector<64x192xf32>
    %c0_160 = arith.constant 0 : index
    %c0_161 = arith.constant 0 : index
    %537 = vector.load %arg12[%c0_160, %c0_161] : memref<16x32xf32, #tpu.memory_space<vmem>>, vector<16x32xf32>
    %538 = vector.extract_strided_slice %536 {offsets = [0, 0], sizes = [32, 192], strides = [1, 1]} : vector<64x192xf32> to vector<32x192xf32>
    %cst_162 = arith.constant dense<0.000000e+00> : vector<16x192xf32>
    %539 = tpu.matmul %537, %538, %cst_162 {dimension_numbers = #tpu.dot_dimension_numbers<[1], [0], [0], [1], [0, 0, 1, 1], [], []>} : vector<16x32xf32>, vector<32x192xf32>, vector<16x192xf32> -> vector<16x192xf32>
    %c0_163 = arith.constant 0 : index
    %c0_164 = arith.constant 0 : index
    %540 = vector.load %arg13[%c0_163, %c0_164] : memref<16x32xf32, #tpu.memory_space<vmem>>, vector<16x32xf32>
    %541 = vector.extract_strided_slice %536 {offsets = [32, 0], sizes = [32, 192], strides = [1, 1]} : vector<64x192xf32> to vector<32x192xf32>
    %cst_165 = arith.constant dense<0.000000e+00> : vector<16x192xf32>
    %542 = tpu.matmul %540, %541, %cst_165 {dimension_numbers = #tpu.dot_dimension_numbers<[1], [0], [0], [1], [0, 0, 1, 1], [], []>} : vector<16x32xf32>, vector<32x192xf32>, vector<16x192xf32> -> vector<16x192xf32>
    %543 = arith.addf %539, %542 : vector<16x192xf32>
    %544 = vector.broadcast %531 : vector<1x192xf32> to vector<16x192xf32>
    %545 = arith.addf %543, %544 : vector<16x192xf32>
    %c0_166 = arith.constant 0 : index
    %c0_167 = arith.constant 0 : index
    %546 = vector.load %arg11[%c0_166, %c0_167] : memref<16x192xf32, #tpu.memory_space<vmem>>, vector<16x192xf32>
    tpu.vector_store %arg11[%c0_166, %c0_167], %545 {strides = array<i32>} : memref<16x192xf32, #tpu.memory_space<vmem>>, vector<16x192xf32>,
    %cst_168 = arith.constant 0.000000e+00 : f32
    %547 = vector.broadcast %cst_168 : f32 to vector<2x32xf32>
    %cst_169 = arith.constant 0.000000e+00 : f32
    %548 = vector.broadcast %cst_169 : f32 to vector<2x32xf32>
    %c0_170 = arith.constant 0 : index
    %c0_171 = arith.constant 0 : index
    %549 = vector.load %arg11[%c0_170, %c0_171] : memref<16x192xf32, #tpu.memory_space<vmem>>, vector<2x192xf32>
    %c14_172 = arith.constant 14 : index
    %c0_173 = arith.constant 0 : index
    %550 = vector.load %arg11[%c14_172, %c0_173] : memref<16x192xf32, #tpu.memory_space<vmem>>, vector<2x192xf32>
    %cst_174 = arith.constant dense<0.000000e+00> : vector<2x96xf32>
    %551 = tpu.matmul %547, %534, %cst_174 {dimension_numbers = #tpu.dot_dimension_numbers<[1], [0], [0], [1], [0, 0, 1, 1], [], []>} : vector<2x32xf32>, vector<32x96xf32>, vector<2x96xf32> -> vector<2x96xf32>
    %552 = vector.broadcast %532 : vector<1x96xf32> to vector<2x96xf32>
    %553 = arith.addf %551, %552 : vector<2x96xf32>
    %cst_175 = arith.constant dense<0.000000e+00> : vector<2x96xf32>
    %554 = tpu.matmul %548, %535, %cst_175 {dimension_numbers = #tpu.dot_dimension_numbers<[1], [0], [0], [1], [0, 0, 1, 1], [], []>} : vector<2x32xf32>, vector<32x96xf32>, vector<2x96xf32> -> vector<2x96xf32>
    %555 = vector.broadcast %533 : vector<1x96xf32> to vector<2x96xf32>
    %556 = arith.addf %554, %555 : vector<2x96xf32>
    %557 = vector.extract_strided_slice %549 {offsets = [0, 0], sizes = [2, 32], strides = [1, 1]} : vector<2x192xf32> to vector<2x32xf32>
    %558 = vector.extract_strided_slice %553 {offsets = [0, 0], sizes = [2, 32], strides = [1, 1]} : vector<2x96xf32> to vector<2x32xf32>
    %559 = arith.addf %557, %558 : vector<2x32xf32>
    %560 = arith.negf %559 : vector<2x32xf32>
    %561 = math.exp %560 : vector<2x32xf32>
    %cst_176 = arith.constant 1.000000e+00 : f32
    %562 = vector.broadcast %cst_176 : f32 to vector<2x32xf32>
    %563 = arith.addf %562, %561 : vector<2x32xf32>
    %564 = arith.divf %562, %563 : vector<2x32xf32>
    %565 = vector.extract_strided_slice %549 {offsets = [0, 32], sizes = [2, 32], strides = [1, 1]} : vector<2x192xf32> to vector<2x32xf32>
    %566 = vector.extract_strided_slice %553 {offsets = [0, 32], sizes = [2, 32], strides = [1, 1]} : vector<2x96xf32> to vector<2x32xf32>
    %567 = arith.addf %565, %566 : vector<2x32xf32>
    %568 = arith.negf %567 : vector<2x32xf32>
    %569 = math.exp %568 : vector<2x32xf32>
    %cst_177 = arith.constant 1.000000e+00 : f32
    %570 = vector.broadcast %cst_177 : f32 to vector<2x32xf32>
    %571 = arith.addf %570, %569 : vector<2x32xf32>
    %572 = arith.divf %570, %571 : vector<2x32xf32>
    %573 = vector.extract_strided_slice %549 {offsets = [0, 64], sizes = [2, 32], strides = [1, 1]} : vector<2x192xf32> to vector<2x32xf32>
    %574 = vector.extract_strided_slice %553 {offsets = [0, 64], sizes = [2, 32], strides = [1, 1]} : vector<2x96xf32> to vector<2x32xf32>
    %575 = arith.mulf %564, %574 : vector<2x32xf32>
    %576 = arith.addf %573, %575 : vector<2x32xf32>
    %577 = math.tanh %576 : vector<2x32xf32>
    %cst_178 = arith.constant 1.000000e+00 : f32
    %578 = vector.broadcast %cst_178 : f32 to vector<2x32xf32>
    %579 = arith.subf %578, %572 : vector<2x32xf32>
    %580 = arith.mulf %579, %577 : vector<2x32xf32>
    %581 = arith.mulf %572, %547 : vector<2x32xf32>
    %582 = arith.addf %580, %581 : vector<2x32xf32>
    %583 = vector.extract_strided_slice %550 {offsets = [0, 96], sizes = [2, 32], strides = [1, 1]} : vector<2x192xf32> to vector<2x32xf32>
    %584 = vector.extract_strided_slice %556 {offsets = [0, 0], sizes = [2, 32], strides = [1, 1]} : vector<2x96xf32> to vector<2x32xf32>
    %585 = arith.addf %583, %584 : vector<2x32xf32>
    %586 = arith.negf %585 : vector<2x32xf32>
    %587 = math.exp %586 : vector<2x32xf32>
    %cst_179 = arith.constant 1.000000e+00 : f32
    %588 = vector.broadcast %cst_179 : f32 to vector<2x32xf32>
    %589 = arith.addf %588, %587 : vector<2x32xf32>
    %590 = arith.divf %588, %589 : vector<2x32xf32>
    %591 = vector.extract_strided_slice %550 {offsets = [0, 128], sizes = [2, 32], strides = [1, 1]} : vector<2x192xf32> to vector<2x32xf32>
    %592 = vector.extract_strided_slice %556 {offsets = [0, 32], sizes = [2, 32], strides = [1, 1]} : vector<2x96xf32> to vector<2x32xf32>
    %593 = arith.addf %591, %592 : vector<2x32xf32>
    %594 = arith.negf %593 : vector<2x32xf32>
    %595 = math.exp %594 : vector<2x32xf32>
    %cst_180 = arith.constant 1.000000e+00 : f32
    %596 = vector.broadcast %cst_180 : f32 to vector<2x32xf32>
    %597 = arith.addf %596, %595 : vector<2x32xf32>
    %598 = arith.divf %596, %597 : vector<2x32xf32>
    %599 = vector.extract_strided_slice %550 {offsets = [0, 160], sizes = [2, 32], strides = [1, 1]} : vector<2x192xf32> to vector<2x32xf32>
    %600 = vector.extract_strided_slice %556 {offsets = [0, 64], sizes = [2, 32], strides = [1, 1]} : vector<2x96xf32> to vector<2x32xf32>
    %601 = arith.mulf %590, %600 : vector<2x32xf32>
    %602 = arith.addf %599, %601 : vector<2x32xf32>
    %603 = math.tanh %602 : vector<2x32xf32>
    %cst_181 = arith.constant 1.000000e+00 : f32
    %604 = vector.broadcast %cst_181 : f32 to vector<2x32xf32>
    %605 = arith.subf %604, %598 : vector<2x32xf32>
    %606 = arith.mulf %605, %603 : vector<2x32xf32>
    %607 = arith.mulf %598, %548 : vector<2x32xf32>
    %608 = arith.addf %606, %607 : vector<2x32xf32>
    %c0_182 = arith.constant 0 : index
    %c0_183 = arith.constant 0 : index
    %609 = vector.load %arg12[%c0_182, %c0_183] : memref<16x32xf32, #tpu.memory_space<vmem>>, vector<2x32xf32>
    tpu.vector_store %arg12[%c0_182, %c0_183], %582 {strides = array<i32>} : memref<16x32xf32, #tpu.memory_space<vmem>>, vector<2x32xf32>,
    %c14_184 = arith.constant 14 : index
    %c0_185 = arith.constant 0 : index
    %610 = vector.load %arg13[%c14_184, %c0_185] : memref<16x32xf32, #tpu.memory_space<vmem>>, vector<2x32xf32>
    tpu.vector_store %arg13[%c14_184, %c0_185], %608 {strides = array<i32>} : memref<16x32xf32, #tpu.memory_space<vmem>>, vector<2x32xf32>,
    %c2_186 = arith.constant 2 : index
    %c0_187 = arith.constant 0 : index
    %611 = vector.load %arg11[%c2_186, %c0_187] : memref<16x192xf32, #tpu.memory_space<vmem>>, vector<2x192xf32>
    %c12_188 = arith.constant 12 : index
    %c0_189 = arith.constant 0 : index
    %612 = vector.load %arg11[%c12_188, %c0_189] : memref<16x192xf32, #tpu.memory_space<vmem>>, vector<2x192xf32>
    %cst_190 = arith.constant dense<0.000000e+00> : vector<2x96xf32>
    %613 = tpu.matmul %582, %534, %cst_190 {dimension_numbers = #tpu.dot_dimension_numbers<[1], [0], [0], [1], [0, 0, 1, 1], [], []>} : vector<2x32xf32>, vector<32x96xf32>, vector<2x96xf32> -> vector<2x96xf32>
    %614 = vector.broadcast %532 : vector<1x96xf32> to vector<2x96xf32>
    %615 = arith.addf %613, %614 : vector<2x96xf32>
    %cst_191 = arith.constant dense<0.000000e+00> : vector<2x96xf32>
    %616 = tpu.matmul %608, %535, %cst_191 {dimension_numbers = #tpu.dot_dimension_numbers<[1], [0], [0], [1], [0, 0, 1, 1], [], []>} : vector<2x32xf32>, vector<32x96xf32>, vector<2x96xf32> -> vector<2x96xf32>
    %617 = vector.broadcast %533 : vector<1x96xf32> to vector<2x96xf32>
    %618 = arith.addf %616, %617 : vector<2x96xf32>
    %619 = vector.extract_strided_slice %611 {offsets = [0, 0], sizes = [2, 32], strides = [1, 1]} : vector<2x192xf32> to vector<2x32xf32>
    %620 = vector.extract_strided_slice %615 {offsets = [0, 0], sizes = [2, 32], strides = [1, 1]} : vector<2x96xf32> to vector<2x32xf32>
    %621 = arith.addf %619, %620 : vector<2x32xf32>
    %622 = arith.negf %621 : vector<2x32xf32>
    %623 = math.exp %622 : vector<2x32xf32>
    %cst_192 = arith.constant 1.000000e+00 : f32
    %624 = vector.broadcast %cst_192 : f32 to vector<2x32xf32>
    %625 = arith.addf %624, %623 : vector<2x32xf32>
    %626 = arith.divf %624, %625 : vector<2x32xf32>
    %627 = vector.extract_strided_slice %611 {offsets = [0, 32], sizes = [2, 32], strides = [1, 1]} : vector<2x192xf32> to vector<2x32xf32>
    %628 = vector.extract_strided_slice %615 {offsets = [0, 32], sizes = [2, 32], strides = [1, 1]} : vector<2x96xf32> to vector<2x32xf32>
    %629 = arith.addf %627, %628 : vector<2x32xf32>
    %630 = arith.negf %629 : vector<2x32xf32>
    %631 = math.exp %630 : vector<2x32xf32>
    %cst_193 = arith.constant 1.000000e+00 : f32
    %632 = vector.broadcast %cst_193 : f32 to vector<2x32xf32>
    %633 = arith.addf %632, %631 : vector<2x32xf32>
    %634 = arith.divf %632, %633 : vector<2x32xf32>
    %635 = vector.extract_strided_slice %611 {offsets = [0, 64], sizes = [2, 32], strides = [1, 1]} : vector<2x192xf32> to vector<2x32xf32>
    %636 = vector.extract_strided_slice %615 {offsets = [0, 64], sizes = [2, 32], strides = [1, 1]} : vector<2x96xf32> to vector<2x32xf32>
    %637 = arith.mulf %626, %636 : vector<2x32xf32>
    %638 = arith.addf %635, %637 : vector<2x32xf32>
    %639 = math.tanh %638 : vector<2x32xf32>
    %cst_194 = arith.constant 1.000000e+00 : f32
    %640 = vector.broadcast %cst_194 : f32 to vector<2x32xf32>
    %641 = arith.subf %640, %634 : vector<2x32xf32>
    %642 = arith.mulf %641, %639 : vector<2x32xf32>
    %643 = arith.mulf %634, %582 : vector<2x32xf32>
    %644 = arith.addf %642, %643 : vector<2x32xf32>
    %645 = vector.extract_strided_slice %612 {offsets = [0, 96], sizes = [2, 32], strides = [1, 1]} : vector<2x192xf32> to vector<2x32xf32>
    %646 = vector.extract_strided_slice %618 {offsets = [0, 0], sizes = [2, 32], strides = [1, 1]} : vector<2x96xf32> to vector<2x32xf32>
    %647 = arith.addf %645, %646 : vector<2x32xf32>
    %648 = arith.negf %647 : vector<2x32xf32>
    %649 = math.exp %648 : vector<2x32xf32>
    %cst_195 = arith.constant 1.000000e+00 : f32
    %650 = vector.broadcast %cst_195 : f32 to vector<2x32xf32>
    %651 = arith.addf %650, %649 : vector<2x32xf32>
    %652 = arith.divf %650, %651 : vector<2x32xf32>
    %653 = vector.extract_strided_slice %612 {offsets = [0, 128], sizes = [2, 32], strides = [1, 1]} : vector<2x192xf32> to vector<2x32xf32>
    %654 = vector.extract_strided_slice %618 {offsets = [0, 32], sizes = [2, 32], strides = [1, 1]} : vector<2x96xf32> to vector<2x32xf32>
    %655 = arith.addf %653, %654 : vector<2x32xf32>
    %656 = arith.negf %655 : vector<2x32xf32>
    %657 = math.exp %656 : vector<2x32xf32>
    %cst_196 = arith.constant 1.000000e+00 : f32
    %658 = vector.broadcast %cst_196 : f32 to vector<2x32xf32>
    %659 = arith.addf %658, %657 : vector<2x32xf32>
    %660 = arith.divf %658, %659 : vector<2x32xf32>
    %661 = vector.extract_strided_slice %612 {offsets = [0, 160], sizes = [2, 32], strides = [1, 1]} : vector<2x192xf32> to vector<2x32xf32>
    %662 = vector.extract_strided_slice %618 {offsets = [0, 64], sizes = [2, 32], strides = [1, 1]} : vector<2x96xf32> to vector<2x32xf32>
    %663 = arith.mulf %652, %662 : vector<2x32xf32>
    %664 = arith.addf %661, %663 : vector<2x32xf32>
    %665 = math.tanh %664 : vector<2x32xf32>
    %cst_197 = arith.constant 1.000000e+00 : f32
    %666 = vector.broadcast %cst_197 : f32 to vector<2x32xf32>
    %667 = arith.subf %666, %660 : vector<2x32xf32>
    %668 = arith.mulf %667, %665 : vector<2x32xf32>
    %669 = arith.mulf %660, %608 : vector<2x32xf32>
    %670 = arith.addf %668, %669 : vector<2x32xf32>
    %c2_198 = arith.constant 2 : index
    %c0_199 = arith.constant 0 : index
    %671 = vector.load %arg12[%c2_198, %c0_199] : memref<16x32xf32, #tpu.memory_space<vmem>>, vector<2x32xf32>
    tpu.vector_store %arg12[%c2_198, %c0_199], %644 {strides = array<i32>} : memref<16x32xf32, #tpu.memory_space<vmem>>, vector<2x32xf32>,
    %c12_200 = arith.constant 12 : index
    %c0_201 = arith.constant 0 : index
    %672 = vector.load %arg13[%c12_200, %c0_201] : memref<16x32xf32, #tpu.memory_space<vmem>>, vector<2x32xf32>
    tpu.vector_store %arg13[%c12_200, %c0_201], %670 {strides = array<i32>} : memref<16x32xf32, #tpu.memory_space<vmem>>, vector<2x32xf32>,
    %c4_202 = arith.constant 4 : index
    %c0_203 = arith.constant 0 : index
    %673 = vector.load %arg11[%c4_202, %c0_203] : memref<16x192xf32, #tpu.memory_space<vmem>>, vector<2x192xf32>
    %c10_204 = arith.constant 10 : index
    %c0_205 = arith.constant 0 : index
    %674 = vector.load %arg11[%c10_204, %c0_205] : memref<16x192xf32, #tpu.memory_space<vmem>>, vector<2x192xf32>
    %cst_206 = arith.constant dense<0.000000e+00> : vector<2x96xf32>
    %675 = tpu.matmul %644, %534, %cst_206 {dimension_numbers = #tpu.dot_dimension_numbers<[1], [0], [0], [1], [0, 0, 1, 1], [], []>} : vector<2x32xf32>, vector<32x96xf32>, vector<2x96xf32> -> vector<2x96xf32>
    %676 = vector.broadcast %532 : vector<1x96xf32> to vector<2x96xf32>
    %677 = arith.addf %675, %676 : vector<2x96xf32>
    %cst_207 = arith.constant dense<0.000000e+00> : vector<2x96xf32>
    %678 = tpu.matmul %670, %535, %cst_207 {dimension_numbers = #tpu.dot_dimension_numbers<[1], [0], [0], [1], [0, 0, 1, 1], [], []>} : vector<2x32xf32>, vector<32x96xf32>, vector<2x96xf32> -> vector<2x96xf32>
    %679 = vector.broadcast %533 : vector<1x96xf32> to vector<2x96xf32>
    %680 = arith.addf %678, %679 : vector<2x96xf32>
    %681 = vector.extract_strided_slice %673 {offsets = [0, 0], sizes = [2, 32], strides = [1, 1]} : vector<2x192xf32> to vector<2x32xf32>
    %682 = vector.extract_strided_slice %677 {offsets = [0, 0], sizes = [2, 32], strides = [1, 1]} : vector<2x96xf32> to vector<2x32xf32>
    %683 = arith.addf %681, %682 : vector<2x32xf32>
    %684 = arith.negf %683 : vector<2x32xf32>
    %685 = math.exp %684 : vector<2x32xf32>
    %cst_208 = arith.constant 1.000000e+00 : f32
    %686 = vector.broadcast %cst_208 : f32 to vector<2x32xf32>
    %687 = arith.addf %686, %685 : vector<2x32xf32>
    %688 = arith.divf %686, %687 : vector<2x32xf32>
    %689 = vector.extract_strided_slice %673 {offsets = [0, 32], sizes = [2, 32], strides = [1, 1]} : vector<2x192xf32> to vector<2x32xf32>
    %690 = vector.extract_strided_slice %677 {offsets = [0, 32], sizes = [2, 32], strides = [1, 1]} : vector<2x96xf32> to vector<2x32xf32>
    %691 = arith.addf %689, %690 : vector<2x32xf32>
    %692 = arith.negf %691 : vector<2x32xf32>
    %693 = math.exp %692 : vector<2x32xf32>
    %cst_209 = arith.constant 1.000000e+00 : f32
    %694 = vector.broadcast %cst_209 : f32 to vector<2x32xf32>
    %695 = arith.addf %694, %693 : vector<2x32xf32>
    %696 = arith.divf %694, %695 : vector<2x32xf32>
    %697 = vector.extract_strided_slice %673 {offsets = [0, 64], sizes = [2, 32], strides = [1, 1]} : vector<2x192xf32> to vector<2x32xf32>
    %698 = vector.extract_strided_slice %677 {offsets = [0, 64], sizes = [2, 32], strides = [1, 1]} : vector<2x96xf32> to vector<2x32xf32>
    %699 = arith.mulf %688, %698 : vector<2x32xf32>
    %700 = arith.addf %697, %699 : vector<2x32xf32>
    %701 = math.tanh %700 : vector<2x32xf32>
    %cst_210 = arith.constant 1.000000e+00 : f32
    %702 = vector.broadcast %cst_210 : f32 to vector<2x32xf32>
    %703 = arith.subf %702, %696 : vector<2x32xf32>
    %704 = arith.mulf %703, %701 : vector<2x32xf32>
    %705 = arith.mulf %696, %644 : vector<2x32xf32>
    %706 = arith.addf %704, %705 : vector<2x32xf32>
    %707 = vector.extract_strided_slice %674 {offsets = [0, 96], sizes = [2, 32], strides = [1, 1]} : vector<2x192xf32> to vector<2x32xf32>
    %708 = vector.extract_strided_slice %680 {offsets = [0, 0], sizes = [2, 32], strides = [1, 1]} : vector<2x96xf32> to vector<2x32xf32>
    %709 = arith.addf %707, %708 : vector<2x32xf32>
    %710 = arith.negf %709 : vector<2x32xf32>
    %711 = math.exp %710 : vector<2x32xf32>
    %cst_211 = arith.constant 1.000000e+00 : f32
    %712 = vector.broadcast %cst_211 : f32 to vector<2x32xf32>
    %713 = arith.addf %712, %711 : vector<2x32xf32>
    %714 = arith.divf %712, %713 : vector<2x32xf32>
    %715 = vector.extract_strided_slice %674 {offsets = [0, 128], sizes = [2, 32], strides = [1, 1]} : vector<2x192xf32> to vector<2x32xf32>
    %716 = vector.extract_strided_slice %680 {offsets = [0, 32], sizes = [2, 32], strides = [1, 1]} : vector<2x96xf32> to vector<2x32xf32>
    %717 = arith.addf %715, %716 : vector<2x32xf32>
    %718 = arith.negf %717 : vector<2x32xf32>
    %719 = math.exp %718 : vector<2x32xf32>
    %cst_212 = arith.constant 1.000000e+00 : f32
    %720 = vector.broadcast %cst_212 : f32 to vector<2x32xf32>
    %721 = arith.addf %720, %719 : vector<2x32xf32>
    %722 = arith.divf %720, %721 : vector<2x32xf32>
    %723 = vector.extract_strided_slice %674 {offsets = [0, 160], sizes = [2, 32], strides = [1, 1]} : vector<2x192xf32> to vector<2x32xf32>
    %724 = vector.extract_strided_slice %680 {offsets = [0, 64], sizes = [2, 32], strides = [1, 1]} : vector<2x96xf32> to vector<2x32xf32>
    %725 = arith.mulf %714, %724 : vector<2x32xf32>
    %726 = arith.addf %723, %725 : vector<2x32xf32>
    %727 = math.tanh %726 : vector<2x32xf32>
    %cst_213 = arith.constant 1.000000e+00 : f32
    %728 = vector.broadcast %cst_213 : f32 to vector<2x32xf32>
    %729 = arith.subf %728, %722 : vector<2x32xf32>
    %730 = arith.mulf %729, %727 : vector<2x32xf32>
    %731 = arith.mulf %722, %670 : vector<2x32xf32>
    %732 = arith.addf %730, %731 : vector<2x32xf32>
    %c4_214 = arith.constant 4 : index
    %c0_215 = arith.constant 0 : index
    %733 = vector.load %arg12[%c4_214, %c0_215] : memref<16x32xf32, #tpu.memory_space<vmem>>, vector<2x32xf32>
    tpu.vector_store %arg12[%c4_214, %c0_215], %706 {strides = array<i32>} : memref<16x32xf32, #tpu.memory_space<vmem>>, vector<2x32xf32>,
    %c10_216 = arith.constant 10 : index
    %c0_217 = arith.constant 0 : index
    %734 = vector.load %arg13[%c10_216, %c0_217] : memref<16x32xf32, #tpu.memory_space<vmem>>, vector<2x32xf32>
    tpu.vector_store %arg13[%c10_216, %c0_217], %732 {strides = array<i32>} : memref<16x32xf32, #tpu.memory_space<vmem>>, vector<2x32xf32>,
    %c6_218 = arith.constant 6 : index
    %c0_219 = arith.constant 0 : index
    %735 = vector.load %arg11[%c6_218, %c0_219] : memref<16x192xf32, #tpu.memory_space<vmem>>, vector<2x192xf32>
    %c8_220 = arith.constant 8 : index
    %c0_221 = arith.constant 0 : index
    %736 = vector.load %arg11[%c8_220, %c0_221] : memref<16x192xf32, #tpu.memory_space<vmem>>, vector<2x192xf32>
    %cst_222 = arith.constant dense<0.000000e+00> : vector<2x96xf32>
    %737 = tpu.matmul %706, %534, %cst_222 {dimension_numbers = #tpu.dot_dimension_numbers<[1], [0], [0], [1], [0, 0, 1, 1], [], []>} : vector<2x32xf32>, vector<32x96xf32>, vector<2x96xf32> -> vector<2x96xf32>
    %738 = vector.broadcast %532 : vector<1x96xf32> to vector<2x96xf32>
    %739 = arith.addf %737, %738 : vector<2x96xf32>
    %cst_223 = arith.constant dense<0.000000e+00> : vector<2x96xf32>
    %740 = tpu.matmul %732, %535, %cst_223 {dimension_numbers = #tpu.dot_dimension_numbers<[1], [0], [0], [1], [0, 0, 1, 1], [], []>} : vector<2x32xf32>, vector<32x96xf32>, vector<2x96xf32> -> vector<2x96xf32>
    %741 = vector.broadcast %533 : vector<1x96xf32> to vector<2x96xf32>
    %742 = arith.addf %740, %741 : vector<2x96xf32>
    %743 = vector.extract_strided_slice %735 {offsets = [0, 0], sizes = [2, 32], strides = [1, 1]} : vector<2x192xf32> to vector<2x32xf32>
    %744 = vector.extract_strided_slice %739 {offsets = [0, 0], sizes = [2, 32], strides = [1, 1]} : vector<2x96xf32> to vector<2x32xf32>
    %745 = arith.addf %743, %744 : vector<2x32xf32>
    %746 = arith.negf %745 : vector<2x32xf32>
    %747 = math.exp %746 : vector<2x32xf32>
    %cst_224 = arith.constant 1.000000e+00 : f32
    %748 = vector.broadcast %cst_224 : f32 to vector<2x32xf32>
    %749 = arith.addf %748, %747 : vector<2x32xf32>
    %750 = arith.divf %748, %749 : vector<2x32xf32>
    %751 = vector.extract_strided_slice %735 {offsets = [0, 32], sizes = [2, 32], strides = [1, 1]} : vector<2x192xf32> to vector<2x32xf32>
    %752 = vector.extract_strided_slice %739 {offsets = [0, 32], sizes = [2, 32], strides = [1, 1]} : vector<2x96xf32> to vector<2x32xf32>
    %753 = arith.addf %751, %752 : vector<2x32xf32>
    %754 = arith.negf %753 : vector<2x32xf32>
    %755 = math.exp %754 : vector<2x32xf32>
    %cst_225 = arith.constant 1.000000e+00 : f32
    %756 = vector.broadcast %cst_225 : f32 to vector<2x32xf32>
    %757 = arith.addf %756, %755 : vector<2x32xf32>
    %758 = arith.divf %756, %757 : vector<2x32xf32>
    %759 = vector.extract_strided_slice %735 {offsets = [0, 64], sizes = [2, 32], strides = [1, 1]} : vector<2x192xf32> to vector<2x32xf32>
    %760 = vector.extract_strided_slice %739 {offsets = [0, 64], sizes = [2, 32], strides = [1, 1]} : vector<2x96xf32> to vector<2x32xf32>
    %761 = arith.mulf %750, %760 : vector<2x32xf32>
    %762 = arith.addf %759, %761 : vector<2x32xf32>
    %763 = math.tanh %762 : vector<2x32xf32>
    %cst_226 = arith.constant 1.000000e+00 : f32
    %764 = vector.broadcast %cst_226 : f32 to vector<2x32xf32>
    %765 = arith.subf %764, %758 : vector<2x32xf32>
    %766 = arith.mulf %765, %763 : vector<2x32xf32>
    %767 = arith.mulf %758, %706 : vector<2x32xf32>
    %768 = arith.addf %766, %767 : vector<2x32xf32>
    %769 = vector.extract_strided_slice %736 {offsets = [0, 96], sizes = [2, 32], strides = [1, 1]} : vector<2x192xf32> to vector<2x32xf32>
    %770 = vector.extract_strided_slice %742 {offsets = [0, 0], sizes = [2, 32], strides = [1, 1]} : vector<2x96xf32> to vector<2x32xf32>
    %771 = arith.addf %769, %770 : vector<2x32xf32>
    %772 = arith.negf %771 : vector<2x32xf32>
    %773 = math.exp %772 : vector<2x32xf32>
    %cst_227 = arith.constant 1.000000e+00 : f32
    %774 = vector.broadcast %cst_227 : f32 to vector<2x32xf32>
    %775 = arith.addf %774, %773 : vector<2x32xf32>
    %776 = arith.divf %774, %775 : vector<2x32xf32>
    %777 = vector.extract_strided_slice %736 {offsets = [0, 128], sizes = [2, 32], strides = [1, 1]} : vector<2x192xf32> to vector<2x32xf32>
    %778 = vector.extract_strided_slice %742 {offsets = [0, 32], sizes = [2, 32], strides = [1, 1]} : vector<2x96xf32> to vector<2x32xf32>
    %779 = arith.addf %777, %778 : vector<2x32xf32>
    %780 = arith.negf %779 : vector<2x32xf32>
    %781 = math.exp %780 : vector<2x32xf32>
    %cst_228 = arith.constant 1.000000e+00 : f32
    %782 = vector.broadcast %cst_228 : f32 to vector<2x32xf32>
    %783 = arith.addf %782, %781 : vector<2x32xf32>
    %784 = arith.divf %782, %783 : vector<2x32xf32>
    %785 = vector.extract_strided_slice %736 {offsets = [0, 160], sizes = [2, 32], strides = [1, 1]} : vector<2x192xf32> to vector<2x32xf32>
    %786 = vector.extract_strided_slice %742 {offsets = [0, 64], sizes = [2, 32], strides = [1, 1]} : vector<2x96xf32> to vector<2x32xf32>
    %787 = arith.mulf %776, %786 : vector<2x32xf32>
    %788 = arith.addf %785, %787 : vector<2x32xf32>
    %789 = math.tanh %788 : vector<2x32xf32>
    %cst_229 = arith.constant 1.000000e+00 : f32
    %790 = vector.broadcast %cst_229 : f32 to vector<2x32xf32>
    %791 = arith.subf %790, %784 : vector<2x32xf32>
    %792 = arith.mulf %791, %789 : vector<2x32xf32>
    %793 = arith.mulf %784, %732 : vector<2x32xf32>
    %794 = arith.addf %792, %793 : vector<2x32xf32>
    %c6_230 = arith.constant 6 : index
    %c0_231 = arith.constant 0 : index
    %795 = vector.load %arg12[%c6_230, %c0_231] : memref<16x32xf32, #tpu.memory_space<vmem>>, vector<2x32xf32>
    tpu.vector_store %arg12[%c6_230, %c0_231], %768 {strides = array<i32>} : memref<16x32xf32, #tpu.memory_space<vmem>>, vector<2x32xf32>,
    %c8_232 = arith.constant 8 : index
    %c0_233 = arith.constant 0 : index
    %796 = vector.load %arg13[%c8_232, %c0_233] : memref<16x32xf32, #tpu.memory_space<vmem>>, vector<2x32xf32>
    tpu.vector_store %arg13[%c8_232, %c0_233], %794 {strides = array<i32>} : memref<16x32xf32, #tpu.memory_space<vmem>>, vector<2x32xf32>,
    %c8_234 = arith.constant 8 : index
    %c0_235 = arith.constant 0 : index
    %797 = vector.load %arg11[%c8_234, %c0_235] : memref<16x192xf32, #tpu.memory_space<vmem>>, vector<2x192xf32>
    %c6_236 = arith.constant 6 : index
    %c0_237 = arith.constant 0 : index
    %798 = vector.load %arg11[%c6_236, %c0_237] : memref<16x192xf32, #tpu.memory_space<vmem>>, vector<2x192xf32>
    %cst_238 = arith.constant dense<0.000000e+00> : vector<2x96xf32>
    %799 = tpu.matmul %768, %534, %cst_238 {dimension_numbers = #tpu.dot_dimension_numbers<[1], [0], [0], [1], [0, 0, 1, 1], [], []>} : vector<2x32xf32>, vector<32x96xf32>, vector<2x96xf32> -> vector<2x96xf32>
    %800 = vector.broadcast %532 : vector<1x96xf32> to vector<2x96xf32>
    %801 = arith.addf %799, %800 : vector<2x96xf32>
    %cst_239 = arith.constant dense<0.000000e+00> : vector<2x96xf32>
    %802 = tpu.matmul %794, %535, %cst_239 {dimension_numbers = #tpu.dot_dimension_numbers<[1], [0], [0], [1], [0, 0, 1, 1], [], []>} : vector<2x32xf32>, vector<32x96xf32>, vector<2x96xf32> -> vector<2x96xf32>
    %803 = vector.broadcast %533 : vector<1x96xf32> to vector<2x96xf32>
    %804 = arith.addf %802, %803 : vector<2x96xf32>
    %805 = vector.extract_strided_slice %797 {offsets = [0, 0], sizes = [2, 32], strides = [1, 1]} : vector<2x192xf32> to vector<2x32xf32>
    %806 = vector.extract_strided_slice %801 {offsets = [0, 0], sizes = [2, 32], strides = [1, 1]} : vector<2x96xf32> to vector<2x32xf32>
    %807 = arith.addf %805, %806 : vector<2x32xf32>
    %808 = arith.negf %807 : vector<2x32xf32>
    %809 = math.exp %808 : vector<2x32xf32>
    %cst_240 = arith.constant 1.000000e+00 : f32
    %810 = vector.broadcast %cst_240 : f32 to vector<2x32xf32>
    %811 = arith.addf %810, %809 : vector<2x32xf32>
    %812 = arith.divf %810, %811 : vector<2x32xf32>
    %813 = vector.extract_strided_slice %797 {offsets = [0, 32], sizes = [2, 32], strides = [1, 1]} : vector<2x192xf32> to vector<2x32xf32>
    %814 = vector.extract_strided_slice %801 {offsets = [0, 32], sizes = [2, 32], strides = [1, 1]} : vector<2x96xf32> to vector<2x32xf32>
    %815 = arith.addf %813, %814 : vector<2x32xf32>
    %816 = arith.negf %815 : vector<2x32xf32>
    %817 = math.exp %816 : vector<2x32xf32>
    %cst_241 = arith.constant 1.000000e+00 : f32
    %818 = vector.broadcast %cst_241 : f32 to vector<2x32xf32>
    %819 = arith.addf %818, %817 : vector<2x32xf32>
    %820 = arith.divf %818, %819 : vector<2x32xf32>
    %821 = vector.extract_strided_slice %797 {offsets = [0, 64], sizes = [2, 32], strides = [1, 1]} : vector<2x192xf32> to vector<2x32xf32>
    %822 = vector.extract_strided_slice %801 {offsets = [0, 64], sizes = [2, 32], strides = [1, 1]} : vector<2x96xf32> to vector<2x32xf32>
    %823 = arith.mulf %812, %822 : vector<2x32xf32>
    %824 = arith.addf %821, %823 : vector<2x32xf32>
    %825 = math.tanh %824 : vector<2x32xf32>
    %cst_242 = arith.constant 1.000000e+00 : f32
    %826 = vector.broadcast %cst_242 : f32 to vector<2x32xf32>
    %827 = arith.subf %826, %820 : vector<2x32xf32>
    %828 = arith.mulf %827, %825 : vector<2x32xf32>
    %829 = arith.mulf %820, %768 : vector<2x32xf32>
    %830 = arith.addf %828, %829 : vector<2x32xf32>
    %831 = vector.extract_strided_slice %798 {offsets = [0, 96], sizes = [2, 32], strides = [1, 1]} : vector<2x192xf32> to vector<2x32xf32>
    %832 = vector.extract_strided_slice %804 {offsets = [0, 0], sizes = [2, 32], strides = [1, 1]} : vector<2x96xf32> to vector<2x32xf32>
    %833 = arith.addf %831, %832 : vector<2x32xf32>
    %834 = arith.negf %833 : vector<2x32xf32>
    %835 = math.exp %834 : vector<2x32xf32>
    %cst_243 = arith.constant 1.000000e+00 : f32
    %836 = vector.broadcast %cst_243 : f32 to vector<2x32xf32>
    %837 = arith.addf %836, %835 : vector<2x32xf32>
    %838 = arith.divf %836, %837 : vector<2x32xf32>
    %839 = vector.extract_strided_slice %798 {offsets = [0, 128], sizes = [2, 32], strides = [1, 1]} : vector<2x192xf32> to vector<2x32xf32>
    %840 = vector.extract_strided_slice %804 {offsets = [0, 32], sizes = [2, 32], strides = [1, 1]} : vector<2x96xf32> to vector<2x32xf32>
    %841 = arith.addf %839, %840 : vector<2x32xf32>
    %842 = arith.negf %841 : vector<2x32xf32>
    %843 = math.exp %842 : vector<2x32xf32>
    %cst_244 = arith.constant 1.000000e+00 : f32
    %844 = vector.broadcast %cst_244 : f32 to vector<2x32xf32>
    %845 = arith.addf %844, %843 : vector<2x32xf32>
    %846 = arith.divf %844, %845 : vector<2x32xf32>
    %847 = vector.extract_strided_slice %798 {offsets = [0, 160], sizes = [2, 32], strides = [1, 1]} : vector<2x192xf32> to vector<2x32xf32>
    %848 = vector.extract_strided_slice %804 {offsets = [0, 64], sizes = [2, 32], strides = [1, 1]} : vector<2x96xf32> to vector<2x32xf32>
    %849 = arith.mulf %838, %848 : vector<2x32xf32>
    %850 = arith.addf %847, %849 : vector<2x32xf32>
    %851 = math.tanh %850 : vector<2x32xf32>
    %cst_245 = arith.constant 1.000000e+00 : f32
    %852 = vector.broadcast %cst_245 : f32 to vector<2x32xf32>
    %853 = arith.subf %852, %846 : vector<2x32xf32>
    %854 = arith.mulf %853, %851 : vector<2x32xf32>
    %855 = arith.mulf %846, %794 : vector<2x32xf32>
    %856 = arith.addf %854, %855 : vector<2x32xf32>
    %c8_246 = arith.constant 8 : index
    %c0_247 = arith.constant 0 : index
    %857 = vector.load %arg12[%c8_246, %c0_247] : memref<16x32xf32, #tpu.memory_space<vmem>>, vector<2x32xf32>
    tpu.vector_store %arg12[%c8_246, %c0_247], %830 {strides = array<i32>} : memref<16x32xf32, #tpu.memory_space<vmem>>, vector<2x32xf32>,
    %c6_248 = arith.constant 6 : index
    %c0_249 = arith.constant 0 : index
    %858 = vector.load %arg13[%c6_248, %c0_249] : memref<16x32xf32, #tpu.memory_space<vmem>>, vector<2x32xf32>
    tpu.vector_store %arg13[%c6_248, %c0_249], %856 {strides = array<i32>} : memref<16x32xf32, #tpu.memory_space<vmem>>, vector<2x32xf32>,
    %c10_250 = arith.constant 10 : index
    %c0_251 = arith.constant 0 : index
    %859 = vector.load %arg11[%c10_250, %c0_251] : memref<16x192xf32, #tpu.memory_space<vmem>>, vector<2x192xf32>
    %c4_252 = arith.constant 4 : index
    %c0_253 = arith.constant 0 : index
    %860 = vector.load %arg11[%c4_252, %c0_253] : memref<16x192xf32, #tpu.memory_space<vmem>>, vector<2x192xf32>
    %cst_254 = arith.constant dense<0.000000e+00> : vector<2x96xf32>
    %861 = tpu.matmul %830, %534, %cst_254 {dimension_numbers = #tpu.dot_dimension_numbers<[1], [0], [0], [1], [0, 0, 1, 1], [], []>} : vector<2x32xf32>, vector<32x96xf32>, vector<2x96xf32> -> vector<2x96xf32>
    %862 = vector.broadcast %532 : vector<1x96xf32> to vector<2x96xf32>
    %863 = arith.addf %861, %862 : vector<2x96xf32>
    %cst_255 = arith.constant dense<0.000000e+00> : vector<2x96xf32>
    %864 = tpu.matmul %856, %535, %cst_255 {dimension_numbers = #tpu.dot_dimension_numbers<[1], [0], [0], [1], [0, 0, 1, 1], [], []>} : vector<2x32xf32>, vector<32x96xf32>, vector<2x96xf32> -> vector<2x96xf32>
    %865 = vector.broadcast %533 : vector<1x96xf32> to vector<2x96xf32>
    %866 = arith.addf %864, %865 : vector<2x96xf32>
    %867 = vector.extract_strided_slice %859 {offsets = [0, 0], sizes = [2, 32], strides = [1, 1]} : vector<2x192xf32> to vector<2x32xf32>
    %868 = vector.extract_strided_slice %863 {offsets = [0, 0], sizes = [2, 32], strides = [1, 1]} : vector<2x96xf32> to vector<2x32xf32>
    %869 = arith.addf %867, %868 : vector<2x32xf32>
    %870 = arith.negf %869 : vector<2x32xf32>
    %871 = math.exp %870 : vector<2x32xf32>
    %cst_256 = arith.constant 1.000000e+00 : f32
    %872 = vector.broadcast %cst_256 : f32 to vector<2x32xf32>
    %873 = arith.addf %872, %871 : vector<2x32xf32>
    %874 = arith.divf %872, %873 : vector<2x32xf32>
    %875 = vector.extract_strided_slice %859 {offsets = [0, 32], sizes = [2, 32], strides = [1, 1]} : vector<2x192xf32> to vector<2x32xf32>
    %876 = vector.extract_strided_slice %863 {offsets = [0, 32], sizes = [2, 32], strides = [1, 1]} : vector<2x96xf32> to vector<2x32xf32>
    %877 = arith.addf %875, %876 : vector<2x32xf32>
    %878 = arith.negf %877 : vector<2x32xf32>
    %879 = math.exp %878 : vector<2x32xf32>
    %cst_257 = arith.constant 1.000000e+00 : f32
    %880 = vector.broadcast %cst_257 : f32 to vector<2x32xf32>
    %881 = arith.addf %880, %879 : vector<2x32xf32>
    %882 = arith.divf %880, %881 : vector<2x32xf32>
    %883 = vector.extract_strided_slice %859 {offsets = [0, 64], sizes = [2, 32], strides = [1, 1]} : vector<2x192xf32> to vector<2x32xf32>
    %884 = vector.extract_strided_slice %863 {offsets = [0, 64], sizes = [2, 32], strides = [1, 1]} : vector<2x96xf32> to vector<2x32xf32>
    %885 = arith.mulf %874, %884 : vector<2x32xf32>
    %886 = arith.addf %883, %885 : vector<2x32xf32>
    %887 = math.tanh %886 : vector<2x32xf32>
    %cst_258 = arith.constant 1.000000e+00 : f32
    %888 = vector.broadcast %cst_258 : f32 to vector<2x32xf32>
    %889 = arith.subf %888, %882 : vector<2x32xf32>
    %890 = arith.mulf %889, %887 : vector<2x32xf32>
    %891 = arith.mulf %882, %830 : vector<2x32xf32>
    %892 = arith.addf %890, %891 : vector<2x32xf32>
    %893 = vector.extract_strided_slice %860 {offsets = [0, 96], sizes = [2, 32], strides = [1, 1]} : vector<2x192xf32> to vector<2x32xf32>
    %894 = vector.extract_strided_slice %866 {offsets = [0, 0], sizes = [2, 32], strides = [1, 1]} : vector<2x96xf32> to vector<2x32xf32>
    %895 = arith.addf %893, %894 : vector<2x32xf32>
    %896 = arith.negf %895 : vector<2x32xf32>
    %897 = math.exp %896 : vector<2x32xf32>
    %cst_259 = arith.constant 1.000000e+00 : f32
    %898 = vector.broadcast %cst_259 : f32 to vector<2x32xf32>
    %899 = arith.addf %898, %897 : vector<2x32xf32>
    %900 = arith.divf %898, %899 : vector<2x32xf32>
    %901 = vector.extract_strided_slice %860 {offsets = [0, 128], sizes = [2, 32], strides = [1, 1]} : vector<2x192xf32> to vector<2x32xf32>
    %902 = vector.extract_strided_slice %866 {offsets = [0, 32], sizes = [2, 32], strides = [1, 1]} : vector<2x96xf32> to vector<2x32xf32>
    %903 = arith.addf %901, %902 : vector<2x32xf32>
    %904 = arith.negf %903 : vector<2x32xf32>
    %905 = math.exp %904 : vector<2x32xf32>
    %cst_260 = arith.constant 1.000000e+00 : f32
    %906 = vector.broadcast %cst_260 : f32 to vector<2x32xf32>
    %907 = arith.addf %906, %905 : vector<2x32xf32>
    %908 = arith.divf %906, %907 : vector<2x32xf32>
    %909 = vector.extract_strided_slice %860 {offsets = [0, 160], sizes = [2, 32], strides = [1, 1]} : vector<2x192xf32> to vector<2x32xf32>
    %910 = vector.extract_strided_slice %866 {offsets = [0, 64], sizes = [2, 32], strides = [1, 1]} : vector<2x96xf32> to vector<2x32xf32>
    %911 = arith.mulf %900, %910 : vector<2x32xf32>
    %912 = arith.addf %909, %911 : vector<2x32xf32>
    %913 = math.tanh %912 : vector<2x32xf32>
    %cst_261 = arith.constant 1.000000e+00 : f32
    %914 = vector.broadcast %cst_261 : f32 to vector<2x32xf32>
    %915 = arith.subf %914, %908 : vector<2x32xf32>
    %916 = arith.mulf %915, %913 : vector<2x32xf32>
    %917 = arith.mulf %908, %856 : vector<2x32xf32>
    %918 = arith.addf %916, %917 : vector<2x32xf32>
    %c10_262 = arith.constant 10 : index
    %c0_263 = arith.constant 0 : index
    %919 = vector.load %arg12[%c10_262, %c0_263] : memref<16x32xf32, #tpu.memory_space<vmem>>, vector<2x32xf32>
    tpu.vector_store %arg12[%c10_262, %c0_263], %892 {strides = array<i32>} : memref<16x32xf32, #tpu.memory_space<vmem>>, vector<2x32xf32>,
    %c4_264 = arith.constant 4 : index
    %c0_265 = arith.constant 0 : index
    %920 = vector.load %arg13[%c4_264, %c0_265] : memref<16x32xf32, #tpu.memory_space<vmem>>, vector<2x32xf32>
    tpu.vector_store %arg13[%c4_264, %c0_265], %918 {strides = array<i32>} : memref<16x32xf32, #tpu.memory_space<vmem>>, vector<2x32xf32>,
    %c12_266 = arith.constant 12 : index
    %c0_267 = arith.constant 0 : index
    %921 = vector.load %arg11[%c12_266, %c0_267] : memref<16x192xf32, #tpu.memory_space<vmem>>, vector<2x192xf32>
    %c2_268 = arith.constant 2 : index
    %c0_269 = arith.constant 0 : index
    %922 = vector.load %arg11[%c2_268, %c0_269] : memref<16x192xf32, #tpu.memory_space<vmem>>, vector<2x192xf32>
    %cst_270 = arith.constant dense<0.000000e+00> : vector<2x96xf32>
    %923 = tpu.matmul %892, %534, %cst_270 {dimension_numbers = #tpu.dot_dimension_numbers<[1], [0], [0], [1], [0, 0, 1, 1], [], []>} : vector<2x32xf32>, vector<32x96xf32>, vector<2x96xf32> -> vector<2x96xf32>
    %924 = vector.broadcast %532 : vector<1x96xf32> to vector<2x96xf32>
    %925 = arith.addf %923, %924 : vector<2x96xf32>
    %cst_271 = arith.constant dense<0.000000e+00> : vector<2x96xf32>
    %926 = tpu.matmul %918, %535, %cst_271 {dimension_numbers = #tpu.dot_dimension_numbers<[1], [0], [0], [1], [0, 0, 1, 1], [], []>} : vector<2x32xf32>, vector<32x96xf32>, vector<2x96xf32> -> vector<2x96xf32>
    %927 = vector.broadcast %533 : vector<1x96xf32> to vector<2x96xf32>
    %928 = arith.addf %926, %927 : vector<2x96xf32>
    %929 = vector.extract_strided_slice %921 {offsets = [0, 0], sizes = [2, 32], strides = [1, 1]} : vector<2x192xf32> to vector<2x32xf32>
    %930 = vector.extract_strided_slice %925 {offsets = [0, 0], sizes = [2, 32], strides = [1, 1]} : vector<2x96xf32> to vector<2x32xf32>
    %931 = arith.addf %929, %930 : vector<2x32xf32>
    %932 = arith.negf %931 : vector<2x32xf32>
    %933 = math.exp %932 : vector<2x32xf32>
    %cst_272 = arith.constant 1.000000e+00 : f32
    %934 = vector.broadcast %cst_272 : f32 to vector<2x32xf32>
    %935 = arith.addf %934, %933 : vector<2x32xf32>
    %936 = arith.divf %934, %935 : vector<2x32xf32>
    %937 = vector.extract_strided_slice %921 {offsets = [0, 32], sizes = [2, 32], strides = [1, 1]} : vector<2x192xf32> to vector<2x32xf32>
    %938 = vector.extract_strided_slice %925 {offsets = [0, 32], sizes = [2, 32], strides = [1, 1]} : vector<2x96xf32> to vector<2x32xf32>
    %939 = arith.addf %937, %938 : vector<2x32xf32>
    %940 = arith.negf %939 : vector<2x32xf32>
    %941 = math.exp %940 : vector<2x32xf32>
    %cst_273 = arith.constant 1.000000e+00 : f32
    %942 = vector.broadcast %cst_273 : f32 to vector<2x32xf32>
    %943 = arith.addf %942, %941 : vector<2x32xf32>
    %944 = arith.divf %942, %943 : vector<2x32xf32>
    %945 = vector.extract_strided_slice %921 {offsets = [0, 64], sizes = [2, 32], strides = [1, 1]} : vector<2x192xf32> to vector<2x32xf32>
    %946 = vector.extract_strided_slice %925 {offsets = [0, 64], sizes = [2, 32], strides = [1, 1]} : vector<2x96xf32> to vector<2x32xf32>
    %947 = arith.mulf %936, %946 : vector<2x32xf32>
    %948 = arith.addf %945, %947 : vector<2x32xf32>
    %949 = math.tanh %948 : vector<2x32xf32>
    %cst_274 = arith.constant 1.000000e+00 : f32
    %950 = vector.broadcast %cst_274 : f32 to vector<2x32xf32>
    %951 = arith.subf %950, %944 : vector<2x32xf32>
    %952 = arith.mulf %951, %949 : vector<2x32xf32>
    %953 = arith.mulf %944, %892 : vector<2x32xf32>
    %954 = arith.addf %952, %953 : vector<2x32xf32>
    %955 = vector.extract_strided_slice %922 {offsets = [0, 96], sizes = [2, 32], strides = [1, 1]} : vector<2x192xf32> to vector<2x32xf32>
    %956 = vector.extract_strided_slice %928 {offsets = [0, 0], sizes = [2, 32], strides = [1, 1]} : vector<2x96xf32> to vector<2x32xf32>
    %957 = arith.addf %955, %956 : vector<2x32xf32>
    %958 = arith.negf %957 : vector<2x32xf32>
    %959 = math.exp %958 : vector<2x32xf32>
    %cst_275 = arith.constant 1.000000e+00 : f32
    %960 = vector.broadcast %cst_275 : f32 to vector<2x32xf32>
    %961 = arith.addf %960, %959 : vector<2x32xf32>
    %962 = arith.divf %960, %961 : vector<2x32xf32>
    %963 = vector.extract_strided_slice %922 {offsets = [0, 128], sizes = [2, 32], strides = [1, 1]} : vector<2x192xf32> to vector<2x32xf32>
    %964 = vector.extract_strided_slice %928 {offsets = [0, 32], sizes = [2, 32], strides = [1, 1]} : vector<2x96xf32> to vector<2x32xf32>
    %965 = arith.addf %963, %964 : vector<2x32xf32>
    %966 = arith.negf %965 : vector<2x32xf32>
    %967 = math.exp %966 : vector<2x32xf32>
    %cst_276 = arith.constant 1.000000e+00 : f32
    %968 = vector.broadcast %cst_276 : f32 to vector<2x32xf32>
    %969 = arith.addf %968, %967 : vector<2x32xf32>
    %970 = arith.divf %968, %969 : vector<2x32xf32>
    %971 = vector.extract_strided_slice %922 {offsets = [0, 160], sizes = [2, 32], strides = [1, 1]} : vector<2x192xf32> to vector<2x32xf32>
    %972 = vector.extract_strided_slice %928 {offsets = [0, 64], sizes = [2, 32], strides = [1, 1]} : vector<2x96xf32> to vector<2x32xf32>
    %973 = arith.mulf %962, %972 : vector<2x32xf32>
    %974 = arith.addf %971, %973 : vector<2x32xf32>
    %975 = math.tanh %974 : vector<2x32xf32>
    %cst_277 = arith.constant 1.000000e+00 : f32
    %976 = vector.broadcast %cst_277 : f32 to vector<2x32xf32>
    %977 = arith.subf %976, %970 : vector<2x32xf32>
    %978 = arith.mulf %977, %975 : vector<2x32xf32>
    %979 = arith.mulf %970, %918 : vector<2x32xf32>
    %980 = arith.addf %978, %979 : vector<2x32xf32>
    %c12_278 = arith.constant 12 : index
    %c0_279 = arith.constant 0 : index
    %981 = vector.load %arg12[%c12_278, %c0_279] : memref<16x32xf32, #tpu.memory_space<vmem>>, vector<2x32xf32>
    tpu.vector_store %arg12[%c12_278, %c0_279], %954 {strides = array<i32>} : memref<16x32xf32, #tpu.memory_space<vmem>>, vector<2x32xf32>,
    %c2_280 = arith.constant 2 : index
    %c0_281 = arith.constant 0 : index
    %982 = vector.load %arg13[%c2_280, %c0_281] : memref<16x32xf32, #tpu.memory_space<vmem>>, vector<2x32xf32>
    tpu.vector_store %arg13[%c2_280, %c0_281], %980 {strides = array<i32>} : memref<16x32xf32, #tpu.memory_space<vmem>>, vector<2x32xf32>,
    %c14_282 = arith.constant 14 : index
    %c0_283 = arith.constant 0 : index
    %983 = vector.load %arg11[%c14_282, %c0_283] : memref<16x192xf32, #tpu.memory_space<vmem>>, vector<2x192xf32>
    %c0_284 = arith.constant 0 : index
    %c0_285 = arith.constant 0 : index
    %984 = vector.load %arg11[%c0_284, %c0_285] : memref<16x192xf32, #tpu.memory_space<vmem>>, vector<2x192xf32>
    %cst_286 = arith.constant dense<0.000000e+00> : vector<2x96xf32>
    %985 = tpu.matmul %954, %534, %cst_286 {dimension_numbers = #tpu.dot_dimension_numbers<[1], [0], [0], [1], [0, 0, 1, 1], [], []>} : vector<2x32xf32>, vector<32x96xf32>, vector<2x96xf32> -> vector<2x96xf32>
    %986 = vector.broadcast %532 : vector<1x96xf32> to vector<2x96xf32>
    %987 = arith.addf %985, %986 : vector<2x96xf32>
    %cst_287 = arith.constant dense<0.000000e+00> : vector<2x96xf32>
    %988 = tpu.matmul %980, %535, %cst_287 {dimension_numbers = #tpu.dot_dimension_numbers<[1], [0], [0], [1], [0, 0, 1, 1], [], []>} : vector<2x32xf32>, vector<32x96xf32>, vector<2x96xf32> -> vector<2x96xf32>
    %989 = vector.broadcast %533 : vector<1x96xf32> to vector<2x96xf32>
    %990 = arith.addf %988, %989 : vector<2x96xf32>
    %991 = vector.extract_strided_slice %983 {offsets = [0, 0], sizes = [2, 32], strides = [1, 1]} : vector<2x192xf32> to vector<2x32xf32>
    %992 = vector.extract_strided_slice %987 {offsets = [0, 0], sizes = [2, 32], strides = [1, 1]} : vector<2x96xf32> to vector<2x32xf32>
    %993 = arith.addf %991, %992 : vector<2x32xf32>
    %994 = arith.negf %993 : vector<2x32xf32>
    %995 = math.exp %994 : vector<2x32xf32>
    %cst_288 = arith.constant 1.000000e+00 : f32
    %996 = vector.broadcast %cst_288 : f32 to vector<2x32xf32>
    %997 = arith.addf %996, %995 : vector<2x32xf32>
    %998 = arith.divf %996, %997 : vector<2x32xf32>
    %999 = vector.extract_strided_slice %983 {offsets = [0, 32], sizes = [2, 32], strides = [1, 1]} : vector<2x192xf32> to vector<2x32xf32>
    %1000 = vector.extract_strided_slice %987 {offsets = [0, 32], sizes = [2, 32], strides = [1, 1]} : vector<2x96xf32> to vector<2x32xf32>
    %1001 = arith.addf %999, %1000 : vector<2x32xf32>
    %1002 = arith.negf %1001 : vector<2x32xf32>
    %1003 = math.exp %1002 : vector<2x32xf32>
    %cst_289 = arith.constant 1.000000e+00 : f32
    %1004 = vector.broadcast %cst_289 : f32 to vector<2x32xf32>
    %1005 = arith.addf %1004, %1003 : vector<2x32xf32>
    %1006 = arith.divf %1004, %1005 : vector<2x32xf32>
    %1007 = vector.extract_strided_slice %983 {offsets = [0, 64], sizes = [2, 32], strides = [1, 1]} : vector<2x192xf32> to vector<2x32xf32>
    %1008 = vector.extract_strided_slice %987 {offsets = [0, 64], sizes = [2, 32], strides = [1, 1]} : vector<2x96xf32> to vector<2x32xf32>
    %1009 = arith.mulf %998, %1008 : vector<2x32xf32>
    %1010 = arith.addf %1007, %1009 : vector<2x32xf32>
    %1011 = math.tanh %1010 : vector<2x32xf32>
    %cst_290 = arith.constant 1.000000e+00 : f32
    %1012 = vector.broadcast %cst_290 : f32 to vector<2x32xf32>
    %1013 = arith.subf %1012, %1006 : vector<2x32xf32>
    %1014 = arith.mulf %1013, %1011 : vector<2x32xf32>
    %1015 = arith.mulf %1006, %954 : vector<2x32xf32>
    %1016 = arith.addf %1014, %1015 : vector<2x32xf32>
    %1017 = vector.extract_strided_slice %984 {offsets = [0, 96], sizes = [2, 32], strides = [1, 1]} : vector<2x192xf32> to vector<2x32xf32>
    %1018 = vector.extract_strided_slice %990 {offsets = [0, 0], sizes = [2, 32], strides = [1, 1]} : vector<2x96xf32> to vector<2x32xf32>
    %1019 = arith.addf %1017, %1018 : vector<2x32xf32>
    %1020 = arith.negf %1019 : vector<2x32xf32>
    %1021 = math.exp %1020 : vector<2x32xf32>
    %cst_291 = arith.constant 1.000000e+00 : f32
    %1022 = vector.broadcast %cst_291 : f32 to vector<2x32xf32>
    %1023 = arith.addf %1022, %1021 : vector<2x32xf32>
    %1024 = arith.divf %1022, %1023 : vector<2x32xf32>
    %1025 = vector.extract_strided_slice %984 {offsets = [0, 128], sizes = [2, 32], strides = [1, 1]} : vector<2x192xf32> to vector<2x32xf32>
    %1026 = vector.extract_strided_slice %990 {offsets = [0, 32], sizes = [2, 32], strides = [1, 1]} : vector<2x96xf32> to vector<2x32xf32>
    %1027 = arith.addf %1025, %1026 : vector<2x32xf32>
    %1028 = arith.negf %1027 : vector<2x32xf32>
    %1029 = math.exp %1028 : vector<2x32xf32>
    %cst_292 = arith.constant 1.000000e+00 : f32
    %1030 = vector.broadcast %cst_292 : f32 to vector<2x32xf32>
    %1031 = arith.addf %1030, %1029 : vector<2x32xf32>
    %1032 = arith.divf %1030, %1031 : vector<2x32xf32>
    %1033 = vector.extract_strided_slice %984 {offsets = [0, 160], sizes = [2, 32], strides = [1, 1]} : vector<2x192xf32> to vector<2x32xf32>
    %1034 = vector.extract_strided_slice %990 {offsets = [0, 64], sizes = [2, 32], strides = [1, 1]} : vector<2x96xf32> to vector<2x32xf32>
    %1035 = arith.mulf %1024, %1034 : vector<2x32xf32>
    %1036 = arith.addf %1033, %1035 : vector<2x32xf32>
    %1037 = math.tanh %1036 : vector<2x32xf32>
    %cst_293 = arith.constant 1.000000e+00 : f32
    %1038 = vector.broadcast %cst_293 : f32 to vector<2x32xf32>
    %1039 = arith.subf %1038, %1032 : vector<2x32xf32>
    %1040 = arith.mulf %1039, %1037 : vector<2x32xf32>
    %1041 = arith.mulf %1032, %980 : vector<2x32xf32>
    %1042 = arith.addf %1040, %1041 : vector<2x32xf32>
    %c14_294 = arith.constant 14 : index
    %c0_295 = arith.constant 0 : index
    %1043 = vector.load %arg12[%c14_294, %c0_295] : memref<16x32xf32, #tpu.memory_space<vmem>>, vector<2x32xf32>
    tpu.vector_store %arg12[%c14_294, %c0_295], %1016 {strides = array<i32>} : memref<16x32xf32, #tpu.memory_space<vmem>>, vector<2x32xf32>,
    %c0_296 = arith.constant 0 : index
    %c0_297 = arith.constant 0 : index
    %1044 = vector.load %arg13[%c0_296, %c0_297] : memref<16x32xf32, #tpu.memory_space<vmem>>, vector<2x32xf32>
    tpu.vector_store %arg13[%c0_296, %c0_297], %1042 {strides = array<i32>} : memref<16x32xf32, #tpu.memory_space<vmem>>, vector<2x32xf32>,
    %c4_298 = arith.constant 4 : index
    %c0_299 = arith.constant 0 : index
    %1045 = vector.load %arg10[%c4_298, %c0_299] : memref<16x32xf32, #tpu.memory_space<vmem>>, vector<2x32xf32>
    tpu.vector_store %arg10[%c4_298, %c0_299], %1016 {strides = array<i32>} : memref<16x32xf32, #tpu.memory_space<vmem>>, vector<2x32xf32>,
    %c6_300 = arith.constant 6 : index
    %c0_301 = arith.constant 0 : index
    %1046 = vector.load %arg10[%c6_300, %c0_301] : memref<16x32xf32, #tpu.memory_space<vmem>>, vector<2x32xf32>
    tpu.vector_store %arg10[%c6_300, %c0_301], %1042 {strides = array<i32>} : memref<16x32xf32, #tpu.memory_space<vmem>>, vector<2x32xf32>,
    %c2_302 = arith.constant 2 : index
    %c0_303 = arith.constant 0 : index
    %1047 = vector.load %arg6[%c2_302, %c0_303] : memref<4x192xf32, #tpu.memory_space<vmem>>, vector<1x192xf32>
    %c4_304 = arith.constant 4 : index
    %c0_305 = arith.constant 0 : index
    %1048 = vector.load %arg8[%c4_304, %c0_305] : memref<8x96xf32, #tpu.memory_space<vmem>>, vector<1x96xf32>
    %c5 = arith.constant 5 : index
    %c0_306 = arith.constant 0 : index
    %1049 = vector.load %arg8[%c5, %c0_306] : memref<8x96xf32, #tpu.memory_space<vmem>>, vector<1x96xf32>
    %c128 = arith.constant 128 : index
    %c0_307 = arith.constant 0 : index
    %1050 = vector.load %arg7[%c128, %c0_307] : memref<256x96xf32, #tpu.memory_space<vmem>>, vector<32x96xf32>
    %c160 = arith.constant 160 : index
    %c0_308 = arith.constant 0 : index
    %1051 = vector.load %arg7[%c160, %c0_308] : memref<256x96xf32, #tpu.memory_space<vmem>>, vector<32x96xf32>
    %c64_309 = arith.constant 64 : index
    %c0_310 = arith.constant 0 : index
    %1052 = vector.load %arg5[%c64_309, %c0_310] : memref<192x192xf32, #tpu.memory_space<vmem>>, vector<64x192xf32>
    %c0_311 = arith.constant 0 : index
    %c0_312 = arith.constant 0 : index
    %1053 = vector.load %arg12[%c0_311, %c0_312] : memref<16x32xf32, #tpu.memory_space<vmem>>, vector<16x32xf32>
    %1054 = vector.extract_strided_slice %1052 {offsets = [0, 0], sizes = [32, 192], strides = [1, 1]} : vector<64x192xf32> to vector<32x192xf32>
    %cst_313 = arith.constant dense<0.000000e+00> : vector<16x192xf32>
    %1055 = tpu.matmul %1053, %1054, %cst_313 {dimension_numbers = #tpu.dot_dimension_numbers<[1], [0], [0], [1], [0, 0, 1, 1], [], []>} : vector<16x32xf32>, vector<32x192xf32>, vector<16x192xf32> -> vector<16x192xf32>
    %c0_314 = arith.constant 0 : index
    %c0_315 = arith.constant 0 : index
    %1056 = vector.load %arg13[%c0_314, %c0_315] : memref<16x32xf32, #tpu.memory_space<vmem>>, vector<16x32xf32>
    %1057 = vector.extract_strided_slice %1052 {offsets = [32, 0], sizes = [32, 192], strides = [1, 1]} : vector<64x192xf32> to vector<32x192xf32>
    %cst_316 = arith.constant dense<0.000000e+00> : vector<16x192xf32>
    %1058 = tpu.matmul %1056, %1057, %cst_316 {dimension_numbers = #tpu.dot_dimension_numbers<[1], [0], [0], [1], [0, 0, 1, 1], [], []>} : vector<16x32xf32>, vector<32x192xf32>, vector<16x192xf32> -> vector<16x192xf32>
    %1059 = arith.addf %1055, %1058 : vector<16x192xf32>
    %1060 = vector.broadcast %1047 : vector<1x192xf32> to vector<16x192xf32>
    %1061 = arith.addf %1059, %1060 : vector<16x192xf32>
    %c0_317 = arith.constant 0 : index
    %c0_318 = arith.constant 0 : index
    %1062 = vector.load %arg11[%c0_317, %c0_318] : memref<16x192xf32, #tpu.memory_space<vmem>>, vector<16x192xf32>
    tpu.vector_store %arg11[%c0_317, %c0_318], %1061 {strides = array<i32>} : memref<16x192xf32, #tpu.memory_space<vmem>>, vector<16x192xf32>,
    %cst_319 = arith.constant 0.000000e+00 : f32
    %1063 = vector.broadcast %cst_319 : f32 to vector<2x32xf32>
    %cst_320 = arith.constant 0.000000e+00 : f32
    %1064 = vector.broadcast %cst_320 : f32 to vector<2x32xf32>
    %c0_321 = arith.constant 0 : index
    %c0_322 = arith.constant 0 : index
    %1065 = vector.load %arg11[%c0_321, %c0_322] : memref<16x192xf32, #tpu.memory_space<vmem>>, vector<2x192xf32>
    %c14_323 = arith.constant 14 : index
    %c0_324 = arith.constant 0 : index
    %1066 = vector.load %arg11[%c14_323, %c0_324] : memref<16x192xf32, #tpu.memory_space<vmem>>, vector<2x192xf32>
    %cst_325 = arith.constant dense<0.000000e+00> : vector<2x96xf32>
    %1067 = tpu.matmul %1063, %1050, %cst_325 {dimension_numbers = #tpu.dot_dimension_numbers<[1], [0], [0], [1], [0, 0, 1, 1], [], []>} : vector<2x32xf32>, vector<32x96xf32>, vector<2x96xf32> -> vector<2x96xf32>
    %1068 = vector.broadcast %1048 : vector<1x96xf32> to vector<2x96xf32>
    %1069 = arith.addf %1067, %1068 : vector<2x96xf32>
    %cst_326 = arith.constant dense<0.000000e+00> : vector<2x96xf32>
    %1070 = tpu.matmul %1064, %1051, %cst_326 {dimension_numbers = #tpu.dot_dimension_numbers<[1], [0], [0], [1], [0, 0, 1, 1], [], []>} : vector<2x32xf32>, vector<32x96xf32>, vector<2x96xf32> -> vector<2x96xf32>
    %1071 = vector.broadcast %1049 : vector<1x96xf32> to vector<2x96xf32>
    %1072 = arith.addf %1070, %1071 : vector<2x96xf32>
    %1073 = vector.extract_strided_slice %1065 {offsets = [0, 0], sizes = [2, 32], strides = [1, 1]} : vector<2x192xf32> to vector<2x32xf32>
    %1074 = vector.extract_strided_slice %1069 {offsets = [0, 0], sizes = [2, 32], strides = [1, 1]} : vector<2x96xf32> to vector<2x32xf32>
    %1075 = arith.addf %1073, %1074 : vector<2x32xf32>
    %1076 = arith.negf %1075 : vector<2x32xf32>
    %1077 = math.exp %1076 : vector<2x32xf32>
    %cst_327 = arith.constant 1.000000e+00 : f32
    %1078 = vector.broadcast %cst_327 : f32 to vector<2x32xf32>
    %1079 = arith.addf %1078, %1077 : vector<2x32xf32>
    %1080 = arith.divf %1078, %1079 : vector<2x32xf32>
    %1081 = vector.extract_strided_slice %1065 {offsets = [0, 32], sizes = [2, 32], strides = [1, 1]} : vector<2x192xf32> to vector<2x32xf32>
    %1082 = vector.extract_strided_slice %1069 {offsets = [0, 32], sizes = [2, 32], strides = [1, 1]} : vector<2x96xf32> to vector<2x32xf32>
    %1083 = arith.addf %1081, %1082 : vector<2x32xf32>
    %1084 = arith.negf %1083 : vector<2x32xf32>
    %1085 = math.exp %1084 : vector<2x32xf32>
    %cst_328 = arith.constant 1.000000e+00 : f32
    %1086 = vector.broadcast %cst_328 : f32 to vector<2x32xf32>
    %1087 = arith.addf %1086, %1085 : vector<2x32xf32>
    %1088 = arith.divf %1086, %1087 : vector<2x32xf32>
    %1089 = vector.extract_strided_slice %1065 {offsets = [0, 64], sizes = [2, 32], strides = [1, 1]} : vector<2x192xf32> to vector<2x32xf32>
    %1090 = vector.extract_strided_slice %1069 {offsets = [0, 64], sizes = [2, 32], strides = [1, 1]} : vector<2x96xf32> to vector<2x32xf32>
    %1091 = arith.mulf %1080, %1090 : vector<2x32xf32>
    %1092 = arith.addf %1089, %1091 : vector<2x32xf32>
    %1093 = math.tanh %1092 : vector<2x32xf32>
    %cst_329 = arith.constant 1.000000e+00 : f32
    %1094 = vector.broadcast %cst_329 : f32 to vector<2x32xf32>
    %1095 = arith.subf %1094, %1088 : vector<2x32xf32>
    %1096 = arith.mulf %1095, %1093 : vector<2x32xf32>
    %1097 = arith.mulf %1088, %1063 : vector<2x32xf32>
    %1098 = arith.addf %1096, %1097 : vector<2x32xf32>
    %1099 = vector.extract_strided_slice %1066 {offsets = [0, 96], sizes = [2, 32], strides = [1, 1]} : vector<2x192xf32> to vector<2x32xf32>
    %1100 = vector.extract_strided_slice %1072 {offsets = [0, 0], sizes = [2, 32], strides = [1, 1]} : vector<2x96xf32> to vector<2x32xf32>
    %1101 = arith.addf %1099, %1100 : vector<2x32xf32>
    %1102 = arith.negf %1101 : vector<2x32xf32>
    %1103 = math.exp %1102 : vector<2x32xf32>
    %cst_330 = arith.constant 1.000000e+00 : f32
    %1104 = vector.broadcast %cst_330 : f32 to vector<2x32xf32>
    %1105 = arith.addf %1104, %1103 : vector<2x32xf32>
    %1106 = arith.divf %1104, %1105 : vector<2x32xf32>
    %1107 = vector.extract_strided_slice %1066 {offsets = [0, 128], sizes = [2, 32], strides = [1, 1]} : vector<2x192xf32> to vector<2x32xf32>
    %1108 = vector.extract_strided_slice %1072 {offsets = [0, 32], sizes = [2, 32], strides = [1, 1]} : vector<2x96xf32> to vector<2x32xf32>
    %1109 = arith.addf %1107, %1108 : vector<2x32xf32>
    %1110 = arith.negf %1109 : vector<2x32xf32>
    %1111 = math.exp %1110 : vector<2x32xf32>
    %cst_331 = arith.constant 1.000000e+00 : f32
    %1112 = vector.broadcast %cst_331 : f32 to vector<2x32xf32>
    %1113 = arith.addf %1112, %1111 : vector<2x32xf32>
    %1114 = arith.divf %1112, %1113 : vector<2x32xf32>
    %1115 = vector.extract_strided_slice %1066 {offsets = [0, 160], sizes = [2, 32], strides = [1, 1]} : vector<2x192xf32> to vector<2x32xf32>
    %1116 = vector.extract_strided_slice %1072 {offsets = [0, 64], sizes = [2, 32], strides = [1, 1]} : vector<2x96xf32> to vector<2x32xf32>
    %1117 = arith.mulf %1106, %1116 : vector<2x32xf32>
    %1118 = arith.addf %1115, %1117 : vector<2x32xf32>
    %1119 = math.tanh %1118 : vector<2x32xf32>
    %cst_332 = arith.constant 1.000000e+00 : f32
    %1120 = vector.broadcast %cst_332 : f32 to vector<2x32xf32>
    %1121 = arith.subf %1120, %1114 : vector<2x32xf32>
    %1122 = arith.mulf %1121, %1119 : vector<2x32xf32>
    %1123 = arith.mulf %1114, %1064 : vector<2x32xf32>
    %1124 = arith.addf %1122, %1123 : vector<2x32xf32>
    %c0_333 = arith.constant 0 : index
    %c0_334 = arith.constant 0 : index
    %1125 = vector.load %arg12[%c0_333, %c0_334] : memref<16x32xf32, #tpu.memory_space<vmem>>, vector<2x32xf32>
    tpu.vector_store %arg12[%c0_333, %c0_334], %1098 {strides = array<i32>} : memref<16x32xf32, #tpu.memory_space<vmem>>, vector<2x32xf32>,
    %c14_335 = arith.constant 14 : index
    %c0_336 = arith.constant 0 : index
    %1126 = vector.load %arg13[%c14_335, %c0_336] : memref<16x32xf32, #tpu.memory_space<vmem>>, vector<2x32xf32>
    tpu.vector_store %arg13[%c14_335, %c0_336], %1124 {strides = array<i32>} : memref<16x32xf32, #tpu.memory_space<vmem>>, vector<2x32xf32>,
    %c2_337 = arith.constant 2 : index
    %c0_338 = arith.constant 0 : index
    %1127 = vector.load %arg11[%c2_337, %c0_338] : memref<16x192xf32, #tpu.memory_space<vmem>>, vector<2x192xf32>
    %c12_339 = arith.constant 12 : index
    %c0_340 = arith.constant 0 : index
    %1128 = vector.load %arg11[%c12_339, %c0_340] : memref<16x192xf32, #tpu.memory_space<vmem>>, vector<2x192xf32>
    %cst_341 = arith.constant dense<0.000000e+00> : vector<2x96xf32>
    %1129 = tpu.matmul %1098, %1050, %cst_341 {dimension_numbers = #tpu.dot_dimension_numbers<[1], [0], [0], [1], [0, 0, 1, 1], [], []>} : vector<2x32xf32>, vector<32x96xf32>, vector<2x96xf32> -> vector<2x96xf32>
    %1130 = vector.broadcast %1048 : vector<1x96xf32> to vector<2x96xf32>
    %1131 = arith.addf %1129, %1130 : vector<2x96xf32>
    %cst_342 = arith.constant dense<0.000000e+00> : vector<2x96xf32>
    %1132 = tpu.matmul %1124, %1051, %cst_342 {dimension_numbers = #tpu.dot_dimension_numbers<[1], [0], [0], [1], [0, 0, 1, 1], [], []>} : vector<2x32xf32>, vector<32x96xf32>, vector<2x96xf32> -> vector<2x96xf32>
    %1133 = vector.broadcast %1049 : vector<1x96xf32> to vector<2x96xf32>
    %1134 = arith.addf %1132, %1133 : vector<2x96xf32>
    %1135 = vector.extract_strided_slice %1127 {offsets = [0, 0], sizes = [2, 32], strides = [1, 1]} : vector<2x192xf32> to vector<2x32xf32>
    %1136 = vector.extract_strided_slice %1131 {offsets = [0, 0], sizes = [2, 32], strides = [1, 1]} : vector<2x96xf32> to vector<2x32xf32>
    %1137 = arith.addf %1135, %1136 : vector<2x32xf32>
    %1138 = arith.negf %1137 : vector<2x32xf32>
    %1139 = math.exp %1138 : vector<2x32xf32>
    %cst_343 = arith.constant 1.000000e+00 : f32
    %1140 = vector.broadcast %cst_343 : f32 to vector<2x32xf32>
    %1141 = arith.addf %1140, %1139 : vector<2x32xf32>
    %1142 = arith.divf %1140, %1141 : vector<2x32xf32>
    %1143 = vector.extract_strided_slice %1127 {offsets = [0, 32], sizes = [2, 32], strides = [1, 1]} : vector<2x192xf32> to vector<2x32xf32>
    %1144 = vector.extract_strided_slice %1131 {offsets = [0, 32], sizes = [2, 32], strides = [1, 1]} : vector<2x96xf32> to vector<2x32xf32>
    %1145 = arith.addf %1143, %1144 : vector<2x32xf32>
    %1146 = arith.negf %1145 : vector<2x32xf32>
    %1147 = math.exp %1146 : vector<2x32xf32>
    %cst_344 = arith.constant 1.000000e+00 : f32
    %1148 = vector.broadcast %cst_344 : f32 to vector<2x32xf32>
    %1149 = arith.addf %1148, %1147 : vector<2x32xf32>
    %1150 = arith.divf %1148, %1149 : vector<2x32xf32>
    %1151 = vector.extract_strided_slice %1127 {offsets = [0, 64], sizes = [2, 32], strides = [1, 1]} : vector<2x192xf32> to vector<2x32xf32>
    %1152 = vector.extract_strided_slice %1131 {offsets = [0, 64], sizes = [2, 32], strides = [1, 1]} : vector<2x96xf32> to vector<2x32xf32>
    %1153 = arith.mulf %1142, %1152 : vector<2x32xf32>
    %1154 = arith.addf %1151, %1153 : vector<2x32xf32>
    %1155 = math.tanh %1154 : vector<2x32xf32>
    %cst_345 = arith.constant 1.000000e+00 : f32
    %1156 = vector.broadcast %cst_345 : f32 to vector<2x32xf32>
    %1157 = arith.subf %1156, %1150 : vector<2x32xf32>
    %1158 = arith.mulf %1157, %1155 : vector<2x32xf32>
    %1159 = arith.mulf %1150, %1098 : vector<2x32xf32>
    %1160 = arith.addf %1158, %1159 : vector<2x32xf32>
    %1161 = vector.extract_strided_slice %1128 {offsets = [0, 96], sizes = [2, 32], strides = [1, 1]} : vector<2x192xf32> to vector<2x32xf32>
    %1162 = vector.extract_strided_slice %1134 {offsets = [0, 0], sizes = [2, 32], strides = [1, 1]} : vector<2x96xf32> to vector<2x32xf32>
    %1163 = arith.addf %1161, %1162 : vector<2x32xf32>
    %1164 = arith.negf %1163 : vector<2x32xf32>
    %1165 = math.exp %1164 : vector<2x32xf32>
    %cst_346 = arith.constant 1.000000e+00 : f32
    %1166 = vector.broadcast %cst_346 : f32 to vector<2x32xf32>
    %1167 = arith.addf %1166, %1165 : vector<2x32xf32>
    %1168 = arith.divf %1166, %1167 : vector<2x32xf32>
    %1169 = vector.extract_strided_slice %1128 {offsets = [0, 128], sizes = [2, 32], strides = [1, 1]} : vector<2x192xf32> to vector<2x32xf32>
    %1170 = vector.extract_strided_slice %1134 {offsets = [0, 32], sizes = [2, 32], strides = [1, 1]} : vector<2x96xf32> to vector<2x32xf32>
    %1171 = arith.addf %1169, %1170 : vector<2x32xf32>
    %1172 = arith.negf %1171 : vector<2x32xf32>
    %1173 = math.exp %1172 : vector<2x32xf32>
    %cst_347 = arith.constant 1.000000e+00 : f32
    %1174 = vector.broadcast %cst_347 : f32 to vector<2x32xf32>
    %1175 = arith.addf %1174, %1173 : vector<2x32xf32>
    %1176 = arith.divf %1174, %1175 : vector<2x32xf32>
    %1177 = vector.extract_strided_slice %1128 {offsets = [0, 160], sizes = [2, 32], strides = [1, 1]} : vector<2x192xf32> to vector<2x32xf32>
    %1178 = vector.extract_strided_slice %1134 {offsets = [0, 64], sizes = [2, 32], strides = [1, 1]} : vector<2x96xf32> to vector<2x32xf32>
    %1179 = arith.mulf %1168, %1178 : vector<2x32xf32>
    %1180 = arith.addf %1177, %1179 : vector<2x32xf32>
    %1181 = math.tanh %1180 : vector<2x32xf32>
    %cst_348 = arith.constant 1.000000e+00 : f32
    %1182 = vector.broadcast %cst_348 : f32 to vector<2x32xf32>
    %1183 = arith.subf %1182, %1176 : vector<2x32xf32>
    %1184 = arith.mulf %1183, %1181 : vector<2x32xf32>
    %1185 = arith.mulf %1176, %1124 : vector<2x32xf32>
    %1186 = arith.addf %1184, %1185 : vector<2x32xf32>
    %c2_349 = arith.constant 2 : index
    %c0_350 = arith.constant 0 : index
    %1187 = vector.load %arg12[%c2_349, %c0_350] : memref<16x32xf32, #tpu.memory_space<vmem>>, vector<2x32xf32>
    tpu.vector_store %arg12[%c2_349, %c0_350], %1160 {strides = array<i32>} : memref<16x32xf32, #tpu.memory_space<vmem>>, vector<2x32xf32>,
    %c12_351 = arith.constant 12 : index
    %c0_352 = arith.constant 0 : index
    %1188 = vector.load %arg13[%c12_351, %c0_352] : memref<16x32xf32, #tpu.memory_space<vmem>>, vector<2x32xf32>
    tpu.vector_store %arg13[%c12_351, %c0_352], %1186 {strides = array<i32>} : memref<16x32xf32, #tpu.memory_space<vmem>>, vector<2x32xf32>,
    %c4_353 = arith.constant 4 : index
    %c0_354 = arith.constant 0 : index
    %1189 = vector.load %arg11[%c4_353, %c0_354] : memref<16x192xf32, #tpu.memory_space<vmem>>, vector<2x192xf32>
    %c10_355 = arith.constant 10 : index
    %c0_356 = arith.constant 0 : index
    %1190 = vector.load %arg11[%c10_355, %c0_356] : memref<16x192xf32, #tpu.memory_space<vmem>>, vector<2x192xf32>
    %cst_357 = arith.constant dense<0.000000e+00> : vector<2x96xf32>
    %1191 = tpu.matmul %1160, %1050, %cst_357 {dimension_numbers = #tpu.dot_dimension_numbers<[1], [0], [0], [1], [0, 0, 1, 1], [], []>} : vector<2x32xf32>, vector<32x96xf32>, vector<2x96xf32> -> vector<2x96xf32>
    %1192 = vector.broadcast %1048 : vector<1x96xf32> to vector<2x96xf32>
    %1193 = arith.addf %1191, %1192 : vector<2x96xf32>
    %cst_358 = arith.constant dense<0.000000e+00> : vector<2x96xf32>
    %1194 = tpu.matmul %1186, %1051, %cst_358 {dimension_numbers = #tpu.dot_dimension_numbers<[1], [0], [0], [1], [0, 0, 1, 1], [], []>} : vector<2x32xf32>, vector<32x96xf32>, vector<2x96xf32> -> vector<2x96xf32>
    %1195 = vector.broadcast %1049 : vector<1x96xf32> to vector<2x96xf32>
    %1196 = arith.addf %1194, %1195 : vector<2x96xf32>
    %1197 = vector.extract_strided_slice %1189 {offsets = [0, 0], sizes = [2, 32], strides = [1, 1]} : vector<2x192xf32> to vector<2x32xf32>
    %1198 = vector.extract_strided_slice %1193 {offsets = [0, 0], sizes = [2, 32], strides = [1, 1]} : vector<2x96xf32> to vector<2x32xf32>
    %1199 = arith.addf %1197, %1198 : vector<2x32xf32>
    %1200 = arith.negf %1199 : vector<2x32xf32>
    %1201 = math.exp %1200 : vector<2x32xf32>
    %cst_359 = arith.constant 1.000000e+00 : f32
    %1202 = vector.broadcast %cst_359 : f32 to vector<2x32xf32>
    %1203 = arith.addf %1202, %1201 : vector<2x32xf32>
    %1204 = arith.divf %1202, %1203 : vector<2x32xf32>
    %1205 = vector.extract_strided_slice %1189 {offsets = [0, 32], sizes = [2, 32], strides = [1, 1]} : vector<2x192xf32> to vector<2x32xf32>
    %1206 = vector.extract_strided_slice %1193 {offsets = [0, 32], sizes = [2, 32], strides = [1, 1]} : vector<2x96xf32> to vector<2x32xf32>
    %1207 = arith.addf %1205, %1206 : vector<2x32xf32>
    %1208 = arith.negf %1207 : vector<2x32xf32>
    %1209 = math.exp %1208 : vector<2x32xf32>
    %cst_360 = arith.constant 1.000000e+00 : f32
    %1210 = vector.broadcast %cst_360 : f32 to vector<2x32xf32>
    %1211 = arith.addf %1210, %1209 : vector<2x32xf32>
    %1212 = arith.divf %1210, %1211 : vector<2x32xf32>
    %1213 = vector.extract_strided_slice %1189 {offsets = [0, 64], sizes = [2, 32], strides = [1, 1]} : vector<2x192xf32> to vector<2x32xf32>
    %1214 = vector.extract_strided_slice %1193 {offsets = [0, 64], sizes = [2, 32], strides = [1, 1]} : vector<2x96xf32> to vector<2x32xf32>
    %1215 = arith.mulf %1204, %1214 : vector<2x32xf32>
    %1216 = arith.addf %1213, %1215 : vector<2x32xf32>
    %1217 = math.tanh %1216 : vector<2x32xf32>
    %cst_361 = arith.constant 1.000000e+00 : f32
    %1218 = vector.broadcast %cst_361 : f32 to vector<2x32xf32>
    %1219 = arith.subf %1218, %1212 : vector<2x32xf32>
    %1220 = arith.mulf %1219, %1217 : vector<2x32xf32>
    %1221 = arith.mulf %1212, %1160 : vector<2x32xf32>
    %1222 = arith.addf %1220, %1221 : vector<2x32xf32>
    %1223 = vector.extract_strided_slice %1190 {offsets = [0, 96], sizes = [2, 32], strides = [1, 1]} : vector<2x192xf32> to vector<2x32xf32>
    %1224 = vector.extract_strided_slice %1196 {offsets = [0, 0], sizes = [2, 32], strides = [1, 1]} : vector<2x96xf32> to vector<2x32xf32>
    %1225 = arith.addf %1223, %1224 : vector<2x32xf32>
    %1226 = arith.negf %1225 : vector<2x32xf32>
    %1227 = math.exp %1226 : vector<2x32xf32>
    %cst_362 = arith.constant 1.000000e+00 : f32
    %1228 = vector.broadcast %cst_362 : f32 to vector<2x32xf32>
    %1229 = arith.addf %1228, %1227 : vector<2x32xf32>
    %1230 = arith.divf %1228, %1229 : vector<2x32xf32>
    %1231 = vector.extract_strided_slice %1190 {offsets = [0, 128], sizes = [2, 32], strides = [1, 1]} : vector<2x192xf32> to vector<2x32xf32>
    %1232 = vector.extract_strided_slice %1196 {offsets = [0, 32], sizes = [2, 32], strides = [1, 1]} : vector<2x96xf32> to vector<2x32xf32>
    %1233 = arith.addf %1231, %1232 : vector<2x32xf32>
    %1234 = arith.negf %1233 : vector<2x32xf32>
    %1235 = math.exp %1234 : vector<2x32xf32>
    %cst_363 = arith.constant 1.000000e+00 : f32
    %1236 = vector.broadcast %cst_363 : f32 to vector<2x32xf32>
    %1237 = arith.addf %1236, %1235 : vector<2x32xf32>
    %1238 = arith.divf %1236, %1237 : vector<2x32xf32>
    %1239 = vector.extract_strided_slice %1190 {offsets = [0, 160], sizes = [2, 32], strides = [1, 1]} : vector<2x192xf32> to vector<2x32xf32>
    %1240 = vector.extract_strided_slice %1196 {offsets = [0, 64], sizes = [2, 32], strides = [1, 1]} : vector<2x96xf32> to vector<2x32xf32>
    %1241 = arith.mulf %1230, %1240 : vector<2x32xf32>
    %1242 = arith.addf %1239, %1241 : vector<2x32xf32>
    %1243 = math.tanh %1242 : vector<2x32xf32>
    %cst_364 = arith.constant 1.000000e+00 : f32
    %1244 = vector.broadcast %cst_364 : f32 to vector<2x32xf32>
    %1245 = arith.subf %1244, %1238 : vector<2x32xf32>
    %1246 = arith.mulf %1245, %1243 : vector<2x32xf32>
    %1247 = arith.mulf %1238, %1186 : vector<2x32xf32>
    %1248 = arith.addf %1246, %1247 : vector<2x32xf32>
    %c4_365 = arith.constant 4 : index
    %c0_366 = arith.constant 0 : index
    %1249 = vector.load %arg12[%c4_365, %c0_366] : memref<16x32xf32, #tpu.memory_space<vmem>>, vector<2x32xf32>
    tpu.vector_store %arg12[%c4_365, %c0_366], %1222 {strides = array<i32>} : memref<16x32xf32, #tpu.memory_space<vmem>>, vector<2x32xf32>,
    %c10_367 = arith.constant 10 : index
    %c0_368 = arith.constant 0 : index
    %1250 = vector.load %arg13[%c10_367, %c0_368] : memref<16x32xf32, #tpu.memory_space<vmem>>, vector<2x32xf32>
    tpu.vector_store %arg13[%c10_367, %c0_368], %1248 {strides = array<i32>} : memref<16x32xf32, #tpu.memory_space<vmem>>, vector<2x32xf32>,
    %c6_369 = arith.constant 6 : index
    %c0_370 = arith.constant 0 : index
    %1251 = vector.load %arg11[%c6_369, %c0_370] : memref<16x192xf32, #tpu.memory_space<vmem>>, vector<2x192xf32>
    %c8_371 = arith.constant 8 : index
    %c0_372 = arith.constant 0 : index
    %1252 = vector.load %arg11[%c8_371, %c0_372] : memref<16x192xf32, #tpu.memory_space<vmem>>, vector<2x192xf32>
    %cst_373 = arith.constant dense<0.000000e+00> : vector<2x96xf32>
    %1253 = tpu.matmul %1222, %1050, %cst_373 {dimension_numbers = #tpu.dot_dimension_numbers<[1], [0], [0], [1], [0, 0, 1, 1], [], []>} : vector<2x32xf32>, vector<32x96xf32>, vector<2x96xf32> -> vector<2x96xf32>
    %1254 = vector.broadcast %1048 : vector<1x96xf32> to vector<2x96xf32>
    %1255 = arith.addf %1253, %1254 : vector<2x96xf32>
    %cst_374 = arith.constant dense<0.000000e+00> : vector<2x96xf32>
    %1256 = tpu.matmul %1248, %1051, %cst_374 {dimension_numbers = #tpu.dot_dimension_numbers<[1], [0], [0], [1], [0, 0, 1, 1], [], []>} : vector<2x32xf32>, vector<32x96xf32>, vector<2x96xf32> -> vector<2x96xf32>
    %1257 = vector.broadcast %1049 : vector<1x96xf32> to vector<2x96xf32>
    %1258 = arith.addf %1256, %1257 : vector<2x96xf32>
    %1259 = vector.extract_strided_slice %1251 {offsets = [0, 0], sizes = [2, 32], strides = [1, 1]} : vector<2x192xf32> to vector<2x32xf32>
    %1260 = vector.extract_strided_slice %1255 {offsets = [0, 0], sizes = [2, 32], strides = [1, 1]} : vector<2x96xf32> to vector<2x32xf32>
    %1261 = arith.addf %1259, %1260 : vector<2x32xf32>
    %1262 = arith.negf %1261 : vector<2x32xf32>
    %1263 = math.exp %1262 : vector<2x32xf32>
    %cst_375 = arith.constant 1.000000e+00 : f32
    %1264 = vector.broadcast %cst_375 : f32 to vector<2x32xf32>
    %1265 = arith.addf %1264, %1263 : vector<2x32xf32>
    %1266 = arith.divf %1264, %1265 : vector<2x32xf32>
    %1267 = vector.extract_strided_slice %1251 {offsets = [0, 32], sizes = [2, 32], strides = [1, 1]} : vector<2x192xf32> to vector<2x32xf32>
    %1268 = vector.extract_strided_slice %1255 {offsets = [0, 32], sizes = [2, 32], strides = [1, 1]} : vector<2x96xf32> to vector<2x32xf32>
    %1269 = arith.addf %1267, %1268 : vector<2x32xf32>
    %1270 = arith.negf %1269 : vector<2x32xf32>
    %1271 = math.exp %1270 : vector<2x32xf32>
    %cst_376 = arith.constant 1.000000e+00 : f32
    %1272 = vector.broadcast %cst_376 : f32 to vector<2x32xf32>
    %1273 = arith.addf %1272, %1271 : vector<2x32xf32>
    %1274 = arith.divf %1272, %1273 : vector<2x32xf32>
    %1275 = vector.extract_strided_slice %1251 {offsets = [0, 64], sizes = [2, 32], strides = [1, 1]} : vector<2x192xf32> to vector<2x32xf32>
    %1276 = vector.extract_strided_slice %1255 {offsets = [0, 64], sizes = [2, 32], strides = [1, 1]} : vector<2x96xf32> to vector<2x32xf32>
    %1277 = arith.mulf %1266, %1276 : vector<2x32xf32>
    %1278 = arith.addf %1275, %1277 : vector<2x32xf32>
    %1279 = math.tanh %1278 : vector<2x32xf32>
    %cst_377 = arith.constant 1.000000e+00 : f32
    %1280 = vector.broadcast %cst_377 : f32 to vector<2x32xf32>
    %1281 = arith.subf %1280, %1274 : vector<2x32xf32>
    %1282 = arith.mulf %1281, %1279 : vector<2x32xf32>
    %1283 = arith.mulf %1274, %1222 : vector<2x32xf32>
    %1284 = arith.addf %1282, %1283 : vector<2x32xf32>
    %1285 = vector.extract_strided_slice %1252 {offsets = [0, 96], sizes = [2, 32], strides = [1, 1]} : vector<2x192xf32> to vector<2x32xf32>
    %1286 = vector.extract_strided_slice %1258 {offsets = [0, 0], sizes = [2, 32], strides = [1, 1]} : vector<2x96xf32> to vector<2x32xf32>
    %1287 = arith.addf %1285, %1286 : vector<2x32xf32>
    %1288 = arith.negf %1287 : vector<2x32xf32>
    %1289 = math.exp %1288 : vector<2x32xf32>
    %cst_378 = arith.constant 1.000000e+00 : f32
    %1290 = vector.broadcast %cst_378 : f32 to vector<2x32xf32>
    %1291 = arith.addf %1290, %1289 : vector<2x32xf32>
    %1292 = arith.divf %1290, %1291 : vector<2x32xf32>
    %1293 = vector.extract_strided_slice %1252 {offsets = [0, 128], sizes = [2, 32], strides = [1, 1]} : vector<2x192xf32> to vector<2x32xf32>
    %1294 = vector.extract_strided_slice %1258 {offsets = [0, 32], sizes = [2, 32], strides = [1, 1]} : vector<2x96xf32> to vector<2x32xf32>
    %1295 = arith.addf %1293, %1294 : vector<2x32xf32>
    %1296 = arith.negf %1295 : vector<2x32xf32>
    %1297 = math.exp %1296 : vector<2x32xf32>
    %cst_379 = arith.constant 1.000000e+00 : f32
    %1298 = vector.broadcast %cst_379 : f32 to vector<2x32xf32>
    %1299 = arith.addf %1298, %1297 : vector<2x32xf32>
    %1300 = arith.divf %1298, %1299 : vector<2x32xf32>
    %1301 = vector.extract_strided_slice %1252 {offsets = [0, 160], sizes = [2, 32], strides = [1, 1]} : vector<2x192xf32> to vector<2x32xf32>
    %1302 = vector.extract_strided_slice %1258 {offsets = [0, 64], sizes = [2, 32], strides = [1, 1]} : vector<2x96xf32> to vector<2x32xf32>
    %1303 = arith.mulf %1292, %1302 : vector<2x32xf32>
    %1304 = arith.addf %1301, %1303 : vector<2x32xf32>
    %1305 = math.tanh %1304 : vector<2x32xf32>
    %cst_380 = arith.constant 1.000000e+00 : f32
    %1306 = vector.broadcast %cst_380 : f32 to vector<2x32xf32>
    %1307 = arith.subf %1306, %1300 : vector<2x32xf32>
    %1308 = arith.mulf %1307, %1305 : vector<2x32xf32>
    %1309 = arith.mulf %1300, %1248 : vector<2x32xf32>
    %1310 = arith.addf %1308, %1309 : vector<2x32xf32>
    %c6_381 = arith.constant 6 : index
    %c0_382 = arith.constant 0 : index
    %1311 = vector.load %arg12[%c6_381, %c0_382] : memref<16x32xf32, #tpu.memory_space<vmem>>, vector<2x32xf32>
    tpu.vector_store %arg12[%c6_381, %c0_382], %1284 {strides = array<i32>} : memref<16x32xf32, #tpu.memory_space<vmem>>, vector<2x32xf32>,
    %c8_383 = arith.constant 8 : index
    %c0_384 = arith.constant 0 : index
    %1312 = vector.load %arg13[%c8_383, %c0_384] : memref<16x32xf32, #tpu.memory_space<vmem>>, vector<2x32xf32>
    tpu.vector_store %arg13[%c8_383, %c0_384], %1310 {strides = array<i32>} : memref<16x32xf32, #tpu.memory_space<vmem>>, vector<2x32xf32>,
    %c8_385 = arith.constant 8 : index
    %c0_386 = arith.constant 0 : index
    %1313 = vector.load %arg11[%c8_385, %c0_386] : memref<16x192xf32, #tpu.memory_space<vmem>>, vector<2x192xf32>
    %c6_387 = arith.constant 6 : index
    %c0_388 = arith.constant 0 : index
    %1314 = vector.load %arg11[%c6_387, %c0_388] : memref<16x192xf32, #tpu.memory_space<vmem>>, vector<2x192xf32>
    %cst_389 = arith.constant dense<0.000000e+00> : vector<2x96xf32>
    %1315 = tpu.matmul %1284, %1050, %cst_389 {dimension_numbers = #tpu.dot_dimension_numbers<[1], [0], [0], [1], [0, 0, 1, 1], [], []>} : vector<2x32xf32>, vector<32x96xf32>, vector<2x96xf32> -> vector<2x96xf32>
    %1316 = vector.broadcast %1048 : vector<1x96xf32> to vector<2x96xf32>
    %1317 = arith.addf %1315, %1316 : vector<2x96xf32>
    %cst_390 = arith.constant dense<0.000000e+00> : vector<2x96xf32>
    %1318 = tpu.matmul %1310, %1051, %cst_390 {dimension_numbers = #tpu.dot_dimension_numbers<[1], [0], [0], [1], [0, 0, 1, 1], [], []>} : vector<2x32xf32>, vector<32x96xf32>, vector<2x96xf32> -> vector<2x96xf32>
    %1319 = vector.broadcast %1049 : vector<1x96xf32> to vector<2x96xf32>
    %1320 = arith.addf %1318, %1319 : vector<2x96xf32>
    %1321 = vector.extract_strided_slice %1313 {offsets = [0, 0], sizes = [2, 32], strides = [1, 1]} : vector<2x192xf32> to vector<2x32xf32>
    %1322 = vector.extract_strided_slice %1317 {offsets = [0, 0], sizes = [2, 32], strides = [1, 1]} : vector<2x96xf32> to vector<2x32xf32>
    %1323 = arith.addf %1321, %1322 : vector<2x32xf32>
    %1324 = arith.negf %1323 : vector<2x32xf32>
    %1325 = math.exp %1324 : vector<2x32xf32>
    %cst_391 = arith.constant 1.000000e+00 : f32
    %1326 = vector.broadcast %cst_391 : f32 to vector<2x32xf32>
    %1327 = arith.addf %1326, %1325 : vector<2x32xf32>
    %1328 = arith.divf %1326, %1327 : vector<2x32xf32>
    %1329 = vector.extract_strided_slice %1313 {offsets = [0, 32], sizes = [2, 32], strides = [1, 1]} : vector<2x192xf32> to vector<2x32xf32>
    %1330 = vector.extract_strided_slice %1317 {offsets = [0, 32], sizes = [2, 32], strides = [1, 1]} : vector<2x96xf32> to vector<2x32xf32>
    %1331 = arith.addf %1329, %1330 : vector<2x32xf32>
    %1332 = arith.negf %1331 : vector<2x32xf32>
    %1333 = math.exp %1332 : vector<2x32xf32>
    %cst_392 = arith.constant 1.000000e+00 : f32
    %1334 = vector.broadcast %cst_392 : f32 to vector<2x32xf32>
    %1335 = arith.addf %1334, %1333 : vector<2x32xf32>
    %1336 = arith.divf %1334, %1335 : vector<2x32xf32>
    %1337 = vector.extract_strided_slice %1313 {offsets = [0, 64], sizes = [2, 32], strides = [1, 1]} : vector<2x192xf32> to vector<2x32xf32>
    %1338 = vector.extract_strided_slice %1317 {offsets = [0, 64], sizes = [2, 32], strides = [1, 1]} : vector<2x96xf32> to vector<2x32xf32>
    %1339 = arith.mulf %1328, %1338 : vector<2x32xf32>
    %1340 = arith.addf %1337, %1339 : vector<2x32xf32>
    %1341 = math.tanh %1340 : vector<2x32xf32>
    %cst_393 = arith.constant 1.000000e+00 : f32
    %1342 = vector.broadcast %cst_393 : f32 to vector<2x32xf32>
    %1343 = arith.subf %1342, %1336 : vector<2x32xf32>
    %1344 = arith.mulf %1343, %1341 : vector<2x32xf32>
    %1345 = arith.mulf %1336, %1284 : vector<2x32xf32>
    %1346 = arith.addf %1344, %1345 : vector<2x32xf32>
    %1347 = vector.extract_strided_slice %1314 {offsets = [0, 96], sizes = [2, 32], strides = [1, 1]} : vector<2x192xf32> to vector<2x32xf32>
    %1348 = vector.extract_strided_slice %1320 {offsets = [0, 0], sizes = [2, 32], strides = [1, 1]} : vector<2x96xf32> to vector<2x32xf32>
    %1349 = arith.addf %1347, %1348 : vector<2x32xf32>
    %1350 = arith.negf %1349 : vector<2x32xf32>
    %1351 = math.exp %1350 : vector<2x32xf32>
    %cst_394 = arith.constant 1.000000e+00 : f32
    %1352 = vector.broadcast %cst_394 : f32 to vector<2x32xf32>
    %1353 = arith.addf %1352, %1351 : vector<2x32xf32>
    %1354 = arith.divf %1352, %1353 : vector<2x32xf32>
    %1355 = vector.extract_strided_slice %1314 {offsets = [0, 128], sizes = [2, 32], strides = [1, 1]} : vector<2x192xf32> to vector<2x32xf32>
    %1356 = vector.extract_strided_slice %1320 {offsets = [0, 32], sizes = [2, 32], strides = [1, 1]} : vector<2x96xf32> to vector<2x32xf32>
    %1357 = arith.addf %1355, %1356 : vector<2x32xf32>
    %1358 = arith.negf %1357 : vector<2x32xf32>
    %1359 = math.exp %1358 : vector<2x32xf32>
    %cst_395 = arith.constant 1.000000e+00 : f32
    %1360 = vector.broadcast %cst_395 : f32 to vector<2x32xf32>
    %1361 = arith.addf %1360, %1359 : vector<2x32xf32>
    %1362 = arith.divf %1360, %1361 : vector<2x32xf32>
    %1363 = vector.extract_strided_slice %1314 {offsets = [0, 160], sizes = [2, 32], strides = [1, 1]} : vector<2x192xf32> to vector<2x32xf32>
    %1364 = vector.extract_strided_slice %1320 {offsets = [0, 64], sizes = [2, 32], strides = [1, 1]} : vector<2x96xf32> to vector<2x32xf32>
    %1365 = arith.mulf %1354, %1364 : vector<2x32xf32>
    %1366 = arith.addf %1363, %1365 : vector<2x32xf32>
    %1367 = math.tanh %1366 : vector<2x32xf32>
    %cst_396 = arith.constant 1.000000e+00 : f32
    %1368 = vector.broadcast %cst_396 : f32 to vector<2x32xf32>
    %1369 = arith.subf %1368, %1362 : vector<2x32xf32>
    %1370 = arith.mulf %1369, %1367 : vector<2x32xf32>
    %1371 = arith.mulf %1362, %1310 : vector<2x32xf32>
    %1372 = arith.addf %1370, %1371 : vector<2x32xf32>
    %c8_397 = arith.constant 8 : index
    %c0_398 = arith.constant 0 : index
    %1373 = vector.load %arg12[%c8_397, %c0_398] : memref<16x32xf32, #tpu.memory_space<vmem>>, vector<2x32xf32>
    tpu.vector_store %arg12[%c8_397, %c0_398], %1346 {strides = array<i32>} : memref<16x32xf32, #tpu.memory_space<vmem>>, vector<2x32xf32>,
    %c6_399 = arith.constant 6 : index
    %c0_400 = arith.constant 0 : index
    %1374 = vector.load %arg13[%c6_399, %c0_400] : memref<16x32xf32, #tpu.memory_space<vmem>>, vector<2x32xf32>
    tpu.vector_store %arg13[%c6_399, %c0_400], %1372 {strides = array<i32>} : memref<16x32xf32, #tpu.memory_space<vmem>>, vector<2x32xf32>,
    %c10_401 = arith.constant 10 : index
    %c0_402 = arith.constant 0 : index
    %1375 = vector.load %arg11[%c10_401, %c0_402] : memref<16x192xf32, #tpu.memory_space<vmem>>, vector<2x192xf32>
    %c4_403 = arith.constant 4 : index
    %c0_404 = arith.constant 0 : index
    %1376 = vector.load %arg11[%c4_403, %c0_404] : memref<16x192xf32, #tpu.memory_space<vmem>>, vector<2x192xf32>
    %cst_405 = arith.constant dense<0.000000e+00> : vector<2x96xf32>
    %1377 = tpu.matmul %1346, %1050, %cst_405 {dimension_numbers = #tpu.dot_dimension_numbers<[1], [0], [0], [1], [0, 0, 1, 1], [], []>} : vector<2x32xf32>, vector<32x96xf32>, vector<2x96xf32> -> vector<2x96xf32>
    %1378 = vector.broadcast %1048 : vector<1x96xf32> to vector<2x96xf32>
    %1379 = arith.addf %1377, %1378 : vector<2x96xf32>
    %cst_406 = arith.constant dense<0.000000e+00> : vector<2x96xf32>
    %1380 = tpu.matmul %1372, %1051, %cst_406 {dimension_numbers = #tpu.dot_dimension_numbers<[1], [0], [0], [1], [0, 0, 1, 1], [], []>} : vector<2x32xf32>, vector<32x96xf32>, vector<2x96xf32> -> vector<2x96xf32>
    %1381 = vector.broadcast %1049 : vector<1x96xf32> to vector<2x96xf32>
    %1382 = arith.addf %1380, %1381 : vector<2x96xf32>
    %1383 = vector.extract_strided_slice %1375 {offsets = [0, 0], sizes = [2, 32], strides = [1, 1]} : vector<2x192xf32> to vector<2x32xf32>
    %1384 = vector.extract_strided_slice %1379 {offsets = [0, 0], sizes = [2, 32], strides = [1, 1]} : vector<2x96xf32> to vector<2x32xf32>
    %1385 = arith.addf %1383, %1384 : vector<2x32xf32>
    %1386 = arith.negf %1385 : vector<2x32xf32>
    %1387 = math.exp %1386 : vector<2x32xf32>
    %cst_407 = arith.constant 1.000000e+00 : f32
    %1388 = vector.broadcast %cst_407 : f32 to vector<2x32xf32>
    %1389 = arith.addf %1388, %1387 : vector<2x32xf32>
    %1390 = arith.divf %1388, %1389 : vector<2x32xf32>
    %1391 = vector.extract_strided_slice %1375 {offsets = [0, 32], sizes = [2, 32], strides = [1, 1]} : vector<2x192xf32> to vector<2x32xf32>
    %1392 = vector.extract_strided_slice %1379 {offsets = [0, 32], sizes = [2, 32], strides = [1, 1]} : vector<2x96xf32> to vector<2x32xf32>
    %1393 = arith.addf %1391, %1392 : vector<2x32xf32>
    %1394 = arith.negf %1393 : vector<2x32xf32>
    %1395 = math.exp %1394 : vector<2x32xf32>
    %cst_408 = arith.constant 1.000000e+00 : f32
    %1396 = vector.broadcast %cst_408 : f32 to vector<2x32xf32>
    %1397 = arith.addf %1396, %1395 : vector<2x32xf32>
    %1398 = arith.divf %1396, %1397 : vector<2x32xf32>
    %1399 = vector.extract_strided_slice %1375 {offsets = [0, 64], sizes = [2, 32], strides = [1, 1]} : vector<2x192xf32> to vector<2x32xf32>
    %1400 = vector.extract_strided_slice %1379 {offsets = [0, 64], sizes = [2, 32], strides = [1, 1]} : vector<2x96xf32> to vector<2x32xf32>
    %1401 = arith.mulf %1390, %1400 : vector<2x32xf32>
    %1402 = arith.addf %1399, %1401 : vector<2x32xf32>
    %1403 = math.tanh %1402 : vector<2x32xf32>
    %cst_409 = arith.constant 1.000000e+00 : f32
    %1404 = vector.broadcast %cst_409 : f32 to vector<2x32xf32>
    %1405 = arith.subf %1404, %1398 : vector<2x32xf32>
    %1406 = arith.mulf %1405, %1403 : vector<2x32xf32>
    %1407 = arith.mulf %1398, %1346 : vector<2x32xf32>
    %1408 = arith.addf %1406, %1407 : vector<2x32xf32>
    %1409 = vector.extract_strided_slice %1376 {offsets = [0, 96], sizes = [2, 32], strides = [1, 1]} : vector<2x192xf32> to vector<2x32xf32>
    %1410 = vector.extract_strided_slice %1382 {offsets = [0, 0], sizes = [2, 32], strides = [1, 1]} : vector<2x96xf32> to vector<2x32xf32>
    %1411 = arith.addf %1409, %1410 : vector<2x32xf32>
    %1412 = arith.negf %1411 : vector<2x32xf32>
    %1413 = math.exp %1412 : vector<2x32xf32>
    %cst_410 = arith.constant 1.000000e+00 : f32
    %1414 = vector.broadcast %cst_410 : f32 to vector<2x32xf32>
    %1415 = arith.addf %1414, %1413 : vector<2x32xf32>
    %1416 = arith.divf %1414, %1415 : vector<2x32xf32>
    %1417 = vector.extract_strided_slice %1376 {offsets = [0, 128], sizes = [2, 32], strides = [1, 1]} : vector<2x192xf32> to vector<2x32xf32>
    %1418 = vector.extract_strided_slice %1382 {offsets = [0, 32], sizes = [2, 32], strides = [1, 1]} : vector<2x96xf32> to vector<2x32xf32>
    %1419 = arith.addf %1417, %1418 : vector<2x32xf32>
    %1420 = arith.negf %1419 : vector<2x32xf32>
    %1421 = math.exp %1420 : vector<2x32xf32>
    %cst_411 = arith.constant 1.000000e+00 : f32
    %1422 = vector.broadcast %cst_411 : f32 to vector<2x32xf32>
    %1423 = arith.addf %1422, %1421 : vector<2x32xf32>
    %1424 = arith.divf %1422, %1423 : vector<2x32xf32>
    %1425 = vector.extract_strided_slice %1376 {offsets = [0, 160], sizes = [2, 32], strides = [1, 1]} : vector<2x192xf32> to vector<2x32xf32>
    %1426 = vector.extract_strided_slice %1382 {offsets = [0, 64], sizes = [2, 32], strides = [1, 1]} : vector<2x96xf32> to vector<2x32xf32>
    %1427 = arith.mulf %1416, %1426 : vector<2x32xf32>
    %1428 = arith.addf %1425, %1427 : vector<2x32xf32>
    %1429 = math.tanh %1428 : vector<2x32xf32>
    %cst_412 = arith.constant 1.000000e+00 : f32
    %1430 = vector.broadcast %cst_412 : f32 to vector<2x32xf32>
    %1431 = arith.subf %1430, %1424 : vector<2x32xf32>
    %1432 = arith.mulf %1431, %1429 : vector<2x32xf32>
    %1433 = arith.mulf %1424, %1372 : vector<2x32xf32>
    %1434 = arith.addf %1432, %1433 : vector<2x32xf32>
    %c10_413 = arith.constant 10 : index
    %c0_414 = arith.constant 0 : index
    %1435 = vector.load %arg12[%c10_413, %c0_414] : memref<16x32xf32, #tpu.memory_space<vmem>>, vector<2x32xf32>
    tpu.vector_store %arg12[%c10_413, %c0_414], %1408 {strides = array<i32>} : memref<16x32xf32, #tpu.memory_space<vmem>>, vector<2x32xf32>,
    %c4_415 = arith.constant 4 : index
    %c0_416 = arith.constant 0 : index
    %1436 = vector.load %arg13[%c4_415, %c0_416] : memref<16x32xf32, #tpu.memory_space<vmem>>, vector<2x32xf32>
    tpu.vector_store %arg13[%c4_415, %c0_416], %1434 {strides = array<i32>} : memref<16x32xf32, #tpu.memory_space<vmem>>, vector<2x32xf32>,
    %c12_417 = arith.constant 12 : index
    %c0_418 = arith.constant 0 : index
    %1437 = vector.load %arg11[%c12_417, %c0_418] : memref<16x192xf32, #tpu.memory_space<vmem>>, vector<2x192xf32>
    %c2_419 = arith.constant 2 : index
    %c0_420 = arith.constant 0 : index
    %1438 = vector.load %arg11[%c2_419, %c0_420] : memref<16x192xf32, #tpu.memory_space<vmem>>, vector<2x192xf32>
    %cst_421 = arith.constant dense<0.000000e+00> : vector<2x96xf32>
    %1439 = tpu.matmul %1408, %1050, %cst_421 {dimension_numbers = #tpu.dot_dimension_numbers<[1], [0], [0], [1], [0, 0, 1, 1], [], []>} : vector<2x32xf32>, vector<32x96xf32>, vector<2x96xf32> -> vector<2x96xf32>
    %1440 = vector.broadcast %1048 : vector<1x96xf32> to vector<2x96xf32>
    %1441 = arith.addf %1439, %1440 : vector<2x96xf32>
    %cst_422 = arith.constant dense<0.000000e+00> : vector<2x96xf32>
    %1442 = tpu.matmul %1434, %1051, %cst_422 {dimension_numbers = #tpu.dot_dimension_numbers<[1], [0], [0], [1], [0, 0, 1, 1], [], []>} : vector<2x32xf32>, vector<32x96xf32>, vector<2x96xf32> -> vector<2x96xf32>
    %1443 = vector.broadcast %1049 : vector<1x96xf32> to vector<2x96xf32>
    %1444 = arith.addf %1442, %1443 : vector<2x96xf32>
    %1445 = vector.extract_strided_slice %1437 {offsets = [0, 0], sizes = [2, 32], strides = [1, 1]} : vector<2x192xf32> to vector<2x32xf32>
    %1446 = vector.extract_strided_slice %1441 {offsets = [0, 0], sizes = [2, 32], strides = [1, 1]} : vector<2x96xf32> to vector<2x32xf32>
    %1447 = arith.addf %1445, %1446 : vector<2x32xf32>
    %1448 = arith.negf %1447 : vector<2x32xf32>
    %1449 = math.exp %1448 : vector<2x32xf32>
    %cst_423 = arith.constant 1.000000e+00 : f32
    %1450 = vector.broadcast %cst_423 : f32 to vector<2x32xf32>
    %1451 = arith.addf %1450, %1449 : vector<2x32xf32>
    %1452 = arith.divf %1450, %1451 : vector<2x32xf32>
    %1453 = vector.extract_strided_slice %1437 {offsets = [0, 32], sizes = [2, 32], strides = [1, 1]} : vector<2x192xf32> to vector<2x32xf32>
    %1454 = vector.extract_strided_slice %1441 {offsets = [0, 32], sizes = [2, 32], strides = [1, 1]} : vector<2x96xf32> to vector<2x32xf32>
    %1455 = arith.addf %1453, %1454 : vector<2x32xf32>
    %1456 = arith.negf %1455 : vector<2x32xf32>
    %1457 = math.exp %1456 : vector<2x32xf32>
    %cst_424 = arith.constant 1.000000e+00 : f32
    %1458 = vector.broadcast %cst_424 : f32 to vector<2x32xf32>
    %1459 = arith.addf %1458, %1457 : vector<2x32xf32>
    %1460 = arith.divf %1458, %1459 : vector<2x32xf32>
    %1461 = vector.extract_strided_slice %1437 {offsets = [0, 64], sizes = [2, 32], strides = [1, 1]} : vector<2x192xf32> to vector<2x32xf32>
    %1462 = vector.extract_strided_slice %1441 {offsets = [0, 64], sizes = [2, 32], strides = [1, 1]} : vector<2x96xf32> to vector<2x32xf32>
    %1463 = arith.mulf %1452, %1462 : vector<2x32xf32>
    %1464 = arith.addf %1461, %1463 : vector<2x32xf32>
    %1465 = math.tanh %1464 : vector<2x32xf32>
    %cst_425 = arith.constant 1.000000e+00 : f32
    %1466 = vector.broadcast %cst_425 : f32 to vector<2x32xf32>
    %1467 = arith.subf %1466, %1460 : vector<2x32xf32>
    %1468 = arith.mulf %1467, %1465 : vector<2x32xf32>
    %1469 = arith.mulf %1460, %1408 : vector<2x32xf32>
    %1470 = arith.addf %1468, %1469 : vector<2x32xf32>
    %1471 = vector.extract_strided_slice %1438 {offsets = [0, 96], sizes = [2, 32], strides = [1, 1]} : vector<2x192xf32> to vector<2x32xf32>
    %1472 = vector.extract_strided_slice %1444 {offsets = [0, 0], sizes = [2, 32], strides = [1, 1]} : vector<2x96xf32> to vector<2x32xf32>
    %1473 = arith.addf %1471, %1472 : vector<2x32xf32>
    %1474 = arith.negf %1473 : vector<2x32xf32>
    %1475 = math.exp %1474 : vector<2x32xf32>
    %cst_426 = arith.constant 1.000000e+00 : f32
    %1476 = vector.broadcast %cst_426 : f32 to vector<2x32xf32>
    %1477 = arith.addf %1476, %1475 : vector<2x32xf32>
    %1478 = arith.divf %1476, %1477 : vector<2x32xf32>
    %1479 = vector.extract_strided_slice %1438 {offsets = [0, 128], sizes = [2, 32], strides = [1, 1]} : vector<2x192xf32> to vector<2x32xf32>
    %1480 = vector.extract_strided_slice %1444 {offsets = [0, 32], sizes = [2, 32], strides = [1, 1]} : vector<2x96xf32> to vector<2x32xf32>
    %1481 = arith.addf %1479, %1480 : vector<2x32xf32>
    %1482 = arith.negf %1481 : vector<2x32xf32>
    %1483 = math.exp %1482 : vector<2x32xf32>
    %cst_427 = arith.constant 1.000000e+00 : f32
    %1484 = vector.broadcast %cst_427 : f32 to vector<2x32xf32>
    %1485 = arith.addf %1484, %1483 : vector<2x32xf32>
    %1486 = arith.divf %1484, %1485 : vector<2x32xf32>
    %1487 = vector.extract_strided_slice %1438 {offsets = [0, 160], sizes = [2, 32], strides = [1, 1]} : vector<2x192xf32> to vector<2x32xf32>
    %1488 = vector.extract_strided_slice %1444 {offsets = [0, 64], sizes = [2, 32], strides = [1, 1]} : vector<2x96xf32> to vector<2x32xf32>
    %1489 = arith.mulf %1478, %1488 : vector<2x32xf32>
    %1490 = arith.addf %1487, %1489 : vector<2x32xf32>
    %1491 = math.tanh %1490 : vector<2x32xf32>
    %cst_428 = arith.constant 1.000000e+00 : f32
    %1492 = vector.broadcast %cst_428 : f32 to vector<2x32xf32>
    %1493 = arith.subf %1492, %1486 : vector<2x32xf32>
    %1494 = arith.mulf %1493, %1491 : vector<2x32xf32>
    %1495 = arith.mulf %1486, %1434 : vector<2x32xf32>
    %1496 = arith.addf %1494, %1495 : vector<2x32xf32>
    %c12_429 = arith.constant 12 : index
    %c0_430 = arith.constant 0 : index
    %1497 = vector.load %arg12[%c12_429, %c0_430] : memref<16x32xf32, #tpu.memory_space<vmem>>, vector<2x32xf32>
    tpu.vector_store %arg12[%c12_429, %c0_430], %1470 {strides = array<i32>} : memref<16x32xf32, #tpu.memory_space<vmem>>, vector<2x32xf32>,
    %c2_431 = arith.constant 2 : index
    %c0_432 = arith.constant 0 : index
    %1498 = vector.load %arg13[%c2_431, %c0_432] : memref<16x32xf32, #tpu.memory_space<vmem>>, vector<2x32xf32>
    tpu.vector_store %arg13[%c2_431, %c0_432], %1496 {strides = array<i32>} : memref<16x32xf32, #tpu.memory_space<vmem>>, vector<2x32xf32>,
    %c14_433 = arith.constant 14 : index
    %c0_434 = arith.constant 0 : index
    %1499 = vector.load %arg11[%c14_433, %c0_434] : memref<16x192xf32, #tpu.memory_space<vmem>>, vector<2x192xf32>
    %c0_435 = arith.constant 0 : index
    %c0_436 = arith.constant 0 : index
    %1500 = vector.load %arg11[%c0_435, %c0_436] : memref<16x192xf32, #tpu.memory_space<vmem>>, vector<2x192xf32>
    %cst_437 = arith.constant dense<0.000000e+00> : vector<2x96xf32>
    %1501 = tpu.matmul %1470, %1050, %cst_437 {dimension_numbers = #tpu.dot_dimension_numbers<[1], [0], [0], [1], [0, 0, 1, 1], [], []>} : vector<2x32xf32>, vector<32x96xf32>, vector<2x96xf32> -> vector<2x96xf32>
    %1502 = vector.broadcast %1048 : vector<1x96xf32> to vector<2x96xf32>
    %1503 = arith.addf %1501, %1502 : vector<2x96xf32>
    %cst_438 = arith.constant dense<0.000000e+00> : vector<2x96xf32>
    %1504 = tpu.matmul %1496, %1051, %cst_438 {dimension_numbers = #tpu.dot_dimension_numbers<[1], [0], [0], [1], [0, 0, 1, 1], [], []>} : vector<2x32xf32>, vector<32x96xf32>, vector<2x96xf32> -> vector<2x96xf32>
    %1505 = vector.broadcast %1049 : vector<1x96xf32> to vector<2x96xf32>
    %1506 = arith.addf %1504, %1505 : vector<2x96xf32>
    %1507 = vector.extract_strided_slice %1499 {offsets = [0, 0], sizes = [2, 32], strides = [1, 1]} : vector<2x192xf32> to vector<2x32xf32>
    %1508 = vector.extract_strided_slice %1503 {offsets = [0, 0], sizes = [2, 32], strides = [1, 1]} : vector<2x96xf32> to vector<2x32xf32>
    %1509 = arith.addf %1507, %1508 : vector<2x32xf32>
    %1510 = arith.negf %1509 : vector<2x32xf32>
    %1511 = math.exp %1510 : vector<2x32xf32>
    %cst_439 = arith.constant 1.000000e+00 : f32
    %1512 = vector.broadcast %cst_439 : f32 to vector<2x32xf32>
    %1513 = arith.addf %1512, %1511 : vector<2x32xf32>
    %1514 = arith.divf %1512, %1513 : vector<2x32xf32>
    %1515 = vector.extract_strided_slice %1499 {offsets = [0, 32], sizes = [2, 32], strides = [1, 1]} : vector<2x192xf32> to vector<2x32xf32>
    %1516 = vector.extract_strided_slice %1503 {offsets = [0, 32], sizes = [2, 32], strides = [1, 1]} : vector<2x96xf32> to vector<2x32xf32>
    %1517 = arith.addf %1515, %1516 : vector<2x32xf32>
    %1518 = arith.negf %1517 : vector<2x32xf32>
    %1519 = math.exp %1518 : vector<2x32xf32>
    %cst_440 = arith.constant 1.000000e+00 : f32
    %1520 = vector.broadcast %cst_440 : f32 to vector<2x32xf32>
    %1521 = arith.addf %1520, %1519 : vector<2x32xf32>
    %1522 = arith.divf %1520, %1521 : vector<2x32xf32>
    %1523 = vector.extract_strided_slice %1499 {offsets = [0, 64], sizes = [2, 32], strides = [1, 1]} : vector<2x192xf32> to vector<2x32xf32>
    %1524 = vector.extract_strided_slice %1503 {offsets = [0, 64], sizes = [2, 32], strides = [1, 1]} : vector<2x96xf32> to vector<2x32xf32>
    %1525 = arith.mulf %1514, %1524 : vector<2x32xf32>
    %1526 = arith.addf %1523, %1525 : vector<2x32xf32>
    %1527 = math.tanh %1526 : vector<2x32xf32>
    %cst_441 = arith.constant 1.000000e+00 : f32
    %1528 = vector.broadcast %cst_441 : f32 to vector<2x32xf32>
    %1529 = arith.subf %1528, %1522 : vector<2x32xf32>
    %1530 = arith.mulf %1529, %1527 : vector<2x32xf32>
    %1531 = arith.mulf %1522, %1470 : vector<2x32xf32>
    %1532 = arith.addf %1530, %1531 : vector<2x32xf32>
    %1533 = vector.extract_strided_slice %1500 {offsets = [0, 96], sizes = [2, 32], strides = [1, 1]} : vector<2x192xf32> to vector<2x32xf32>
    %1534 = vector.extract_strided_slice %1506 {offsets = [0, 0], sizes = [2, 32], strides = [1, 1]} : vector<2x96xf32> to vector<2x32xf32>
    %1535 = arith.addf %1533, %1534 : vector<2x32xf32>
    %1536 = arith.negf %1535 : vector<2x32xf32>
    %1537 = math.exp %1536 : vector<2x32xf32>
    %cst_442 = arith.constant 1.000000e+00 : f32
    %1538 = vector.broadcast %cst_442 : f32 to vector<2x32xf32>
    %1539 = arith.addf %1538, %1537 : vector<2x32xf32>
    %1540 = arith.divf %1538, %1539 : vector<2x32xf32>
    %1541 = vector.extract_strided_slice %1500 {offsets = [0, 128], sizes = [2, 32], strides = [1, 1]} : vector<2x192xf32> to vector<2x32xf32>
    %1542 = vector.extract_strided_slice %1506 {offsets = [0, 32], sizes = [2, 32], strides = [1, 1]} : vector<2x96xf32> to vector<2x32xf32>
    %1543 = arith.addf %1541, %1542 : vector<2x32xf32>
    %1544 = arith.negf %1543 : vector<2x32xf32>
    %1545 = math.exp %1544 : vector<2x32xf32>
    %cst_443 = arith.constant 1.000000e+00 : f32
    %1546 = vector.broadcast %cst_443 : f32 to vector<2x32xf32>
    %1547 = arith.addf %1546, %1545 : vector<2x32xf32>
    %1548 = arith.divf %1546, %1547 : vector<2x32xf32>
    %1549 = vector.extract_strided_slice %1500 {offsets = [0, 160], sizes = [2, 32], strides = [1, 1]} : vector<2x192xf32> to vector<2x32xf32>
    %1550 = vector.extract_strided_slice %1506 {offsets = [0, 64], sizes = [2, 32], strides = [1, 1]} : vector<2x96xf32> to vector<2x32xf32>
    %1551 = arith.mulf %1540, %1550 : vector<2x32xf32>
    %1552 = arith.addf %1549, %1551 : vector<2x32xf32>
    %1553 = math.tanh %1552 : vector<2x32xf32>
    %cst_444 = arith.constant 1.000000e+00 : f32
    %1554 = vector.broadcast %cst_444 : f32 to vector<2x32xf32>
    %1555 = arith.subf %1554, %1548 : vector<2x32xf32>
    %1556 = arith.mulf %1555, %1553 : vector<2x32xf32>
    %1557 = arith.mulf %1548, %1496 : vector<2x32xf32>
    %1558 = arith.addf %1556, %1557 : vector<2x32xf32>
    %c14_445 = arith.constant 14 : index
    %c0_446 = arith.constant 0 : index
    %1559 = vector.load %arg12[%c14_445, %c0_446] : memref<16x32xf32, #tpu.memory_space<vmem>>, vector<2x32xf32>
    tpu.vector_store %arg12[%c14_445, %c0_446], %1532 {strides = array<i32>} : memref<16x32xf32, #tpu.memory_space<vmem>>, vector<2x32xf32>,
    %c0_447 = arith.constant 0 : index
    %c0_448 = arith.constant 0 : index
    %1560 = vector.load %arg13[%c0_447, %c0_448] : memref<16x32xf32, #tpu.memory_space<vmem>>, vector<2x32xf32>
    tpu.vector_store %arg13[%c0_447, %c0_448], %1558 {strides = array<i32>} : memref<16x32xf32, #tpu.memory_space<vmem>>, vector<2x32xf32>,
    %c8_449 = arith.constant 8 : index
    %c0_450 = arith.constant 0 : index
    %1561 = vector.load %arg10[%c8_449, %c0_450] : memref<16x32xf32, #tpu.memory_space<vmem>>, vector<2x32xf32>
    tpu.vector_store %arg10[%c8_449, %c0_450], %1532 {strides = array<i32>} : memref<16x32xf32, #tpu.memory_space<vmem>>, vector<2x32xf32>,
    %c10_451 = arith.constant 10 : index
    %c0_452 = arith.constant 0 : index
    %1562 = vector.load %arg10[%c10_451, %c0_452] : memref<16x32xf32, #tpu.memory_space<vmem>>, vector<2x32xf32>
    tpu.vector_store %arg10[%c10_451, %c0_452], %1558 {strides = array<i32>} : memref<16x32xf32, #tpu.memory_space<vmem>>, vector<2x32xf32>,
    %c3_453 = arith.constant 3 : index
    %c0_454 = arith.constant 0 : index
    %1563 = vector.load %arg6[%c3_453, %c0_454] : memref<4x192xf32, #tpu.memory_space<vmem>>, vector<1x192xf32>
    %c6_455 = arith.constant 6 : index
    %c0_456 = arith.constant 0 : index
    %1564 = vector.load %arg8[%c6_455, %c0_456] : memref<8x96xf32, #tpu.memory_space<vmem>>, vector<1x96xf32>
    %c7 = arith.constant 7 : index
    %c0_457 = arith.constant 0 : index
    %1565 = vector.load %arg8[%c7, %c0_457] : memref<8x96xf32, #tpu.memory_space<vmem>>, vector<1x96xf32>
    %c192 = arith.constant 192 : index
    %c0_458 = arith.constant 0 : index
    %1566 = vector.load %arg7[%c192, %c0_458] : memref<256x96xf32, #tpu.memory_space<vmem>>, vector<32x96xf32>
    %c224 = arith.constant 224 : index
    %c0_459 = arith.constant 0 : index
    %1567 = vector.load %arg7[%c224, %c0_459] : memref<256x96xf32, #tpu.memory_space<vmem>>, vector<32x96xf32>
    %c128_460 = arith.constant 128 : index
    %c0_461 = arith.constant 0 : index
    %1568 = vector.load %arg5[%c128_460, %c0_461] : memref<192x192xf32, #tpu.memory_space<vmem>>, vector<64x192xf32>
    %c0_462 = arith.constant 0 : index
    %c0_463 = arith.constant 0 : index
    %1569 = vector.load %arg12[%c0_462, %c0_463] : memref<16x32xf32, #tpu.memory_space<vmem>>, vector<16x32xf32>
    %1570 = vector.extract_strided_slice %1568 {offsets = [0, 0], sizes = [32, 192], strides = [1, 1]} : vector<64x192xf32> to vector<32x192xf32>
    %cst_464 = arith.constant dense<0.000000e+00> : vector<16x192xf32>
    %1571 = tpu.matmul %1569, %1570, %cst_464 {dimension_numbers = #tpu.dot_dimension_numbers<[1], [0], [0], [1], [0, 0, 1, 1], [], []>} : vector<16x32xf32>, vector<32x192xf32>, vector<16x192xf32> -> vector<16x192xf32>
    %c0_465 = arith.constant 0 : index
    %c0_466 = arith.constant 0 : index
    %1572 = vector.load %arg13[%c0_465, %c0_466] : memref<16x32xf32, #tpu.memory_space<vmem>>, vector<16x32xf32>
    %1573 = vector.extract_strided_slice %1568 {offsets = [32, 0], sizes = [32, 192], strides = [1, 1]} : vector<64x192xf32> to vector<32x192xf32>
    %cst_467 = arith.constant dense<0.000000e+00> : vector<16x192xf32>
    %1574 = tpu.matmul %1572, %1573, %cst_467 {dimension_numbers = #tpu.dot_dimension_numbers<[1], [0], [0], [1], [0, 0, 1, 1], [], []>} : vector<16x32xf32>, vector<32x192xf32>, vector<16x192xf32> -> vector<16x192xf32>
    %1575 = arith.addf %1571, %1574 : vector<16x192xf32>
    %1576 = vector.broadcast %1563 : vector<1x192xf32> to vector<16x192xf32>
    %1577 = arith.addf %1575, %1576 : vector<16x192xf32>
    %c0_468 = arith.constant 0 : index
    %c0_469 = arith.constant 0 : index
    %1578 = vector.load %arg11[%c0_468, %c0_469] : memref<16x192xf32, #tpu.memory_space<vmem>>, vector<16x192xf32>
    tpu.vector_store %arg11[%c0_468, %c0_469], %1577 {strides = array<i32>} : memref<16x192xf32, #tpu.memory_space<vmem>>, vector<16x192xf32>,
    %cst_470 = arith.constant 0.000000e+00 : f32
    %1579 = vector.broadcast %cst_470 : f32 to vector<2x32xf32>
    %cst_471 = arith.constant 0.000000e+00 : f32
    %1580 = vector.broadcast %cst_471 : f32 to vector<2x32xf32>
    %c0_472 = arith.constant 0 : index
    %c0_473 = arith.constant 0 : index
    %1581 = vector.load %arg11[%c0_472, %c0_473] : memref<16x192xf32, #tpu.memory_space<vmem>>, vector<2x192xf32>
    %c14_474 = arith.constant 14 : index
    %c0_475 = arith.constant 0 : index
    %1582 = vector.load %arg11[%c14_474, %c0_475] : memref<16x192xf32, #tpu.memory_space<vmem>>, vector<2x192xf32>
    %cst_476 = arith.constant dense<0.000000e+00> : vector<2x96xf32>
    %1583 = tpu.matmul %1579, %1566, %cst_476 {dimension_numbers = #tpu.dot_dimension_numbers<[1], [0], [0], [1], [0, 0, 1, 1], [], []>} : vector<2x32xf32>, vector<32x96xf32>, vector<2x96xf32> -> vector<2x96xf32>
    %1584 = vector.broadcast %1564 : vector<1x96xf32> to vector<2x96xf32>
    %1585 = arith.addf %1583, %1584 : vector<2x96xf32>
    %cst_477 = arith.constant dense<0.000000e+00> : vector<2x96xf32>
    %1586 = tpu.matmul %1580, %1567, %cst_477 {dimension_numbers = #tpu.dot_dimension_numbers<[1], [0], [0], [1], [0, 0, 1, 1], [], []>} : vector<2x32xf32>, vector<32x96xf32>, vector<2x96xf32> -> vector<2x96xf32>
    %1587 = vector.broadcast %1565 : vector<1x96xf32> to vector<2x96xf32>
    %1588 = arith.addf %1586, %1587 : vector<2x96xf32>
    %1589 = vector.extract_strided_slice %1581 {offsets = [0, 0], sizes = [2, 32], strides = [1, 1]} : vector<2x192xf32> to vector<2x32xf32>
    %1590 = vector.extract_strided_slice %1585 {offsets = [0, 0], sizes = [2, 32], strides = [1, 1]} : vector<2x96xf32> to vector<2x32xf32>
    %1591 = arith.addf %1589, %1590 : vector<2x32xf32>
    %1592 = arith.negf %1591 : vector<2x32xf32>
    %1593 = math.exp %1592 : vector<2x32xf32>
    %cst_478 = arith.constant 1.000000e+00 : f32
    %1594 = vector.broadcast %cst_478 : f32 to vector<2x32xf32>
    %1595 = arith.addf %1594, %1593 : vector<2x32xf32>
    %1596 = arith.divf %1594, %1595 : vector<2x32xf32>
    %1597 = vector.extract_strided_slice %1581 {offsets = [0, 32], sizes = [2, 32], strides = [1, 1]} : vector<2x192xf32> to vector<2x32xf32>
    %1598 = vector.extract_strided_slice %1585 {offsets = [0, 32], sizes = [2, 32], strides = [1, 1]} : vector<2x96xf32> to vector<2x32xf32>
    %1599 = arith.addf %1597, %1598 : vector<2x32xf32>
    %1600 = arith.negf %1599 : vector<2x32xf32>
    %1601 = math.exp %1600 : vector<2x32xf32>
    %cst_479 = arith.constant 1.000000e+00 : f32
    %1602 = vector.broadcast %cst_479 : f32 to vector<2x32xf32>
    %1603 = arith.addf %1602, %1601 : vector<2x32xf32>
    %1604 = arith.divf %1602, %1603 : vector<2x32xf32>
    %1605 = vector.extract_strided_slice %1581 {offsets = [0, 64], sizes = [2, 32], strides = [1, 1]} : vector<2x192xf32> to vector<2x32xf32>
    %1606 = vector.extract_strided_slice %1585 {offsets = [0, 64], sizes = [2, 32], strides = [1, 1]} : vector<2x96xf32> to vector<2x32xf32>
    %1607 = arith.mulf %1596, %1606 : vector<2x32xf32>
    %1608 = arith.addf %1605, %1607 : vector<2x32xf32>
    %1609 = math.tanh %1608 : vector<2x32xf32>
    %cst_480 = arith.constant 1.000000e+00 : f32
    %1610 = vector.broadcast %cst_480 : f32 to vector<2x32xf32>
    %1611 = arith.subf %1610, %1604 : vector<2x32xf32>
    %1612 = arith.mulf %1611, %1609 : vector<2x32xf32>
    %1613 = arith.mulf %1604, %1579 : vector<2x32xf32>
    %1614 = arith.addf %1612, %1613 : vector<2x32xf32>
    %1615 = vector.extract_strided_slice %1582 {offsets = [0, 96], sizes = [2, 32], strides = [1, 1]} : vector<2x192xf32> to vector<2x32xf32>
    %1616 = vector.extract_strided_slice %1588 {offsets = [0, 0], sizes = [2, 32], strides = [1, 1]} : vector<2x96xf32> to vector<2x32xf32>
    %1617 = arith.addf %1615, %1616 : vector<2x32xf32>
    %1618 = arith.negf %1617 : vector<2x32xf32>
    %1619 = math.exp %1618 : vector<2x32xf32>
    %cst_481 = arith.constant 1.000000e+00 : f32
    %1620 = vector.broadcast %cst_481 : f32 to vector<2x32xf32>
    %1621 = arith.addf %1620, %1619 : vector<2x32xf32>
    %1622 = arith.divf %1620, %1621 : vector<2x32xf32>
    %1623 = vector.extract_strided_slice %1582 {offsets = [0, 128], sizes = [2, 32], strides = [1, 1]} : vector<2x192xf32> to vector<2x32xf32>
    %1624 = vector.extract_strided_slice %1588 {offsets = [0, 32], sizes = [2, 32], strides = [1, 1]} : vector<2x96xf32> to vector<2x32xf32>
    %1625 = arith.addf %1623, %1624 : vector<2x32xf32>
    %1626 = arith.negf %1625 : vector<2x32xf32>
    %1627 = math.exp %1626 : vector<2x32xf32>
    %cst_482 = arith.constant 1.000000e+00 : f32
    %1628 = vector.broadcast %cst_482 : f32 to vector<2x32xf32>
    %1629 = arith.addf %1628, %1627 : vector<2x32xf32>
    %1630 = arith.divf %1628, %1629 : vector<2x32xf32>
    %1631 = vector.extract_strided_slice %1582 {offsets = [0, 160], sizes = [2, 32], strides = [1, 1]} : vector<2x192xf32> to vector<2x32xf32>
    %1632 = vector.extract_strided_slice %1588 {offsets = [0, 64], sizes = [2, 32], strides = [1, 1]} : vector<2x96xf32> to vector<2x32xf32>
    %1633 = arith.mulf %1622, %1632 : vector<2x32xf32>
    %1634 = arith.addf %1631, %1633 : vector<2x32xf32>
    %1635 = math.tanh %1634 : vector<2x32xf32>
    %cst_483 = arith.constant 1.000000e+00 : f32
    %1636 = vector.broadcast %cst_483 : f32 to vector<2x32xf32>
    %1637 = arith.subf %1636, %1630 : vector<2x32xf32>
    %1638 = arith.mulf %1637, %1635 : vector<2x32xf32>
    %1639 = arith.mulf %1630, %1580 : vector<2x32xf32>
    %1640 = arith.addf %1638, %1639 : vector<2x32xf32>
    %c0_484 = arith.constant 0 : index
    %c0_485 = arith.constant 0 : index
    %1641 = vector.load %arg12[%c0_484, %c0_485] : memref<16x32xf32, #tpu.memory_space<vmem>>, vector<2x32xf32>
    tpu.vector_store %arg12[%c0_484, %c0_485], %1614 {strides = array<i32>} : memref<16x32xf32, #tpu.memory_space<vmem>>, vector<2x32xf32>,
    %c14_486 = arith.constant 14 : index
    %c0_487 = arith.constant 0 : index
    %1642 = vector.load %arg13[%c14_486, %c0_487] : memref<16x32xf32, #tpu.memory_space<vmem>>, vector<2x32xf32>
    tpu.vector_store %arg13[%c14_486, %c0_487], %1640 {strides = array<i32>} : memref<16x32xf32, #tpu.memory_space<vmem>>, vector<2x32xf32>,
    %c2_488 = arith.constant 2 : index
    %c0_489 = arith.constant 0 : index
    %1643 = vector.load %arg11[%c2_488, %c0_489] : memref<16x192xf32, #tpu.memory_space<vmem>>, vector<2x192xf32>
    %c12_490 = arith.constant 12 : index
    %c0_491 = arith.constant 0 : index
    %1644 = vector.load %arg11[%c12_490, %c0_491] : memref<16x192xf32, #tpu.memory_space<vmem>>, vector<2x192xf32>
    %cst_492 = arith.constant dense<0.000000e+00> : vector<2x96xf32>
    %1645 = tpu.matmul %1614, %1566, %cst_492 {dimension_numbers = #tpu.dot_dimension_numbers<[1], [0], [0], [1], [0, 0, 1, 1], [], []>} : vector<2x32xf32>, vector<32x96xf32>, vector<2x96xf32> -> vector<2x96xf32>
    %1646 = vector.broadcast %1564 : vector<1x96xf32> to vector<2x96xf32>
    %1647 = arith.addf %1645, %1646 : vector<2x96xf32>
    %cst_493 = arith.constant dense<0.000000e+00> : vector<2x96xf32>
    %1648 = tpu.matmul %1640, %1567, %cst_493 {dimension_numbers = #tpu.dot_dimension_numbers<[1], [0], [0], [1], [0, 0, 1, 1], [], []>} : vector<2x32xf32>, vector<32x96xf32>, vector<2x96xf32> -> vector<2x96xf32>
    %1649 = vector.broadcast %1565 : vector<1x96xf32> to vector<2x96xf32>
    %1650 = arith.addf %1648, %1649 : vector<2x96xf32>
    %1651 = vector.extract_strided_slice %1643 {offsets = [0, 0], sizes = [2, 32], strides = [1, 1]} : vector<2x192xf32> to vector<2x32xf32>
    %1652 = vector.extract_strided_slice %1647 {offsets = [0, 0], sizes = [2, 32], strides = [1, 1]} : vector<2x96xf32> to vector<2x32xf32>
    %1653 = arith.addf %1651, %1652 : vector<2x32xf32>
    %1654 = arith.negf %1653 : vector<2x32xf32>
    %1655 = math.exp %1654 : vector<2x32xf32>
    %cst_494 = arith.constant 1.000000e+00 : f32
    %1656 = vector.broadcast %cst_494 : f32 to vector<2x32xf32>
    %1657 = arith.addf %1656, %1655 : vector<2x32xf32>
    %1658 = arith.divf %1656, %1657 : vector<2x32xf32>
    %1659 = vector.extract_strided_slice %1643 {offsets = [0, 32], sizes = [2, 32], strides = [1, 1]} : vector<2x192xf32> to vector<2x32xf32>
    %1660 = vector.extract_strided_slice %1647 {offsets = [0, 32], sizes = [2, 32], strides = [1, 1]} : vector<2x96xf32> to vector<2x32xf32>
    %1661 = arith.addf %1659, %1660 : vector<2x32xf32>
    %1662 = arith.negf %1661 : vector<2x32xf32>
    %1663 = math.exp %1662 : vector<2x32xf32>
    %cst_495 = arith.constant 1.000000e+00 : f32
    %1664 = vector.broadcast %cst_495 : f32 to vector<2x32xf32>
    %1665 = arith.addf %1664, %1663 : vector<2x32xf32>
    %1666 = arith.divf %1664, %1665 : vector<2x32xf32>
    %1667 = vector.extract_strided_slice %1643 {offsets = [0, 64], sizes = [2, 32], strides = [1, 1]} : vector<2x192xf32> to vector<2x32xf32>
    %1668 = vector.extract_strided_slice %1647 {offsets = [0, 64], sizes = [2, 32], strides = [1, 1]} : vector<2x96xf32> to vector<2x32xf32>
    %1669 = arith.mulf %1658, %1668 : vector<2x32xf32>
    %1670 = arith.addf %1667, %1669 : vector<2x32xf32>
    %1671 = math.tanh %1670 : vector<2x32xf32>
    %cst_496 = arith.constant 1.000000e+00 : f32
    %1672 = vector.broadcast %cst_496 : f32 to vector<2x32xf32>
    %1673 = arith.subf %1672, %1666 : vector<2x32xf32>
    %1674 = arith.mulf %1673, %1671 : vector<2x32xf32>
    %1675 = arith.mulf %1666, %1614 : vector<2x32xf32>
    %1676 = arith.addf %1674, %1675 : vector<2x32xf32>
    %1677 = vector.extract_strided_slice %1644 {offsets = [0, 96], sizes = [2, 32], strides = [1, 1]} : vector<2x192xf32> to vector<2x32xf32>
    %1678 = vector.extract_strided_slice %1650 {offsets = [0, 0], sizes = [2, 32], strides = [1, 1]} : vector<2x96xf32> to vector<2x32xf32>
    %1679 = arith.addf %1677, %1678 : vector<2x32xf32>
    %1680 = arith.negf %1679 : vector<2x32xf32>
    %1681 = math.exp %1680 : vector<2x32xf32>
    %cst_497 = arith.constant 1.000000e+00 : f32
    %1682 = vector.broadcast %cst_497 : f32 to vector<2x32xf32>
    %1683 = arith.addf %1682, %1681 : vector<2x32xf32>
    %1684 = arith.divf %1682, %1683 : vector<2x32xf32>
    %1685 = vector.extract_strided_slice %1644 {offsets = [0, 128], sizes = [2, 32], strides = [1, 1]} : vector<2x192xf32> to vector<2x32xf32>
    %1686 = vector.extract_strided_slice %1650 {offsets = [0, 32], sizes = [2, 32], strides = [1, 1]} : vector<2x96xf32> to vector<2x32xf32>
    %1687 = arith.addf %1685, %1686 : vector<2x32xf32>
    %1688 = arith.negf %1687 : vector<2x32xf32>
    %1689 = math.exp %1688 : vector<2x32xf32>
    %cst_498 = arith.constant 1.000000e+00 : f32
    %1690 = vector.broadcast %cst_498 : f32 to vector<2x32xf32>
    %1691 = arith.addf %1690, %1689 : vector<2x32xf32>
    %1692 = arith.divf %1690, %1691 : vector<2x32xf32>
    %1693 = vector.extract_strided_slice %1644 {offsets = [0, 160], sizes = [2, 32], strides = [1, 1]} : vector<2x192xf32> to vector<2x32xf32>
    %1694 = vector.extract_strided_slice %1650 {offsets = [0, 64], sizes = [2, 32], strides = [1, 1]} : vector<2x96xf32> to vector<2x32xf32>
    %1695 = arith.mulf %1684, %1694 : vector<2x32xf32>
    %1696 = arith.addf %1693, %1695 : vector<2x32xf32>
    %1697 = math.tanh %1696 : vector<2x32xf32>
    %cst_499 = arith.constant 1.000000e+00 : f32
    %1698 = vector.broadcast %cst_499 : f32 to vector<2x32xf32>
    %1699 = arith.subf %1698, %1692 : vector<2x32xf32>
    %1700 = arith.mulf %1699, %1697 : vector<2x32xf32>
    %1701 = arith.mulf %1692, %1640 : vector<2x32xf32>
    %1702 = arith.addf %1700, %1701 : vector<2x32xf32>
    %c2_500 = arith.constant 2 : index
    %c0_501 = arith.constant 0 : index
    %1703 = vector.load %arg12[%c2_500, %c0_501] : memref<16x32xf32, #tpu.memory_space<vmem>>, vector<2x32xf32>
    tpu.vector_store %arg12[%c2_500, %c0_501], %1676 {strides = array<i32>} : memref<16x32xf32, #tpu.memory_space<vmem>>, vector<2x32xf32>,
    %c12_502 = arith.constant 12 : index
    %c0_503 = arith.constant 0 : index
    %1704 = vector.load %arg13[%c12_502, %c0_503] : memref<16x32xf32, #tpu.memory_space<vmem>>, vector<2x32xf32>
    tpu.vector_store %arg13[%c12_502, %c0_503], %1702 {strides = array<i32>} : memref<16x32xf32, #tpu.memory_space<vmem>>, vector<2x32xf32>,
    %c4_504 = arith.constant 4 : index
    %c0_505 = arith.constant 0 : index
    %1705 = vector.load %arg11[%c4_504, %c0_505] : memref<16x192xf32, #tpu.memory_space<vmem>>, vector<2x192xf32>
    %c10_506 = arith.constant 10 : index
    %c0_507 = arith.constant 0 : index
    %1706 = vector.load %arg11[%c10_506, %c0_507] : memref<16x192xf32, #tpu.memory_space<vmem>>, vector<2x192xf32>
    %cst_508 = arith.constant dense<0.000000e+00> : vector<2x96xf32>
    %1707 = tpu.matmul %1676, %1566, %cst_508 {dimension_numbers = #tpu.dot_dimension_numbers<[1], [0], [0], [1], [0, 0, 1, 1], [], []>} : vector<2x32xf32>, vector<32x96xf32>, vector<2x96xf32> -> vector<2x96xf32>
    %1708 = vector.broadcast %1564 : vector<1x96xf32> to vector<2x96xf32>
    %1709 = arith.addf %1707, %1708 : vector<2x96xf32>
    %cst_509 = arith.constant dense<0.000000e+00> : vector<2x96xf32>
    %1710 = tpu.matmul %1702, %1567, %cst_509 {dimension_numbers = #tpu.dot_dimension_numbers<[1], [0], [0], [1], [0, 0, 1, 1], [], []>} : vector<2x32xf32>, vector<32x96xf32>, vector<2x96xf32> -> vector<2x96xf32>
    %1711 = vector.broadcast %1565 : vector<1x96xf32> to vector<2x96xf32>
    %1712 = arith.addf %1710, %1711 : vector<2x96xf32>
    %1713 = vector.extract_strided_slice %1705 {offsets = [0, 0], sizes = [2, 32], strides = [1, 1]} : vector<2x192xf32> to vector<2x32xf32>
    %1714 = vector.extract_strided_slice %1709 {offsets = [0, 0], sizes = [2, 32], strides = [1, 1]} : vector<2x96xf32> to vector<2x32xf32>
    %1715 = arith.addf %1713, %1714 : vector<2x32xf32>
    %1716 = arith.negf %1715 : vector<2x32xf32>
    %1717 = math.exp %1716 : vector<2x32xf32>
    %cst_510 = arith.constant 1.000000e+00 : f32
    %1718 = vector.broadcast %cst_510 : f32 to vector<2x32xf32>
    %1719 = arith.addf %1718, %1717 : vector<2x32xf32>
    %1720 = arith.divf %1718, %1719 : vector<2x32xf32>
    %1721 = vector.extract_strided_slice %1705 {offsets = [0, 32], sizes = [2, 32], strides = [1, 1]} : vector<2x192xf32> to vector<2x32xf32>
    %1722 = vector.extract_strided_slice %1709 {offsets = [0, 32], sizes = [2, 32], strides = [1, 1]} : vector<2x96xf32> to vector<2x32xf32>
    %1723 = arith.addf %1721, %1722 : vector<2x32xf32>
    %1724 = arith.negf %1723 : vector<2x32xf32>
    %1725 = math.exp %1724 : vector<2x32xf32>
    %cst_511 = arith.constant 1.000000e+00 : f32
    %1726 = vector.broadcast %cst_511 : f32 to vector<2x32xf32>
    %1727 = arith.addf %1726, %1725 : vector<2x32xf32>
    %1728 = arith.divf %1726, %1727 : vector<2x32xf32>
    %1729 = vector.extract_strided_slice %1705 {offsets = [0, 64], sizes = [2, 32], strides = [1, 1]} : vector<2x192xf32> to vector<2x32xf32>
    %1730 = vector.extract_strided_slice %1709 {offsets = [0, 64], sizes = [2, 32], strides = [1, 1]} : vector<2x96xf32> to vector<2x32xf32>
    %1731 = arith.mulf %1720, %1730 : vector<2x32xf32>
    %1732 = arith.addf %1729, %1731 : vector<2x32xf32>
    %1733 = math.tanh %1732 : vector<2x32xf32>
    %cst_512 = arith.constant 1.000000e+00 : f32
    %1734 = vector.broadcast %cst_512 : f32 to vector<2x32xf32>
    %1735 = arith.subf %1734, %1728 : vector<2x32xf32>
    %1736 = arith.mulf %1735, %1733 : vector<2x32xf32>
    %1737 = arith.mulf %1728, %1676 : vector<2x32xf32>
    %1738 = arith.addf %1736, %1737 : vector<2x32xf32>
    %1739 = vector.extract_strided_slice %1706 {offsets = [0, 96], sizes = [2, 32], strides = [1, 1]} : vector<2x192xf32> to vector<2x32xf32>
    %1740 = vector.extract_strided_slice %1712 {offsets = [0, 0], sizes = [2, 32], strides = [1, 1]} : vector<2x96xf32> to vector<2x32xf32>
    %1741 = arith.addf %1739, %1740 : vector<2x32xf32>
    %1742 = arith.negf %1741 : vector<2x32xf32>
    %1743 = math.exp %1742 : vector<2x32xf32>
    %cst_513 = arith.constant 1.000000e+00 : f32
    %1744 = vector.broadcast %cst_513 : f32 to vector<2x32xf32>
    %1745 = arith.addf %1744, %1743 : vector<2x32xf32>
    %1746 = arith.divf %1744, %1745 : vector<2x32xf32>
    %1747 = vector.extract_strided_slice %1706 {offsets = [0, 128], sizes = [2, 32], strides = [1, 1]} : vector<2x192xf32> to vector<2x32xf32>
    %1748 = vector.extract_strided_slice %1712 {offsets = [0, 32], sizes = [2, 32], strides = [1, 1]} : vector<2x96xf32> to vector<2x32xf32>
    %1749 = arith.addf %1747, %1748 : vector<2x32xf32>
    %1750 = arith.negf %1749 : vector<2x32xf32>
    %1751 = math.exp %1750 : vector<2x32xf32>
    %cst_514 = arith.constant 1.000000e+00 : f32
    %1752 = vector.broadcast %cst_514 : f32 to vector<2x32xf32>
    %1753 = arith.addf %1752, %1751 : vector<2x32xf32>
    %1754 = arith.divf %1752, %1753 : vector<2x32xf32>
    %1755 = vector.extract_strided_slice %1706 {offsets = [0, 160], sizes = [2, 32], strides = [1, 1]} : vector<2x192xf32> to vector<2x32xf32>
    %1756 = vector.extract_strided_slice %1712 {offsets = [0, 64], sizes = [2, 32], strides = [1, 1]} : vector<2x96xf32> to vector<2x32xf32>
    %1757 = arith.mulf %1746, %1756 : vector<2x32xf32>
    %1758 = arith.addf %1755, %1757 : vector<2x32xf32>
    %1759 = math.tanh %1758 : vector<2x32xf32>
    %cst_515 = arith.constant 1.000000e+00 : f32
    %1760 = vector.broadcast %cst_515 : f32 to vector<2x32xf32>
    %1761 = arith.subf %1760, %1754 : vector<2x32xf32>
    %1762 = arith.mulf %1761, %1759 : vector<2x32xf32>
    %1763 = arith.mulf %1754, %1702 : vector<2x32xf32>
    %1764 = arith.addf %1762, %1763 : vector<2x32xf32>
    %c4_516 = arith.constant 4 : index
    %c0_517 = arith.constant 0 : index
    %1765 = vector.load %arg12[%c4_516, %c0_517] : memref<16x32xf32, #tpu.memory_space<vmem>>, vector<2x32xf32>
    tpu.vector_store %arg12[%c4_516, %c0_517], %1738 {strides = array<i32>} : memref<16x32xf32, #tpu.memory_space<vmem>>, vector<2x32xf32>,
    %c10_518 = arith.constant 10 : index
    %c0_519 = arith.constant 0 : index
    %1766 = vector.load %arg13[%c10_518, %c0_519] : memref<16x32xf32, #tpu.memory_space<vmem>>, vector<2x32xf32>
    tpu.vector_store %arg13[%c10_518, %c0_519], %1764 {strides = array<i32>} : memref<16x32xf32, #tpu.memory_space<vmem>>, vector<2x32xf32>,
    %c6_520 = arith.constant 6 : index
    %c0_521 = arith.constant 0 : index
    %1767 = vector.load %arg11[%c6_520, %c0_521] : memref<16x192xf32, #tpu.memory_space<vmem>>, vector<2x192xf32>
    %c8_522 = arith.constant 8 : index
    %c0_523 = arith.constant 0 : index
    %1768 = vector.load %arg11[%c8_522, %c0_523] : memref<16x192xf32, #tpu.memory_space<vmem>>, vector<2x192xf32>
    %cst_524 = arith.constant dense<0.000000e+00> : vector<2x96xf32>
    %1769 = tpu.matmul %1738, %1566, %cst_524 {dimension_numbers = #tpu.dot_dimension_numbers<[1], [0], [0], [1], [0, 0, 1, 1], [], []>} : vector<2x32xf32>, vector<32x96xf32>, vector<2x96xf32> -> vector<2x96xf32>
    %1770 = vector.broadcast %1564 : vector<1x96xf32> to vector<2x96xf32>
    %1771 = arith.addf %1769, %1770 : vector<2x96xf32>
    %cst_525 = arith.constant dense<0.000000e+00> : vector<2x96xf32>
    %1772 = tpu.matmul %1764, %1567, %cst_525 {dimension_numbers = #tpu.dot_dimension_numbers<[1], [0], [0], [1], [0, 0, 1, 1], [], []>} : vector<2x32xf32>, vector<32x96xf32>, vector<2x96xf32> -> vector<2x96xf32>
    %1773 = vector.broadcast %1565 : vector<1x96xf32> to vector<2x96xf32>
    %1774 = arith.addf %1772, %1773 : vector<2x96xf32>
    %1775 = vector.extract_strided_slice %1767 {offsets = [0, 0], sizes = [2, 32], strides = [1, 1]} : vector<2x192xf32> to vector<2x32xf32>
    %1776 = vector.extract_strided_slice %1771 {offsets = [0, 0], sizes = [2, 32], strides = [1, 1]} : vector<2x96xf32> to vector<2x32xf32>
    %1777 = arith.addf %1775, %1776 : vector<2x32xf32>
    %1778 = arith.negf %1777 : vector<2x32xf32>
    %1779 = math.exp %1778 : vector<2x32xf32>
    %cst_526 = arith.constant 1.000000e+00 : f32
    %1780 = vector.broadcast %cst_526 : f32 to vector<2x32xf32>
    %1781 = arith.addf %1780, %1779 : vector<2x32xf32>
    %1782 = arith.divf %1780, %1781 : vector<2x32xf32>
    %1783 = vector.extract_strided_slice %1767 {offsets = [0, 32], sizes = [2, 32], strides = [1, 1]} : vector<2x192xf32> to vector<2x32xf32>
    %1784 = vector.extract_strided_slice %1771 {offsets = [0, 32], sizes = [2, 32], strides = [1, 1]} : vector<2x96xf32> to vector<2x32xf32>
    %1785 = arith.addf %1783, %1784 : vector<2x32xf32>
    %1786 = arith.negf %1785 : vector<2x32xf32>
    %1787 = math.exp %1786 : vector<2x32xf32>
    %cst_527 = arith.constant 1.000000e+00 : f32
    %1788 = vector.broadcast %cst_527 : f32 to vector<2x32xf32>
    %1789 = arith.addf %1788, %1787 : vector<2x32xf32>
    %1790 = arith.divf %1788, %1789 : vector<2x32xf32>
    %1791 = vector.extract_strided_slice %1767 {offsets = [0, 64], sizes = [2, 32], strides = [1, 1]} : vector<2x192xf32> to vector<2x32xf32>
    %1792 = vector.extract_strided_slice %1771 {offsets = [0, 64], sizes = [2, 32], strides = [1, 1]} : vector<2x96xf32> to vector<2x32xf32>
    %1793 = arith.mulf %1782, %1792 : vector<2x32xf32>
    %1794 = arith.addf %1791, %1793 : vector<2x32xf32>
    %1795 = math.tanh %1794 : vector<2x32xf32>
    %cst_528 = arith.constant 1.000000e+00 : f32
    %1796 = vector.broadcast %cst_528 : f32 to vector<2x32xf32>
    %1797 = arith.subf %1796, %1790 : vector<2x32xf32>
    %1798 = arith.mulf %1797, %1795 : vector<2x32xf32>
    %1799 = arith.mulf %1790, %1738 : vector<2x32xf32>
    %1800 = arith.addf %1798, %1799 : vector<2x32xf32>
    %1801 = vector.extract_strided_slice %1768 {offsets = [0, 96], sizes = [2, 32], strides = [1, 1]} : vector<2x192xf32> to vector<2x32xf32>
    %1802 = vector.extract_strided_slice %1774 {offsets = [0, 0], sizes = [2, 32], strides = [1, 1]} : vector<2x96xf32> to vector<2x32xf32>
    %1803 = arith.addf %1801, %1802 : vector<2x32xf32>
    %1804 = arith.negf %1803 : vector<2x32xf32>
    %1805 = math.exp %1804 : vector<2x32xf32>
    %cst_529 = arith.constant 1.000000e+00 : f32
    %1806 = vector.broadcast %cst_529 : f32 to vector<2x32xf32>
    %1807 = arith.addf %1806, %1805 : vector<2x32xf32>
    %1808 = arith.divf %1806, %1807 : vector<2x32xf32>
    %1809 = vector.extract_strided_slice %1768 {offsets = [0, 128], sizes = [2, 32], strides = [1, 1]} : vector<2x192xf32> to vector<2x32xf32>
    %1810 = vector.extract_strided_slice %1774 {offsets = [0, 32], sizes = [2, 32], strides = [1, 1]} : vector<2x96xf32> to vector<2x32xf32>
    %1811 = arith.addf %1809, %1810 : vector<2x32xf32>
    %1812 = arith.negf %1811 : vector<2x32xf32>
    %1813 = math.exp %1812 : vector<2x32xf32>
    %cst_530 = arith.constant 1.000000e+00 : f32
    %1814 = vector.broadcast %cst_530 : f32 to vector<2x32xf32>
    %1815 = arith.addf %1814, %1813 : vector<2x32xf32>
    %1816 = arith.divf %1814, %1815 : vector<2x32xf32>
    %1817 = vector.extract_strided_slice %1768 {offsets = [0, 160], sizes = [2, 32], strides = [1, 1]} : vector<2x192xf32> to vector<2x32xf32>
    %1818 = vector.extract_strided_slice %1774 {offsets = [0, 64], sizes = [2, 32], strides = [1, 1]} : vector<2x96xf32> to vector<2x32xf32>
    %1819 = arith.mulf %1808, %1818 : vector<2x32xf32>
    %1820 = arith.addf %1817, %1819 : vector<2x32xf32>
    %1821 = math.tanh %1820 : vector<2x32xf32>
    %cst_531 = arith.constant 1.000000e+00 : f32
    %1822 = vector.broadcast %cst_531 : f32 to vector<2x32xf32>
    %1823 = arith.subf %1822, %1816 : vector<2x32xf32>
    %1824 = arith.mulf %1823, %1821 : vector<2x32xf32>
    %1825 = arith.mulf %1816, %1764 : vector<2x32xf32>
    %1826 = arith.addf %1824, %1825 : vector<2x32xf32>
    %c6_532 = arith.constant 6 : index
    %c0_533 = arith.constant 0 : index
    %1827 = vector.load %arg12[%c6_532, %c0_533] : memref<16x32xf32, #tpu.memory_space<vmem>>, vector<2x32xf32>
    tpu.vector_store %arg12[%c6_532, %c0_533], %1800 {strides = array<i32>} : memref<16x32xf32, #tpu.memory_space<vmem>>, vector<2x32xf32>,
    %c8_534 = arith.constant 8 : index
    %c0_535 = arith.constant 0 : index
    %1828 = vector.load %arg13[%c8_534, %c0_535] : memref<16x32xf32, #tpu.memory_space<vmem>>, vector<2x32xf32>
    tpu.vector_store %arg13[%c8_534, %c0_535], %1826 {strides = array<i32>} : memref<16x32xf32, #tpu.memory_space<vmem>>, vector<2x32xf32>,
    %c8_536 = arith.constant 8 : index
    %c0_537 = arith.constant 0 : index
    %1829 = vector.load %arg11[%c8_536, %c0_537] : memref<16x192xf32, #tpu.memory_space<vmem>>, vector<2x192xf32>
    %c6_538 = arith.constant 6 : index
    %c0_539 = arith.constant 0 : index
    %1830 = vector.load %arg11[%c6_538, %c0_539] : memref<16x192xf32, #tpu.memory_space<vmem>>, vector<2x192xf32>
    %cst_540 = arith.constant dense<0.000000e+00> : vector<2x96xf32>
    %1831 = tpu.matmul %1800, %1566, %cst_540 {dimension_numbers = #tpu.dot_dimension_numbers<[1], [0], [0], [1], [0, 0, 1, 1], [], []>} : vector<2x32xf32>, vector<32x96xf32>, vector<2x96xf32> -> vector<2x96xf32>
    %1832 = vector.broadcast %1564 : vector<1x96xf32> to vector<2x96xf32>
    %1833 = arith.addf %1831, %1832 : vector<2x96xf32>
    %cst_541 = arith.constant dense<0.000000e+00> : vector<2x96xf32>
    %1834 = tpu.matmul %1826, %1567, %cst_541 {dimension_numbers = #tpu.dot_dimension_numbers<[1], [0], [0], [1], [0, 0, 1, 1], [], []>} : vector<2x32xf32>, vector<32x96xf32>, vector<2x96xf32> -> vector<2x96xf32>
    %1835 = vector.broadcast %1565 : vector<1x96xf32> to vector<2x96xf32>
    %1836 = arith.addf %1834, %1835 : vector<2x96xf32>
    %1837 = vector.extract_strided_slice %1829 {offsets = [0, 0], sizes = [2, 32], strides = [1, 1]} : vector<2x192xf32> to vector<2x32xf32>
    %1838 = vector.extract_strided_slice %1833 {offsets = [0, 0], sizes = [2, 32], strides = [1, 1]} : vector<2x96xf32> to vector<2x32xf32>
    %1839 = arith.addf %1837, %1838 : vector<2x32xf32>
    %1840 = arith.negf %1839 : vector<2x32xf32>
    %1841 = math.exp %1840 : vector<2x32xf32>
    %cst_542 = arith.constant 1.000000e+00 : f32
    %1842 = vector.broadcast %cst_542 : f32 to vector<2x32xf32>
    %1843 = arith.addf %1842, %1841 : vector<2x32xf32>
    %1844 = arith.divf %1842, %1843 : vector<2x32xf32>
    %1845 = vector.extract_strided_slice %1829 {offsets = [0, 32], sizes = [2, 32], strides = [1, 1]} : vector<2x192xf32> to vector<2x32xf32>
    %1846 = vector.extract_strided_slice %1833 {offsets = [0, 32], sizes = [2, 32], strides = [1, 1]} : vector<2x96xf32> to vector<2x32xf32>
    %1847 = arith.addf %1845, %1846 : vector<2x32xf32>
    %1848 = arith.negf %1847 : vector<2x32xf32>
    %1849 = math.exp %1848 : vector<2x32xf32>
    %cst_543 = arith.constant 1.000000e+00 : f32
    %1850 = vector.broadcast %cst_543 : f32 to vector<2x32xf32>
    %1851 = arith.addf %1850, %1849 : vector<2x32xf32>
    %1852 = arith.divf %1850, %1851 : vector<2x32xf32>
    %1853 = vector.extract_strided_slice %1829 {offsets = [0, 64], sizes = [2, 32], strides = [1, 1]} : vector<2x192xf32> to vector<2x32xf32>
    %1854 = vector.extract_strided_slice %1833 {offsets = [0, 64], sizes = [2, 32], strides = [1, 1]} : vector<2x96xf32> to vector<2x32xf32>
    %1855 = arith.mulf %1844, %1854 : vector<2x32xf32>
    %1856 = arith.addf %1853, %1855 : vector<2x32xf32>
    %1857 = math.tanh %1856 : vector<2x32xf32>
    %cst_544 = arith.constant 1.000000e+00 : f32
    %1858 = vector.broadcast %cst_544 : f32 to vector<2x32xf32>
    %1859 = arith.subf %1858, %1852 : vector<2x32xf32>
    %1860 = arith.mulf %1859, %1857 : vector<2x32xf32>
    %1861 = arith.mulf %1852, %1800 : vector<2x32xf32>
    %1862 = arith.addf %1860, %1861 : vector<2x32xf32>
    %1863 = vector.extract_strided_slice %1830 {offsets = [0, 96], sizes = [2, 32], strides = [1, 1]} : vector<2x192xf32> to vector<2x32xf32>
    %1864 = vector.extract_strided_slice %1836 {offsets = [0, 0], sizes = [2, 32], strides = [1, 1]} : vector<2x96xf32> to vector<2x32xf32>
    %1865 = arith.addf %1863, %1864 : vector<2x32xf32>
    %1866 = arith.negf %1865 : vector<2x32xf32>
    %1867 = math.exp %1866 : vector<2x32xf32>
    %cst_545 = arith.constant 1.000000e+00 : f32
    %1868 = vector.broadcast %cst_545 : f32 to vector<2x32xf32>
    %1869 = arith.addf %1868, %1867 : vector<2x32xf32>
    %1870 = arith.divf %1868, %1869 : vector<2x32xf32>
    %1871 = vector.extract_strided_slice %1830 {offsets = [0, 128], sizes = [2, 32], strides = [1, 1]} : vector<2x192xf32> to vector<2x32xf32>
    %1872 = vector.extract_strided_slice %1836 {offsets = [0, 32], sizes = [2, 32], strides = [1, 1]} : vector<2x96xf32> to vector<2x32xf32>
    %1873 = arith.addf %1871, %1872 : vector<2x32xf32>
    %1874 = arith.negf %1873 : vector<2x32xf32>
    %1875 = math.exp %1874 : vector<2x32xf32>
    %cst_546 = arith.constant 1.000000e+00 : f32
    %1876 = vector.broadcast %cst_546 : f32 to vector<2x32xf32>
    %1877 = arith.addf %1876, %1875 : vector<2x32xf32>
    %1878 = arith.divf %1876, %1877 : vector<2x32xf32>
    %1879 = vector.extract_strided_slice %1830 {offsets = [0, 160], sizes = [2, 32], strides = [1, 1]} : vector<2x192xf32> to vector<2x32xf32>
    %1880 = vector.extract_strided_slice %1836 {offsets = [0, 64], sizes = [2, 32], strides = [1, 1]} : vector<2x96xf32> to vector<2x32xf32>
    %1881 = arith.mulf %1870, %1880 : vector<2x32xf32>
    %1882 = arith.addf %1879, %1881 : vector<2x32xf32>
    %1883 = math.tanh %1882 : vector<2x32xf32>
    %cst_547 = arith.constant 1.000000e+00 : f32
    %1884 = vector.broadcast %cst_547 : f32 to vector<2x32xf32>
    %1885 = arith.subf %1884, %1878 : vector<2x32xf32>
    %1886 = arith.mulf %1885, %1883 : vector<2x32xf32>
    %1887 = arith.mulf %1878, %1826 : vector<2x32xf32>
    %1888 = arith.addf %1886, %1887 : vector<2x32xf32>
    %c8_548 = arith.constant 8 : index
    %c0_549 = arith.constant 0 : index
    %1889 = vector.load %arg12[%c8_548, %c0_549] : memref<16x32xf32, #tpu.memory_space<vmem>>, vector<2x32xf32>
    tpu.vector_store %arg12[%c8_548, %c0_549], %1862 {strides = array<i32>} : memref<16x32xf32, #tpu.memory_space<vmem>>, vector<2x32xf32>,
    %c6_550 = arith.constant 6 : index
    %c0_551 = arith.constant 0 : index
    %1890 = vector.load %arg13[%c6_550, %c0_551] : memref<16x32xf32, #tpu.memory_space<vmem>>, vector<2x32xf32>
    tpu.vector_store %arg13[%c6_550, %c0_551], %1888 {strides = array<i32>} : memref<16x32xf32, #tpu.memory_space<vmem>>, vector<2x32xf32>,
    %c10_552 = arith.constant 10 : index
    %c0_553 = arith.constant 0 : index
    %1891 = vector.load %arg11[%c10_552, %c0_553] : memref<16x192xf32, #tpu.memory_space<vmem>>, vector<2x192xf32>
    %c4_554 = arith.constant 4 : index
    %c0_555 = arith.constant 0 : index
    %1892 = vector.load %arg11[%c4_554, %c0_555] : memref<16x192xf32, #tpu.memory_space<vmem>>, vector<2x192xf32>
    %cst_556 = arith.constant dense<0.000000e+00> : vector<2x96xf32>
    %1893 = tpu.matmul %1862, %1566, %cst_556 {dimension_numbers = #tpu.dot_dimension_numbers<[1], [0], [0], [1], [0, 0, 1, 1], [], []>} : vector<2x32xf32>, vector<32x96xf32>, vector<2x96xf32> -> vector<2x96xf32>
    %1894 = vector.broadcast %1564 : vector<1x96xf32> to vector<2x96xf32>
    %1895 = arith.addf %1893, %1894 : vector<2x96xf32>
    %cst_557 = arith.constant dense<0.000000e+00> : vector<2x96xf32>
    %1896 = tpu.matmul %1888, %1567, %cst_557 {dimension_numbers = #tpu.dot_dimension_numbers<[1], [0], [0], [1], [0, 0, 1, 1], [], []>} : vector<2x32xf32>, vector<32x96xf32>, vector<2x96xf32> -> vector<2x96xf32>
    %1897 = vector.broadcast %1565 : vector<1x96xf32> to vector<2x96xf32>
    %1898 = arith.addf %1896, %1897 : vector<2x96xf32>
    %1899 = vector.extract_strided_slice %1891 {offsets = [0, 0], sizes = [2, 32], strides = [1, 1]} : vector<2x192xf32> to vector<2x32xf32>
    %1900 = vector.extract_strided_slice %1895 {offsets = [0, 0], sizes = [2, 32], strides = [1, 1]} : vector<2x96xf32> to vector<2x32xf32>
    %1901 = arith.addf %1899, %1900 : vector<2x32xf32>
    %1902 = arith.negf %1901 : vector<2x32xf32>
    %1903 = math.exp %1902 : vector<2x32xf32>
    %cst_558 = arith.constant 1.000000e+00 : f32
    %1904 = vector.broadcast %cst_558 : f32 to vector<2x32xf32>
    %1905 = arith.addf %1904, %1903 : vector<2x32xf32>
    %1906 = arith.divf %1904, %1905 : vector<2x32xf32>
    %1907 = vector.extract_strided_slice %1891 {offsets = [0, 32], sizes = [2, 32], strides = [1, 1]} : vector<2x192xf32> to vector<2x32xf32>
    %1908 = vector.extract_strided_slice %1895 {offsets = [0, 32], sizes = [2, 32], strides = [1, 1]} : vector<2x96xf32> to vector<2x32xf32>
    %1909 = arith.addf %1907, %1908 : vector<2x32xf32>
    %1910 = arith.negf %1909 : vector<2x32xf32>
    %1911 = math.exp %1910 : vector<2x32xf32>
    %cst_559 = arith.constant 1.000000e+00 : f32
    %1912 = vector.broadcast %cst_559 : f32 to vector<2x32xf32>
    %1913 = arith.addf %1912, %1911 : vector<2x32xf32>
    %1914 = arith.divf %1912, %1913 : vector<2x32xf32>
    %1915 = vector.extract_strided_slice %1891 {offsets = [0, 64], sizes = [2, 32], strides = [1, 1]} : vector<2x192xf32> to vector<2x32xf32>
    %1916 = vector.extract_strided_slice %1895 {offsets = [0, 64], sizes = [2, 32], strides = [1, 1]} : vector<2x96xf32> to vector<2x32xf32>
    %1917 = arith.mulf %1906, %1916 : vector<2x32xf32>
    %1918 = arith.addf %1915, %1917 : vector<2x32xf32>
    %1919 = math.tanh %1918 : vector<2x32xf32>
    %cst_560 = arith.constant 1.000000e+00 : f32
    %1920 = vector.broadcast %cst_560 : f32 to vector<2x32xf32>
    %1921 = arith.subf %1920, %1914 : vector<2x32xf32>
    %1922 = arith.mulf %1921, %1919 : vector<2x32xf32>
    %1923 = arith.mulf %1914, %1862 : vector<2x32xf32>
    %1924 = arith.addf %1922, %1923 : vector<2x32xf32>
    %1925 = vector.extract_strided_slice %1892 {offsets = [0, 96], sizes = [2, 32], strides = [1, 1]} : vector<2x192xf32> to vector<2x32xf32>
    %1926 = vector.extract_strided_slice %1898 {offsets = [0, 0], sizes = [2, 32], strides = [1, 1]} : vector<2x96xf32> to vector<2x32xf32>
    %1927 = arith.addf %1925, %1926 : vector<2x32xf32>
    %1928 = arith.negf %1927 : vector<2x32xf32>
    %1929 = math.exp %1928 : vector<2x32xf32>
    %cst_561 = arith.constant 1.000000e+00 : f32
    %1930 = vector.broadcast %cst_561 : f32 to vector<2x32xf32>
    %1931 = arith.addf %1930, %1929 : vector<2x32xf32>
    %1932 = arith.divf %1930, %1931 : vector<2x32xf32>
    %1933 = vector.extract_strided_slice %1892 {offsets = [0, 128], sizes = [2, 32], strides = [1, 1]} : vector<2x192xf32> to vector<2x32xf32>
    %1934 = vector.extract_strided_slice %1898 {offsets = [0, 32], sizes = [2, 32], strides = [1, 1]} : vector<2x96xf32> to vector<2x32xf32>
    %1935 = arith.addf %1933, %1934 : vector<2x32xf32>
    %1936 = arith.negf %1935 : vector<2x32xf32>
    %1937 = math.exp %1936 : vector<2x32xf32>
    %cst_562 = arith.constant 1.000000e+00 : f32
    %1938 = vector.broadcast %cst_562 : f32 to vector<2x32xf32>
    %1939 = arith.addf %1938, %1937 : vector<2x32xf32>
    %1940 = arith.divf %1938, %1939 : vector<2x32xf32>
    %1941 = vector.extract_strided_slice %1892 {offsets = [0, 160], sizes = [2, 32], strides = [1, 1]} : vector<2x192xf32> to vector<2x32xf32>
    %1942 = vector.extract_strided_slice %1898 {offsets = [0, 64], sizes = [2, 32], strides = [1, 1]} : vector<2x96xf32> to vector<2x32xf32>
    %1943 = arith.mulf %1932, %1942 : vector<2x32xf32>
    %1944 = arith.addf %1941, %1943 : vector<2x32xf32>
    %1945 = math.tanh %1944 : vector<2x32xf32>
    %cst_563 = arith.constant 1.000000e+00 : f32
    %1946 = vector.broadcast %cst_563 : f32 to vector<2x32xf32>
    %1947 = arith.subf %1946, %1940 : vector<2x32xf32>
    %1948 = arith.mulf %1947, %1945 : vector<2x32xf32>
    %1949 = arith.mulf %1940, %1888 : vector<2x32xf32>
    %1950 = arith.addf %1948, %1949 : vector<2x32xf32>
    %c10_564 = arith.constant 10 : index
    %c0_565 = arith.constant 0 : index
    %1951 = vector.load %arg12[%c10_564, %c0_565] : memref<16x32xf32, #tpu.memory_space<vmem>>, vector<2x32xf32>
    tpu.vector_store %arg12[%c10_564, %c0_565], %1924 {strides = array<i32>} : memref<16x32xf32, #tpu.memory_space<vmem>>, vector<2x32xf32>,
    %c4_566 = arith.constant 4 : index
    %c0_567 = arith.constant 0 : index
    %1952 = vector.load %arg13[%c4_566, %c0_567] : memref<16x32xf32, #tpu.memory_space<vmem>>, vector<2x32xf32>
    tpu.vector_store %arg13[%c4_566, %c0_567], %1950 {strides = array<i32>} : memref<16x32xf32, #tpu.memory_space<vmem>>, vector<2x32xf32>,
    %c12_568 = arith.constant 12 : index
    %c0_569 = arith.constant 0 : index
    %1953 = vector.load %arg11[%c12_568, %c0_569] : memref<16x192xf32, #tpu.memory_space<vmem>>, vector<2x192xf32>
    %c2_570 = arith.constant 2 : index
    %c0_571 = arith.constant 0 : index
    %1954 = vector.load %arg11[%c2_570, %c0_571] : memref<16x192xf32, #tpu.memory_space<vmem>>, vector<2x192xf32>
    %cst_572 = arith.constant dense<0.000000e+00> : vector<2x96xf32>
    %1955 = tpu.matmul %1924, %1566, %cst_572 {dimension_numbers = #tpu.dot_dimension_numbers<[1], [0], [0], [1], [0, 0, 1, 1], [], []>} : vector<2x32xf32>, vector<32x96xf32>, vector<2x96xf32> -> vector<2x96xf32>
    %1956 = vector.broadcast %1564 : vector<1x96xf32> to vector<2x96xf32>
    %1957 = arith.addf %1955, %1956 : vector<2x96xf32>
    %cst_573 = arith.constant dense<0.000000e+00> : vector<2x96xf32>
    %1958 = tpu.matmul %1950, %1567, %cst_573 {dimension_numbers = #tpu.dot_dimension_numbers<[1], [0], [0], [1], [0, 0, 1, 1], [], []>} : vector<2x32xf32>, vector<32x96xf32>, vector<2x96xf32> -> vector<2x96xf32>
    %1959 = vector.broadcast %1565 : vector<1x96xf32> to vector<2x96xf32>
    %1960 = arith.addf %1958, %1959 : vector<2x96xf32>
    %1961 = vector.extract_strided_slice %1953 {offsets = [0, 0], sizes = [2, 32], strides = [1, 1]} : vector<2x192xf32> to vector<2x32xf32>
    %1962 = vector.extract_strided_slice %1957 {offsets = [0, 0], sizes = [2, 32], strides = [1, 1]} : vector<2x96xf32> to vector<2x32xf32>
    %1963 = arith.addf %1961, %1962 : vector<2x32xf32>
    %1964 = arith.negf %1963 : vector<2x32xf32>
    %1965 = math.exp %1964 : vector<2x32xf32>
    %cst_574 = arith.constant 1.000000e+00 : f32
    %1966 = vector.broadcast %cst_574 : f32 to vector<2x32xf32>
    %1967 = arith.addf %1966, %1965 : vector<2x32xf32>
    %1968 = arith.divf %1966, %1967 : vector<2x32xf32>
    %1969 = vector.extract_strided_slice %1953 {offsets = [0, 32], sizes = [2, 32], strides = [1, 1]} : vector<2x192xf32> to vector<2x32xf32>
    %1970 = vector.extract_strided_slice %1957 {offsets = [0, 32], sizes = [2, 32], strides = [1, 1]} : vector<2x96xf32> to vector<2x32xf32>
    %1971 = arith.addf %1969, %1970 : vector<2x32xf32>
    %1972 = arith.negf %1971 : vector<2x32xf32>
    %1973 = math.exp %1972 : vector<2x32xf32>
    %cst_575 = arith.constant 1.000000e+00 : f32
    %1974 = vector.broadcast %cst_575 : f32 to vector<2x32xf32>
    %1975 = arith.addf %1974, %1973 : vector<2x32xf32>
    %1976 = arith.divf %1974, %1975 : vector<2x32xf32>
    %1977 = vector.extract_strided_slice %1953 {offsets = [0, 64], sizes = [2, 32], strides = [1, 1]} : vector<2x192xf32> to vector<2x32xf32>
    %1978 = vector.extract_strided_slice %1957 {offsets = [0, 64], sizes = [2, 32], strides = [1, 1]} : vector<2x96xf32> to vector<2x32xf32>
    %1979 = arith.mulf %1968, %1978 : vector<2x32xf32>
    %1980 = arith.addf %1977, %1979 : vector<2x32xf32>
    %1981 = math.tanh %1980 : vector<2x32xf32>
    %cst_576 = arith.constant 1.000000e+00 : f32
    %1982 = vector.broadcast %cst_576 : f32 to vector<2x32xf32>
    %1983 = arith.subf %1982, %1976 : vector<2x32xf32>
    %1984 = arith.mulf %1983, %1981 : vector<2x32xf32>
    %1985 = arith.mulf %1976, %1924 : vector<2x32xf32>
    %1986 = arith.addf %1984, %1985 : vector<2x32xf32>
    %1987 = vector.extract_strided_slice %1954 {offsets = [0, 96], sizes = [2, 32], strides = [1, 1]} : vector<2x192xf32> to vector<2x32xf32>
    %1988 = vector.extract_strided_slice %1960 {offsets = [0, 0], sizes = [2, 32], strides = [1, 1]} : vector<2x96xf32> to vector<2x32xf32>
    %1989 = arith.addf %1987, %1988 : vector<2x32xf32>
    %1990 = arith.negf %1989 : vector<2x32xf32>
    %1991 = math.exp %1990 : vector<2x32xf32>
    %cst_577 = arith.constant 1.000000e+00 : f32
    %1992 = vector.broadcast %cst_577 : f32 to vector<2x32xf32>
    %1993 = arith.addf %1992, %1991 : vector<2x32xf32>
    %1994 = arith.divf %1992, %1993 : vector<2x32xf32>
    %1995 = vector.extract_strided_slice %1954 {offsets = [0, 128], sizes = [2, 32], strides = [1, 1]} : vector<2x192xf32> to vector<2x32xf32>
    %1996 = vector.extract_strided_slice %1960 {offsets = [0, 32], sizes = [2, 32], strides = [1, 1]} : vector<2x96xf32> to vector<2x32xf32>
    %1997 = arith.addf %1995, %1996 : vector<2x32xf32>
    %1998 = arith.negf %1997 : vector<2x32xf32>
    %1999 = math.exp %1998 : vector<2x32xf32>
    %cst_578 = arith.constant 1.000000e+00 : f32
    %2000 = vector.broadcast %cst_578 : f32 to vector<2x32xf32>
    %2001 = arith.addf %2000, %1999 : vector<2x32xf32>
    %2002 = arith.divf %2000, %2001 : vector<2x32xf32>
    %2003 = vector.extract_strided_slice %1954 {offsets = [0, 160], sizes = [2, 32], strides = [1, 1]} : vector<2x192xf32> to vector<2x32xf32>
    %2004 = vector.extract_strided_slice %1960 {offsets = [0, 64], sizes = [2, 32], strides = [1, 1]} : vector<2x96xf32> to vector<2x32xf32>
    %2005 = arith.mulf %1994, %2004 : vector<2x32xf32>
    %2006 = arith.addf %2003, %2005 : vector<2x32xf32>
    %2007 = math.tanh %2006 : vector<2x32xf32>
    %cst_579 = arith.constant 1.000000e+00 : f32
    %2008 = vector.broadcast %cst_579 : f32 to vector<2x32xf32>
    %2009 = arith.subf %2008, %2002 : vector<2x32xf32>
    %2010 = arith.mulf %2009, %2007 : vector<2x32xf32>
    %2011 = arith.mulf %2002, %1950 : vector<2x32xf32>
    %2012 = arith.addf %2010, %2011 : vector<2x32xf32>
    %c12_580 = arith.constant 12 : index
    %c0_581 = arith.constant 0 : index
    %2013 = vector.load %arg12[%c12_580, %c0_581] : memref<16x32xf32, #tpu.memory_space<vmem>>, vector<2x32xf32>
    tpu.vector_store %arg12[%c12_580, %c0_581], %1986 {strides = array<i32>} : memref<16x32xf32, #tpu.memory_space<vmem>>, vector<2x32xf32>,
    %c2_582 = arith.constant 2 : index
    %c0_583 = arith.constant 0 : index
    %2014 = vector.load %arg13[%c2_582, %c0_583] : memref<16x32xf32, #tpu.memory_space<vmem>>, vector<2x32xf32>
    tpu.vector_store %arg13[%c2_582, %c0_583], %2012 {strides = array<i32>} : memref<16x32xf32, #tpu.memory_space<vmem>>, vector<2x32xf32>,
    %c14_584 = arith.constant 14 : index
    %c0_585 = arith.constant 0 : index
    %2015 = vector.load %arg11[%c14_584, %c0_585] : memref<16x192xf32, #tpu.memory_space<vmem>>, vector<2x192xf32>
    %c0_586 = arith.constant 0 : index
    %c0_587 = arith.constant 0 : index
    %2016 = vector.load %arg11[%c0_586, %c0_587] : memref<16x192xf32, #tpu.memory_space<vmem>>, vector<2x192xf32>
    %cst_588 = arith.constant dense<0.000000e+00> : vector<2x96xf32>
    %2017 = tpu.matmul %1986, %1566, %cst_588 {dimension_numbers = #tpu.dot_dimension_numbers<[1], [0], [0], [1], [0, 0, 1, 1], [], []>} : vector<2x32xf32>, vector<32x96xf32>, vector<2x96xf32> -> vector<2x96xf32>
    %2018 = vector.broadcast %1564 : vector<1x96xf32> to vector<2x96xf32>
    %2019 = arith.addf %2017, %2018 : vector<2x96xf32>
    %cst_589 = arith.constant dense<0.000000e+00> : vector<2x96xf32>
    %2020 = tpu.matmul %2012, %1567, %cst_589 {dimension_numbers = #tpu.dot_dimension_numbers<[1], [0], [0], [1], [0, 0, 1, 1], [], []>} : vector<2x32xf32>, vector<32x96xf32>, vector<2x96xf32> -> vector<2x96xf32>
    %2021 = vector.broadcast %1565 : vector<1x96xf32> to vector<2x96xf32>
    %2022 = arith.addf %2020, %2021 : vector<2x96xf32>
    %2023 = vector.extract_strided_slice %2015 {offsets = [0, 0], sizes = [2, 32], strides = [1, 1]} : vector<2x192xf32> to vector<2x32xf32>
    %2024 = vector.extract_strided_slice %2019 {offsets = [0, 0], sizes = [2, 32], strides = [1, 1]} : vector<2x96xf32> to vector<2x32xf32>
    %2025 = arith.addf %2023, %2024 : vector<2x32xf32>
    %2026 = arith.negf %2025 : vector<2x32xf32>
    %2027 = math.exp %2026 : vector<2x32xf32>
    %cst_590 = arith.constant 1.000000e+00 : f32
    %2028 = vector.broadcast %cst_590 : f32 to vector<2x32xf32>
    %2029 = arith.addf %2028, %2027 : vector<2x32xf32>
    %2030 = arith.divf %2028, %2029 : vector<2x32xf32>
    %2031 = vector.extract_strided_slice %2015 {offsets = [0, 32], sizes = [2, 32], strides = [1, 1]} : vector<2x192xf32> to vector<2x32xf32>
    %2032 = vector.extract_strided_slice %2019 {offsets = [0, 32], sizes = [2, 32], strides = [1, 1]} : vector<2x96xf32> to vector<2x32xf32>
    %2033 = arith.addf %2031, %2032 : vector<2x32xf32>
    %2034 = arith.negf %2033 : vector<2x32xf32>
    %2035 = math.exp %2034 : vector<2x32xf32>
    %cst_591 = arith.constant 1.000000e+00 : f32
    %2036 = vector.broadcast %cst_591 : f32 to vector<2x32xf32>
    %2037 = arith.addf %2036, %2035 : vector<2x32xf32>
    %2038 = arith.divf %2036, %2037 : vector<2x32xf32>
    %2039 = vector.extract_strided_slice %2015 {offsets = [0, 64], sizes = [2, 32], strides = [1, 1]} : vector<2x192xf32> to vector<2x32xf32>
    %2040 = vector.extract_strided_slice %2019 {offsets = [0, 64], sizes = [2, 32], strides = [1, 1]} : vector<2x96xf32> to vector<2x32xf32>
    %2041 = arith.mulf %2030, %2040 : vector<2x32xf32>
    %2042 = arith.addf %2039, %2041 : vector<2x32xf32>
    %2043 = math.tanh %2042 : vector<2x32xf32>
    %cst_592 = arith.constant 1.000000e+00 : f32
    %2044 = vector.broadcast %cst_592 : f32 to vector<2x32xf32>
    %2045 = arith.subf %2044, %2038 : vector<2x32xf32>
    %2046 = arith.mulf %2045, %2043 : vector<2x32xf32>
    %2047 = arith.mulf %2038, %1986 : vector<2x32xf32>
    %2048 = arith.addf %2046, %2047 : vector<2x32xf32>
    %2049 = vector.extract_strided_slice %2016 {offsets = [0, 96], sizes = [2, 32], strides = [1, 1]} : vector<2x192xf32> to vector<2x32xf32>
    %2050 = vector.extract_strided_slice %2022 {offsets = [0, 0], sizes = [2, 32], strides = [1, 1]} : vector<2x96xf32> to vector<2x32xf32>
    %2051 = arith.addf %2049, %2050 : vector<2x32xf32>
    %2052 = arith.negf %2051 : vector<2x32xf32>
    %2053 = math.exp %2052 : vector<2x32xf32>
    %cst_593 = arith.constant 1.000000e+00 : f32
    %2054 = vector.broadcast %cst_593 : f32 to vector<2x32xf32>
    %2055 = arith.addf %2054, %2053 : vector<2x32xf32>
    %2056 = arith.divf %2054, %2055 : vector<2x32xf32>
    %2057 = vector.extract_strided_slice %2016 {offsets = [0, 128], sizes = [2, 32], strides = [1, 1]} : vector<2x192xf32> to vector<2x32xf32>
    %2058 = vector.extract_strided_slice %2022 {offsets = [0, 32], sizes = [2, 32], strides = [1, 1]} : vector<2x96xf32> to vector<2x32xf32>
    %2059 = arith.addf %2057, %2058 : vector<2x32xf32>
    %2060 = arith.negf %2059 : vector<2x32xf32>
    %2061 = math.exp %2060 : vector<2x32xf32>
    %cst_594 = arith.constant 1.000000e+00 : f32
    %2062 = vector.broadcast %cst_594 : f32 to vector<2x32xf32>
    %2063 = arith.addf %2062, %2061 : vector<2x32xf32>
    %2064 = arith.divf %2062, %2063 : vector<2x32xf32>
    %2065 = vector.extract_strided_slice %2016 {offsets = [0, 160], sizes = [2, 32], strides = [1, 1]} : vector<2x192xf32> to vector<2x32xf32>
    %2066 = vector.extract_strided_slice %2022 {offsets = [0, 64], sizes = [2, 32], strides = [1, 1]} : vector<2x96xf32> to vector<2x32xf32>
    %2067 = arith.mulf %2056, %2066 : vector<2x32xf32>
    %2068 = arith.addf %2065, %2067 : vector<2x32xf32>
    %2069 = math.tanh %2068 : vector<2x32xf32>
    %cst_595 = arith.constant 1.000000e+00 : f32
    %2070 = vector.broadcast %cst_595 : f32 to vector<2x32xf32>
    %2071 = arith.subf %2070, %2064 : vector<2x32xf32>
    %2072 = arith.mulf %2071, %2069 : vector<2x32xf32>
    %2073 = arith.mulf %2064, %2012 : vector<2x32xf32>
    %2074 = arith.addf %2072, %2073 : vector<2x32xf32>
    %c14_596 = arith.constant 14 : index
    %c0_597 = arith.constant 0 : index
    %2075 = vector.load %arg12[%c14_596, %c0_597] : memref<16x32xf32, #tpu.memory_space<vmem>>, vector<2x32xf32>
    tpu.vector_store %arg12[%c14_596, %c0_597], %2048 {strides = array<i32>} : memref<16x32xf32, #tpu.memory_space<vmem>>, vector<2x32xf32>,
    %c0_598 = arith.constant 0 : index
    %c0_599 = arith.constant 0 : index
    %2076 = vector.load %arg13[%c0_598, %c0_599] : memref<16x32xf32, #tpu.memory_space<vmem>>, vector<2x32xf32>
    tpu.vector_store %arg13[%c0_598, %c0_599], %2074 {strides = array<i32>} : memref<16x32xf32, #tpu.memory_space<vmem>>, vector<2x32xf32>,
    %c12_600 = arith.constant 12 : index
    %c0_601 = arith.constant 0 : index
    %2077 = vector.load %arg10[%c12_600, %c0_601] : memref<16x32xf32, #tpu.memory_space<vmem>>, vector<2x32xf32>
    tpu.vector_store %arg10[%c12_600, %c0_601], %2048 {strides = array<i32>} : memref<16x32xf32, #tpu.memory_space<vmem>>, vector<2x32xf32>,
    %c14_602 = arith.constant 14 : index
    %c0_603 = arith.constant 0 : index
    %2078 = vector.load %arg10[%c14_602, %c0_603] : memref<16x32xf32, #tpu.memory_space<vmem>>, vector<2x32xf32>
    tpu.vector_store %arg10[%c14_602, %c0_603], %2074 {strides = array<i32>} : memref<16x32xf32, #tpu.memory_space<vmem>>, vector<2x32xf32>,
    %c0_604 = arith.constant 0 : index
    %c0_605 = arith.constant 0 : index
    %2079 = vector.load %arg12[%c0_604, %c0_605] : memref<16x32xf32, #tpu.memory_space<vmem>>, vector<16x32xf32>
    %c0_606 = arith.constant 0 : index
    %c0_607 = arith.constant 0 : index
    %2080 = vector.load %arg13[%c0_606, %c0_607] : memref<16x32xf32, #tpu.memory_space<vmem>>, vector<16x32xf32>
    %2081 = arith.addf %2079, %2080 : vector<16x32xf32>
    %c0_608 = arith.constant 0 : index
    %c0_609 = arith.constant 0 : index
    %2082 = vector.load %arg9[%c0_608, %c0_609] : memref<16x32xf32, #tpu.memory_space<vmem>>, vector<16x32xf32>
    tpu.vector_store %arg9[%c0_608, %c0_609], %2081 {strides = array<i32>} : memref<16x32xf32, #tpu.memory_space<vmem>>, vector<16x32xf32>,
    return
  }
}

</mosaic_0001>

<bundles_post_ra>
// kernel: tpu_custom_call.1
= control target key start
LH: loop header
LB: loop body
LE: loop exit
PB: predicated region body
PF: predicated region fallthrough
CT: control target
= control target key end

     0   :  { %16 = vsyncpa [#allocation6], 0  ;;  %s12224_s0 = inlined_call_operand.vmem [shape: s32[16,1], index: 0, kind: input, shape index: {}]   ;;  %s12225_s1 = inlined_call_operand.vmem [shape: s32[16,1], index: 1, kind: input, shape index: {}]   ;;  %s12226_s2 = inlined_call_operand.vmem [shape: f32[128,32], index: 2, kind: input, shape index: {}]   ;;  %s12227_s3 = inlined_call_operand.hbm [shape: f32[1,32], index: 3, kind: input, shape index: {}]   ;;  %s12228_s4 = inlined_call_operand.vmem [shape: f32[32,192], index: 4, kind: input, shape index: {}]   ;;  %s12229_s5 = inlined_call_operand.vmem [shape: f32[192,192], index: 5, kind: input, shape index: {}]   ;;  %s12230_s6 = inlined_call_operand.vmem [shape: f32[4,192], index: 6, kind: input, shape index: {}]   ;;  %s12231_s7 = inlined_call_operand.vmem [shape: f32[256,96], index: 7, kind: input, shape index: {}]   ;;  %s12232_s8 = inlined_call_operand.vmem [shape: f32[8,96], index: 8, kind: input, shape index: {}]   ;;  %s12233_s9 = inlined_call_operand.hbm [shape: f32[16,32], index: 9, kind: output, shape index: {0}]   ;;  %s12234_s10 = inlined_call_operand.hbm [shape: f32[16,32], index: 10, kind: output, shape index: {1}]  }
   0x1   :  { %17 = vsyncpa [#allocation7], 0 }
   0x2   :  { %18 = vsyncpa [#allocation10], 0  ;;  %s10068_s13 = smov [#allocation5]  }
   0x3   :  { %s31_s14 = sshll.u32 %s10068_s13, 4  ;;  %s32_s14 = int_to_ptr.vmem [resolvable:$true] %s31_s14 }
   0x4   :  { %s10010_s15 = scalar_lea.vmem %s32_s14, 16  ;;  %s10014_s16 = scalar_lea.vmem %s32_s14, 32 }
   0x5   :  { %p10011_p0 = scmp.ne.s32.totalorder %s32_s14, %s10010_s15  ;;  %p10015_p1 = scmp.lt.s32.totalorder %s32_s14, %s32_s14 }
   0x6   :  { %p10016_p2 = scmp.lt.s32.totalorder %s10014_s16, %s10010_s15 }
   0x8   :  { %p10017_p3 = por %p10016_p2, %p10015_p1 }
   0xa   :  { %p10018_p4 = pnand %p10017_p3, %p10011_p0 }
   0xc   :  { %10021 = shalt.err (!%p10018_p4)
}
   0xd   :  { %34 = dma.hbm_to_vmem [thread:$0]  %s12227_s3, 16, %s32_s14, [#allocation6]  }
   0xe   :  { %10062 = dma.done.wait [#allocation6], 16  }
   0xf   :  { %10063 = vsyncadd [#allocation6], 4294967280  ;;  %v10069_v0 = vmov 0   ;;  %v10070_v1 = vmov 0.0   ;;  %v51_v2 = vld [vmem:[%s12224_s0 + $0x8] sm:$0xff]  ;;  %v50_v3 = vld [vmem:[%s12224_s0] sm:$0xff]  ;;  %v48_v28 = vlaneseq }
  0x10   :  { %9449 = vset.pattern.permute.xlu1 %v10069_v0  ;;  %9448 = vset.pattern.permute.xlu0 %v10069_v0  ;;  %v63_v4 = vld [vmem:[%s12225_s1 + $0x8] sm:$0xff]  ;;  %v62_v6 = vld [vmem:[%s12225_s1] sm:$0xff]  ;;  %v93_v7 = vld [vmem:[%s12226_s2 + $0x78] sm:$0xff]  ;;  %vm10071_vm4 = vmmov 0   ;;  %vm206_vm5 = vcmask 261120   ;;  %vm291_vm6 = vcmask 523264  }
  0x11   :  { %277 = vmatprep.mubr.f32.mxu1 %v10070_v1  ;;  %56 = vperm.xlu1 %9449, %v51_v2   ;;  %v65_v5 = vadd.s32 64, %v63_v4  ;;  %v92_v8 = vld [vmem:[%s12226_s2 + $0x70] sm:$0xff]  ;;  %v64_v9 = vadd.s32 64, %v62_v6  ;;  %v91_v10 = vld [vmem:[%s12226_s2 + $0x68] sm:$0xff]  ;;  %v90_v11 = vld [vmem:[%s12226_s2 + $0x60] sm:$0xff]  ;;  %v49_v29 = vand.u32 127, %v48_v28 }
  0x12   :  { %53 = vperm.xlu0 %9448, %v50_v3   ;;  %8698 = vmatprep.subr.mxu0 %v93_v7  ;;  %v194_v12 = vld [vmem:[%s12228_s4 + $0x38] sm:$0xff]  ;;  %v193_v13 = vld [vmem:[%s12228_s4 + $0x30] sm:$0xff]  ;;  %v192_v14 = vld [vmem:[%s12228_s4 + $0x28] sm:$0xff]  ;;  %v197_v57 = vshrl.u32 %v48_v28, 7  ;;  %s10072_s23 = smov 64   ;;  %s10073_s25 = smov 96  }
  0x13   :  { %8699 = vmatpush3.msra.mxu0 %v93_v7  ;;  %237 = vmatprep.subr.mxu1 %v194_v12  ;;  %v191_v15 = vld [vmem:[%s12228_s4 + $0x20] sm:$0xff]  ;;  %v89_v16 = vld [vmem:[%s12226_s2 + $0x58] sm:$0xff]  ;;  %v88_v17 = vld [vmem:[%s12226_s2 + $0x50] sm:$0xff]  ;;  %s10074_s26 = smov 32   ;;  %vm518_vm7 = vcmask 261126   ;;  %vm516_vm8 = vcmask 254976  }
  0x14   :  { %8700 = vmatprep.subr.mxu0 %v92_v8  ;;  %238 = vmatpush1.msra.mxu1 %v193_v13  ;;  %v87_v18 = vld [vmem:[%s12226_s2 + $0x48] sm:$0xff]  ;;  %v86_v19 = vld [vmem:[%s12226_s2 + $0x40] sm:$0xff]  ;;  %v85_v20 = vld [vmem:[%s12226_s2 + $0x38] sm:$0xff]  ;;  %v10315_v58 = vsub.s32 0, %v197_v57  ;;  %v10320_v60 = vsub.s32 1, %v197_v57  ;;  %vm744_vm9 = vcmask 259076  }
  0x15   :  { %70 = vperm.xlu1 %9449, %v65_v5   ;;  %8701 = vmatpush3.msra.mxu0 %v92_v8  ;;  %v84_v21 = vld [vmem:[%s12226_s2 + $0x30] sm:$0xff]  ;;  %v83_v22 = vld [vmem:[%s12226_s2 + $0x28] sm:$0xff]  ;;  %v82_v23 = vld [vmem:[%s12226_s2 + $0x20] sm:$0xff]  ;;  %vm742_vm10 = vcmask 257026  }
  0x16   :  { %67 = vperm.xlu0 %9448, %v64_v9   ;;  %8702 = vmatprep.subr.mxu0 %v91_v10  ;;  %v81_v24 = vld [vmem:[%s12226_s2 + $0x18] sm:$0xff]  ;;  %v80_v25 = vld [vmem:[%s12226_s2 + $0x10] sm:$0xff]  ;;  %v79_v26 = vld [vmem:[%s12226_s2 + $0x8] sm:$0xff] }
  0x17   :  { %8703 = vmatpush3.msra.mxu0 %v91_v10  ;;  %239 = vmatprep.subr.mxu1 %v192_v14  ;;  %v78_v27 = vld [vmem:[%s12226_s2] sm:$0xff]  ;;  %v190_v40 = vld [vmem:[%s12228_s4 + $0x18] sm:$0xff]  ;;  %v189_v41 = vld [vmem:[%s12228_s4 + $0x10] sm:$0xff] }
  0x18   :  { %8704 = vmatprep.subr.mxu0 %v90_v11  ;;  %240 = vmatpush1.msra.mxu1 %v191_v15  ;;  %v188_v42 = vld [vmem:[%s12228_s4 + $0x8] sm:$0xff]  ;;  %v187_v43 = vld [vmem:[%s12228_s4] sm:$0xff]  ;;  %v10232_v44 = vld [vmem:[%s12231_s7 + $0x38] sm:$0xff] }
  0x19   :  { %8705 = vmatpush3.msra.mxu0 %v90_v11  ;;  %241 = vmatprep.subr.mxu1 %v190_v40  ;;  %v10240_v45 = vld [vmem:[%s12231_s7 + $0x30] sm:$0xff]  ;;  %v10247_v46 = vld [vmem:[%s12231_s7 + $0x28] sm:$0xff]  ;;  %v10254_v47 = vld [vmem:[%s12231_s7 + $0x20] sm:$0xff] }
  0x1a   :  { %8706 = vmatprep.subr.mxu0 %v89_v16  ;;  %242 = vmatpush1.msra.mxu1 %v189_v41  ;;  %v8182_v49 = vld [vmem:[#allocation5] ss:$0 sm:$0xff]  ;;  %v10262_v52 = vld [vmem:[%s12231_s7 + $0x18] sm:$0xff]  ;;  %v10268_v53 = vld [vmem:[%s12231_s7 + $0x10] sm:$0xff] }
  0x1b   :  { %8707 = vmatpush3.msra.mxu0 %v89_v16  ;;  %243 = vmatprep.subr.mxu1 %v188_v42  ;;  %v10276_v55 = vld [vmem:[%s12231_s7 + $0x8] sm:$0xff]  ;;  %v10284_v56 = vld [vmem:[%s12231_s7] sm:$0xff] }
  0x1c   :  { %8708 = vmatprep.subr.mxu0 %v88_v17  ;;  %244 = vmatpush1.msra.mxu1 %v187_v43  ;;  %v176_v59 = vld [vmem:[%s12230_s6] ss:$4 sm:$0x3]  ;;  %v10336_v12 = vld [vmem:[%s12232_s8 + $0x1] ss:$0 sm:$0xff] }
  0x1d   :  { %8709 = vmatpush3.msra.mxu0 %v88_v17  ;;  %8733 = vmatprep.subr.mxu1 %v10070_v1  ;;  %v199_v61 = vrot.slane %v176_v59, %v10315_v58  ;;  %v203_v62 = vrot.slane %v176_v59, %v10320_v60  ;;  %v10328_v7 = vld [vmem:[%s12232_s8] ss:$0 sm:$0xff] }
  0x1e   :  { %8710 = vmatprep.subr.mxu0 %v87_v18 }
  0x1f   :  { %8711 = vmatpush3.msra.mxu0 %v87_v18 }
  0x20   :  { %8712 = vmatprep.subr.mxu0 %v86_v19 }
  0x21   :  { %8713 = vmatpush3.msra.mxu0 %v86_v19 }
  0x22   :  { %8714 = vmatprep.subr.mxu0 %v85_v20 }
  0x23   :  { %8715 = vmatpush3.msra.mxu0 %v85_v20 }
  0x24   :  { %8716 = vmatprep.subr.mxu0 %v84_v21 }
  0x25   :  { %8717 = vmatpush3.msra.mxu0 %v84_v21 }
  0x26   :  { %8718 = vmatprep.subr.mxu0 %v83_v22 }
  0x27   :  { %8719 = vmatpush3.msra.mxu0 %v83_v22 }
  0x28   :  { %8720 = vmatprep.subr.mxu0 %v82_v23 }
  0x29   :  { %8721 = vmatpush3.msra.mxu0 %v82_v23 }
  0x2a   :  { %8722 = vmatprep.subr.mxu0 %v81_v24 }
  0x2b   :  { %8723 = vmatpush3.msra.mxu0 %v81_v24 }
  0x2c   :  { %8724 = vmatprep.subr.mxu0 %v80_v25 }
  0x2d   :  { %8725 = vmatpush3.msra.mxu0 %v80_v25 }
  0x2e   :  { %8726 = vmatprep.subr.mxu0 %v79_v26 }
  0x2f   :  { %8727 = vmatpush3.msra.mxu0 %v79_v26 }
  0x30   :  { %8728 = vmatprep.subr.mxu0 %v78_v27 }
  0x31   :  { %8729 = vmatpush3.msra.mxu0 %v78_v27 }
  0x32   :  { %8766 = vmatprep.subr.mxu0 %v10070_v1 }
  0x8c   :  { %v57_v30 = vpop.permute.xlu1 %56 }
  0x8d   :  { %v54_v31 = vpop.permute.xlu0 %53  ;;  %vm59_vm0 = vcmp.eq.s32.totalorder %v49_v29, %v57_v30 }
  0x8e   :  { %vm58_vm1 = vcmp.eq.s32.totalorder %v49_v29, %v54_v31  ;;  %v61_v34 = vsel %vm59_vm0, 1.0, %v10070_v1 }
  0x8f   :  { %v60_v36 = vsel %vm58_vm1, 1.0, %v10070_v1 }
  0x90   :  { %v71_v32 = vpop.permute.xlu1 %70 }
  0x91   :  { %v68_v33 = vpop.permute.xlu0 %67  ;;  %vm73_vm2 = vcmp.eq.s32.totalorder %v49_v29, %v71_v32 }
  0x92   :  { %vm72_vm3 = vcmp.eq.s32.totalorder %v49_v29, %v68_v33  ;;  %v75_v35 = vsel %vm73_vm2, 1.0, %v10070_v1 }
  0x93   :  { %v74_v37 = vsel %vm72_vm3, 1.0, %v10070_v1  ;;  %v77_v38 = vadd.f32 %v75_v35, %v61_v34 }
  0x94   :  { %v76_v39 = vadd.f32 %v74_v37, %v60_v36 }
  0x96   :  { %8730 = vmatprep.mubr.f32.mxu0 %v76_v39 }
  0x97   :  { %8731 = vmatmul.mubr.f32.vlgmr.msra.gmra.mxu0 %v77_v38 }
  0x98   :  { %8774 = vmatprep.mubr.msk.f32.mxu0 %vm10071_vm4, %v10070_v1  ;;  %8767 = vmatpush3.msra.mxu0 %v10232_v44 }
  0x99   :  { %8768 = vmatprep.subr.mxu0 %v10070_v1 }
  0x9a   :  { %8769 = vmatpush3.msra.mxu0 %v10240_v45 }
  0x9b   :  { %8770 = vmatprep.subr.mxu0 %v10070_v1 }
  0x9c   :  { %8771 = vmatpush3.msra.mxu0 %v10247_v46 }
  0x9d   :  { %8772 = vmatprep.subr.mxu0 %v10070_v1 }
  0x9e   :  { %8773 = vmatpush3.msra.mxu0 %v10254_v47 }
  0x9f   :  { %8788 = vmatprep.subr.mxu0 %v10070_v1 }
 0x157   :  { %v8732_v48 = vpop.f32.mrf.mxu0 }
 0x158   :  { %v173_v54 = vadd.f32 %v8732_v48, %v8182_v49 }
 0x159   :  { %v167_v50 = vpop.f32.mrf.mxu0 }
 0x15a   :  { %v168_v51 = vadd.f32 %v8182_v49, %v167_v50 }
 0x15c   :  { %8183 = vmatmul.mubr.msk.f32.vlgmr.msra.gmra.mxu1 %vm206_vm5, %v168_v51 }
 0x15d   :  { %8734 = vmatpush3.msra.mxu1 %v10262_v52  ;;  %283 = vmatprep.mubr.f32.mxu1 %v10070_v1 }
 0x15e   :  { %8735 = vmatprep.subr.mxu1 %v10070_v1 }
 0x15f   :  { %8736 = vmatpush3.msra.mxu1 %v10268_v53 }
 0x160   :  { %8737 = vmatprep.subr.mxu1 %v10070_v1  ;;  %8184 = vmatmul.mubr.msk.f32.gmra.mxu1 %vm206_vm5, %v173_v54 }
 0x161   :  { %8738 = vmatpush3.msra.mxu1 %v10276_v55  ;;  %8741 = vmatprep.mubr.msk.f32.mxu1 %vm10071_vm4, %v10070_v1 }
 0x162   :  { %8739 = vmatprep.subr.mxu1 %v10070_v1 }
 0x163   :  { %8740 = vmatpush3.msra.mxu1 %v10284_v56 }
 0x164   :  { %8744 = vmatprep.subr.mxu1 %v10070_v1  ;;  %8742 = vmatmul.mubr.f32.vlgmr.msra.gmra.mxu1 %v10070_v1 }
 0x165   :  { %8745 = vmatpush3.msra.mxu1 %v10232_v44  ;;  %8752 = vmatprep.mubr.msk.f32.mxu1 %vm10071_vm4, %v10070_v1 }
 0x166   :  { %8746 = vmatprep.subr.mxu1 %v10070_v1 }
 0x167   :  { %8747 = vmatpush3.msra.mxu1 %v10240_v45 }
 0x168   :  { %8748 = vmatprep.subr.mxu1 %v10070_v1 }
 0x169   :  { %8749 = vmatpush3.msra.mxu1 %v10247_v46 }
 0x16a   :  { %8750 = vmatprep.subr.mxu1 %v10070_v1 }
 0x16b   :  { %8751 = vmatpush3.msra.mxu1 %v10254_v47 }
 0x16c   :  { %8753 = vmatmul.mubr.f32.vlgmr.msra.gmra.mxu1 %v10070_v1  ;;  %8755 = vmatprep.subr.mxu1 %v10070_v1 }
 0x16d   :  { %8756 = vmatpush3.msra.mxu1 %v10262_v52  ;;  %8763 = vmatprep.mubr.msk.f32.mxu1 %vm10071_vm4, %v10070_v1 }
 0x16e   :  { %8757 = vmatprep.subr.mxu1 %v10070_v1 }
 0x16f   :  { %8758 = vmatpush3.msra.mxu1 %v10268_v53 }
 0x170   :  { %8759 = vmatprep.subr.mxu1 %v10070_v1 }
 0x171   :  { %8760 = vmatpush3.msra.mxu1 %v10276_v55 }
 0x172   :  { %8761 = vmatprep.subr.mxu1 %v10070_v1 }
 0x173   :  { %8762 = vmatpush3.msra.mxu1 %v10284_v56 }
 0x174   :  { %8777 = vmatprep.subr.mxu1 %v10070_v1 }
 0x21c   :  { %v279_v63 = vpop.f32.mrf.mxu1 }
 0x21d   :  { %v280_v0 = vadd.f32 %v279_v63, %v199_v61 }
 0x21e   :  { %v281_v2 = vpop.f32.mrf.mxu1 }
 0x21f   :  { %290 = vst [vmem:[#allocation2] sm:$0xff] %v280_v0  ;;  %v282_v3 = vadd.f32 %v281_v2, %v203_v62 }
 0x220   :  { %v285_v4 = vpop.f32.mrf.mxu1 }
 0x221   :  { %292 = vst.msk [vmem:[#allocation2 + $0x8] sm:$0xff] %vm291_vm6, %v282_v3  ;;  %v286_v5 = vadd.f32 %v285_v4, %v199_v61 }
 0x222   :  { %v287_v6 = vpop.f32.mrf.mxu1 }
 0x223   :  { %293 = vst [vmem:[#allocation2 + $0x10] sm:$0xff] %v286_v5  ;;  %v288_v8 = vadd.f32 %v287_v6, %v203_v62 }
 0x224   :  { %v371_v9 = vpop.f32.mrf.mxu1 }
 0x225   :  { %294 = vst.msk [vmem:[#allocation2 + $0x18] sm:$0xff] %vm291_vm6, %v288_v8  ;;  %v372_v10 = vadd.f32 %v10328_v7, %v371_v9 }
 0x226   :  { %v8743_v11 = vpop.f32.mrf.mxu1  ;;  %v295_v17 = vld [vmem:[#allocation2] sm:$0x3] }
 0x227   :  { %457 = vrot.lane.b32.xlu1 %v372_v10, %s10072_s23  ;;  %v449_v18 = vadd.f32 %v372_v10, %v295_v17 }
 0x229   :  { %v8187_v19 = vmul.f32 -1.442695, %v449_v18 }
 0x22a   :  { %v296_v26 = vld [vmem:[#allocation2 + $0x10] sm:$0xc0] }
 0x22b   :  { %9450 = vpow2.f32 %v8187_v19 }
 0x22c   :  { %v445_v13 = vpop.f32.mrf.mxu1  ;;  %v297_v37 = vld [vmem:[#allocation2 + $0x18] sm:$0xc0] }
 0x22d   :  { %v446_v14 = vadd.f32 %v10336_v12, %v445_v13 }
 0x22e   :  { %v8754_v15 = vpop.f32.mrf.mxu1 }
 0x22f   :  { %v476_v16 = vrot.slane %v446_v14, 2  ;;  %v521_v15 = vld [vmem:[#allocation2 + $0x10] sm:$0x30] }
 0x231   :  { %477 = vrot.lane.b32.xlu0 %v476_v16, %s10073_s25 }
 0x235   :  { %494 = vrot.lane.b32.xlu0 %v476_v16, %s10074_s26 }
 0x238   :  { %v9451_v20 = vpop.eup %9450 }
 0x239   :  { %v453_v21 = vadd.f32 1.0, %v9451_v20 }
 0x23b   :  { %9452 = vrcp.f32 %v453_v21  ;;  %v520_v21 = vld [vmem:[#allocation2] sm:$0xc] }
 0x248   :  { %v9453_v22 = vpop.eup %9452 }
 0x249   :  { %v467_v42 = vsub.f32 1.0, %v9453_v22  ;;  %v473_v48 = vmul.f32 0.0, %v9453_v22 }
 0x299   :  { %v458_v23 = vpop.permute.xlu1 %457 }
 0x29a   :  { %v460_v24 = vmul.f32 %v9453_v22, %v458_v23 }
 0x29c   :  { %462 = vrot.lane.b32.xlu1 %v460_v24, %s10072_s23 }
 0x2a3   :  { %v478_v25 = vpop.permute.xlu0 %477 }
 0x2a4   :  { %v480_v27 = vadd.f32 %v478_v25, %v296_v26  ;;  %v487_v41 = vadd.f32 %v478_v25, %v297_v37 }
 0x2a6   :  { %v8188_v28 = vmul.f32 -1.442695, %v480_v27  ;;  %v8189_v50 = vmul.f32 -1.442695, %v487_v41 }
 0x2a7   :  { %v495_v31 = vpop.permute.xlu0 %494 }
 0x2a8   :  { %9454 = vpow2.f32 %v8188_v28 }
 0x2b5   :  { %v9455_v29 = vpop.eup %9454 }
 0x2b6   :  { %v484_v30 = vadd.f32 1.0, %v9455_v29 }
 0x2b8   :  { %9456 = vrcp.f32 %v484_v30 }
 0x2c5   :  { %v9457_v32 = vpop.eup %9456 }
 0x2c6   :  { %v497_v33 = vmul.f32 %v9457_v32, %v495_v31  ;;  %v522_v32 = vld [vmem:[#allocation2 + $0x18] sm:$0x30] }
 0x2c8   :  { %499 = vrot.lane.b32.xlu0 %v497_v33, %s10072_s23 }
 0x30e   :  { %v463_v34 = vpop.permute.xlu1 %462 }
 0x30f   :  { %v465_v35 = vadd.f32 %v463_v34, %v295_v17 }
 0x311   :  { %9458 = vtanh.f32 %v465_v35 }
 0x31e   :  { %v9459_v36 = vpop.eup %9458 }
 0x31f   :  { %469 = vrot.lane.b32.xlu1 %v9459_v36, %s10073_s25 }
 0x33a   :  { %v500_v38 = vpop.permute.xlu0 %499 }
 0x33b   :  { %v502_v39 = vadd.f32 %v500_v38, %v297_v37 }
 0x33d   :  { %9460 = vtanh.f32 %v502_v39 }
 0x33e   :  { %9462 = vpow2.f32 %v8189_v50 }
 0x34a   :  { %v9461_v40 = vpop.eup %9460 }
 0x34b   :  { %506 = vrot.lane.b32.xlu0 %v9461_v40, %s10073_s25  ;;  %v9463_v54 = vpop.eup %9462 }
 0x34c   :  { %v491_v57 = vadd.f32 1.0, %v9463_v54 }
 0x34e   :  { %9464 = vrcp.f32 %v491_v57 }
 0x35b   :  { %v9465_v59 = vpop.eup %9464 }
 0x35c   :  { %v504_v61 = vsub.f32 1.0, %v9465_v59  ;;  %v510_v63 = vmul.f32 0.0, %v9465_v59 }
 0x391   :  { %v470_v43 = vpop.permute.xlu1 %469 }
 0x392   :  { %v472_v49 = vmul.f32 %v470_v43, %v467_v42 }
 0x394   :  { %v10345_v51 = vadd.f32 %v473_v48, %v472_v49 }
 0x396   :  { %513 = vrot.lane.b32.xlu1 %v10345_v51, %s10073_s25 }
 0x3bd   :  { %v507_v62 = vpop.permute.xlu0 %506 }
 0x3be   :  { %v509_v0 = vmul.f32 %v507_v62, %v504_v61  ;;  %v695_v62 = vrot.slane %v10345_v51, 6 }
 0x3c0   :  { %v10349_v2 = vadd.f32 %v510_v63, %v509_v0 }
 0x3c2   :  { %519 = vst.msk [vmem:[#allocation4 + $0x8] sm:$0xc0] %vm518_vm7, %v10349_v2  ;;  %v596_v3 = vrot.slane %v10349_v2, 6  ;;  %v734_v49 = vrot.slane %v10349_v2, 2 }
 0x3c4   :  { %8775 = vmatmul.mubr.msk.f32.vlgmr.msra.gmra.mxu0 %vm206_vm5, %v596_v3 }
 0x3c5   :  { %8789 = vmatpush3.msra.mxu0 %v10232_v44  ;;  %8796 = vmatprep.mubr.msk.f32.mxu0 %vm10071_vm4, %v10070_v1 }
 0x3c6   :  { %8790 = vmatprep.subr.mxu0 %v10070_v1 }
 0x3c7   :  { %8791 = vmatpush3.msra.mxu0 %v10240_v45 }
 0x3c8   :  { %8792 = vmatprep.subr.mxu0 %v10070_v1 }
 0x3c9   :  { %8793 = vmatpush3.msra.mxu0 %v10247_v46 }
 0x3ca   :  { %8794 = vmatprep.subr.mxu0 %v10070_v1 }
 0x3cb   :  { %8795 = vmatpush3.msra.mxu0 %v10254_v47 }
 0x3cc   :  { %8810 = vmatprep.subr.mxu0 %v10070_v1 }
 0x408   :  { %v514_v4 = vpop.permute.xlu1 %513 }
 0x409   :  { %517 = vst.msk [vmem:[#allocation3] sm:$0x3] %vm516_vm8, %v514_v4  ;;  %8764 = vmatmul.mubr.msk.f32.vlgmr.msra.gmra.mxu1 %vm206_vm5, %v514_v4 }
 0x40a   :  { %8778 = vmatpush3.msra.mxu1 %v10262_v52  ;;  %8785 = vmatprep.mubr.msk.f32.mxu1 %vm10071_vm4, %v10070_v1 }
 0x40b   :  { %8779 = vmatprep.subr.mxu1 %v10070_v1 }
 0x40c   :  { %8780 = vmatpush3.msra.mxu1 %v10268_v53 }
 0x40d   :  { %8781 = vmatprep.subr.mxu1 %v10070_v1 }
 0x40e   :  { %8782 = vmatpush3.msra.mxu1 %v10276_v55 }
 0x40f   :  { %8783 = vmatprep.subr.mxu1 %v10070_v1 }
 0x410   :  { %8784 = vmatpush3.msra.mxu1 %v10284_v56 }
 0x411   :  { %8799 = vmatprep.subr.mxu1 %v10070_v1 }
 0x484   :  { %v665_v5 = vpop.f32.mrf.mxu0 }
 0x485   :  { %v666_v6 = vadd.f32 %v10336_v12, %v665_v5 }
 0x486   :  { %v8776_v8 = vpop.f32.mrf.mxu0 }
 0x487   :  { %v700_v9 = vrot.slane %v666_v6, 4 }
 0x489   :  { %701 = vrot.lane.b32.xlu0 %v700_v9, %s10073_s25 }
 0x48d   :  { %718 = vrot.lane.b32.xlu0 %v700_v9, %s10074_s26 }
 0x4c9   :  { %v591_v10 = vpop.f32.mrf.mxu1 }
 0x4ca   :  { %v592_v11 = vadd.f32 %v10328_v7, %v591_v10 }
 0x4cb   :  { %v8765_v13 = vpop.f32.mrf.mxu1 }
 0x4cc   :  { %v670_v14 = vrot.slane %v592_v11, 6  ;;  %v747_v11 = vld [vmem:[#allocation2 + $0x10] sm:$0xc] }
 0x4ce   :  { %679 = vrot.lane.b32.xlu1 %v670_v14, %s10072_s23  ;;  %v672_v22 = vadd.f32 %v670_v14, %v520_v21 }
 0x4d0   :  { %v8192_v23 = vmul.f32 -1.442695, %v672_v22 }
 0x4fb   :  { %v702_v16 = vpop.permute.xlu0 %701 }
 0x4fc   :  { %v704_v17 = vadd.f32 %v702_v16, %v521_v15  ;;  %v711_v39 = vadd.f32 %v702_v16, %v522_v32 }
 0x4fe   :  { %v8193_v18 = vmul.f32 -1.442695, %v704_v17  ;;  %v8194_v40 = vmul.f32 -1.442695, %v711_v39 }
 0x4ff   :  { %v719_v25 = vpop.permute.xlu0 %718 }
 0x500   :  { %9466 = vpow2.f32 %v8193_v18 }
 0x50d   :  { %v9467_v19 = vpop.eup %9466 }
 0x50e   :  { %v708_v20 = vadd.f32 1.0, %v9467_v19 }
 0x510   :  { %9468 = vrcp.f32 %v708_v20 }
 0x511   :  { %9470 = vpow2.f32 %v8192_v23 }
 0x51d   :  { %v9469_v24 = vpop.eup %9468 }
 0x51e   :  { %v721_v26 = vmul.f32 %v9469_v24, %v719_v25  ;;  %v9471_v27 = vpop.eup %9470  ;;  %v746_v25 = vld [vmem:[#allocation2] sm:$0x30] }
 0x51f   :  { %v676_v28 = vadd.f32 1.0, %v9471_v27 }
 0x520   :  { %723 = vrot.lane.b32.xlu0 %v721_v26, %s10072_s23 }
 0x521   :  { %9472 = vrcp.f32 %v676_v28 }
 0x52e   :  { %v9473_v29 = vpop.eup %9472 }
 0x52f   :  { %v689_v63 = vsub.f32 1.0, %v9473_v29  ;;  %v697_v3 = vmul.f32 %v9473_v29, %v695_v62 }
 0x540   :  { %v680_v30 = vpop.permute.xlu1 %679 }
 0x541   :  { %v682_v31 = vmul.f32 %v9473_v29, %v680_v30 }
 0x543   :  { %684 = vrot.lane.b32.xlu1 %v682_v31, %s10072_s23 }
 0x592   :  { %v724_v33 = vpop.permute.xlu0 %723 }
 0x593   :  { %v726_v34 = vadd.f32 %v724_v33, %v522_v32  ;;  %v748_v32 = vld [vmem:[#allocation2 + $0x18] sm:$0xc] }
 0x595   :  { %9474 = vtanh.f32 %v726_v34 }
 0x5a2   :  { %v9475_v35 = vpop.eup %9474 }
 0x5a3   :  { %730 = vrot.lane.b32.xlu0 %v9475_v35, %s10073_s25 }
 0x5b5   :  { %v685_v36 = vpop.permute.xlu1 %684 }
 0x5b6   :  { %v687_v37 = vadd.f32 %v685_v36, %v520_v21 }
 0x5b8   :  { %9476 = vtanh.f32 %v687_v37 }
 0x5b9   :  { %9478 = vpow2.f32 %v8194_v40 }
 0x5c5   :  { %v9477_v38 = vpop.eup %9476 }
 0x5c6   :  { %691 = vrot.lane.b32.xlu1 %v9477_v38, %s10073_s25  ;;  %v9479_v41 = vpop.eup %9478 }
 0x5c7   :  { %v715_v42 = vadd.f32 1.0, %v9479_v41 }
 0x5c9   :  { %9480 = vrcp.f32 %v715_v42 }
 0x5d6   :  { %v9481_v43 = vpop.eup %9480 }
 0x5d7   :  { %v728_v48 = vsub.f32 1.0, %v9481_v43  ;;  %v736_v54 = vmul.f32 %v9481_v43, %v734_v49 }
 0x615   :  { %v731_v50 = vpop.permute.xlu0 %730 }
 0x616   :  { %v733_v57 = vmul.f32 %v731_v50, %v728_v48 }
 0x618   :  { %v10387_v59 = vadd.f32 %v736_v54, %v733_v57 }
 0x61a   :  { %745 = vst.msk [vmem:[#allocation4 + $0x8] sm:$0x30] %vm744_vm9, %v10387_v59  ;;  %v825_v61 = vrot.slane %v10387_v59, 4  ;;  %v963_v49 = vrot.slane %v10387_v59, 2 }
 0x61c   :  { %8797 = vmatmul.mubr.msk.f32.vlgmr.msra.gmra.mxu0 %vm206_vm5, %v825_v61 }
 0x61d   :  { %8811 = vmatpush3.msra.mxu0 %v10232_v44  ;;  %8818 = vmatprep.mubr.msk.f32.mxu0 %vm10071_vm4, %v10070_v1 }
 0x61e   :  { %8812 = vmatprep.subr.mxu0 %v10070_v1 }
 0x61f   :  { %8813 = vmatpush3.msra.mxu0 %v10240_v45 }
 0x620   :  { %8814 = vmatprep.subr.mxu0 %v10070_v1 }
 0x621   :  { %8815 = vmatpush3.msra.mxu0 %v10247_v46 }
 0x622   :  { %8816 = vmatprep.subr.mxu0 %v10070_v1 }
 0x623   :  { %8817 = vmatpush3.msra.mxu0 %v10254_v47 }
 0x624   :  { %8832 = vmatprep.subr.mxu0 %v10070_v1 }
 0x638   :  { %v692_v0 = vpop.permute.xlu1 %691 }
 0x639   :  { %v694_v2 = vmul.f32 %v692_v0, %v689_v63 }
 0x63b   :  { %v10404_v4 = vadd.f32 %v697_v3, %v694_v2 }
 0x63d   :  { %v749_v5 = vrot.slane %v10404_v4, 2  ;;  %v924_v0 = vrot.slane %v10404_v4, 6 }
 0x63f   :  { %750 = vrot.lane.b32.xlu1 %v749_v5, %s10073_s25 }
 0x6b1   :  { %v751_v6 = vpop.permute.xlu1 %750 }
 0x6b2   :  { %8786 = vmatmul.mubr.msk.f32.vlgmr.msra.gmra.mxu1 %vm206_vm5, %v751_v6 }
 0x6b3   :  { %8800 = vmatpush3.msra.mxu1 %v10262_v52  ;;  %8807 = vmatprep.mubr.msk.f32.mxu1 %vm10071_vm4, %v10070_v1 }
 0x6b4   :  { %8801 = vmatprep.subr.mxu1 %v10070_v1 }
 0x6b5   :  { %8802 = vmatpush3.msra.mxu1 %v10268_v53 }
 0x6b6   :  { %8803 = vmatprep.subr.mxu1 %v10070_v1 }
 0x6b7   :  { %8804 = vmatpush3.msra.mxu1 %v10276_v55 }
 0x6b8   :  { %8805 = vmatprep.subr.mxu1 %v10070_v1 }
 0x6b9   :  { %8806 = vmatpush3.msra.mxu1 %v10284_v56 }
 0x6ba   :  { %8821 = vmatprep.subr.mxu1 %v10070_v1 }
 0x6dc   :  { %v894_v51 = vpop.f32.mrf.mxu0 }
 0x6dd   :  { %v895_v8 = vadd.f32 %v10336_v12, %v894_v51 }
 0x6de   :  { %v8798_v9 = vpop.f32.mrf.mxu0 }
 0x6df   :  { %v929_v10 = vrot.slane %v895_v8, 6 }
 0x6e1   :  { %930 = vrot.lane.b32.xlu0 %v929_v10, %s10073_s25  ;;  %947 = vrot.lane.b32.xlu1 %v929_v10, %s10074_s26 }
 0x753   :  { %v931_v13 = vpop.permute.xlu0 %930  ;;  %v948_v22 = vpop.permute.xlu1 %947 }
 0x754   :  { %v933_v14 = vadd.f32 %v931_v13, %v747_v11  ;;  %v940_v37 = vadd.f32 %v931_v13, %v748_v32  ;;  %v974_v13 = vld [vmem:[#allocation2 + $0x10] sm:$0x3] }
 0x756   :  { %v8198_v15 = vmul.f32 -1.442695, %v933_v14  ;;  %v8199_v38 = vmul.f32 -1.442695, %v940_v37 }
 0x758   :  { %9482 = vpow2.f32 %v8198_v15 }
 0x765   :  { %v9483_v16 = vpop.eup %9482 }
 0x766   :  { %v937_v17 = vadd.f32 1.0, %v9483_v16 }
 0x768   :  { %9484 = vrcp.f32 %v937_v17 }
 0x772   :  { %v820_v18 = vpop.f32.mrf.mxu1 }
 0x773   :  { %v821_v19 = vadd.f32 %v10328_v7, %v820_v18 }
 0x774   :  { %v8787_v20 = vpop.f32.mrf.mxu1 }
 0x775   :  { %v9485_v21 = vpop.eup %9484  ;;  %v899_v23 = vrot.slane %v821_v19, 4 }
 0x776   :  { %v950_v24 = vmul.f32 %v9485_v21, %v948_v22 }
 0x777   :  { %908 = vrot.lane.b32.xlu0 %v899_v23, %s10072_s23  ;;  %v901_v26 = vadd.f32 %v899_v23, %v746_v25 }
 0x778   :  { %952 = vrot.lane.b32.xlu1 %v950_v24, %s10072_s23 }
 0x779   :  { %v8197_v27 = vmul.f32 -1.442695, %v901_v26  ;;  %v975_v26 = vld [vmem:[#allocation2 + $0x18] sm:$0x3] }
 0x77b   :  { %9486 = vpow2.f32 %v8197_v27 }
 0x788   :  { %v9487_v28 = vpop.eup %9486 }
 0x789   :  { %v905_v29 = vadd.f32 1.0, %v9487_v28 }
 0x78b   :  { %9488 = vrcp.f32 %v905_v29 }
 0x798   :  { %v9489_v30 = vpop.eup %9488 }
 0x799   :  { %v918_v59 = vsub.f32 1.0, %v9489_v30  ;;  %v926_v3 = vmul.f32 %v9489_v30, %v924_v0 }
 0x7e9   :  { %v909_v31 = vpop.permute.xlu0 %908 }
 0x7ea   :  { %v911_v33 = vmul.f32 %v9489_v30, %v909_v31  ;;  %v953_v34 = vpop.permute.xlu1 %952  ;;  %v973_v30 = vld [vmem:[#allocation2] sm:$0xc0] }
 0x7eb   :  { %v955_v35 = vadd.f32 %v953_v34, %v748_v32 }
 0x7ec   :  { %913 = vrot.lane.b32.xlu0 %v911_v33, %s10072_s23 }
 0x7ed   :  { %9490 = vtanh.f32 %v955_v35 }
 0x7ee   :  { %9492 = vpow2.f32 %v8199_v38 }
 0x7fa   :  { %v9491_v36 = vpop.eup %9490 }
 0x7fb   :  { %959 = vrot.lane.b32.xlu1 %v9491_v36, %s10073_s25  ;;  %v9493_v39 = vpop.eup %9492 }
 0x7fc   :  { %v944_v40 = vadd.f32 1.0, %v9493_v39 }
 0x7fe   :  { %9494 = vrcp.f32 %v944_v40 }
 0x80b   :  { %v9495_v43 = vpop.eup %9494 }
 0x80c   :  { %v957_v48 = vsub.f32 1.0, %v9495_v43  ;;  %v965_v57 = vmul.f32 %v9495_v43, %v963_v49 }
 0x85e   :  { %v914_v41 = vpop.permute.xlu0 %913 }
 0x85f   :  { %v916_v42 = vadd.f32 %v914_v41, %v746_v25 }
 0x861   :  { %9496 = vtanh.f32 %v916_v42 }
 0x86d   :  { %v960_v50 = vpop.permute.xlu1 %959 }
 0x86e   :  { %v9497_v54 = vpop.eup %9496  ;;  %v962_v61 = vmul.f32 %v960_v50, %v957_v48 }
 0x86f   :  { %920 = vrot.lane.b32.xlu0 %v9497_v54, %s10073_s25 }
 0x870   :  { %v10429_v62 = vadd.f32 %v965_v57, %v962_v61 }
 0x872   :  { %972 = vst.msk [vmem:[#allocation4 + $0x8] sm:$0xc] %vm742_vm10, %v10429_v62  ;;  %v1052_v63 = vrot.slane %v10429_v62, 2 }
 0x874   :  { %8819 = vmatmul.mubr.msk.f32.vlgmr.msra.gmra.mxu0 %vm206_vm5, %v1052_v63 }
 0x875   :  { %8833 = vmatpush3.msra.mxu0 %v10232_v44  ;;  %8840 = vmatprep.mubr.msk.f32.mxu0 %vm10071_vm4, %v10070_v1 }
 0x876   :  { %8834 = vmatprep.subr.mxu0 %v10070_v1 }
 0x877   :  { %8835 = vmatpush3.msra.mxu0 %v10240_v45 }
 0x878   :  { %8836 = vmatprep.subr.mxu0 %v10070_v1 }
 0x879   :  { %8837 = vmatpush3.msra.mxu0 %v10247_v46 }
 0x87a   :  { %8838 = vmatprep.subr.mxu0 %v10070_v1 }
 0x87b   :  { %8839 = vmatpush3.msra.mxu0 %v10254_v47 }
 0x87c   :  { %8854 = vmatprep.subr.mxu0 %v10070_v1 }
 0x8e1   :  { %v921_v2 = vpop.permute.xlu0 %920 }
 0x8e2   :  { %v923_v5 = vmul.f32 %v921_v2, %v918_v59 }
 0x8e4   :  { %v10448_v6 = vadd.f32 %v926_v3, %v923_v5 }
 0x8e6   :  { %v976_v51 = vrot.slane %v10448_v6, 4  ;;  %v1151_v2 = vrot.slane %v10448_v6, 6 }
 0x8e8   :  { %977 = vrot.lane.b32.xlu1 %v976_v51, %s10073_s25 }
 0x934   :  { %v1121_v8 = vpop.f32.mrf.mxu0 }
 0x935   :  { %v1122_v9 = vadd.f32 %v10336_v12, %v1121_v8 }
 0x936   :  { %v8820_v10 = vpop.f32.mrf.mxu0 }
 0x937   :  { %1173 = vrot.lane.b32.xlu1 %v1122_v9, %s10074_s26  ;;  %1156 = vrot.lane.b32.xlu0 %v1122_v9, %s10073_s25 }
 0x95a   :  { %v978_v11 = vpop.permute.xlu1 %977 }
 0x95b   :  { %8808 = vmatmul.mubr.msk.f32.vlgmr.msra.gmra.mxu1 %vm206_vm5, %v978_v11 }
 0x95c   :  { %8822 = vmatpush3.msra.mxu1 %v10262_v52  ;;  %8829 = vmatprep.mubr.msk.f32.mxu1 %vm10071_vm4, %v10070_v1 }
 0x95d   :  { %8823 = vmatprep.subr.mxu1 %v10070_v1 }
 0x95e   :  { %8824 = vmatpush3.msra.mxu1 %v10268_v53 }
 0x95f   :  { %8825 = vmatprep.subr.mxu1 %v10070_v1 }
 0x960   :  { %8826 = vmatpush3.msra.mxu1 %v10276_v55 }
 0x961   :  { %8827 = vmatprep.subr.mxu1 %v10070_v1 }
 0x962   :  { %8828 = vmatpush3.msra.mxu1 %v10284_v56 }
 0x963   :  { %8843 = vmatprep.subr.mxu1 %v10070_v1 }
 0x9a9   :  { %v1157_v14 = vpop.permute.xlu0 %1156  ;;  %v1174_v20 = vpop.permute.xlu1 %1173 }
 0x9aa   :  { %v1159_v15 = vadd.f32 %v1157_v14, %v974_v13  ;;  %v1166_v38 = vadd.f32 %v1157_v14, %v975_v26  ;;  %v1199_v13 = vld [vmem:[#allocation2] sm:$0xc0] }
 0x9ac   :  { %v8203_v16 = vmul.f32 -1.442695, %v1159_v15  ;;  %v8204_v39 = vmul.f32 -1.442695, %v1166_v38 }
 0x9ae   :  { %9498 = vpow2.f32 %v8203_v16 }
 0x9bb   :  { %v9499_v17 = vpop.eup %9498 }
 0x9bc   :  { %v1163_v18 = vadd.f32 1.0, %v9499_v17 }
 0x9be   :  { %9500 = vrcp.f32 %v1163_v18 }
 0x9cb   :  { %v9501_v19 = vpop.eup %9500 }
 0x9cc   :  { %v1176_v21 = vmul.f32 %v9501_v19, %v1174_v20 }
 0x9ce   :  { %1178 = vrot.lane.b32.xlu1 %v1176_v21, %s10072_s23 }
 0xa1b   :  { %v1047_v22 = vpop.f32.mrf.mxu1 }
 0xa1c   :  { %v1048_v23 = vadd.f32 %v10328_v7, %v1047_v22 }
 0xa1d   :  { %v8809_v24 = vpop.f32.mrf.mxu1 }
 0xa1e   :  { %v1126_v25 = vrot.slane %v1048_v23, 2  ;;  %v1200_v24 = vld [vmem:[#allocation2 + $0x8] sm:$0xc0] }
 0xa20   :  { %1135 = vrot.lane.b32.xlu0 %v1126_v25, %s10072_s23  ;;  %v1128_v31 = vadd.f32 %v1126_v25, %v973_v30 }
 0xa22   :  { %v8202_v32 = vmul.f32 -1.442695, %v1128_v31  ;;  %v1198_v31 = vld [vmem:[#allocation2 + $0x10] sm:$0x3] }
 0xa40   :  { %v1179_v27 = vpop.permute.xlu1 %1178 }
 0xa41   :  { %v1181_v28 = vadd.f32 %v1179_v27, %v975_v26 }
 0xa43   :  { %9502 = vtanh.f32 %v1181_v28 }
 0xa44   :  { %9504 = vpow2.f32 %v8202_v32 }
 0xa50   :  { %v9503_v29 = vpop.eup %9502 }
 0xa51   :  { %1185 = vrot.lane.b32.xlu1 %v9503_v29, %s10073_s25  ;;  %v9505_v33 = vpop.eup %9504 }
 0xa52   :  { %v1132_v34 = vadd.f32 1.0, %v9505_v33 }
 0xa54   :  { %9506 = vrcp.f32 %v1132_v34 }
 0xa55   :  { %9508 = vpow2.f32 %v8204_v39 }
 0xa61   :  { %v9507_v35 = vpop.eup %9506 }
 0xa62   :  { %v9509_v40 = vpop.eup %9508  ;;  %v1145_v0 = vsub.f32 1.0, %v9507_v35  ;;  %v1153_v8 = vmul.f32 %v9507_v35, %v1151_v2 }
 0xa63   :  { %v1170_v41 = vadd.f32 1.0, %v9509_v40 }
 0xa65   :  { %9510 = vrcp.f32 %v1170_v41 }
 0xa72   :  { %v9511_v42 = vpop.eup %9510 }
 0xa73   :  { %v1183_v43 = vsub.f32 1.0, %v9511_v42  ;;  %v1190_v49 = vmul.f32 %v9511_v42, %v1052_v63 }
 0xa92   :  { %v1136_v36 = vpop.permute.xlu0 %1135 }
 0xa93   :  { %v1138_v37 = vmul.f32 %v9507_v35, %v1136_v36 }
 0xa95   :  { %1140 = vrot.lane.b32.xlu0 %v1138_v37, %s10072_s23 }
 0xac3   :  { %v1186_v48 = vpop.permute.xlu1 %1185 }
 0xac4   :  { %v1188_v50 = vmul.f32 %v1186_v48, %v1183_v43 }
 0xac6   :  { %v10473_v54 = vadd.f32 %v1190_v49, %v1188_v50 }
 0xac8   :  { %1197 = vst.msk [vmem:[#allocation4 + $0x8] sm:$0x3] %vm516_vm8, %v10473_v54  ;;  %8841 = vmatmul.mubr.msk.f32.vlgmr.msra.gmra.mxu0 %vm206_vm5, %v10473_v54  ;;  %v1411_v48 = vrot.slane %v10473_v54, 2 }
 0xac9   :  { %8855 = vmatpush3.msra.mxu0 %v10232_v44  ;;  %8862 = vmatprep.mubr.msk.f32.mxu0 %vm10071_vm4, %v10070_v1 }
 0xaca   :  { %8856 = vmatprep.subr.mxu0 %v10070_v1 }
 0xacb   :  { %8857 = vmatpush3.msra.mxu0 %v10240_v45 }
 0xacc   :  { %8858 = vmatprep.subr.mxu0 %v10070_v1 }
 0xacd   :  { %8859 = vmatpush3.msra.mxu0 %v10247_v46 }
 0xace   :  { %8860 = vmatprep.subr.mxu0 %v10070_v1 }
 0xacf   :  { %8861 = vmatpush3.msra.mxu0 %v10254_v47 }
 0xad0   :  { %8876 = vmatprep.subr.mxu0 %v10070_v1 }
 0xb07   :  { %v1141_v57 = vpop.permute.xlu0 %1140 }
 0xb08   :  { %v1143_v61 = vadd.f32 %v1141_v57, %v973_v30 }
 0xb0a   :  { %9512 = vtanh.f32 %v1143_v61 }
 0xb17   :  { %v9513_v62 = vpop.eup %9512 }
 0xb18   :  { %1147 = vrot.lane.b32.xlu0 %v9513_v62, %s10073_s25 }
 0xb88   :  { %v1345_v63 = vpop.f32.mrf.mxu0 }
 0xb89   :  { %v1346_v59 = vadd.f32 %v10336_v12, %v1345_v63 }
 0xb8a   :  { %v8842_v3 = vpop.f32.mrf.mxu0  ;;  %v1148_v5 = vpop.permute.xlu0 %1147 }
 0xb8b   :  { %v1377_v51 = vrot.slane %v1346_v59, 2  ;;  %v1150_v9 = vmul.f32 %v1148_v5, %v1145_v0 }
 0xb8d   :  { %v10492_v10 = vadd.f32 %v1153_v8, %v1150_v9  ;;  %1378 = vrot.lane.b32.xlu0 %v1377_v51, %s10073_s25  ;;  %v1422_v9 = vld [vmem:[#allocation2] sm:$0x30] }
 0xb8f   :  { %v1201_v11 = vrot.slane %v10492_v10, 6 }
 0xb91   :  { %1202 = vrot.lane.b32.xlu1 %v1201_v11, %s10073_s25 }
 0xb95   :  { %1395 = vrot.lane.b32.xlu1 %v1377_v51, %s10074_s26 }
 0xbff   :  { %v1379_v14 = vpop.permute.xlu0 %1378 }
 0xc00   :  { %v1381_v15 = vadd.f32 %v1379_v14, %v1199_v13  ;;  %v1388_v30 = vadd.f32 %v1379_v14, %v1200_v24 }
 0xc02   :  { %v8208_v16 = vmul.f32 -1.442695, %v1381_v15  ;;  %v8209_v33 = vmul.f32 -1.442695, %v1388_v30 }
 0xc03   :  { %v1203_v17 = vpop.permute.xlu1 %1202 }
 0xc04   :  { %9514 = vpow2.f32 %v8208_v16  ;;  %8830 = vmatmul.mubr.msk.f32.vlgmr.msra.gmra.mxu1 %vm206_vm5, %v1203_v17 }
 0xc05   :  { %8844 = vmatpush3.msra.mxu1 %v10262_v52  ;;  %8851 = vmatprep.mubr.msk.f32.mxu1 %vm10071_vm4, %v10070_v1 }
 0xc06   :  { %8845 = vmatprep.subr.mxu1 %v10070_v1 }
 0xc07   :  { %8846 = vmatpush3.msra.mxu1 %v10268_v53  ;;  %v1396_v21 = vpop.permute.xlu1 %1395 }
 0xc08   :  { %8847 = vmatprep.subr.mxu1 %v10070_v1 }
 0xc09   :  { %8848 = vmatpush3.msra.mxu1 %v10276_v55 }
 0xc0a   :  { %8849 = vmatprep.subr.mxu1 %v10070_v1 }
 0xc0b   :  { %8850 = vmatpush3.msra.mxu1 %v10284_v56 }
 0xc0c   :  { %8865 = vmatprep.subr.mxu1 %v10070_v1 }
 0xc11   :  { %v9515_v18 = vpop.eup %9514 }
 0xc12   :  { %v1385_v19 = vadd.f32 1.0, %v9515_v18 }
 0xc14   :  { %9516 = vrcp.f32 %v1385_v19 }
 0xc21   :  { %v9517_v20 = vpop.eup %9516 }
 0xc22   :  { %v1398_v22 = vmul.f32 %v9517_v20, %v1396_v21 }
 0xc24   :  { %1400 = vrot.lane.b32.xlu0 %v1398_v22, %s10072_s23 }
 0xc96   :  { %v1401_v23 = vpop.permute.xlu0 %1400 }
 0xc97   :  { %v1403_v25 = vadd.f32 %v1401_v23, %v1200_v24 }
 0xc99   :  { %9518 = vtanh.f32 %v1403_v25 }
 0xc9a   :  { %9520 = vpow2.f32 %v8209_v33 }
 0xca6   :  { %v9519_v29 = vpop.eup %9518 }
 0xca7   :  { %v9521_v35 = vpop.eup %9520 }
 0xca8   :  { %v1392_v37 = vadd.f32 1.0, %v9521_v35  ;;  %v9962_v35 = vld [vmem:[%s12231_s7 + $0x38] sm:$0xff] }
 0xcc4   :  { %v1272_v26 = vpop.f32.mrf.mxu1 }
 0xcc5   :  { %v1273_v27 = vadd.f32 %v10328_v7, %v1272_v26 }
 0xcc6   :  { %v8831_v28 = vpop.f32.mrf.mxu1 }
 0xcc7   :  { %1357 = vrot.lane.b32.xlu1 %v1273_v27, %s10072_s23  ;;  %v1349_v32 = vadd.f32 %v1273_v27, %v1198_v31 }
 0xcc9   :  { %v8207_v34 = vmul.f32 -1.442695, %v1349_v32 }
 0xccb   :  { %1407 = vrot.lane.b32.xlu1 %v9519_v29, %s10073_s25  ;;  %9522 = vpow2.f32 %v8207_v34 }
 0xccc   :  { %9524 = vrcp.f32 %v1392_v37  ;;  %v9964_v37 = vld [vmem:[%s12231_s7 + $0x28] sm:$0xff] }
 0xcd8   :  { %v9523_v36 = vpop.eup %9522 }
 0xcd9   :  { %v1353_v38 = vadd.f32 1.0, %v9523_v36  ;;  %v9525_v39 = vpop.eup %9524  ;;  %v9963_v36 = vld [vmem:[%s12231_s7 + $0x30] sm:$0xff] }
 0xcda   :  { %v1405_v43 = vsub.f32 1.0, %v9525_v39  ;;  %v1413_v50 = vmul.f32 %v9525_v39, %v1411_v48  ;;  %v1421_v39 = vld [vmem:[#allocation2 + $0x10] sm:$0xc] }
 0xcdb   :  { %9526 = vrcp.f32 %v1353_v38  ;;  %v9965_v38 = vld [vmem:[%s12231_s7 + $0x20] sm:$0xff] }
 0xce8   :  { %v9527_v40 = vpop.eup %9526 }
 0xd39   :  { %v1358_v41 = vpop.permute.xlu1 %1357 }
 0xd3a   :  { %v1360_v42 = vmul.f32 %v9527_v40, %v1358_v41 }
 0xd3c   :  { %1362 = vrot.lane.b32.xlu0 %v1360_v42, %s10072_s23 }
 0xd3d   :  { %v1408_v49 = vpop.permute.xlu1 %1407 }
 0xd3e   :  { %v1410_v57 = vmul.f32 %v1408_v49, %v1405_v43 }
 0xd40   :  { %v10517_v61 = vadd.f32 %v1413_v50, %v1410_v57 }
 0xd42   :  { %1420 = vst.msk [vmem:[#allocation4] sm:$0xc0] %vm518_vm7, %v10517_v61  ;;  %v1497_v62 = vrot.slane %v10517_v61, 6  ;;  %v1635_v30 = vrot.slane %v10517_v61, 2 }
 0xd44   :  { %8863 = vmatmul.mubr.msk.f32.vlgmr.msra.gmra.mxu0 %vm206_vm5, %v1497_v62 }
 0xd45   :  { %8877 = vmatpush3.msra.mxu0 %v10232_v44  ;;  %8884 = vmatprep.mubr.msk.f32.mxu0 %vm10071_vm4, %v10070_v1 }
 0xd46   :  { %8878 = vmatprep.subr.mxu0 %v10070_v1 }
 0xd47   :  { %8879 = vmatpush3.msra.mxu0 %v10240_v45 }
 0xd48   :  { %8880 = vmatprep.subr.mxu0 %v10070_v1 }
 0xd49   :  { %8881 = vmatpush3.msra.mxu0 %v10247_v46  ;;  %v1367_v46 = vsub.f32 1.0, %v9527_v40 }
 0xd4a   :  { %8882 = vmatprep.subr.mxu0 %v10070_v1 }
 0xd4b   :  { %8883 = vmatpush3.msra.mxu0 %v10254_v47  ;;  %v1374_v47 = vmul.f32 %v9527_v40, %v1201_v11 }
 0xd4c   :  { %8898 = vmatprep.subr.mxu0 %v10070_v1 }
 0xdae   :  { %v1363_v54 = vpop.permute.xlu0 %1362 }
 0xdaf   :  { %v1365_v63 = vadd.f32 %v1363_v54, %v1198_v31 }
 0xdb1   :  { %9528 = vtanh.f32 %v1365_v63 }
 0xdbe   :  { %v9529_v44 = vpop.eup %9528 }
 0xdbf   :  { %1369 = vrot.lane.b32.xlu0 %v9529_v44, %s10073_s25 }
 0xe04   :  { %v1566_v59 = vpop.f32.mrf.mxu0 }
 0xe05   :  { %v1567_v0 = vadd.f32 %v10336_v12, %v1566_v59 }
 0xe06   :  { %v8864_v45 = vpop.f32.mrf.mxu0 }
 0xe07   :  { %v1601_v2 = vrot.slane %v1567_v0, 4 }
 0xe09   :  { %1602 = vrot.lane.b32.xlu0 %v1601_v2, %s10073_s25 }
 0xe31   :  { %v1370_v3 = vpop.permute.xlu0 %1369 }
 0xe32   :  { %v1372_v5 = vmul.f32 %v1370_v3, %v1367_v46 }
 0xe34   :  { %v10538_v51 = vadd.f32 %v1374_v47, %v1372_v5 }
 0xe36   :  { %1416 = vrot.lane.b32.xlu1 %v10538_v51, %s10073_s25  ;;  %v1596_v0 = vrot.slane %v10538_v51, 6 }
 0xe3a   :  { %1619 = vrot.lane.b32.xlu1 %v1601_v2, %s10074_s26 }
 0xe7b   :  { %v1603_v8 = vpop.permute.xlu0 %1602 }
 0xe7c   :  { %v1605_v13 = vadd.f32 %v1603_v8, %v1422_v9 }
 0xe7e   :  { %v8213_v14 = vmul.f32 -1.442695, %v1605_v13 }
 0xe80   :  { %9530 = vpow2.f32 %v8213_v14 }
 0xe8d   :  { %v9531_v15 = vpop.eup %9530 }
 0xe8e   :  { %v1609_v16 = vadd.f32 1.0, %v9531_v15 }
 0xe90   :  { %9532 = vrcp.f32 %v1609_v16  ;;  %v9966_v16 = vld [vmem:[%s12231_s7 + $0x18] sm:$0xff] }
 0xe9d   :  { %v9533_v11 = vpop.eup %9532 }
 0xea8   :  { %v1417_v17 = vpop.permute.xlu1 %1416 }
 0xea9   :  { %1419 = vst.msk [vmem:[#allocation3 + $0x8] sm:$0x3] %vm516_vm8, %v1417_v17  ;;  %8852 = vmatmul.mubr.msk.f32.vlgmr.msra.gmra.mxu1 %vm206_vm5, %v1417_v17 }
 0xeaa   :  { %8866 = vmatpush3.msra.mxu1 %v10262_v52  ;;  %8873 = vmatprep.mubr.msk.f32.mxu1 %vm10071_vm4, %v10070_v1  ;;  %v1423_v52 = vld [vmem:[#allocation2 + $0x8] sm:$0x30] }
 0xeab   :  { %8867 = vmatprep.subr.mxu1 %v10070_v1  ;;  %v1612_v25 = vadd.f32 %v1603_v8, %v1423_v52 }
 0xeac   :  { %v1620_v18 = vpop.permute.xlu1 %1619  ;;  %8868 = vmatpush3.msra.mxu1 %v10268_v53 }
 0xead   :  { %v1622_v19 = vmul.f32 %v9533_v11, %v1620_v18  ;;  %8869 = vmatprep.subr.mxu1 %v10070_v1  ;;  %v8214_v26 = vmul.f32 -1.442695, %v1612_v25  ;;  %v9967_v18 = vld [vmem:[%s12231_s7 + $0x10] sm:$0xff] }
 0xeae   :  { %8870 = vmatpush3.msra.mxu1 %v10276_v55 }
 0xeaf   :  { %1624 = vrot.lane.b32.xlu0 %v1622_v19, %s10072_s23  ;;  %8871 = vmatprep.subr.mxu1 %v10070_v1 }
 0xeb0   :  { %8872 = vmatpush3.msra.mxu1 %v10284_v56 }
 0xeb1   :  { %8887 = vmatprep.subr.mxu1 %v10070_v1 }
 0xf21   :  { %v1625_v20 = vpop.permute.xlu0 %1624 }
 0xf22   :  { %v1627_v21 = vadd.f32 %v1625_v20, %v1423_v52  ;;  %v9968_v52 = vld [vmem:[%s12231_s7 + $0x8] sm:$0xff]  ;;  %v9969_v20 = vld [vmem:[%s12231_s7] sm:$0xff] }
 0xf24   :  { %9534 = vtanh.f32 %v1627_v21  ;;  %v1647_v21 = vld [vmem:[#allocation2 + $0x8] sm:$0xc] }
 0xf25   :  { %9536 = vpow2.f32 %v8214_v26 }
 0xf31   :  { %v9535_v22 = vpop.eup %9534 }
 0xf32   :  { %1631 = vrot.lane.b32.xlu0 %v9535_v22, %s10073_s25  ;;  %v9537_v56 = vpop.eup %9536 }
 0xf33   :  { %v1616_v27 = vadd.f32 1.0, %v9537_v56 }
 0xf35   :  { %9538 = vrcp.f32 %v1616_v27 }
 0xf42   :  { %v9539_v28 = vpop.eup %9538 }
 0xf43   :  { %v1629_v29 = vsub.f32 1.0, %v9539_v28  ;;  %v1637_v32 = vmul.f32 %v9539_v28, %v1635_v30 }
 0xf69   :  { %v1492_v53 = vpop.f32.mrf.mxu1 }
 0xf6a   :  { %v1493_v23 = vadd.f32 %v10328_v7, %v1492_v53 }
 0xf6b   :  { %v8853_v24 = vpop.f32.mrf.mxu1 }
 0xf6c   :  { %v1571_v55 = vrot.slane %v1493_v23, 6 }
 0xf6e   :  { %1580 = vrot.lane.b32.xlu1 %v1571_v55, %s10072_s23  ;;  %v1573_v40 = vadd.f32 %v1571_v55, %v1421_v39  ;;  %v10616_v55 = vld [vmem:[%s12232_s8] ss:$0 sm:$0xff] }
 0xf70   :  { %v8212_v41 = vmul.f32 -1.442695, %v1573_v40 }
 0xf72   :  { %9540 = vpow2.f32 %v8212_v41 }
 0xf7f   :  { %v9541_v42 = vpop.eup %9540 }
 0xf80   :  { %v1577_v43 = vadd.f32 1.0, %v9541_v42 }
 0xf82   :  { %9542 = vrcp.f32 %v1577_v43 }
 0xf8f   :  { %v9543_v48 = vpop.eup %9542 }
 0xf90   :  { %v1590_v45 = vsub.f32 1.0, %v9543_v48  ;;  %v1598_v46 = vmul.f32 %v9543_v48, %v1596_v0 }
 0xfa4   :  { %v1632_v31 = vpop.permute.xlu0 %1631 }
 0xfa5   :  { %v1634_v33 = vmul.f32 %v1632_v31, %v1629_v29 }
 0xfa7   :  { %v10560_v34 = vadd.f32 %v1637_v32, %v1634_v33 }
 0xfa9   :  { %1644 = vst.msk [vmem:[#allocation4] sm:$0x30] %vm744_vm9, %v10560_v34  ;;  %v1724_v7 = vrot.slane %v10560_v34, 4  ;;  %v1862_v33 = vrot.slane %v10560_v34, 2 }
 0xfab   :  { %8885 = vmatmul.mubr.msk.f32.vlgmr.msra.gmra.mxu0 %vm206_vm5, %v1724_v7 }
 0xfac   :  { %8899 = vmatpush3.msra.mxu0 %v9962_v35  ;;  %8906 = vmatprep.mubr.msk.f32.mxu0 %vm10071_vm4, %v10070_v1 }
 0xfad   :  { %8900 = vmatprep.subr.mxu0 %v10070_v1 }
 0xfae   :  { %8901 = vmatpush3.msra.mxu0 %v9963_v36 }
 0xfaf   :  { %8902 = vmatprep.subr.mxu0 %v10070_v1 }
 0xfb0   :  { %8903 = vmatpush3.msra.mxu0 %v9964_v37 }
 0xfb1   :  { %8904 = vmatprep.subr.mxu0 %v10070_v1 }
 0xfb2   :  { %8905 = vmatpush3.msra.mxu0 %v9965_v38 }
 0xfe0   :  { %v1581_v49 = vpop.permute.xlu1 %1580 }
 0xfe1   :  { %v1583_v50 = vmul.f32 %v9543_v48, %v1581_v49 }
 0xfe3   :  { %1585 = vrot.lane.b32.xlu1 %v1583_v50, %s10072_s23 }
0x1055   :  { %v1586_v57 = vpop.permute.xlu1 %1585 }
0x1056   :  { %v1588_v61 = vadd.f32 %v1586_v57, %v1421_v39  ;;  %v1645_v39 = vld [vmem:[#allocation2 + $0x10] sm:$0x30] }
0x1058   :  { %9544 = vtanh.f32 %v1588_v61 }
0x1065   :  { %v9545_v62 = vpop.eup %9544 }
0x1066   :  { %1592 = vrot.lane.b32.xlu0 %v9545_v62, %s10073_s25 }
0x106b   :  { %v1793_v54 = vpop.f32.mrf.mxu0 }
0x106c   :  { %v1794_v63 = vadd.f32 %v10336_v12, %v1793_v54  ;;  %v1646_v12 = vld [vmem:[#allocation2] sm:$0xc]  ;;  %v9971_v54 = vld [vmem:[%s12232_s8 + $0x1] ss:$0 sm:$0xff] }
0x106d   :  { %v8886_v44 = vpop.f32.mrf.mxu0 }
0x106e   :  { %v1828_v59 = vrot.slane %v1794_v63, 6 }
0x1070   :  { %1829 = vrot.lane.b32.xlu0 %v1828_v59, %s10073_s25 }
0x10d8   :  { %v1593_v2 = vpop.permute.xlu0 %1592 }
0x10d9   :  { %v1595_v3 = vmul.f32 %v1593_v2, %v1590_v45 }
0x10db   :  { %v10588_v47 = vadd.f32 %v1598_v46, %v1595_v3 }
0x10dd   :  { %v1648_v5 = vrot.slane %v10588_v47, 2  ;;  %v1823_v0 = vrot.slane %v10588_v47, 6 }
0x10df   :  { %1649 = vrot.lane.b32.xlu1 %v1648_v5, %s10073_s25 }
0x10e2   :  { %v1830_v8 = vpop.permute.xlu0 %1829 }
0x10e3   :  { %1846 = vrot.lane.b32.xlu1 %v1828_v59, %s10074_s26  ;;  %v1832_v9 = vadd.f32 %v1830_v8, %v1646_v12  ;;  %v1839_v27 = vadd.f32 %v1830_v8, %v1647_v21  ;;  %v1873_v12 = vld [vmem:[#allocation2] sm:$0x3] }
0x10e5   :  { %v8218_v13 = vmul.f32 -1.442695, %v1832_v9  ;;  %v8219_v28 = vmul.f32 -1.442695, %v1839_v27 }
0x10e7   :  { %9546 = vpow2.f32 %v8218_v13 }
0x10f4   :  { %v9547_v14 = vpop.eup %9546 }
0x10f5   :  { %v1836_v15 = vadd.f32 1.0, %v9547_v14 }
0x10f7   :  { %9548 = vrcp.f32 %v1836_v15 }
0x1104   :  { %v9549_v17 = vpop.eup %9548 }
0x1151   :  { %v1650_v51 = vpop.permute.xlu1 %1649 }
0x1152   :  { %8874 = vmatmul.mubr.msk.f32.vlgmr.msra.gmra.mxu1 %vm206_vm5, %v1650_v51 }
0x1153   :  { %8888 = vmatpush3.msra.mxu1 %v9966_v16  ;;  %8895 = vmatprep.mubr.msk.f32.mxu1 %vm10071_vm4, %v10070_v1 }
0x1154   :  { %8889 = vmatprep.subr.mxu1 %v10070_v1 }
0x1155   :  { %v1847_v11 = vpop.permute.xlu1 %1846  ;;  %8890 = vmatpush3.msra.mxu1 %v9967_v18  ;;  %v1874_v18 = vld [vmem:[#allocation2 + $0x8] sm:$0x3] }
0x1156   :  { %v1849_v19 = vmul.f32 %v9549_v17, %v1847_v11  ;;  %8891 = vmatprep.subr.mxu1 %v10070_v1 }
0x1157   :  { %8892 = vmatpush3.msra.mxu1 %v9968_v52 }
0x1158   :  { %1851 = vrot.lane.b32.xlu0 %v1849_v19, %s10072_s23  ;;  %8893 = vmatprep.subr.mxu1 %v10070_v1 }
0x1159   :  { %8894 = vmatpush3.msra.mxu1 %v9969_v20  ;;  %v2126_v20 = vld [vmem:[%s12229_s5 + $0x78] sm:$0xff] }
0x115a   :  { %2161 = vmatprep.subr.mxu1 %v2126_v20 }
0x11ca   :  { %v1852_v22 = vpop.permute.xlu0 %1851 }
0x11cb   :  { %v1854_v53 = vadd.f32 %v1852_v22, %v1647_v21  ;;  %v2125_v21 = vld [vmem:[%s12229_s5 + $0x70] sm:$0xff]  ;;  %v2124_v22 = vld [vmem:[%s12229_s5 + $0x68] sm:$0xff] }
0x11cd   :  { %9550 = vtanh.f32 %v1854_v53  ;;  %v2123_v53 = vld [vmem:[%s12229_s5 + $0x60] sm:$0xff] }
0x11ce   :  { %9552 = vpow2.f32 %v8219_v28  ;;  %v2118_v28 = vld [vmem:[%s12229_s5 + $0x38] sm:$0xff] }
0x11cf   :  { %2244 = vmatprep.subr.mxu0 %v2118_v28 }
0x11da   :  { %v9551_v23 = vpop.eup %9550 }
0x11db   :  { %1858 = vrot.lane.b32.xlu0 %v9551_v23, %s10073_s25  ;;  %v9553_v29 = vpop.eup %9552  ;;  %v2122_v23 = vld [vmem:[%s12229_s5 + $0x58] sm:$0xff] }
0x11dc   :  { %v1843_v30 = vadd.f32 1.0, %v9553_v29 }
0x11de   :  { %9554 = vrcp.f32 %v1843_v30  ;;  %v2117_v30 = vld [vmem:[%s12229_s5 + $0x30] sm:$0xff] }
0x11eb   :  { %v9555_v31 = vpop.eup %9554 }
0x11ec   :  { %v1856_v32 = vsub.f32 1.0, %v9555_v31  ;;  %v1864_v35 = vmul.f32 %v9555_v31, %v1862_v33  ;;  %v2113_v33 = vld [vmem:[%s12229_s5 + $0x10] sm:$0xff] }
0x1212   :  { %v1719_v24 = vpop.f32.mrf.mxu1 }
0x1213   :  { %v1720_v25 = vadd.f32 %v10616_v55, %v1719_v24  ;;  %v2121_v24 = vld [vmem:[%s12229_s5 + $0x50] sm:$0xff] }
0x1214   :  { %v8875_v26 = vpop.f32.mrf.mxu1 }
0x1215   :  { %v1798_v56 = vrot.slane %v1720_v25, 4  ;;  %v2120_v26 = vld [vmem:[%s12229_s5 + $0x48] sm:$0xff] }
0x1217   :  { %1807 = vrot.lane.b32.xlu1 %v1798_v56, %s10072_s23  ;;  %v1800_v40 = vadd.f32 %v1798_v56, %v1645_v39  ;;  %v2119_v56 = vld [vmem:[%s12229_s5 + $0x40] sm:$0xff] }
0x1219   :  { %v8217_v41 = vmul.f32 -1.442695, %v1800_v40 }
0x121b   :  { %9556 = vpow2.f32 %v8217_v41 }
0x1228   :  { %v9557_v34 = vpop.eup %9556 }
0x1229   :  { %v1804_v42 = vadd.f32 1.0, %v9557_v34 }
0x122b   :  { %9558 = vrcp.f32 %v1804_v42 }
0x1238   :  { %v9559_v43 = vpop.eup %9558 }
0x1239   :  { %v1817_v59 = vsub.f32 1.0, %v9559_v43  ;;  %v1825_v2 = vmul.f32 %v9559_v43, %v1823_v0 }
0x124d   :  { %v1859_v7 = vpop.permute.xlu0 %1858 }
0x124e   :  { %v1861_v36 = vmul.f32 %v1859_v7, %v1856_v32  ;;  %v2112_v7 = vld [vmem:[%s12229_s5 + $0x8] sm:$0xff] }
0x1250   :  { %v10621_v37 = vadd.f32 %v1864_v35, %v1861_v36  ;;  %v2111_v35 = vld [vmem:[%s12229_s5] sm:$0xff] }
0x1252   :  { %1871 = vst.msk [vmem:[#allocation4] sm:$0xc] %vm742_vm10, %v10621_v37  ;;  %v1951_v38 = vrot.slane %v10621_v37, 2  ;;  %v10723_v37 = vld [vmem:[%s12231_s7 + $0x50] sm:$0xff] }
0x1254   :  { %8907 = vmatmul.mubr.msk.f32.vlgmr.msra.gmra.mxu0 %vm206_vm5, %v1951_v38 }
0x1255   :  { %2284 = vmatprep.mubr.f32.mxu0 %v10070_v1  ;;  %2245 = vmatpush1.msra.mxu0 %v2117_v30 }
0x1289   :  { %v1808_v48 = vpop.permute.xlu1 %1807 }
0x128a   :  { %v1810_v49 = vmul.f32 %v9559_v43, %v1808_v48 }
0x128c   :  { %1812 = vrot.lane.b32.xlu1 %v1810_v49, %s10072_s23 }
0x12fe   :  { %v1813_v50 = vpop.permute.xlu1 %1812 }
0x12ff   :  { %v1815_v57 = vadd.f32 %v1813_v50, %v1645_v39 }
0x1301   :  { %9560 = vtanh.f32 %v1815_v57 }
0x130e   :  { %v9561_v61 = vpop.eup %9560 }
0x130f   :  { %1819 = vrot.lane.b32.xlu0 %v9561_v61, %s10073_s25  ;;  %v10717_v61 = vld [vmem:[%s12231_s7 + $0x58] sm:$0xff] }
0x1314   :  { %v2020_v62 = vpop.f32.mrf.mxu0 }
0x1315   :  { %v2021_v63 = vadd.f32 %v9971_v54, %v2020_v62  ;;  %v2130_v54 = vld [vmem:[#allocation4 + $0x8] sm:$0xff] }
0x1316   :  { %v8908_v44 = vpop.f32.mrf.mxu0 }
0x1317   :  { %2055 = vrot.lane.b32.xlu0 %v2021_v63, %s10073_s25  ;;  %v1872_v44 = vld [vmem:[#allocation2 + $0x10] sm:$0xc0] }
0x1381   :  { %v1820_v45 = vpop.permute.xlu0 %1819 }
0x1382   :  { %v1822_v46 = vmul.f32 %v1820_v45, %v1817_v59 }
0x1384   :  { %v10637_v3 = vadd.f32 %v1825_v2, %v1822_v46 }
0x1386   :  { %v1875_v5 = vrot.slane %v10637_v3, 4 }
0x1388   :  { %1876 = vrot.lane.b32.xlu1 %v1875_v5, %s10073_s25 }
0x1389   :  { %v10642_v8 = vpop.permute.xlu0 %2055 }
0x138a   :  { %v2058_v9 = vadd.f32 %v10642_v8, %v1873_v12  ;;  %v2065_v36 = vadd.f32 %v10642_v8, %v1874_v18 }
0x138c   :  { %2072 = vrot.lane.b32.xlu1 %v2021_v63, %s10074_s26  ;;  %v8223_v13 = vmul.f32 -1.442695, %v2058_v9  ;;  %v8224_v39 = vmul.f32 -1.442695, %v2065_v36  ;;  %v10739_v63 = vld [vmem:[%s12231_s7 + $0x40] sm:$0xff] }
0x138e   :  { %9562 = vpow2.f32 %v8223_v13 }
0x139b   :  { %v9563_v14 = vpop.eup %9562 }
0x139c   :  { %v2062_v15 = vadd.f32 1.0, %v9563_v14 }
0x139e   :  { %9564 = vrcp.f32 %v2062_v15 }
0x13ab   :  { %v9565_v16 = vpop.eup %9564 }
0x13fa   :  { %v1877_v51 = vpop.permute.xlu1 %1876 }
0x13fb   :  { %8896 = vmatmul.mubr.msk.f32.vlgmr.msra.gmra.mxu1 %vm206_vm5, %v1877_v51 }
0x13fc   :  { %2201 = vmatprep.mubr.f32.mxu1 %v10070_v1  ;;  %2162 = vmatpush1.msra.mxu1 %v2125_v21  ;;  %v8225_v21 = vld [vmem:[%s12230_s6 + $0x1] ss:$4 sm:$0x3] }
0x13fd   :  { %2163 = vmatprep.subr.mxu1 %v2124_v22  ;;  %v10783_v22 = vrot.slane %v8225_v21, %v10315_v58 }
0x13fe   :  { %v2073_v17 = vpop.permute.xlu1 %2072  ;;  %2164 = vmatpush1.msra.mxu1 %v2123_v53 }
0x13ff   :  { %v2075_v11 = vmul.f32 %v9565_v16, %v2073_v17  ;;  %2165 = vmatprep.subr.mxu1 %v2122_v23 }
0x1400   :  { %2166 = vmatpush1.msra.mxu1 %v2121_v24  ;;  %v10786_v24 = vrot.slane %v8225_v21, %v10320_v60 }
0x1401   :  { %2077 = vrot.lane.b32.xlu0 %v2075_v11, %s10072_s23  ;;  %2167 = vmatprep.subr.mxu1 %v2120_v26 }
0x1402   :  { %2168 = vmatpush1.msra.mxu1 %v2119_v56 }
0x1403   :  { %8909 = vmatprep.subr.mxu1 %v10070_v1 }
0x1473   :  { %v2078_v19 = vpop.permute.xlu0 %2077 }
0x1474   :  { %v2080_v52 = vadd.f32 %v2078_v19, %v1874_v18  ;;  %v10775_v18 = vld [vmem:[%s12232_s8 + $0x2] ss:$0 sm:$0xff] }
0x1476   :  { %9566 = vtanh.f32 %v2080_v52 }
0x1477   :  { %9568 = vpow2.f32 %v8224_v39  ;;  %v10814_v39 = vld [vmem:[%s12231_s7 + $0x60] sm:$0xff] }
0x1483   :  { %v9567_v25 = vpop.eup %9566 }
0x1484   :  { %2084 = vrot.lane.b32.xlu1 %v9567_v25, %s10073_s25  ;;  %v9569_v40 = vpop.eup %9568 }
0x1485   :  { %v2069_v41 = vadd.f32 1.0, %v9569_v40 }
0x1487   :  { %9570 = vrcp.f32 %v2069_v41 }
0x1488   :  { %739 = vrot.lane.b32.xlu1 %v10404_v4, %s10073_s25  ;;  %v2116_v4 = vld [vmem:[%s12229_s5 + $0x28] sm:$0xff] }
0x1489   :  { %2246 = vmatprep.subr.mxu0 %v2116_v4  ;;  %v2050_v4 = vrot.slane %v10637_v3, 6 }
0x148c   :  { %1193 = vrot.lane.b32.xlu1 %v10492_v10, %s10073_s25  ;;  %v2115_v10 = vld [vmem:[%s12229_s5 + $0x20] sm:$0xff] }
0x148d   :  { %2247 = vmatpush1.msra.mxu0 %v2115_v10  ;;  %v10800_v10 = vld [vmem:[%s12231_s7 + $0x70] sm:$0xff] }
0x1494   :  { %v9571_v34 = vpop.eup %9570 }
0x1495   :  { %v2082_v42 = vsub.f32 1.0, %v9571_v34  ;;  %v2089_v48 = vmul.f32 %v9571_v34, %v1951_v38  ;;  %v10731_v38 = vld [vmem:[%s12231_s7 + $0x48] sm:$0xff] }
0x14bb   :  { %v1946_v27 = vpop.f32.mrf.mxu1 }
0x14bc   :  { %v1947_v29 = vadd.f32 %v10616_v55, %v1946_v27  ;;  %v2114_v55 = vld [vmem:[%s12229_s5 + $0x18] sm:$0xff] }
0x14bd   :  { %v8897_v31 = vpop.f32.mrf.mxu1  ;;  %2248 = vmatprep.subr.mxu0 %v2114_v55 }
0x14be   :  { %v2025_v32 = vrot.slane %v1947_v29, 2  ;;  %2249 = vmatpush1.msra.mxu0 %v2113_v33 }
0x14bf   :  { %2250 = vmatprep.subr.mxu0 %v2112_v7 }
0x14c0   :  { %2034 = vrot.lane.b32.xlu0 %v2025_v32, %s10072_s23  ;;  %2251 = vmatpush1.msra.mxu0 %v2111_v35  ;;  %v2027_v59 = vadd.f32 %v2025_v32, %v1872_v44  ;;  %v10795_v32 = vld [vmem:[%s12231_s7 + $0x78] sm:$0xff] }
0x14c1   :  { %8920 = vmatprep.subr.mxu0 %v10070_v1 }
0x14c2   :  { %v8222_v0 = vmul.f32 -1.442695, %v2027_v59 }
0x14c4   :  { %968 = vrot.lane.b32.xlu0 %v10448_v6, %s10073_s25  ;;  %9572 = vpow2.f32 %v8222_v0 }
0x14d1   :  { %v9573_v45 = vpop.eup %9572 }
0x14d2   :  { %v2031_v2 = vadd.f32 1.0, %v9573_v45 }
0x14d4   :  { %9574 = vrcp.f32 %v2031_v2 }
0x14e1   :  { %v9575_v46 = vpop.eup %9574 }
0x14e2   :  { %v2044_v31 = vsub.f32 1.0, %v9575_v46  ;;  %v2052_v33 = vmul.f32 %v9575_v46, %v2050_v4 }
0x14f6   :  { %v2085_v43 = vpop.permute.xlu1 %2084 }
0x14f7   :  { %v2087_v49 = vmul.f32 %v2085_v43, %v2082_v42 }
0x14f9   :  { %v2090_v50 = vadd.f32 %v2089_v48, %v2087_v49 }
0x14fa   :  { %v740_v57 = vpop.permute.xlu1 %739 }
0x14fb   :  { %2096 = vst.msk [vmem:[#allocation4] sm:$0x3] %vm516_vm8, %v2090_v50  ;;  %2098 = vst.msk [vmem:[#allocation9 + $0x2] sm:$0x3] %vm516_vm8, %v2090_v50 }
0x14fc   :  { %743 = vst.msk [vmem:[#allocation3] sm:$0xc] %vm742_vm10, %v740_v57 }
0x14fe   :  { %v1194_v6 = vpop.permute.xlu1 %1193 }
0x14ff   :  { %1196 = vst.msk [vmem:[#allocation3] sm:$0xc0] %vm518_vm7, %v1194_v6 }
0x1502   :  { %v2129_v62 = vld [vmem:[#allocation4] sm:$0xff] }
0x1503   :  { %8226 = vmatmul.mubr.msk.f32.vlgmr.msra.gmra.mxu1 %vm206_vm5, %v2129_v62 }
0x1504   :  { %8910 = vmatpush3.msra.mxu1 %v10717_v61  ;;  %2207 = vmatprep.mubr.f32.mxu1 %v10070_v1 }
0x1505   :  { %8911 = vmatprep.subr.mxu1 %v10070_v1 }
0x1506   :  { %8912 = vmatpush3.msra.mxu1 %v10723_v37 }
0x1507   :  { %8913 = vmatprep.subr.mxu1 %v10070_v1  ;;  %8227 = vmatmul.mubr.msk.f32.gmra.mxu1 %vm206_vm5, %v2130_v54 }
0x1508   :  { %8914 = vmatpush3.msra.mxu1 %v10731_v38  ;;  %8917 = vmatprep.mubr.msk.f32.mxu1 %vm10071_vm4, %v10070_v1 }
0x1509   :  { %8915 = vmatprep.subr.mxu1 %v10070_v1 }
0x150a   :  { %8916 = vmatpush3.msra.mxu1 %v10739_v63 }
0x150b   :  { %8918 = vmatmul.mubr.f32.vlgmr.msra.gmra.mxu1 %v10070_v1  ;;  %8931 = vmatprep.subr.mxu1 %v10070_v1 }
0x150c   :  { %8932 = vmatpush3.msra.mxu1 %v10717_v61  ;;  %8939 = vmatprep.mubr.msk.f32.mxu1 %vm10071_vm4, %v10070_v1 }
0x150d   :  { %8933 = vmatprep.subr.mxu1 %v10070_v1 }
0x150e   :  { %8934 = vmatpush3.msra.mxu1 %v10723_v37 }
0x150f   :  { %8935 = vmatprep.subr.mxu1 %v10070_v1 }
0x1510   :  { %8936 = vmatpush3.msra.mxu1 %v10731_v38 }
0x1511   :  { %8937 = vmatprep.subr.mxu1 %v10070_v1 }
0x1512   :  { %8938 = vmatpush3.msra.mxu1 %v10739_v63 }
0x1513   :  { %8953 = vmatprep.subr.mxu1 %v10070_v1 }
0x1532   :  { %v2035_v5 = vpop.permute.xlu0 %2034 }
0x1533   :  { %v2037_v8 = vmul.f32 %v9575_v46, %v2035_v5  ;;  %v10848_v5 = vld [vmem:[%s12232_s8 + $0x3] ss:$0 sm:$0xff] }
0x1535   :  { %2039 = vrot.lane.b32.xlu0 %v2037_v8, %s10072_s23 }
0x1536   :  { %v969_v12 = vpop.permute.xlu0 %968 }
0x1537   :  { %971 = vst.msk [vmem:[#allocation3] sm:$0x30] %vm744_vm9, %v969_v12 }
0x1539   :  { %1640 = vrot.lane.b32.xlu0 %v10588_v47, %s10073_s25 }
0x153e   :  { %v2127_v9 = vld [vmem:[#allocation3] sm:$0xff] }
0x153f   :  { %8228 = vmatmul.mubr.msk.f32.vlgmr.msra.gmra.mxu0 %vm206_vm5, %v2127_v9 }
0x1540   :  { %2290 = vmatprep.mubr.f32.mxu0 %v10070_v1  ;;  %8921 = vmatpush3.msra.mxu0 %v10795_v32 }
0x1541   :  { %8922 = vmatprep.subr.mxu0 %v10070_v1 }
0x1542   :  { %8923 = vmatpush3.msra.mxu0 %v10800_v10 }
0x1543   :  { %8924 = vmatprep.subr.mxu0 %v10070_v1 }
0x15a7   :  { %v2040_v13 = vpop.permute.xlu0 %2039 }
0x15a8   :  { %v2042_v14 = vadd.f32 %v2040_v13, %v1872_v44 }
0x15aa   :  { %9576 = vtanh.f32 %v2042_v14 }
0x15ab   :  { %v1641_v15 = vpop.permute.xlu0 %1640 }
0x15ac   :  { %1643 = vst.msk [vmem:[#allocation3 + $0x8] sm:$0xc] %vm742_vm10, %v1641_v15 }
0x15b7   :  { %v9577_v51 = vpop.eup %9576 }
0x15b8   :  { %2046 = vrot.lane.b32.xlu1 %v9577_v51, %s10073_s25 }
0x15bc   :  { %1867 = vrot.lane.b32.xlu1 %v10637_v3, %s10073_s25  ;;  %v10807_v3 = vld [vmem:[%s12231_s7 + $0x68] sm:$0xff] }
0x15bd   :  { %8925 = vmatpush3.msra.mxu0 %v10807_v3 }
0x15be   :  { %8926 = vmatprep.subr.mxu0 %v10070_v1 }
0x15bf   :  { %8927 = vmatpush3.msra.mxu0 %v10814_v39 }
0x15c0   :  { %8942 = vmatprep.subr.mxu0 %v10070_v1 }
0x15c3   :  { %v2203_v16 = vpop.f32.mrf.mxu1 }
0x15c5   :  { %v2205_v17 = vpop.f32.mrf.mxu1 }
0x15c7   :  { %v10768_v47 = vpop.f32.mrf.mxu1 }
0x15c9   :  { %v10770_v11 = vpop.f32.mrf.mxu1 }
0x15cb   :  { %v2389_v19 = vpop.f32.mrf.mxu1 }
0x15cc   :  { %v2390_v52 = vadd.f32 %v10775_v18, %v2389_v19 }
0x15cd   :  { %v8919_v20 = vpop.f32.mrf.mxu1 }
0x15ce   :  { %2475 = vrot.lane.b32.xlu1 %v2390_v52, %s10072_s23 }
0x15ff   :  { %v2286_v53 = vpop.f32.mrf.mxu0 }
0x1600   :  { %v2287_v23 = vadd.f32 %v2286_v53, %v2203_v16 }
0x1601   :  { %v2288_v25 = vpop.f32.mrf.mxu0 }
0x1602   :  { %v2308_v26 = vadd.f32 %v10783_v22, %v2287_v23  ;;  %v2289_v56 = vadd.f32 %v2288_v25, %v2205_v17 }
0x1604   :  { %2312 = vst [vmem:[#allocation2] sm:$0xff] %v2308_v26  ;;  %v2309_v27 = vadd.f32 %v10786_v24, %v2289_v56 }
0x1606   :  { %2313 = vst.msk [vmem:[#allocation2 + $0x8] sm:$0xff] %vm291_vm6, %v2309_v27 }
0x160b   :  { %v2316_v28 = vld [vmem:[#allocation2] sm:$0x3] }
0x160c   :  { %v2467_v29 = vadd.f32 %v2390_v52, %v2316_v28 }
0x160e   :  { %v8232_v30 = vmul.f32 -1.442695, %v2467_v29 }
0x1610   :  { %9578 = vpow2.f32 %v8232_v30  ;;  %v2536_v30 = vld [vmem:[#allocation2] sm:$0xc] }
0x161d   :  { %v9579_v35 = vpop.eup %9578 }
0x161e   :  { %v2471_v41 = vadd.f32 1.0, %v9579_v35 }
0x1620   :  { %9580 = vrcp.f32 %v2471_v41 }
0x162a   :  { %v2047_v55 = vpop.permute.xlu1 %2046 }
0x162b   :  { %v2049_v7 = vmul.f32 %v2047_v55, %v2044_v31 }
0x162d   :  { %v2053_v36 = vadd.f32 %v2052_v33, %v2049_v7  ;;  %v9581_v34 = vpop.eup %9580 }
0x162e   :  { %v1868_v40 = vpop.permute.xlu1 %1867  ;;  %v2485_v62 = vsub.f32 1.0, %v9581_v34  ;;  %v2491_v44 = vmul.f32 0.0, %v9581_v34 }
0x162f   :  { %1870 = vst.msk [vmem:[#allocation3 + $0x8] sm:$0x30] %vm744_vm9, %v1868_v40  ;;  %2092 = vrot.lane.b32.xlu0 %v2053_v36, %s10073_s25 }
0x1640   :  { %v2476_v42 = vpop.permute.xlu1 %2475 }
0x1641   :  { %v2478_v43 = vmul.f32 %v9581_v34, %v2476_v42 }
0x1643   :  { %2480 = vrot.lane.b32.xlu0 %v2478_v43, %s10072_s23 }
0x16a1   :  { %v2093_v48 = vpop.permute.xlu0 %2092 }
0x16a2   :  { %2095 = vst.msk [vmem:[#allocation3 + $0x8] sm:$0xc0] %vm518_vm7, %v2093_v48  ;;  %2097 = vst.msk [vmem:[#allocation9 - $0x6] sm:$0xc0] %vm518_vm7, %v2093_v48 }
0x16a9   :  { %v2128_v49 = vld [vmem:[#allocation3 + $0x8] sm:$0xff] }
0x16aa   :  { %8229 = vmatmul.mubr.msk.f32.gmra.mxu0 %vm206_vm5, %v2128_v49 }
0x16ab   :  { %8928 = vmatprep.mubr.msk.f32.mxu0 %vm10071_vm4, %v10070_v1 }
0x16ae   :  { %8929 = vmatmul.mubr.f32.vlgmr.msra.gmra.mxu0 %v10070_v1 }
0x16af   :  { %8943 = vmatpush3.msra.mxu0 %v10795_v32  ;;  %8950 = vmatprep.mubr.msk.f32.mxu0 %vm10071_vm4, %v10070_v1 }
0x16b0   :  { %8944 = vmatprep.subr.mxu0 %v10070_v1 }
0x16b1   :  { %8945 = vmatpush3.msra.mxu0 %v10800_v10 }
0x16b2   :  { %8946 = vmatprep.subr.mxu0 %v10070_v1 }
0x16b3   :  { %8947 = vmatpush3.msra.mxu0 %v10807_v3 }
0x16b4   :  { %8948 = vmatprep.subr.mxu0 %v10070_v1 }
0x16b5   :  { %v2481_v50 = vpop.permute.xlu0 %2480  ;;  %8949 = vmatpush3.msra.mxu0 %v10814_v39 }
0x16b6   :  { %v2483_v57 = vadd.f32 %v2481_v50, %v2316_v28  ;;  %8964 = vmatprep.subr.mxu0 %v10070_v1 }
0x16b8   :  { %9582 = vtanh.f32 %v2483_v57 }
0x16c5   :  { %v9583_v6 = vpop.eup %9582 }
0x16c6   :  { %2487 = vrot.lane.b32.xlu1 %v9583_v6, %s10073_s25 }
0x1738   :  { %v2488_v54 = vpop.permute.xlu1 %2487 }
0x1739   :  { %v2490_v59 = vmul.f32 %v2488_v54, %v2485_v62 }
0x173b   :  { %v10840_v0 = vadd.f32 %v2491_v44, %v2490_v59 }
0x173d   :  { %2531 = vrot.lane.b32.xlu1 %v10840_v0, %s10073_s25 }
0x176a   :  { %v2292_v45 = vpop.f32.mrf.mxu0 }
0x176b   :  { %v2293_v2 = vadd.f32 %v2292_v45, %v10768_v47 }
0x176c   :  { %v2294_v46 = vpop.f32.mrf.mxu0 }
0x176d   :  { %v2310_v8 = vadd.f32 %v10783_v22, %v2293_v2  ;;  %v2295_v12 = vadd.f32 %v2294_v46, %v10770_v11 }
0x176e   :  { %v2463_v9 = vpop.f32.mrf.mxu0 }
0x176f   :  { %2314 = vst [vmem:[#allocation2 + $0x10] sm:$0xff] %v2310_v8  ;;  %v2311_v13 = vadd.f32 %v10786_v24, %v2295_v12  ;;  %v2464_v14 = vadd.f32 %v10848_v5, %v2463_v9  ;;  %v2711_v12 = vrot.slane %v10840_v0, 6 }
0x1770   :  { %v8930_v15 = vpop.f32.mrf.mxu0 }
0x1771   :  { %2315 = vst.msk [vmem:[#allocation2 + $0x18] sm:$0xff] %vm291_vm6, %v2311_v13  ;;  %v2494_v51 = vrot.slane %v2464_v14, 2 }
0x1773   :  { %2495 = vrot.lane.b32.xlu0 %v2494_v51, %s10073_s25 }
0x1776   :  { %v2317_v17 = vld [vmem:[#allocation2 + $0x10] sm:$0xc0] }
0x1777   :  { %2512 = vrot.lane.b32.xlu0 %v2494_v51, %s10074_s26 }
0x1778   :  { %v2318_v56 = vld [vmem:[#allocation2 + $0x18] sm:$0xc0] }
0x17af   :  { %v2532_v16 = vpop.permute.xlu1 %2531 }
0x17b0   :  { %2534 = vst.msk [vmem:[#allocation3] sm:$0x3] %vm516_vm8, %v2532_v16  ;;  %8940 = vmatmul.mubr.msk.f32.vlgmr.msra.gmra.mxu1 %vm206_vm5, %v2532_v16 }
0x17b1   :  { %8954 = vmatpush3.msra.mxu1 %v10717_v61  ;;  %8961 = vmatprep.mubr.msk.f32.mxu1 %vm10071_vm4, %v10070_v1 }
0x17b2   :  { %8955 = vmatprep.subr.mxu1 %v10070_v1 }
0x17b3   :  { %8956 = vmatpush3.msra.mxu1 %v10723_v37 }
0x17b4   :  { %8957 = vmatprep.subr.mxu1 %v10070_v1 }
0x17b5   :  { %8958 = vmatpush3.msra.mxu1 %v10731_v38 }
0x17b6   :  { %8959 = vmatprep.subr.mxu1 %v10070_v1 }
0x17b7   :  { %8960 = vmatpush3.msra.mxu1 %v10739_v63 }
0x17b8   :  { %8975 = vmatprep.subr.mxu1 %v10070_v1 }
0x17e5   :  { %v2496_v47 = vpop.permute.xlu0 %2495 }
0x17e6   :  { %v2498_v11 = vadd.f32 %v2496_v47, %v2317_v17  ;;  %v2505_v55 = vadd.f32 %v2496_v47, %v2318_v56  ;;  %v2537_v17 = vld [vmem:[#allocation2 + $0x10] sm:$0x30] }
0x17e8   :  { %v8233_v19 = vmul.f32 -1.442695, %v2498_v11  ;;  %v8234_v7 = vmul.f32 -1.442695, %v2505_v55 }
0x17e9   :  { %v2513_v21 = vpop.permute.xlu0 %2512 }
0x17ea   :  { %9584 = vpow2.f32 %v8233_v19 }
0x17f7   :  { %v9585_v52 = vpop.eup %9584 }
0x17f8   :  { %v2502_v20 = vadd.f32 1.0, %v9585_v52 }
0x17fa   :  { %9586 = vrcp.f32 %v2502_v20 }
0x1807   :  { %v9587_v22 = vpop.eup %9586 }
0x1808   :  { %v2515_v53 = vmul.f32 %v9587_v22, %v2513_v21 }
0x180a   :  { %2517 = vrot.lane.b32.xlu1 %v2515_v53, %s10072_s23 }
0x1870   :  { %v2607_v23 = vpop.f32.mrf.mxu1 }
0x1871   :  { %v2608_v24 = vadd.f32 %v10775_v18, %v2607_v23  ;;  %v2538_v23 = vld [vmem:[#allocation2 + $0x18] sm:$0x30] }
0x1872   :  { %v8941_v25 = vpop.f32.mrf.mxu1 }
0x1873   :  { %v2686_v26 = vrot.slane %v2608_v24, 6 }
0x1875   :  { %2695 = vrot.lane.b32.xlu1 %v2686_v26, %s10072_s23  ;;  %v2688_v31 = vadd.f32 %v2686_v26, %v2536_v30 }
0x1877   :  { %v8237_v4 = vmul.f32 -1.442695, %v2688_v31 }
0x187c   :  { %v2518_v27 = vpop.permute.xlu1 %2517 }
0x187d   :  { %v2520_v28 = vadd.f32 %v2518_v27, %v2318_v56 }
0x187f   :  { %9588 = vtanh.f32 %v2520_v28 }
0x1880   :  { %9590 = vpow2.f32 %v8237_v4 }
0x1881   :  { %9592 = vpow2.f32 %v8234_v7 }
0x188c   :  { %v9589_v29 = vpop.eup %9588 }
0x188d   :  { %2524 = vrot.lane.b32.xlu0 %v9589_v29, %s10073_s25  ;;  %v9591_v33 = vpop.eup %9590 }
0x188e   :  { %v2692_v35 = vadd.f32 1.0, %v9591_v33  ;;  %v9593_v36 = vpop.eup %9592 }
0x188f   :  { %v2509_v42 = vadd.f32 1.0, %v9593_v36 }
0x1890   :  { %9594 = vrcp.f32 %v2692_v35 }
0x1891   :  { %9596 = vrcp.f32 %v2509_v42 }
0x189d   :  { %v9595_v40 = vpop.eup %9594 }
0x189e   :  { %v9597_v43 = vpop.eup %9596  ;;  %v2705_v9 = vsub.f32 1.0, %v9595_v40  ;;  %v2713_v14 = vmul.f32 %v9595_v40, %v2711_v12 }
0x189f   :  { %v2522_v48 = vsub.f32 1.0, %v9597_v43  ;;  %v2528_v50 = vmul.f32 0.0, %v9597_v43  ;;  %v2760_v43 = vld [vmem:[#allocation2] sm:$0x30] }
0x18e7   :  { %v2696_v41 = vpop.permute.xlu1 %2695 }
0x18e8   :  { %v2698_v34 = vmul.f32 %v9595_v40, %v2696_v41 }
0x18ea   :  { %2700 = vrot.lane.b32.xlu0 %v2698_v34, %s10072_s23 }
0x18ff   :  { %v2525_v49 = vpop.permute.xlu0 %2524 }
0x1900   :  { %v2527_v57 = vmul.f32 %v2525_v49, %v2522_v48 }
0x1902   :  { %v10874_v6 = vadd.f32 %v2528_v50, %v2527_v57 }
0x1904   :  { %2535 = vst.msk [vmem:[#allocation4 + $0x8] sm:$0xc0] %vm518_vm7, %v10874_v6  ;;  %v2612_v62 = vrot.slane %v10874_v6, 6  ;;  %v2750_v35 = vrot.slane %v10874_v6, 2 }
0x1906   :  { %8951 = vmatmul.mubr.msk.f32.vlgmr.msra.gmra.mxu0 %vm206_vm5, %v2612_v62 }
0x1907   :  { %8965 = vmatpush3.msra.mxu0 %v10795_v32  ;;  %8972 = vmatprep.mubr.msk.f32.mxu0 %vm10071_vm4, %v10070_v1 }
0x1908   :  { %8966 = vmatprep.subr.mxu0 %v10070_v1 }
0x1909   :  { %8967 = vmatpush3.msra.mxu0 %v10800_v10 }
0x190a   :  { %8968 = vmatprep.subr.mxu0 %v10070_v1 }
0x190b   :  { %8969 = vmatpush3.msra.mxu0 %v10807_v3 }
0x190c   :  { %8970 = vmatprep.subr.mxu0 %v10070_v1 }
0x190d   :  { %8971 = vmatpush3.msra.mxu0 %v10814_v39 }
0x190e   :  { %8986 = vmatprep.subr.mxu0 %v10070_v1 }
0x195c   :  { %v2701_v54 = vpop.permute.xlu0 %2700 }
0x195d   :  { %v2703_v44 = vadd.f32 %v2701_v54, %v2536_v30 }
0x195f   :  { %9598 = vtanh.f32 %v2703_v44 }
0x196c   :  { %v9599_v59 = vpop.eup %9598 }
0x196d   :  { %2707 = vrot.lane.b32.xlu1 %v9599_v59, %s10073_s25 }
0x19c6   :  { %v2681_v45 = vpop.f32.mrf.mxu0 }
0x19c7   :  { %v2682_v2 = vadd.f32 %v10848_v5, %v2681_v45 }
0x19c8   :  { %v8952_v46 = vpop.f32.mrf.mxu0 }
0x19c9   :  { %v2716_v8 = vrot.slane %v2682_v2, 4 }
0x19cb   :  { %2717 = vrot.lane.b32.xlu0 %v2716_v8, %s10073_s25 }
0x19cf   :  { %2734 = vrot.lane.b32.xlu0 %v2716_v8, %s10074_s26 }
0x19df   :  { %v2708_v13 = vpop.permute.xlu1 %2707 }
0x19e0   :  { %v2710_v15 = vmul.f32 %v2708_v13, %v2705_v9 }
0x19e2   :  { %v10895_v51 = vadd.f32 %v2713_v14, %v2710_v15 }
0x19e4   :  { %v2763_v16 = vrot.slane %v10895_v51, 2  ;;  %v2938_v13 = vrot.slane %v10895_v51, 6 }
0x19e6   :  { %2764 = vrot.lane.b32.xlu1 %v2763_v16, %s10073_s25 }
0x1a3d   :  { %v2718_v47 = vpop.permute.xlu0 %2717 }
0x1a3e   :  { %v2720_v11 = vadd.f32 %v2718_v47, %v2537_v17  ;;  %v2727_v30 = vadd.f32 %v2718_v47, %v2538_v23 }
0x1a40   :  { %v8238_v19 = vmul.f32 -1.442695, %v2720_v11  ;;  %v8239_v31 = vmul.f32 -1.442695, %v2727_v30  ;;  %v2761_v11 = vld [vmem:[#allocation2 + $0x10] sm:$0xc] }
0x1a41   :  { %v2735_v22 = vpop.permute.xlu0 %2734 }
0x1a42   :  { %9600 = vpow2.f32 %v8238_v19 }
0x1a4f   :  { %v9601_v52 = vpop.eup %9600 }
0x1a50   :  { %v2724_v20 = vadd.f32 1.0, %v9601_v52 }
0x1a52   :  { %9602 = vrcp.f32 %v2724_v20 }
0x1a58   :  { %v2765_v21 = vpop.permute.xlu1 %2764 }
0x1a59   :  { %8962 = vmatmul.mubr.msk.f32.vlgmr.msra.gmra.mxu1 %vm206_vm5, %v2765_v21 }
0x1a5a   :  { %8976 = vmatpush3.msra.mxu1 %v10717_v61  ;;  %8983 = vmatprep.mubr.msk.f32.mxu1 %vm10071_vm4, %v10070_v1 }
0x1a5b   :  { %8977 = vmatprep.subr.mxu1 %v10070_v1 }
0x1a5c   :  { %8978 = vmatpush3.msra.mxu1 %v10723_v37 }
0x1a5d   :  { %8979 = vmatprep.subr.mxu1 %v10070_v1 }
0x1a5e   :  { %8980 = vmatpush3.msra.mxu1 %v10731_v38 }
0x1a5f   :  { %v9603_v0 = vpop.eup %9602  ;;  %8981 = vmatprep.subr.mxu1 %v10070_v1 }
0x1a60   :  { %v2737_v53 = vmul.f32 %v9603_v0, %v2735_v22  ;;  %8982 = vmatpush3.msra.mxu1 %v10739_v63 }
0x1a61   :  { %8997 = vmatprep.subr.mxu1 %v10070_v1 }
0x1a62   :  { %2739 = vrot.lane.b32.xlu1 %v2737_v53, %s10072_s23 }
0x1ad4   :  { %v2740_v24 = vpop.permute.xlu1 %2739 }
0x1ad5   :  { %v2742_v25 = vadd.f32 %v2740_v24, %v2538_v23 }
0x1ad7   :  { %9604 = vtanh.f32 %v2742_v25  ;;  %v2762_v25 = vld [vmem:[#allocation2 + $0x18] sm:$0xc] }
0x1ad8   :  { %9606 = vpow2.f32 %v8239_v31 }
0x1ae4   :  { %v9605_v26 = vpop.eup %9604 }
0x1ae5   :  { %2746 = vrot.lane.b32.xlu0 %v9605_v26, %s10073_s25  ;;  %v9607_v4 = vpop.eup %9606 }
0x1ae6   :  { %v2731_v55 = vadd.f32 1.0, %v9607_v4 }
0x1ae8   :  { %9608 = vrcp.f32 %v2731_v55 }
0x1af5   :  { %v9609_v33 = vpop.eup %9608 }
0x1af6   :  { %v2744_v7 = vsub.f32 1.0, %v9609_v33  ;;  %v2752_v40 = vmul.f32 %v9609_v33, %v2750_v35 }
0x1b19   :  { %v2834_v56 = vpop.f32.mrf.mxu1 }
0x1b1a   :  { %v2835_v27 = vadd.f32 %v10775_v18, %v2834_v56 }
0x1b1b   :  { %v8963_v28 = vpop.f32.mrf.mxu1 }
0x1b1c   :  { %v2913_v29 = vrot.slane %v2835_v27, 4 }
0x1b1e   :  { %2922 = vrot.lane.b32.xlu1 %v2913_v29, %s10072_s23  ;;  %v2915_v48 = vadd.f32 %v2913_v29, %v2760_v43 }
0x1b20   :  { %v8242_v49 = vmul.f32 -1.442695, %v2915_v48 }
0x1b22   :  { %9610 = vpow2.f32 %v8242_v49  ;;  %v2987_v49 = vld [vmem:[#allocation2] sm:$0xc0] }
0x1b2f   :  { %v9611_v50 = vpop.eup %9610 }
0x1b30   :  { %v2919_v57 = vadd.f32 1.0, %v9611_v50 }
0x1b32   :  { %9612 = vrcp.f32 %v2919_v57 }
0x1b3f   :  { %v9613_v6 = vpop.eup %9612 }
0x1b40   :  { %v2932_v9 = vsub.f32 1.0, %v9613_v6  ;;  %v2940_v15 = vmul.f32 %v9613_v6, %v2938_v13  ;;  %v2988_v13 = vld [vmem:[#allocation2 + $0x10] sm:$0x3] }
0x1b57   :  { %v2747_v36 = vpop.permute.xlu0 %2746 }
0x1b58   :  { %v2749_v41 = vmul.f32 %v2747_v36, %v2744_v7 }
0x1b5a   :  { %v10915_v34 = vadd.f32 %v2752_v40, %v2749_v41 }
0x1b5c   :  { %2759 = vst.msk [vmem:[#allocation4 + $0x8] sm:$0x30] %vm744_vm9, %v10915_v34  ;;  %v2839_v42 = vrot.slane %v10915_v34, 4  ;;  %v2977_v33 = vrot.slane %v10915_v34, 2 }
0x1b5e   :  { %8973 = vmatmul.mubr.msk.f32.vlgmr.msra.gmra.mxu0 %vm206_vm5, %v2839_v42 }
0x1b5f   :  { %8987 = vmatpush3.msra.mxu0 %v10795_v32  ;;  %8994 = vmatprep.mubr.msk.f32.mxu0 %vm10071_vm4, %v10070_v1 }
0x1b60   :  { %8988 = vmatprep.subr.mxu0 %v10070_v1 }
0x1b61   :  { %8989 = vmatpush3.msra.mxu0 %v10800_v10 }
0x1b62   :  { %8990 = vmatprep.subr.mxu0 %v10070_v1 }
0x1b63   :  { %8991 = vmatpush3.msra.mxu0 %v10807_v3 }
0x1b64   :  { %8992 = vmatprep.subr.mxu0 %v10070_v1 }
0x1b65   :  { %8993 = vmatpush3.msra.mxu0 %v10814_v39 }
0x1b66   :  { %9008 = vmatprep.subr.mxu0 %v10070_v1 }
0x1b90   :  { %v2923_v62 = vpop.permute.xlu1 %2922 }
0x1b91   :  { %v2925_v54 = vmul.f32 %v9613_v6, %v2923_v62 }
0x1b93   :  { %2927 = vrot.lane.b32.xlu0 %v2925_v54, %s10072_s23 }
0x1c05   :  { %v2928_v44 = vpop.permute.xlu0 %2927 }
0x1c06   :  { %v2930_v59 = vadd.f32 %v2928_v44, %v2760_v43 }
0x1c08   :  { %9614 = vtanh.f32 %v2930_v59 }
0x1c15   :  { %v9615_v45 = vpop.eup %9614 }
0x1c16   :  { %2934 = vrot.lane.b32.xlu1 %v9615_v45, %s10073_s25 }
0x1c1e   :  { %v2908_v2 = vpop.f32.mrf.mxu0 }
0x1c1f   :  { %v2909_v46 = vadd.f32 %v10848_v5, %v2908_v2 }
0x1c20   :  { %v8974_v8 = vpop.f32.mrf.mxu0 }
0x1c21   :  { %v2943_v12 = vrot.slane %v2909_v46, 6 }
0x1c23   :  { %2944 = vrot.lane.b32.xlu0 %v2943_v12, %s10073_s25  ;;  %2961 = vrot.lane.b32.xlu1 %v2943_v12, %s10074_s26 }
0x1c88   :  { %v2935_v14 = vpop.permute.xlu1 %2934 }
0x1c89   :  { %v2937_v16 = vmul.f32 %v2935_v14, %v2932_v9 }
0x1c8b   :  { %v10937_v17 = vadd.f32 %v2940_v15, %v2937_v16 }
0x1c8d   :  { %v2990_v47 = vrot.slane %v10937_v17, 4 }
0x1c8f   :  { %2991 = vrot.lane.b32.xlu0 %v2990_v47, %s10073_s25 }
0x1c95   :  { %v2945_v19 = vpop.permute.xlu0 %2944  ;;  %v2962_v53 = vpop.permute.xlu1 %2961 }
0x1c96   :  { %v2947_v52 = vadd.f32 %v2945_v19, %v2761_v11  ;;  %v2954_v28 = vadd.f32 %v2945_v19, %v2762_v25 }
0x1c98   :  { %v8243_v20 = vmul.f32 -1.442695, %v2947_v52  ;;  %v8244_v29 = vmul.f32 -1.442695, %v2954_v28 }
0x1c9a   :  { %9616 = vpow2.f32 %v8243_v20 }
0x1ca7   :  { %v9617_v21 = vpop.eup %9616 }
0x1ca8   :  { %v2951_v0 = vadd.f32 1.0, %v9617_v21 }
0x1caa   :  { %9618 = vrcp.f32 %v2951_v0  ;;  %v3165_v0 = vrot.slane %v10937_v17, 6 }
0x1cb7   :  { %v9619_v22 = vpop.eup %9618 }
0x1cb8   :  { %v2964_v23 = vmul.f32 %v9619_v22, %v2962_v53 }
0x1cba   :  { %2966 = vrot.lane.b32.xlu1 %v2964_v23, %s10072_s23 }
0x1d01   :  { %v2992_v24 = vpop.permute.xlu0 %2991 }
0x1d02   :  { %8984 = vmatmul.mubr.msk.f32.vlgmr.msra.gmra.mxu1 %vm206_vm5, %v2992_v24 }
0x1d03   :  { %8998 = vmatpush3.msra.mxu1 %v10717_v61  ;;  %9005 = vmatprep.mubr.msk.f32.mxu1 %vm10071_vm4, %v10070_v1 }
0x1d04   :  { %8999 = vmatprep.subr.mxu1 %v10070_v1 }
0x1d05   :  { %9000 = vmatpush3.msra.mxu1 %v10723_v37 }
0x1d06   :  { %9001 = vmatprep.subr.mxu1 %v10070_v1 }
0x1d07   :  { %9002 = vmatpush3.msra.mxu1 %v10731_v38 }
0x1d08   :  { %9003 = vmatprep.subr.mxu1 %v10070_v1 }
0x1d09   :  { %9004 = vmatpush3.msra.mxu1 %v10739_v63 }
0x1d0a   :  { %9019 = vmatprep.subr.mxu1 %v10070_v1 }
0x1d2c   :  { %v2967_v26 = vpop.permute.xlu1 %2966 }
0x1d2d   :  { %v2969_v56 = vadd.f32 %v2967_v26, %v2762_v25  ;;  %v2989_v26 = vld [vmem:[#allocation2 + $0x18] sm:$0x3] }
0x1d2f   :  { %9620 = vtanh.f32 %v2969_v56 }
0x1d30   :  { %9622 = vpow2.f32 %v8244_v29 }
0x1d3c   :  { %v9621_v27 = vpop.eup %9620 }
0x1d3d   :  { %2973 = vrot.lane.b32.xlu0 %v9621_v27, %s10073_s25  ;;  %v9623_v30 = vpop.eup %9622 }
0x1d3e   :  { %v2958_v31 = vadd.f32 1.0, %v9623_v30 }
0x1d40   :  { %9624 = vrcp.f32 %v2958_v31 }
0x1d4d   :  { %v9625_v4 = vpop.eup %9624 }
0x1d4e   :  { %v2971_v55 = vsub.f32 1.0, %v9625_v4  ;;  %v2979_v35 = vmul.f32 %v9625_v4, %v2977_v33 }
0x1daf   :  { %v2974_v7 = vpop.permute.xlu0 %2973 }
0x1db0   :  { %v2976_v36 = vmul.f32 %v2974_v7, %v2971_v55 }
0x1db2   :  { %v10955_v40 = vadd.f32 %v2979_v35, %v2976_v36 }
0x1db4   :  { %2986 = vst.msk [vmem:[#allocation4 + $0x8] sm:$0xc] %vm742_vm10, %v10955_v40  ;;  %v3066_v41 = vrot.slane %v10955_v40, 2 }
0x1db6   :  { %8995 = vmatmul.mubr.msk.f32.vlgmr.msra.gmra.mxu0 %vm206_vm5, %v3066_v41 }
0x1db7   :  { %9009 = vmatpush3.msra.mxu0 %v10795_v32  ;;  %9016 = vmatprep.mubr.msk.f32.mxu0 %vm10071_vm4, %v10070_v1 }
0x1db8   :  { %9010 = vmatprep.subr.mxu0 %v10070_v1 }
0x1db9   :  { %9011 = vmatpush3.msra.mxu0 %v10800_v10 }
0x1dba   :  { %9012 = vmatprep.subr.mxu0 %v10070_v1 }
0x1dbb   :  { %9013 = vmatpush3.msra.mxu0 %v10807_v3 }
0x1dbc   :  { %9014 = vmatprep.subr.mxu0 %v10070_v1 }
0x1dbd   :  { %9015 = vmatpush3.msra.mxu0 %v10814_v39 }
0x1dbe   :  { %9030 = vmatprep.subr.mxu0 %v10070_v1 }
0x1dc2   :  { %v3061_v34 = vpop.f32.mrf.mxu1 }
0x1dc3   :  { %v3062_v42 = vadd.f32 %v10775_v18, %v3061_v34 }
0x1dc4   :  { %v8985_v43 = vpop.f32.mrf.mxu1 }
0x1dc5   :  { %v3140_v48 = vrot.slane %v3062_v42, 2 }
0x1dc7   :  { %3149 = vrot.lane.b32.xlu1 %v3140_v48, %s10072_s23  ;;  %v3142_v50 = vadd.f32 %v3140_v48, %v2987_v49 }
0x1dc9   :  { %v8247_v57 = vmul.f32 -1.442695, %v3142_v50 }
0x1dcb   :  { %9626 = vpow2.f32 %v8247_v57 }
0x1dd8   :  { %v9627_v6 = vpop.eup %9626 }
0x1dd9   :  { %v3146_v62 = vadd.f32 1.0, %v9627_v6 }
0x1ddb   :  { %9628 = vrcp.f32 %v3146_v62 }
0x1de8   :  { %v9629_v54 = vpop.eup %9628 }
0x1de9   :  { %v3159_v21 = vsub.f32 1.0, %v9629_v54  ;;  %v3167_v53 = vmul.f32 %v9629_v54, %v3165_v0 }
0x1e39   :  { %v3150_v44 = vpop.permute.xlu1 %3149 }
0x1e3a   :  { %v3152_v59 = vmul.f32 %v9629_v54, %v3150_v44 }
0x1e3c   :  { %3154 = vrot.lane.b32.xlu0 %v3152_v59, %s10072_s23  ;;  %v3213_v59 = vld [vmem:[#allocation2] sm:$0xc0] }
0x1e76   :  { %v3135_v45 = vpop.f32.mrf.mxu0 }
0x1e77   :  { %v3136_v2 = vadd.f32 %v10848_v5, %v3135_v45 }
0x1e78   :  { %v8996_v46 = vpop.f32.mrf.mxu0 }
0x1e79   :  { %3170 = vrot.lane.b32.xlu1 %v3136_v2, %s10073_s25 }
0x1e7d   :  { %3187 = vrot.lane.b32.xlu1 %v3136_v2, %s10074_s26 }
0x1eae   :  { %v3155_v8 = vpop.permute.xlu0 %3154 }
0x1eaf   :  { %v3157_v12 = vadd.f32 %v3155_v8, %v2987_v49 }
0x1eb1   :  { %9630 = vtanh.f32 %v3157_v12 }
0x1ebe   :  { %v9631_v9 = vpop.eup %9630 }
0x1ebf   :  { %3161 = vrot.lane.b32.xlu0 %v9631_v9, %s10073_s25 }
0x1eeb   :  { %v3171_v14 = vpop.permute.xlu1 %3170 }
0x1eec   :  { %v3173_v15 = vadd.f32 %v3171_v14, %v2988_v13  ;;  %v3180_v30 = vadd.f32 %v3171_v14, %v2989_v26 }
0x1eee   :  { %v8248_v16 = vmul.f32 -1.442695, %v3173_v15  ;;  %v8249_v31 = vmul.f32 -1.442695, %v3180_v30  ;;  %v11047_v30 = vld [vmem:[%s12231_s7 + $0x50] sm:$0xff] }
0x1eef   :  { %v3188_v52 = vpop.permute.xlu1 %3187 }
0x1ef0   :  { %9632 = vpow2.f32 %v8248_v16 }
0x1efd   :  { %v9633_v47 = vpop.eup %9632 }
0x1efe   :  { %v3177_v11 = vadd.f32 1.0, %v9633_v47 }
0x1f00   :  { %9634 = vrcp.f32 %v3177_v11 }
0x1f0d   :  { %v9635_v19 = vpop.eup %9634 }
0x1f0e   :  { %v3190_v20 = vmul.f32 %v9635_v19, %v3188_v52  ;;  %v3214_v19 = vld [vmem:[#allocation2 + $0x8] sm:$0xc0] }
0x1f10   :  { %3192 = vrot.lane.b32.xlu1 %v3190_v20, %s10072_s23 }
0x1f31   :  { %v3162_v22 = vpop.permute.xlu0 %3161 }
0x1f32   :  { %v3164_v23 = vmul.f32 %v3162_v22, %v3159_v21 }
0x1f34   :  { %v10982_v24 = vadd.f32 %v3167_v53, %v3164_v23 }
0x1f36   :  { %v3215_v25 = vrot.slane %v10982_v24, 6 }
0x1f38   :  { %3216 = vrot.lane.b32.xlu0 %v3215_v25, %s10073_s25 }
0x1f82   :  { %v3193_v56 = vpop.permute.xlu1 %3192 }
0x1f83   :  { %v3195_v27 = vadd.f32 %v3193_v56, %v2989_v26 }
0x1f85   :  { %9636 = vtanh.f32 %v3195_v27 }
0x1f86   :  { %9638 = vpow2.f32 %v8249_v31  ;;  %v11054_v31 = vld [vmem:[%s12231_s7 + $0x48] sm:$0xff] }
0x1f92   :  { %v9637_v28 = vpop.eup %9636 }
0x1f93   :  { %3199 = vrot.lane.b32.xlu0 %v9637_v28, %s10073_s25 }
0x1faa   :  { %v3217_v29 = vpop.permute.xlu0 %3216 }
0x1fab   :  { %9006 = vmatmul.mubr.msk.f32.vlgmr.msra.gmra.mxu1 %vm206_vm5, %v3217_v29 }
0x1fac   :  { %9020 = vmatpush3.msra.mxu1 %v10717_v61  ;;  %9027 = vmatprep.mubr.msk.f32.mxu1 %vm10071_vm4, %v10070_v1  ;;  %v9639_v61 = vpop.eup %9638 }
0x1fad   :  { %9021 = vmatprep.subr.mxu1 %v10070_v1  ;;  %v3184_v4 = vadd.f32 1.0, %v9639_v61 }
0x1fae   :  { %9022 = vmatpush3.msra.mxu1 %v10723_v37 }
0x1faf   :  { %9023 = vmatprep.subr.mxu1 %v10070_v1  ;;  %9640 = vrcp.f32 %v3184_v4  ;;  %v11061_v4 = vld [vmem:[%s12231_s7 + $0x40] sm:$0xff] }
0x1fb0   :  { %9024 = vmatpush3.msra.mxu1 %v10731_v38 }
0x1fb1   :  { %9025 = vmatprep.subr.mxu1 %v10070_v1 }
0x1fb2   :  { %9026 = vmatpush3.msra.mxu1 %v10739_v63 }
0x1fb3   :  { %9041 = vmatprep.subr.mxu1 %v10070_v1 }
0x1fbc   :  { %v9641_v55 = vpop.eup %9640 }
0x1fbd   :  { %v3197_v33 = vsub.f32 1.0, %v9641_v55  ;;  %v3204_v37 = vmul.f32 %v9641_v55, %v3066_v41  ;;  %v3212_v41 = vld [vmem:[#allocation2 + $0x10] sm:$0x3] }
0x2005   :  { %v3200_v7 = vpop.permute.xlu0 %3199 }
0x2006   :  { %v3202_v35 = vmul.f32 %v3200_v7, %v3197_v33 }
0x2008   :  { %v11002_v38 = vadd.f32 %v3204_v37, %v3202_v35 }
0x200a   :  { %3211 = vst.msk [vmem:[#allocation4 + $0x8] sm:$0x3] %vm516_vm8, %v11002_v38  ;;  %9017 = vmatmul.mubr.msk.f32.vlgmr.msra.gmra.mxu0 %vm206_vm5, %v11002_v38  ;;  %v3425_v33 = vrot.slane %v11002_v38, 2 }
0x200b   :  { %9031 = vmatpush3.msra.mxu0 %v10795_v32  ;;  %9038 = vmatprep.mubr.msk.f32.mxu0 %vm10071_vm4, %v10070_v1 }
0x200c   :  { %9032 = vmatprep.subr.mxu0 %v10070_v1 }
0x200d   :  { %9033 = vmatpush3.msra.mxu0 %v10800_v10 }
0x200e   :  { %9034 = vmatprep.subr.mxu0 %v10070_v1 }
0x200f   :  { %9035 = vmatpush3.msra.mxu0 %v10807_v3 }
0x2010   :  { %9036 = vmatprep.subr.mxu0 %v10070_v1 }
0x2011   :  { %9037 = vmatpush3.msra.mxu0 %v10814_v39 }
0x2012   :  { %9052 = vmatprep.subr.mxu0 %v10070_v1 }
0x206b   :  { %v3286_v63 = vpop.f32.mrf.mxu1 }
0x206c   :  { %v3287_v36 = vadd.f32 %v10775_v18, %v3286_v63 }
0x206d   :  { %v9007_v40 = vpop.f32.mrf.mxu1 }
0x206e   :  { %3371 = vrot.lane.b32.xlu1 %v3287_v36, %s10072_s23  ;;  %v3363_v34 = vadd.f32 %v3287_v36, %v3212_v41 }
0x2070   :  { %v8252_v42 = vmul.f32 -1.442695, %v3363_v34 }
0x2072   :  { %9642 = vpow2.f32 %v8252_v42 }
0x207f   :  { %v9643_v49 = vpop.eup %9642 }
0x2080   :  { %v3367_v6 = vadd.f32 1.0, %v9643_v49 }
0x2082   :  { %9644 = vrcp.f32 %v3367_v6 }
0x208f   :  { %v9645_v62 = vpop.eup %9644 }
0x2090   :  { %v3381_v11 = vsub.f32 1.0, %v9645_v62  ;;  %v3388_v21 = vmul.f32 %v9645_v62, %v3215_v25  ;;  %v11038_v25 = vld [vmem:[%s12231_s7 + $0x58] sm:$0xff] }
0x20ca   :  { %v3359_v43 = vpop.f32.mrf.mxu0 }
0x20cb   :  { %v3360_v48 = vadd.f32 %v10848_v5, %v3359_v43 }
0x20cc   :  { %v9018_v50 = vpop.f32.mrf.mxu0 }
0x20cd   :  { %v3391_v57 = vrot.slane %v3360_v48, 2 }
0x20cf   :  { %3392 = vrot.lane.b32.xlu1 %v3391_v57, %s10073_s25 }
0x20e0   :  { %v3372_v54 = vpop.permute.xlu1 %3371 }
0x20e1   :  { %v3374_v44 = vmul.f32 %v9645_v62, %v3372_v54  ;;  %v3436_v54 = vld [vmem:[#allocation2] sm:$0x30] }
0x20e3   :  { %3376 = vrot.lane.b32.xlu0 %v3374_v44, %s10072_s23 }
0x20e7   :  { %3409 = vrot.lane.b32.xlu0 %v3391_v57, %s10074_s26 }
0x2141   :  { %v3393_v45 = vpop.permute.xlu1 %3392 }
0x2142   :  { %v3395_v2 = vadd.f32 %v3393_v45, %v3213_v59  ;;  %v3402_v26 = vadd.f32 %v3393_v45, %v3214_v19 }
0x2144   :  { %v8253_v46 = vmul.f32 -1.442695, %v3395_v2  ;;  %v8254_v56 = vmul.f32 -1.442695, %v3402_v26 }
0x2146   :  { %9646 = vpow2.f32 %v8253_v46 }
0x2153   :  { %v9647_v8 = vpop.eup %9646 }
0x2154   :  { %v3399_v12 = vadd.f32 1.0, %v9647_v8 }
0x2155   :  { %v3377_v9 = vpop.permute.xlu0 %3376 }
0x2156   :  { %9648 = vrcp.f32 %v3399_v12  ;;  %v3379_v13 = vadd.f32 %v3377_v9, %v3212_v41 }
0x2158   :  { %9650 = vtanh.f32 %v3379_v13 }
0x2159   :  { %v3410_v15 = vpop.permute.xlu0 %3409 }
0x2163   :  { %v9649_v14 = vpop.eup %9648 }
0x2164   :  { %v3412_v16 = vmul.f32 %v9649_v14, %v3410_v15  ;;  %v3437_v15 = vld [vmem:[#allocation2 + $0x8] sm:$0x30] }
0x2165   :  { %v9651_v47 = vpop.eup %9650 }
0x2166   :  { %3383 = vrot.lane.b32.xlu1 %v9651_v47, %s10073_s25  ;;  %3414 = vrot.lane.b32.xlu0 %v3412_v16, %s10072_s23 }
0x21d8   :  { %v3384_v52 = vpop.permute.xlu1 %3383  ;;  %v3415_v20 = vpop.permute.xlu0 %3414 }
0x21d9   :  { %v3386_v0 = vmul.f32 %v3384_v52, %v3381_v11  ;;  %v3417_v22 = vadd.f32 %v3415_v20, %v3214_v19 }
0x21db   :  { %v11028_v53 = vadd.f32 %v3388_v21, %v3386_v0  ;;  %9652 = vtanh.f32 %v3417_v22 }
0x21dc   :  { %9654 = vpow2.f32 %v8254_v56 }
0x21dd   :  { %3430 = vrot.lane.b32.xlu1 %v11028_v53, %s10073_s25  ;;  %v3610_v11 = vrot.slane %v11028_v53, 6 }
0x21e8   :  { %v9653_v23 = vpop.eup %9652 }
0x21e9   :  { %3421 = vrot.lane.b32.xlu0 %v9653_v23, %s10073_s25  ;;  %v9655_v27 = vpop.eup %9654 }
0x21ea   :  { %v3406_v28 = vadd.f32 1.0, %v9655_v27 }
0x21ec   :  { %9656 = vrcp.f32 %v3406_v28 }
0x21f9   :  { %v9657_v61 = vpop.eup %9656 }
0x21fa   :  { %v3419_v55 = vsub.f32 1.0, %v9657_v61  ;;  %v3427_v37 = vmul.f32 %v9657_v61, %v3425_v33 }
0x224f   :  { %v3431_v29 = vpop.permute.xlu1 %3430 }
0x2250   :  { %3433 = vst.msk [vmem:[#allocation3 + $0x8] sm:$0x3] %vm516_vm8, %v3431_v29  ;;  %9028 = vmatmul.mubr.msk.f32.vlgmr.msra.gmra.mxu1 %vm206_vm5, %v3431_v29 }
0x2251   :  { %9042 = vmatpush3.msra.mxu1 %v11038_v25  ;;  %9049 = vmatprep.mubr.msk.f32.mxu1 %vm10071_vm4, %v10070_v1 }
0x2252   :  { %9043 = vmatprep.subr.mxu1 %v10070_v1 }
0x2253   :  { %9044 = vmatpush3.msra.mxu1 %v11047_v30 }
0x2254   :  { %9045 = vmatprep.subr.mxu1 %v10070_v1 }
0x2255   :  { %9046 = vmatpush3.msra.mxu1 %v11054_v31 }
0x2256   :  { %9047 = vmatprep.subr.mxu1 %v10070_v1 }
0x2257   :  { %9048 = vmatpush3.msra.mxu1 %v11061_v4 }
0x2258   :  { %9063 = vmatprep.subr.mxu1 %v10070_v1 }
0x225b   :  { %v3422_v7 = vpop.permute.xlu0 %3421 }
0x225c   :  { %v3424_v35 = vmul.f32 %v3422_v7, %v3419_v55 }
0x225e   :  { %v11066_v63 = vadd.f32 %v3427_v37, %v3424_v35 }
0x2260   :  { %3434 = vst.msk [vmem:[#allocation4] sm:$0xc0] %vm518_vm7, %v11066_v63  ;;  %v3511_v36 = vrot.slane %v11066_v63, 6  ;;  %v3649_v61 = vrot.slane %v11066_v63, 2 }
0x2262   :  { %9039 = vmatmul.mubr.msk.f32.vlgmr.msra.gmra.mxu0 %vm206_vm5, %v3511_v36  ;;  %v9979_v36 = vld [vmem:[%s12231_s7 + $0x60] sm:$0xff] }
0x2263   :  { %9053 = vmatpush3.msra.mxu0 %v10795_v32  ;;  %9060 = vmatprep.mubr.msk.f32.mxu0 %vm10071_vm4, %v10070_v1 }
0x2264   :  { %9054 = vmatprep.subr.mxu0 %v10070_v1 }
0x2265   :  { %9055 = vmatpush3.msra.mxu0 %v10800_v10 }
0x2266   :  { %9056 = vmatprep.subr.mxu0 %v10070_v1 }
0x2267   :  { %9057 = vmatpush3.msra.mxu0 %v10807_v3  ;;  %v3435_v3 = vld [vmem:[#allocation2 + $0x10] sm:$0xc] }
0x2268   :  { %9058 = vmatprep.subr.mxu0 %v10070_v1 }
0x2269   :  { %9059 = vmatpush3.msra.mxu0 %v10814_v39 }
0x226a   :  { %9074 = vmatprep.subr.mxu0 %v10070_v1 }
0x2310   :  { %v3506_v38 = vpop.f32.mrf.mxu1 }
0x2311   :  { %v3507_v32 = vadd.f32 %v10775_v18, %v3506_v38  ;;  %v11133_v38 = vld [vmem:[%s12232_s8 + $0x2] ss:$0 sm:$0xff] }
0x2312   :  { %v9029_v40 = vpop.f32.mrf.mxu1 }
0x2313   :  { %v3585_v41 = vrot.slane %v3507_v32, 6 }
0x2315   :  { %3594 = vrot.lane.b32.xlu1 %v3585_v41, %s10072_s23  ;;  %v3587_v48 = vadd.f32 %v3585_v41, %v3435_v3 }
0x2317   :  { %v8257_v49 = vmul.f32 -1.442695, %v3587_v48 }
0x2319   :  { %9658 = vpow2.f32 %v8257_v49 }
0x2322   :  { %v3580_v34 = vpop.f32.mrf.mxu0 }
0x2323   :  { %v3581_v10 = vadd.f32 %v10848_v5, %v3580_v34 }
0x2324   :  { %v9040_v42 = vpop.f32.mrf.mxu0 }
0x2325   :  { %v3615_v43 = vrot.slane %v3581_v10, 4 }
0x2326   :  { %v9659_v39 = vpop.eup %9658 }
0x2327   :  { %3616 = vrot.lane.b32.xlu1 %v3615_v43, %s10073_s25  ;;  %v3591_v50 = vadd.f32 1.0, %v9659_v39 }
0x2329   :  { %9660 = vrcp.f32 %v3591_v50 }
0x2336   :  { %v9661_v57 = vpop.eup %9660 }
0x2337   :  { %v3604_v19 = vsub.f32 1.0, %v9661_v57  ;;  %v3612_v20 = vmul.f32 %v9661_v57, %v3610_v11 }
0x2387   :  { %v3595_v18 = vpop.permute.xlu1 %3594 }
0x2388   :  { %v3597_v6 = vmul.f32 %v9661_v57, %v3595_v18 }
0x238a   :  { %3599 = vrot.lane.b32.xlu0 %v3597_v6, %s10072_s23 }
0x238e   :  { %3633 = vrot.lane.b32.xlu0 %v3615_v43, %s10074_s26 }
0x2399   :  { %v3617_v62 = vpop.permute.xlu1 %3616 }
0x239a   :  { %v3619_v44 = vadd.f32 %v3617_v62, %v3436_v54  ;;  %v3626_v26 = vadd.f32 %v3617_v62, %v3437_v15  ;;  %v3660_v62 = vld [vmem:[#allocation2] sm:$0xc] }
0x239c   :  { %v8258_v59 = vmul.f32 -1.442695, %v3619_v44  ;;  %v8259_v56 = vmul.f32 -1.442695, %v3626_v26 }
0x239e   :  { %9662 = vpow2.f32 %v8258_v59 }
0x23ab   :  { %v9663_v45 = vpop.eup %9662 }
0x23ac   :  { %v3623_v2 = vadd.f32 1.0, %v9663_v45 }
0x23ae   :  { %9664 = vrcp.f32 %v3623_v2 }
0x23bb   :  { %v9665_v12 = vpop.eup %9664 }
0x23fc   :  { %v3600_v46 = vpop.permute.xlu0 %3599 }
0x23fd   :  { %v3602_v8 = vadd.f32 %v3600_v46, %v3435_v3  ;;  %v3659_v3 = vld [vmem:[#allocation2 + $0x10] sm:$0x30] }
0x23ff   :  { %9666 = vtanh.f32 %v3602_v8 }
0x2400   :  { %v3634_v9 = vpop.permute.xlu0 %3633 }
0x2401   :  { %v3636_v13 = vmul.f32 %v9665_v12, %v3634_v9 }
0x2403   :  { %3638 = vrot.lane.b32.xlu0 %v3636_v13, %s10072_s23 }
0x240c   :  { %v9667_v14 = vpop.eup %9666 }
0x240d   :  { %3606 = vrot.lane.b32.xlu1 %v9667_v14, %s10073_s25  ;;  %v3661_v14 = vld [vmem:[#allocation2 + $0x8] sm:$0xc] }
0x2475   :  { %v3639_v16 = vpop.permute.xlu0 %3638 }
0x2476   :  { %v3641_v47 = vadd.f32 %v3639_v16, %v3437_v15 }
0x2478   :  { %9668 = vtanh.f32 %v3641_v47 }
0x2479   :  { %9670 = vpow2.f32 %v8259_v56 }
0x247f   :  { %v3607_v52 = vpop.permute.xlu1 %3606 }
0x2480   :  { %v3609_v21 = vmul.f32 %v3607_v52, %v3604_v19 }
0x2482   :  { %v11091_v0 = vadd.f32 %v3612_v20, %v3609_v21 }
0x2484   :  { %v3662_v22 = vrot.slane %v11091_v0, 2  ;;  %v3837_v20 = vrot.slane %v11091_v0, 6 }
0x2485   :  { %v9669_v23 = vpop.eup %9668 }
0x2486   :  { %3663 = vrot.lane.b32.xlu1 %v3662_v22, %s10073_s25  ;;  %3645 = vrot.lane.b32.xlu0 %v9669_v23, %s10073_s25  ;;  %v9671_v27 = vpop.eup %9670 }
0x2487   :  { %v3630_v28 = vadd.f32 1.0, %v9671_v27 }
0x2489   :  { %9672 = vrcp.f32 %v3630_v28 }
0x2496   :  { %v9673_v53 = vpop.eup %9672 }
0x2497   :  { %v3643_v29 = vsub.f32 1.0, %v9673_v53  ;;  %v3651_v7 = vmul.f32 %v9673_v53, %v3649_v61 }
0x24f8   :  { %v3664_v55 = vpop.permute.xlu1 %3663  ;;  %v3646_v33 = vpop.permute.xlu0 %3645 }
0x24f9   :  { %v3648_v37 = vmul.f32 %v3646_v33, %v3643_v29  ;;  %9050 = vmatmul.mubr.msk.f32.vlgmr.msra.gmra.mxu1 %vm206_vm5, %v3664_v55 }
0x24fa   :  { %9064 = vmatpush3.msra.mxu1 %v11038_v25  ;;  %9071 = vmatprep.mubr.msk.f32.mxu1 %vm10071_vm4, %v10070_v1  ;;  %v9976_v25 = vld [vmem:[%s12231_s7 + $0x78] sm:$0xff] }
0x24fb   :  { %v11101_v35 = vadd.f32 %v3651_v7, %v3648_v37  ;;  %9065 = vmatprep.subr.mxu1 %v10070_v1 }
0x24fc   :  { %9066 = vmatpush3.msra.mxu1 %v11047_v30  ;;  %v9977_v30 = vld [vmem:[%s12231_s7 + $0x70] sm:$0xff] }
0x24fd   :  { %3658 = vst.msk [vmem:[#allocation4] sm:$0x30] %vm744_vm9, %v11101_v35  ;;  %v3738_v63 = vrot.slane %v11101_v35, 4  ;;  %9067 = vmatprep.subr.mxu1 %v10070_v1  ;;  %v3876_v61 = vrot.slane %v11101_v35, 2 }
0x24fe   :  { %9068 = vmatpush3.msra.mxu1 %v11054_v31  ;;  %v9978_v31 = vld [vmem:[%s12231_s7 + $0x68] sm:$0xff] }
0x24ff   :  { %9061 = vmatmul.mubr.msk.f32.vlgmr.msra.gmra.mxu0 %vm206_vm5, %v3738_v63  ;;  %9069 = vmatprep.subr.mxu1 %v10070_v1 }
0x2500   :  { %9075 = vmatpush3.msra.mxu0 %v9976_v25  ;;  %9082 = vmatprep.mubr.msk.f32.mxu0 %vm10071_vm4, %v10070_v1 }
0x2501   :  { %9076 = vmatprep.subr.mxu0 %v10070_v1  ;;  %9070 = vmatpush3.msra.mxu1 %v11061_v4 }
0x2502   :  { %9077 = vmatpush3.msra.mxu0 %v9977_v30  ;;  %v9981_v30 = vld [vmem:[%s12232_s8 + $0x3] ss:$0 sm:$0xff] }
0x2503   :  { %9078 = vmatprep.subr.mxu0 %v10070_v1 }
0x2504   :  { %9079 = vmatpush3.msra.mxu0 %v9978_v31 }
0x2505   :  { %9080 = vmatprep.subr.mxu0 %v10070_v1 }
0x2506   :  { %9081 = vmatpush3.msra.mxu0 %v9979_v36 }
0x25b9   :  { %v3733_v4 = vpop.f32.mrf.mxu1 }
0x25ba   :  { %v3734_v32 = vadd.f32 %v11133_v38, %v3733_v4 }
0x25bb   :  { %v9051_v40 = vpop.f32.mrf.mxu1 }
0x25bc   :  { %v3812_v41 = vrot.slane %v3734_v32, 4 }
0x25be   :  { %3821 = vrot.lane.b32.xlu1 %v3812_v41, %s10072_s23  ;;  %v3814_v48 = vadd.f32 %v3812_v41, %v3659_v3 }
0x25bf   :  { %v3807_v34 = vpop.f32.mrf.mxu0 }
0x25c0   :  { %v3808_v10 = vadd.f32 %v10848_v5, %v3807_v34  ;;  %v8262_v49 = vmul.f32 -1.442695, %v3814_v48  ;;  %v3886_v34 = vld [vmem:[#allocation2 + $0x10] sm:$0xc0] }
0x25c1   :  { %v9062_v42 = vpop.f32.mrf.mxu0 }
0x25c2   :  { %v3842_v43 = vrot.slane %v3808_v10, 6  ;;  %9674 = vpow2.f32 %v8262_v49 }
0x25c4   :  { %3843 = vrot.lane.b32.xlu0 %v3842_v43, %s10073_s25 }
0x25c8   :  { %3860 = vrot.lane.b32.xlu0 %v3842_v43, %s10074_s26  ;;  %v3887_v43 = vld [vmem:[#allocation2] sm:$0x3] }
0x25cf   :  { %v9675_v39 = vpop.eup %9674 }
0x25d0   :  { %v3818_v50 = vadd.f32 1.0, %v9675_v39 }
0x25d2   :  { %9676 = vrcp.f32 %v3818_v50 }
0x25df   :  { %v9677_v57 = vpop.eup %9676 }
0x25e0   :  { %v3831_v52 = vsub.f32 1.0, %v9677_v57  ;;  %v3839_v22 = vmul.f32 %v9677_v57, %v3837_v20  ;;  %v4139_v20 = vld [vmem:[%s12229_s5 + $0xf0] sm:$0xff] }
0x2630   :  { %v3822_v18 = vpop.permute.xlu1 %3821 }
0x2631   :  { %v3824_v6 = vmul.f32 %v9677_v57, %v3822_v18 }
0x2633   :  { %3826 = vrot.lane.b32.xlu1 %v3824_v6, %s10072_s23 }
0x2636   :  { %v3844_v5 = vpop.permute.xlu0 %3843 }
0x2637   :  { %v3846_v54 = vadd.f32 %v3844_v5, %v3660_v62  ;;  %v3853_v11 = vadd.f32 %v3844_v5, %v3661_v14 }
0x2639   :  { %v8263_v44 = vmul.f32 -1.442695, %v3846_v54  ;;  %v8264_v19 = vmul.f32 -1.442695, %v3853_v11  ;;  %v4126_v11 = vld [vmem:[%s12229_s5 + $0x88] sm:$0xff] }
0x263a   :  { %v3861_v46 = vpop.permute.xlu0 %3860 }
0x263b   :  { %9678 = vpow2.f32 %v8263_v44 }
0x2648   :  { %v9679_v59 = vpop.eup %9678 }
0x2649   :  { %v3850_v45 = vadd.f32 1.0, %v9679_v59 }
0x264b   :  { %9680 = vrcp.f32 %v3850_v45 }
0x2658   :  { %v9681_v2 = vpop.eup %9680 }
0x2659   :  { %v3863_v8 = vmul.f32 %v9681_v2, %v3861_v46  ;;  %v3888_v46 = vld [vmem:[#allocation2 + $0x8] sm:$0x3] }
0x265b   :  { %3865 = vrot.lane.b32.xlu0 %v3863_v8, %s10072_s23 }
0x26a5   :  { %v3827_v12 = vpop.permute.xlu1 %3826 }
0x26a6   :  { %v3829_v9 = vadd.f32 %v3827_v12, %v3659_v3 }
0x26a8   :  { %9682 = vtanh.f32 %v3829_v9  ;;  %v4132_v9 = vld [vmem:[%s12229_s5 + $0xb8] sm:$0xff] }
0x26a9   :  { %4258 = vmatprep.subr.mxu0 %v4132_v9 }
0x26b5   :  { %v9683_v13 = vpop.eup %9682 }
0x26b6   :  { %3833 = vrot.lane.b32.xlu1 %v9683_v13, %s10073_s25 }
0x26cd   :  { %v3866_v15 = vpop.permute.xlu0 %3865 }
0x26ce   :  { %v3868_v16 = vadd.f32 %v3866_v15, %v3661_v14 }
0x26d0   :  { %9684 = vtanh.f32 %v3868_v16  ;;  %v4128_v16 = vld [vmem:[%s12229_s5 + $0x98] sm:$0xff] }
0x26d1   :  { %9686 = vpow2.f32 %v8264_v19  ;;  %v4140_v19 = vld [vmem:[%s12229_s5 + $0xf8] sm:$0xff] }
0x26d2   :  { %4175 = vmatprep.subr.mxu1 %v4140_v19 }
0x26dd   :  { %v9685_v47 = vpop.eup %9684 }
0x26de   :  { %3872 = vrot.lane.b32.xlu0 %v9685_v47, %s10073_s25  ;;  %v9687_v27 = vpop.eup %9686  ;;  %v4127_v47 = vld [vmem:[%s12229_s5 + $0x90] sm:$0xff] }
0x26df   :  { %v3857_v28 = vadd.f32 1.0, %v9687_v27  ;;  %v4134_v27 = vld [vmem:[%s12229_s5 + $0xc8] sm:$0xff] }
0x26e1   :  { %9688 = vrcp.f32 %v3857_v28  ;;  %v4133_v28 = vld [vmem:[%s12229_s5 + $0xc0] sm:$0xff] }
0x26ee   :  { %v9689_v53 = vpop.eup %9688 }
0x26ef   :  { %v3870_v29 = vsub.f32 1.0, %v9689_v53  ;;  %v3878_v33 = vmul.f32 %v9689_v53, %v3876_v61 }
0x2728   :  { %v3834_v21 = vpop.permute.xlu1 %3833 }
0x2729   :  { %v3836_v23 = vmul.f32 %v3834_v21, %v3831_v52  ;;  %v4125_v52 = vld [vmem:[%s12229_s5 + $0x80] sm:$0xff]  ;;  %v4138_v21 = vld [vmem:[%s12229_s5 + $0xe8] sm:$0xff] }
0x272b   :  { %v11145_v26 = vadd.f32 %v3839_v22, %v3836_v23  ;;  %v4137_v22 = vld [vmem:[%s12229_s5 + $0xe0] sm:$0xff]  ;;  %v4136_v23 = vld [vmem:[%s12229_s5 + $0xd8] sm:$0xff] }
0x272d   :  { %v3889_v56 = vrot.slane %v11145_v26, 4 }
0x272f   :  { %3890 = vrot.lane.b32.xlu1 %v3889_v56, %s10073_s25  ;;  %v4135_v56 = vld [vmem:[%s12229_s5 + $0xd0] sm:$0xff] }
0x2750   :  { %v3873_v55 = vpop.permute.xlu0 %3872 }
0x2751   :  { %v3875_v7 = vmul.f32 %v3873_v55, %v3870_v29 }
0x2753   :  { %v11150_v37 = vadd.f32 %v3878_v33, %v3875_v7  ;;  %v4064_v7 = vrot.slane %v11145_v26, 6 }
0x2755   :  { %3885 = vst.msk [vmem:[#allocation4] sm:$0xc] %vm742_vm10, %v11150_v37  ;;  %v3965_v63 = vrot.slane %v11150_v37, 2  ;;  %v11261_v37 = vld [vmem:[%s12231_s7 + $0xb0] sm:$0xff] }
0x2757   :  { %9083 = vmatmul.mubr.msk.f32.vlgmr.msra.gmra.mxu0 %vm206_vm5, %v3965_v63 }
0x2758   :  { %4298 = vmatprep.mubr.f32.mxu0 %v10070_v1 }
0x27a1   :  { %v3891_v25 = vpop.permute.xlu1 %3890 }
0x27a2   :  { %9072 = vmatmul.mubr.msk.f32.vlgmr.msra.gmra.mxu1 %vm206_vm5, %v3891_v25 }
0x27a3   :  { %4215 = vmatprep.mubr.f32.mxu1 %v10070_v1  ;;  %4176 = vmatpush1.msra.mxu1 %v4139_v20 }
0x27a4   :  { %4177 = vmatprep.subr.mxu1 %v4138_v21 }
0x27a5   :  { %4178 = vmatpush1.msra.mxu1 %v4137_v22 }
0x27a6   :  { %4179 = vmatprep.subr.mxu1 %v4136_v23  ;;  %v11358_v23 = vld [vmem:[%s12232_s8 + $0x5] ss:$0 sm:$0xff] }
0x27a7   :  { %4180 = vmatpush1.msra.mxu1 %v4135_v56 }
0x27a8   :  { %4181 = vmatprep.subr.mxu1 %v4134_v27 }
0x27a9   :  { %4182 = vmatpush1.msra.mxu1 %v4133_v28 }
0x27aa   :  { %9085 = vmatprep.subr.mxu1 %v10070_v1 }
0x2817   :  { %v4034_v35 = vpop.f32.mrf.mxu0 }
0x2818   :  { %v4035_v31 = vadd.f32 %v9981_v30, %v4034_v35 }
0x2819   :  { %v9084_v36 = vpop.f32.mrf.mxu0 }
0x281a   :  { %4069 = vrot.lane.b32.xlu0 %v4035_v31, %s10073_s25 }
0x2862   :  { %v3960_v4 = vpop.f32.mrf.mxu1 }
0x2863   :  { %v3961_v32 = vadd.f32 %v11133_v38, %v3960_v4 }
0x2864   :  { %v9073_v40 = vpop.f32.mrf.mxu1 }
0x2865   :  { %v4039_v41 = vrot.slane %v3961_v32, 2 }
0x2867   :  { %4048 = vrot.lane.b32.xlu1 %v4039_v41, %s10072_s23  ;;  %v4041_v10 = vadd.f32 %v4039_v41, %v3886_v34 }
0x2869   :  { %v8267_v3 = vmul.f32 -1.442695, %v4041_v10 }
0x286b   :  { %4086 = vrot.lane.b32.xlu1 %v4035_v31, %s10074_s26  ;;  %9690 = vpow2.f32 %v8267_v3  ;;  %v11276_v3 = vld [vmem:[%s12231_s7 + $0xa0] sm:$0xff] }
0x2878   :  { %v9691_v39 = vpop.eup %9690 }
0x2879   :  { %v4045_v50 = vadd.f32 1.0, %v9691_v39  ;;  %v11290_v39 = vld [vmem:[%s12231_s7 + $0x90] sm:$0xff] }
0x288c   :  { %v11168_v42 = vpop.permute.xlu0 %4069 }
0x288d   :  { %v4072_v48 = vadd.f32 %v11168_v42, %v3887_v43 }
0x288f   :  { %v8268_v49 = vmul.f32 -1.442695, %v4072_v48  ;;  %v11282_v48 = vld [vmem:[%s12231_s7 + $0x98] sm:$0xff] }
0x2891   :  { %9692 = vpow2.f32 %v8268_v49 }
0x2892   :  { %9694 = vrcp.f32 %v4045_v50  ;;  %v11299_v50 = vld [vmem:[%s12231_s7 + $0x88] sm:$0xff] }
0x289e   :  { %v9693_v38 = vpop.eup %9692 }
0x289f   :  { %v4076_v57 = vadd.f32 1.0, %v9693_v38  ;;  %v11171_v18 = vpop.eup %9694  ;;  %v4144_v38 = vld [vmem:[#allocation4 + $0x8] sm:$0xff] }
0x28a0   :  { %v4058_v33 = vsub.f32 1.0, %v11171_v18  ;;  %v4066_v35 = vmul.f32 %v11171_v18, %v4064_v7 }
0x28a1   :  { %9696 = vrcp.f32 %v4076_v57  ;;  %v11307_v57 = vld [vmem:[%s12231_s7 + $0x80] sm:$0xff] }
0x28ae   :  { %v9697_v5 = vpop.eup %9696 }
0x28d9   :  { %v4049_v6 = vpop.permute.xlu1 %4048 }
0x28da   :  { %v4051_v62 = vmul.f32 %v11171_v18, %v4049_v6 }
0x28dc   :  { %4053 = vrot.lane.b32.xlu0 %v4051_v62, %s10072_s23  ;;  %v8270_v62 = vld [vmem:[%s12230_s6 + $0x2] ss:$4 sm:$0x3] }
0x28dd   :  { %v4087_v54 = vpop.permute.xlu1 %4086 }
0x28de   :  { %v4089_v44 = vmul.f32 %v9697_v5, %v4087_v54  ;;  %v4315_v54 = vrot.slane %v8270_v62, %v10315_v58 }
0x28e0   :  { %4091 = vrot.lane.b32.xlu1 %v4089_v44, %s10072_s23 }
0x28e4   :  { %2755 = vrot.lane.b32.xlu1 %v10895_v51, %s10073_s25  ;;  %v4131_v51 = vld [vmem:[%s12229_s5 + $0xb0] sm:$0xff] }
0x28e5   :  { %4259 = vmatpush1.msra.mxu0 %v4131_v51 }
0x28e8   :  { %3207 = vrot.lane.b32.xlu1 %v10982_v24, %s10073_s25  ;;  %v4130_v24 = vld [vmem:[%s12229_s5 + $0xa8] sm:$0xff] }
0x28e9   :  { %4260 = vmatprep.subr.mxu0 %v4130_v24 }
0x28ec   :  { %3654 = vrot.lane.b32.xlu1 %v11091_v0, %s10073_s25  ;;  %v4129_v0 = vld [vmem:[%s12229_s5 + $0xa0] sm:$0xff] }
0x28ed   :  { %4261 = vmatpush1.msra.mxu0 %v4129_v0  ;;  %v11350_v0 = vld [vmem:[%s12232_s8 + $0x4] ss:$0 sm:$0xff] }
0x28ee   :  { %4262 = vmatprep.subr.mxu0 %v4128_v16 }
0x28ef   :  { %4263 = vmatpush1.msra.mxu0 %v4127_v47 }
0x28f0   :  { %4264 = vmatprep.subr.mxu0 %v4126_v11 }
0x28f1   :  { %4265 = vmatpush1.msra.mxu0 %v4125_v52 }
0x28f2   :  { %9096 = vmatprep.subr.mxu0 %v10070_v1 }
0x294e   :  { %v4054_v59 = vpop.permute.xlu0 %4053 }
0x294f   :  { %v4056_v45 = vadd.f32 %v4054_v59, %v3886_v34 }
0x2951   :  { %9698 = vtanh.f32 %v4056_v45  ;;  %v4319_v45 = vrot.slane %v8270_v62, %v10320_v60 }
0x2952   :  { %v4092_v2 = vpop.permute.xlu1 %4091 }
0x2953   :  { %v4094_v8 = vadd.f32 %v4092_v2, %v3888_v46 }
0x2955   :  { %9700 = vtanh.f32 %v4094_v8 }
0x2956   :  { %v2756_v12 = vpop.permute.xlu1 %2755 }
0x2957   :  { %2758 = vst.msk [vmem:[#allocation3] sm:$0xc] %vm742_vm10, %v2756_v12 }
0x295a   :  { %v3208_v13 = vpop.permute.xlu1 %3207 }
0x295b   :  { %3210 = vst.msk [vmem:[#allocation3] sm:$0xc0] %vm518_vm7, %v3208_v13 }
0x295e   :  { %v9699_v14 = vpop.eup %9698  ;;  %v3655_v15 = vpop.permute.xlu1 %3654 }
0x295f   :  { %3657 = vst.msk [vmem:[#allocation3 + $0x8] sm:$0xc] %vm742_vm10, %v3655_v15  ;;  %4060 = vrot.lane.b32.xlu0 %v9699_v14, %s10073_s25 }
0x2962   :  { %v9701_v53 = vpop.eup %9700 }
0x2963   :  { %2982 = vrot.lane.b32.xlu0 %v10937_v17, %s10073_s25  ;;  %v4079_v17 = vadd.f32 %v11168_v42, %v3888_v46 }
0x2965   :  { %v8269_v29 = vmul.f32 -1.442695, %v4079_v17 }
0x2967   :  { %4098 = vrot.lane.b32.xlu0 %v9701_v53, %s10073_s25  ;;  %9702 = vpow2.f32 %v8269_v29 }
0x296b   :  { %3881 = vrot.lane.b32.xlu0 %v11145_v26, %s10073_s25  ;;  %v11252_v26 = vld [vmem:[%s12231_s7 + $0xb8] sm:$0xff] }
0x2974   :  { %v9703_v61 = vpop.eup %9702 }
0x2975   :  { %v4083_v55 = vadd.f32 1.0, %v9703_v61 }
0x2977   :  { %9704 = vrcp.f32 %v4083_v55 }
0x2984   :  { %v9705_v36 = vpop.eup %9704 }
0x2985   :  { %v4096_v32 = vsub.f32 1.0, %v9705_v36  ;;  %v4103_v41 = vmul.f32 %v9705_v36, %v3965_v63  ;;  %v11269_v63 = vld [vmem:[%s12231_s7 + $0xa8] sm:$0xff] }
0x29d1   :  { %v4061_v25 = vpop.permute.xlu0 %4060 }
0x29d2   :  { %v4063_v30 = vmul.f32 %v4061_v25, %v4058_v33 }
0x29d4   :  { %v4067_v31 = vadd.f32 %v4066_v35, %v4063_v30 }
0x29d5   :  { %v2983_v4 = vpop.permute.xlu0 %2982 }
0x29d6   :  { %2985 = vst.msk [vmem:[#allocation3] sm:$0x30] %vm744_vm9, %v2983_v4  ;;  %4106 = vrot.lane.b32.xlu1 %v4067_v31, %s10073_s25 }
0x29d9   :  { %v4099_v40 = vpop.permute.xlu0 %4098 }
0x29da   :  { %v4101_v34 = vmul.f32 %v4099_v40, %v4096_v32 }
0x29dc   :  { %v4104_v10 = vadd.f32 %v4103_v41, %v4101_v34 }
0x29dd   :  { %v3882_v42 = vpop.permute.xlu0 %3881  ;;  %v4141_v43 = vld [vmem:[#allocation3] sm:$0xff] }
0x29de   :  { %4110 = vst.msk [vmem:[#allocation4] sm:$0x3] %vm516_vm8, %v4104_v10  ;;  %4112 = vst.msk [vmem:[#allocation9 + $0x6] sm:$0x3] %vm516_vm8, %v4104_v10  ;;  %8273 = vmatmul.mubr.msk.f32.vlgmr.msra.gmra.mxu0 %vm206_vm5, %v4141_v43 }
0x29df   :  { %3884 = vst.msk [vmem:[#allocation3 + $0x8] sm:$0x30] %vm744_vm9, %v3882_v42  ;;  %9097 = vmatpush3.msra.mxu0 %v11252_v26  ;;  %4304 = vmatprep.mubr.f32.mxu0 %v10070_v1 }
0x29e0   :  { %9098 = vmatprep.subr.mxu0 %v10070_v1 }
0x29e1   :  { %9099 = vmatpush3.msra.mxu0 %v11261_v37 }
0x29e2   :  { %9100 = vmatprep.subr.mxu0 %v10070_v1 }
0x29e3   :  { %9101 = vmatpush3.msra.mxu0 %v11269_v63 }
0x29e4   :  { %9102 = vmatprep.subr.mxu0 %v10070_v1 }
0x29e5   :  { %v4143_v49 = vld [vmem:[#allocation4] sm:$0xff]  ;;  %9103 = vmatpush3.msra.mxu0 %v11276_v3 }
0x29e6   :  { %8271 = vmatmul.mubr.msk.f32.vlgmr.msra.gmra.mxu1 %vm206_vm5, %v4143_v49  ;;  %9118 = vmatprep.subr.mxu0 %v10070_v1 }
0x29e7   :  { %9086 = vmatpush3.msra.mxu1 %v11282_v48  ;;  %4221 = vmatprep.mubr.f32.mxu1 %v10070_v1 }
0x29e8   :  { %9087 = vmatprep.subr.mxu1 %v10070_v1 }
0x29e9   :  { %9088 = vmatpush3.msra.mxu1 %v11290_v39 }
0x29ea   :  { %9089 = vmatprep.subr.mxu1 %v10070_v1  ;;  %8272 = vmatmul.mubr.msk.f32.gmra.mxu1 %vm206_vm5, %v4144_v38 }
0x29eb   :  { %9090 = vmatpush3.msra.mxu1 %v11299_v50  ;;  %9093 = vmatprep.mubr.msk.f32.mxu1 %vm10071_vm4, %v10070_v1 }
0x29ec   :  { %9091 = vmatprep.subr.mxu1 %v10070_v1 }
0x29ed   :  { %9092 = vmatpush3.msra.mxu1 %v11307_v57 }
0x29ee   :  { %9094 = vmatmul.mubr.f32.vlgmr.msra.gmra.mxu1 %v10070_v1  ;;  %9107 = vmatprep.subr.mxu1 %v10070_v1 }
0x29ef   :  { %9108 = vmatpush3.msra.mxu1 %v11282_v48  ;;  %9115 = vmatprep.mubr.msk.f32.mxu1 %vm10071_vm4, %v10070_v1 }
0x29f0   :  { %9109 = vmatprep.subr.mxu1 %v10070_v1 }
0x29f1   :  { %9110 = vmatpush3.msra.mxu1 %v11290_v39 }
0x29f2   :  { %9111 = vmatprep.subr.mxu1 %v10070_v1 }
0x29f3   :  { %9112 = vmatpush3.msra.mxu1 %v11299_v50 }
0x29f4   :  { %9113 = vmatprep.subr.mxu1 %v10070_v1 }
0x29f5   :  { %9114 = vmatpush3.msra.mxu1 %v11307_v57 }
0x29f6   :  { %9129 = vmatprep.subr.mxu1 %v10070_v1 }
0x2a48   :  { %v4107_v18 = vpop.permute.xlu1 %4106 }
0x2a49   :  { %4109 = vst.msk [vmem:[#allocation3 + $0x8] sm:$0xc0] %vm518_vm7, %v4107_v18  ;;  %4111 = vst.msk [vmem:[#allocation9 - $0x2] sm:$0xc0] %vm518_vm7, %v4107_v18 }
0x2a50   :  { %v4142_v6 = vld [vmem:[#allocation3 + $0x8] sm:$0xff] }
0x2a51   :  { %8274 = vmatmul.mubr.msk.f32.gmra.mxu0 %vm206_vm5, %v4142_v6 }
0x2a52   :  { %9104 = vmatprep.mubr.msk.f32.mxu0 %vm10071_vm4, %v10070_v1 }
0x2a55   :  { %9105 = vmatmul.mubr.f32.vlgmr.msra.gmra.mxu0 %v10070_v1 }
0x2a56   :  { %9119 = vmatpush3.msra.mxu0 %v11252_v26  ;;  %9126 = vmatprep.mubr.msk.f32.mxu0 %vm10071_vm4, %v10070_v1 }
0x2a57   :  { %9120 = vmatprep.subr.mxu0 %v10070_v1 }
0x2a58   :  { %9121 = vmatpush3.msra.mxu0 %v11261_v37 }
0x2a59   :  { %9122 = vmatprep.subr.mxu0 %v10070_v1 }
0x2a5a   :  { %9123 = vmatpush3.msra.mxu0 %v11269_v63 }
0x2a5b   :  { %9124 = vmatprep.subr.mxu0 %v10070_v1 }
0x2a5c   :  { %9125 = vmatpush3.msra.mxu0 %v11276_v3 }
0x2a5d   :  { %9140 = vmatprep.subr.mxu0 %v10070_v1 }
0x2a9e   :  { %v4300_v5 = vpop.f32.mrf.mxu0 }
0x2aa0   :  { %v4302_v2 = vpop.f32.mrf.mxu0 }
0x2aa6   :  { %v4217_v44 = vpop.f32.mrf.mxu1 }
0x2aa7   :  { %v4301_v59 = vadd.f32 %v4300_v5, %v4217_v44 }
0x2aa8   :  { %v4219_v46 = vpop.f32.mrf.mxu1 }
0x2aa9   :  { %v4322_v8 = vadd.f32 %v4315_v54, %v4301_v59  ;;  %v4303_v12 = vadd.f32 %v4302_v2, %v4219_v46 }
0x2aaa   :  { %v4223_v9 = vpop.f32.mrf.mxu1 }
0x2aab   :  { %4326 = vst [vmem:[#allocation2] sm:$0xff] %v4322_v8  ;;  %v4323_v51 = vadd.f32 %v4319_v45, %v4303_v12 }
0x2aac   :  { %v4225_v24 = vpop.f32.mrf.mxu1 }
0x2aad   :  { %4327 = vst.msk [vmem:[#allocation2 + $0x8] sm:$0xff] %vm291_vm6, %v4323_v51 }
0x2aae   :  { %v4403_v13 = vpop.f32.mrf.mxu1 }
0x2aaf   :  { %v4404_v14 = vadd.f32 %v11350_v0, %v4403_v13 }
0x2ab0   :  { %v9095_v15 = vpop.f32.mrf.mxu1 }
0x2ab1   :  { %4489 = vrot.lane.b32.xlu1 %v4404_v14, %s10072_s23 }
0x2ab2   :  { %v4330_v16 = vld [vmem:[#allocation2] sm:$0x3] }
0x2ab3   :  { %v4481_v47 = vadd.f32 %v4404_v14, %v4330_v16 }
0x2ab5   :  { %v8277_v11 = vmul.f32 -1.442695, %v4481_v47 }
0x2ab7   :  { %9706 = vpow2.f32 %v8277_v11 }
0x2ac4   :  { %v9707_v19 = vpop.eup %9706 }
0x2ac5   :  { %v4485_v20 = vadd.f32 1.0, %v9707_v19 }
0x2ac7   :  { %9708 = vrcp.f32 %v4485_v20 }
0x2ad4   :  { %v9709_v55 = vpop.eup %9708 }
0x2ad5   :  { %v4499_v43 = vsub.f32 1.0, %v9709_v55  ;;  %v4505_v38 = vmul.f32 0.0, %v9709_v55 }
0x2b11   :  { %v4306_v52 = vpop.f32.mrf.mxu0 }
0x2b12   :  { %v4307_v21 = vadd.f32 %v4306_v52, %v4223_v9 }
0x2b13   :  { %v4308_v22 = vpop.f32.mrf.mxu0 }
0x2b14   :  { %v4324_v56 = vadd.f32 %v4315_v54, %v4307_v21  ;;  %v4309_v27 = vadd.f32 %v4308_v22, %v4225_v24 }
0x2b15   :  { %v4477_v28 = vpop.f32.mrf.mxu0 }
0x2b16   :  { %4328 = vst [vmem:[#allocation2 + $0x10] sm:$0xff] %v4324_v56  ;;  %v4325_v53 = vadd.f32 %v4319_v45, %v4309_v27  ;;  %v4478_v17 = vadd.f32 %v11358_v23, %v4477_v28  ;;  %v4550_v56 = vld [vmem:[#allocation2] sm:$0xc] }
0x2b17   :  { %v9106_v29 = vpop.f32.mrf.mxu0 }
0x2b18   :  { %4329 = vst.msk [vmem:[#allocation2 + $0x18] sm:$0xff] %vm291_vm6, %v4325_v53  ;;  %v4508_v61 = vrot.slane %v4478_v17, 2 }
0x2b1a   :  { %4509 = vrot.lane.b32.xlu0 %v4508_v61, %s10073_s25 }
0x2b1d   :  { %v4331_v35 = vld [vmem:[#allocation2 + $0x10] sm:$0xc0] }
0x2b1e   :  { %4526 = vrot.lane.b32.xlu0 %v4508_v61, %s10074_s26 }
0x2b1f   :  { %v4332_v62 = vld [vmem:[#allocation2 + $0x18] sm:$0xc0] }
0x2b23   :  { %v4490_v33 = vpop.permute.xlu1 %4489 }
0x2b24   :  { %v4492_v7 = vmul.f32 %v9709_v55, %v4490_v33  ;;  %v4551_v33 = vld [vmem:[#allocation2 + $0x10] sm:$0x30] }
0x2b26   :  { %4494 = vrot.lane.b32.xlu1 %v4492_v7, %s10072_s23 }
0x2b8c   :  { %v4510_v25 = vpop.permute.xlu0 %4509 }
0x2b8d   :  { %v4512_v30 = vadd.f32 %v4510_v25, %v4331_v35  ;;  %v4519_v59 = vadd.f32 %v4510_v25, %v4332_v62 }
0x2b8f   :  { %v8278_v31 = vmul.f32 -1.442695, %v4512_v30  ;;  %v8279_v45 = vmul.f32 -1.442695, %v4519_v59 }
0x2b90   :  { %v4527_v34 = vpop.permute.xlu0 %4526 }
0x2b91   :  { %9710 = vpow2.f32 %v8278_v31 }
0x2b98   :  { %v4495_v36 = vpop.permute.xlu1 %4494 }
0x2b99   :  { %v4497_v4 = vadd.f32 %v4495_v36, %v4330_v16 }
0x2b9b   :  { %9712 = vtanh.f32 %v4497_v4 }
0x2b9e   :  { %v9711_v32 = vpop.eup %9710 }
0x2b9f   :  { %v4516_v40 = vadd.f32 1.0, %v9711_v32 }
0x2ba1   :  { %9714 = vrcp.f32 %v4516_v40 }
0x2ba8   :  { %v9713_v41 = vpop.eup %9712 }
0x2ba9   :  { %4501 = vrot.lane.b32.xlu1 %v9713_v41, %s10073_s25 }
0x2bae   :  { %v9715_v10 = vpop.eup %9714 }
0x2baf   :  { %v4529_v42 = vmul.f32 %v9715_v10, %v4527_v34  ;;  %v4552_v10 = vld [vmem:[#allocation2 + $0x18] sm:$0x30] }
0x2bb1   :  { %4531 = vrot.lane.b32.xlu0 %v4529_v42, %s10072_s23 }
0x2c1b   :  { %v4502_v49 = vpop.permute.xlu1 %4501 }
0x2c1c   :  { %v4504_v18 = vmul.f32 %v4502_v49, %v4499_v43 }
0x2c1e   :  { %v11367_v6 = vadd.f32 %v4505_v38, %v4504_v18 }
0x2c20   :  { %4545 = vrot.lane.b32.xlu1 %v11367_v6, %s10073_s25  ;;  %v4725_v38 = vrot.slane %v11367_v6, 6 }
0x2c23   :  { %v4532_v5 = vpop.permute.xlu0 %4531 }
0x2c24   :  { %v4534_v54 = vadd.f32 %v4532_v5, %v4332_v62 }
0x2c26   :  { %9716 = vtanh.f32 %v4534_v54 }
0x2c27   :  { %9718 = vpow2.f32 %v8279_v45 }
0x2c33   :  { %v9717_v44 = vpop.eup %9716 }
0x2c34   :  { %4538 = vrot.lane.b32.xlu0 %v9717_v44, %s10073_s25  ;;  %v9719_v2 = vpop.eup %9718 }
0x2c35   :  { %v4523_v46 = vadd.f32 1.0, %v9719_v2 }
0x2c37   :  { %9720 = vrcp.f32 %v4523_v46 }
0x2c44   :  { %v9721_v12 = vpop.eup %9720 }
0x2c45   :  { %v4536_v9 = vsub.f32 1.0, %v9721_v12  ;;  %v4542_v13 = vmul.f32 0.0, %v9721_v12 }
0x2c92   :  { %v4546_v8 = vpop.permute.xlu1 %4545 }
0x2c93   :  { %4548 = vst.msk [vmem:[#allocation3] sm:$0x3] %vm516_vm8, %v4546_v8  ;;  %9116 = vmatmul.mubr.msk.f32.vlgmr.msra.gmra.mxu1 %vm206_vm5, %v4546_v8 }
0x2c94   :  { %9130 = vmatpush3.msra.mxu1 %v11282_v48  ;;  %9137 = vmatprep.mubr.msk.f32.mxu1 %vm10071_vm4, %v10070_v1 }
0x2c95   :  { %9131 = vmatprep.subr.mxu1 %v10070_v1 }
0x2c96   :  { %9132 = vmatpush3.msra.mxu1 %v11290_v39 }
0x2c97   :  { %9133 = vmatprep.subr.mxu1 %v10070_v1 }
0x2c98   :  { %9134 = vmatpush3.msra.mxu1 %v11299_v50 }
0x2c99   :  { %9135 = vmatprep.subr.mxu1 %v10070_v1 }
0x2c9a   :  { %9136 = vmatpush3.msra.mxu1 %v11307_v57 }
0x2c9b   :  { %9151 = vmatprep.subr.mxu1 %v10070_v1 }
0x2ca6   :  { %v4539_v51 = vpop.permute.xlu0 %4538 }
0x2ca7   :  { %v4541_v24 = vmul.f32 %v4539_v51, %v4536_v9 }
0x2ca9   :  { %v11384_v14 = vadd.f32 %v4542_v13, %v4541_v24 }
0x2cab   :  { %4549 = vst.msk [vmem:[#allocation4 + $0x8] sm:$0xc0] %vm518_vm7, %v11384_v14  ;;  %v4626_v15 = vrot.slane %v11384_v14, 6  ;;  %v4764_v6 = vrot.slane %v11384_v14, 2 }
0x2cad   :  { %9127 = vmatmul.mubr.msk.f32.vlgmr.msra.gmra.mxu0 %vm206_vm5, %v4626_v15 }
0x2cae   :  { %9141 = vmatpush3.msra.mxu0 %v11252_v26  ;;  %9148 = vmatprep.mubr.msk.f32.mxu0 %vm10071_vm4, %v10070_v1 }
0x2caf   :  { %9142 = vmatprep.subr.mxu0 %v10070_v1 }
0x2cb0   :  { %9143 = vmatpush3.msra.mxu0 %v11261_v37 }
0x2cb1   :  { %9144 = vmatprep.subr.mxu0 %v10070_v1 }
0x2cb2   :  { %9145 = vmatpush3.msra.mxu0 %v11269_v63 }
0x2cb3   :  { %9146 = vmatprep.subr.mxu0 %v10070_v1 }
0x2cb4   :  { %9147 = vmatpush3.msra.mxu0 %v11276_v3 }
0x2cb5   :  { %9162 = vmatprep.subr.mxu0 %v10070_v1 }
0x2d53   :  { %v4621_v16 = vpop.f32.mrf.mxu1 }
0x2d54   :  { %v4622_v47 = vadd.f32 %v11350_v0, %v4621_v16 }
0x2d55   :  { %v9117_v11 = vpop.f32.mrf.mxu1 }
0x2d56   :  { %v4700_v19 = vrot.slane %v4622_v47, 6 }
0x2d58   :  { %4709 = vrot.lane.b32.xlu1 %v4700_v19, %s10072_s23  ;;  %v4702_v27 = vadd.f32 %v4700_v19, %v4550_v56 }
0x2d5a   :  { %v8282_v28 = vmul.f32 -1.442695, %v4702_v27  ;;  %v4775_v27 = vld [vmem:[#allocation2 + $0x10] sm:$0xc] }
0x2d5c   :  { %9722 = vpow2.f32 %v8282_v28 }
0x2d69   :  { %v9723_v53 = vpop.eup %9722 }
0x2d6a   :  { %v4706_v17 = vadd.f32 1.0, %v9723_v53 }
0x2d6c   :  { %9724 = vrcp.f32 %v4706_v17 }
0x2d6d   :  { %v4695_v52 = vpop.f32.mrf.mxu0 }
0x2d6e   :  { %v4696_v20 = vadd.f32 %v11358_v23, %v4695_v52 }
0x2d6f   :  { %v9128_v21 = vpop.f32.mrf.mxu0 }
0x2d70   :  { %v4730_v22 = vrot.slane %v4696_v20, 4 }
0x2d72   :  { %4731 = vrot.lane.b32.xlu0 %v4730_v22, %s10073_s25 }
0x2d76   :  { %4748 = vrot.lane.b32.xlu0 %v4730_v22, %s10074_s26 }
0x2d79   :  { %v9725_v29 = vpop.eup %9724 }
0x2d7a   :  { %v4719_v18 = vsub.f32 1.0, %v9725_v29  ;;  %v4727_v5 = vmul.f32 %v9725_v29, %v4725_v38 }
0x2dca   :  { %v4710_v61 = vpop.permute.xlu1 %4709 }
0x2dcb   :  { %v4712_v55 = vmul.f32 %v9725_v29, %v4710_v61  ;;  %v4774_v29 = vld [vmem:[#allocation2] sm:$0x30] }
0x2dcd   :  { %4714 = vrot.lane.b32.xlu1 %v4712_v55, %s10072_s23 }
0x2de4   :  { %v4732_v7 = vpop.permute.xlu0 %4731 }
0x2de5   :  { %v4734_v25 = vadd.f32 %v4732_v7, %v4551_v33  ;;  %v4741_v45 = vadd.f32 %v4732_v7, %v4552_v10 }
0x2de7   :  { %v8283_v35 = vmul.f32 -1.442695, %v4734_v25  ;;  %v8284_v2 = vmul.f32 -1.442695, %v4741_v45 }
0x2de8   :  { %v4749_v4 = vpop.permute.xlu0 %4748 }
0x2de9   :  { %9726 = vpow2.f32 %v8283_v35 }
0x2df6   :  { %v9727_v30 = vpop.eup %9726 }
0x2df7   :  { %v4738_v31 = vadd.f32 1.0, %v9727_v30 }
0x2df9   :  { %9728 = vrcp.f32 %v4738_v31 }
0x2e06   :  { %v9729_v36 = vpop.eup %9728 }
0x2e07   :  { %v4751_v32 = vmul.f32 %v9729_v36, %v4749_v4 }
0x2e09   :  { %4753 = vrot.lane.b32.xlu0 %v4751_v32, %s10072_s23 }
0x2e3f   :  { %v4715_v40 = vpop.permute.xlu1 %4714 }
0x2e40   :  { %v4717_v41 = vadd.f32 %v4715_v40, %v4550_v56 }
0x2e42   :  { %9730 = vtanh.f32 %v4717_v41  ;;  %v4776_v41 = vld [vmem:[#allocation2 + $0x18] sm:$0xc] }
0x2e4f   :  { %v9731_v34 = vpop.eup %9730 }
0x2e50   :  { %4721 = vrot.lane.b32.xlu1 %v9731_v34, %s10073_s25 }
0x2e7b   :  { %v4754_v42 = vpop.permute.xlu0 %4753 }
0x2e7c   :  { %v4756_v43 = vadd.f32 %v4754_v42, %v4552_v10 }
0x2e7e   :  { %9732 = vtanh.f32 %v4756_v43 }
0x2e7f   :  { %9734 = vpow2.f32 %v8284_v2 }
0x2e8b   :  { %v9733_v49 = vpop.eup %9732 }
0x2e8c   :  { %4760 = vrot.lane.b32.xlu0 %v9733_v49, %s10073_s25  ;;  %v9735_v46 = vpop.eup %9734 }
0x2e8d   :  { %v4745_v8 = vadd.f32 1.0, %v9735_v46 }
0x2e8f   :  { %9736 = vrcp.f32 %v4745_v8 }
0x2e9c   :  { %v9737_v12 = vpop.eup %9736 }
0x2e9d   :  { %v4758_v9 = vsub.f32 1.0, %v9737_v12  ;;  %v4766_v24 = vmul.f32 %v9737_v12, %v4764_v6 }
0x2ec2   :  { %v4722_v62 = vpop.permute.xlu1 %4721 }
0x2ec3   :  { %v4724_v54 = vmul.f32 %v4722_v62, %v4719_v18 }
0x2ec5   :  { %v11410_v44 = vadd.f32 %v4727_v5, %v4724_v54 }
0x2ec7   :  { %v4777_v59 = vrot.slane %v11410_v44, 2 }
0x2ec9   :  { %4778 = vrot.lane.b32.xlu1 %v4777_v59, %s10073_s25 }
0x2efe   :  { %v4761_v51 = vpop.permute.xlu0 %4760 }
0x2eff   :  { %v4763_v13 = vmul.f32 %v4761_v51, %v4758_v9 }
0x2f01   :  { %v11415_v15 = vadd.f32 %v4766_v24, %v4763_v13  ;;  %v4952_v24 = vrot.slane %v11410_v44, 6 }
0x2f03   :  { %4773 = vst.msk [vmem:[#allocation4 + $0x8] sm:$0x30] %vm744_vm9, %v11415_v15  ;;  %v4853_v16 = vrot.slane %v11415_v15, 4  ;;  %v4991_v2 = vrot.slane %v11415_v15, 2 }
0x2f05   :  { %9149 = vmatmul.mubr.msk.f32.vlgmr.msra.gmra.mxu0 %vm206_vm5, %v4853_v16 }
0x2f06   :  { %9163 = vmatpush3.msra.mxu0 %v11252_v26  ;;  %9170 = vmatprep.mubr.msk.f32.mxu0 %vm10071_vm4, %v10070_v1 }
0x2f07   :  { %9164 = vmatprep.subr.mxu0 %v10070_v1 }
0x2f08   :  { %9165 = vmatpush3.msra.mxu0 %v11261_v37 }
0x2f09   :  { %9166 = vmatprep.subr.mxu0 %v10070_v1 }
0x2f0a   :  { %9167 = vmatpush3.msra.mxu0 %v11269_v63 }
0x2f0b   :  { %9168 = vmatprep.subr.mxu0 %v10070_v1 }
0x2f0c   :  { %9169 = vmatpush3.msra.mxu0 %v11276_v3 }
0x2f0d   :  { %9184 = vmatprep.subr.mxu0 %v10070_v1 }
0x2f3b   :  { %v4779_v14 = vpop.permute.xlu1 %4778 }
0x2f3c   :  { %9138 = vmatmul.mubr.msk.f32.vlgmr.msra.gmra.mxu1 %vm206_vm5, %v4779_v14 }
0x2f3d   :  { %9152 = vmatpush3.msra.mxu1 %v11282_v48  ;;  %9159 = vmatprep.mubr.msk.f32.mxu1 %vm10071_vm4, %v10070_v1 }
0x2f3e   :  { %9153 = vmatprep.subr.mxu1 %v10070_v1 }
0x2f3f   :  { %9154 = vmatpush3.msra.mxu1 %v11290_v39 }
0x2f40   :  { %9155 = vmatprep.subr.mxu1 %v10070_v1 }
0x2f41   :  { %9156 = vmatpush3.msra.mxu1 %v11299_v50 }
0x2f42   :  { %9157 = vmatprep.subr.mxu1 %v10070_v1 }
0x2f43   :  { %9158 = vmatpush3.msra.mxu1 %v11307_v57 }
0x2f44   :  { %9173 = vmatprep.subr.mxu1 %v10070_v1 }
0x2fc5   :  { %v4922_v47 = vpop.f32.mrf.mxu0 }
0x2fc6   :  { %v4923_v11 = vadd.f32 %v11358_v23, %v4922_v47 }
0x2fc7   :  { %v9150_v19 = vpop.f32.mrf.mxu0 }
0x2fc8   :  { %v4957_v52 = vrot.slane %v4923_v11, 6 }
0x2fca   :  { %4975 = vrot.lane.b32.xlu1 %v4957_v52, %s10074_s26  ;;  %4958 = vrot.lane.b32.xlu0 %v4957_v52, %s10073_s25 }
0x2ffc   :  { %v4848_v20 = vpop.f32.mrf.mxu1 }
0x2ffd   :  { %v4849_v21 = vadd.f32 %v11350_v0, %v4848_v20 }
0x2ffe   :  { %v9139_v22 = vpop.f32.mrf.mxu1 }
0x2fff   :  { %v4927_v56 = vrot.slane %v4849_v21, 4  ;;  %v5002_v21 = vld [vmem:[#allocation2 + $0x10] sm:$0x3] }
0x3001   :  { %4936 = vrot.lane.b32.xlu0 %v4927_v56, %s10072_s23  ;;  %v4929_v61 = vadd.f32 %v4927_v56, %v4774_v29 }
0x3003   :  { %v8287_v33 = vmul.f32 -1.442695, %v4929_v61 }
0x303c   :  { %v4959_v28 = vpop.permute.xlu0 %4958  ;;  %v4976_v35 = vpop.permute.xlu1 %4975 }
0x303d   :  { %v4961_v53 = vadd.f32 %v4959_v28, %v4775_v27  ;;  %v4968_v18 = vadd.f32 %v4959_v28, %v4776_v41 }
0x303f   :  { %v8288_v17 = vmul.f32 -1.442695, %v4961_v53  ;;  %v8289_v62 = vmul.f32 -1.442695, %v4968_v18 }
0x3041   :  { %9738 = vpow2.f32 %v8288_v17 }
0x304e   :  { %v9739_v55 = vpop.eup %9738 }
0x304f   :  { %v4965_v7 = vadd.f32 1.0, %v9739_v55 }
0x3051   :  { %9740 = vrcp.f32 %v4965_v7 }
0x3052   :  { %9742 = vpow2.f32 %v8287_v33 }
0x305e   :  { %v9741_v25 = vpop.eup %9740 }
0x305f   :  { %v9743_v30 = vpop.eup %9742  ;;  %v4978_v31 = vmul.f32 %v9741_v25, %v4976_v35  ;;  %v5001_v35 = vld [vmem:[#allocation2] sm:$0xc0] }
0x3060   :  { %v4933_v36 = vadd.f32 1.0, %v9743_v30 }
0x3061   :  { %4980 = vrot.lane.b32.xlu1 %v4978_v31, %s10072_s23 }
0x3062   :  { %9744 = vrcp.f32 %v4933_v36 }
0x306f   :  { %v9745_v4 = vpop.eup %9744 }
0x3070   :  { %v4946_v51 = vsub.f32 1.0, %v9745_v4  ;;  %v4954_v15 = vmul.f32 %v9745_v4, %v4952_v24 }
0x3073   :  { %v4937_v32 = vpop.permute.xlu0 %4936 }
0x3074   :  { %v4939_v40 = vmul.f32 %v9745_v4, %v4937_v32 }
0x3076   :  { %4941 = vrot.lane.b32.xlu0 %v4939_v40, %s10072_s23 }
0x30d3   :  { %v4981_v34 = vpop.permute.xlu1 %4980 }
0x30d4   :  { %v4983_v10 = vadd.f32 %v4981_v34, %v4776_v41  ;;  %v5003_v34 = vld [vmem:[#allocation2 + $0x18] sm:$0x3] }
0x30d6   :  { %9746 = vtanh.f32 %v4983_v10 }
0x30e3   :  { %v9747_v42 = vpop.eup %9746 }
0x30e4   :  { %4987 = vrot.lane.b32.xlu1 %v9747_v42, %s10073_s25 }
0x30e8   :  { %v4942_v43 = vpop.permute.xlu0 %4941 }
0x30e9   :  { %v4944_v49 = vadd.f32 %v4942_v43, %v4774_v29 }
0x30eb   :  { %9748 = vtanh.f32 %v4944_v49 }
0x30ec   :  { %9750 = vpow2.f32 %v8289_v62 }
0x30f8   :  { %v9749_v38 = vpop.eup %9748 }
0x30f9   :  { %4948 = vrot.lane.b32.xlu0 %v9749_v38, %s10073_s25  ;;  %v9751_v5 = vpop.eup %9750 }
0x30fa   :  { %v4972_v54 = vadd.f32 1.0, %v9751_v5 }
0x30fc   :  { %9752 = vrcp.f32 %v4972_v54 }
0x3109   :  { %v9753_v59 = vpop.eup %9752 }
0x310a   :  { %v4985_v45 = vsub.f32 1.0, %v9753_v59  ;;  %v4993_v8 = vmul.f32 %v9753_v59, %v4991_v2 }
0x3156   :  { %v4988_v46 = vpop.permute.xlu1 %4987 }
0x3157   :  { %v4990_v12 = vmul.f32 %v4988_v46, %v4985_v45 }
0x3159   :  { %v11452_v9 = vadd.f32 %v4993_v8, %v4990_v12 }
0x315b   :  { %5000 = vst.msk [vmem:[#allocation4 + $0x8] sm:$0xc] %vm742_vm10, %v11452_v9  ;;  %v5080_v6 = vrot.slane %v11452_v9, 2 }
0x315d   :  { %9171 = vmatmul.mubr.msk.f32.vlgmr.msra.gmra.mxu0 %vm206_vm5, %v5080_v6 }
0x315e   :  { %9185 = vmatpush3.msra.mxu0 %v11252_v26  ;;  %9192 = vmatprep.mubr.msk.f32.mxu0 %vm10071_vm4, %v10070_v1 }
0x315f   :  { %9186 = vmatprep.subr.mxu0 %v10070_v1 }
0x3160   :  { %9187 = vmatpush3.msra.mxu0 %v11261_v37 }
0x3161   :  { %9188 = vmatprep.subr.mxu0 %v10070_v1 }
0x3162   :  { %9189 = vmatpush3.msra.mxu0 %v11269_v63 }
0x3163   :  { %9190 = vmatprep.subr.mxu0 %v10070_v1 }
0x3164   :  { %9191 = vmatpush3.msra.mxu0 %v11276_v3 }
0x3165   :  { %9206 = vmatprep.subr.mxu0 %v10070_v1 }
0x316b   :  { %v4949_v13 = vpop.permute.xlu0 %4948 }
0x316c   :  { %v4951_v16 = vmul.f32 %v4949_v13, %v4946_v51 }
0x316e   :  { %v11471_v14 = vadd.f32 %v4954_v15, %v4951_v16 }
0x3170   :  { %v5004_v47 = vrot.slane %v11471_v14, 4 }
0x3172   :  { %5005 = vrot.lane.b32.xlu1 %v5004_v47, %s10073_s25 }
0x31e4   :  { %v5006_v11 = vpop.permute.xlu1 %5005 }
0x31e5   :  { %9160 = vmatmul.mubr.msk.f32.vlgmr.msra.gmra.mxu1 %vm206_vm5, %v5006_v11 }
0x31e6   :  { %9174 = vmatpush3.msra.mxu1 %v11282_v48  ;;  %9181 = vmatprep.mubr.msk.f32.mxu1 %vm10071_vm4, %v10070_v1 }
0x31e7   :  { %9175 = vmatprep.subr.mxu1 %v10070_v1 }
0x31e8   :  { %9176 = vmatpush3.msra.mxu1 %v11290_v39 }
0x31e9   :  { %9177 = vmatprep.subr.mxu1 %v10070_v1 }
0x31ea   :  { %9178 = vmatpush3.msra.mxu1 %v11299_v50 }
0x31eb   :  { %9179 = vmatprep.subr.mxu1 %v10070_v1 }
0x31ec   :  { %9180 = vmatpush3.msra.mxu1 %v11307_v57 }
0x31ed   :  { %9195 = vmatprep.subr.mxu1 %v10070_v1 }
0x321d   :  { %v5149_v19 = vpop.f32.mrf.mxu0 }
0x321e   :  { %v5150_v52 = vadd.f32 %v11358_v23, %v5149_v19 }
0x321f   :  { %v9172_v20 = vpop.f32.mrf.mxu0 }
0x3220   :  { %5201 = vrot.lane.b32.xlu1 %v5150_v52, %s10074_s26  ;;  %5184 = vrot.lane.b32.xlu0 %v5150_v52, %s10073_s25 }
0x3292   :  { %v5185_v22 = vpop.permute.xlu0 %5184  ;;  %v5202_v7 = vpop.permute.xlu1 %5201 }
0x3293   :  { %v5187_v56 = vadd.f32 %v5185_v22, %v5002_v21  ;;  %v5194_v49 = vadd.f32 %v5185_v22, %v5003_v34  ;;  %v5227_v22 = vld [vmem:[#allocation2] sm:$0xc0] }
0x3295   :  { %v8293_v27 = vmul.f32 -1.442695, %v5187_v56  ;;  %v8294_v38 = vmul.f32 -1.442695, %v5194_v49 }
0x3297   :  { %9754 = vpow2.f32 %v8293_v27 }
0x32a4   :  { %v9755_v28 = vpop.eup %9754 }
0x32a5   :  { %v5191_v53 = vadd.f32 1.0, %v9755_v28  ;;  %v5075_v17 = vpop.f32.mrf.mxu1 }
0x32a6   :  { %v5076_v29 = vadd.f32 %v11350_v0, %v5075_v17 }
0x32a7   :  { %9756 = vrcp.f32 %v5191_v53  ;;  %v9161_v61 = vpop.f32.mrf.mxu1 }
0x32a8   :  { %v5154_v55 = vrot.slane %v5076_v29, 2 }
0x32aa   :  { %5163 = vrot.lane.b32.xlu0 %v5154_v55, %s10072_s23  ;;  %v5156_v30 = vadd.f32 %v5154_v55, %v5001_v35 }
0x32ac   :  { %v8292_v31 = vmul.f32 -1.442695, %v5156_v30 }
0x32ae   :  { %9758 = vpow2.f32 %v8292_v31 }
0x32b4   :  { %v9757_v33 = vpop.eup %9756 }
0x32b5   :  { %v5204_v25 = vmul.f32 %v9757_v33, %v5202_v7 }
0x32b7   :  { %5206 = vrot.lane.b32.xlu1 %v5204_v25, %s10072_s23 }
0x32bb   :  { %v9759_v36 = vpop.eup %9758 }
0x32bc   :  { %v5160_v4 = vadd.f32 1.0, %v9759_v36 }
0x32be   :  { %9760 = vrcp.f32 %v5160_v4  ;;  %v5226_v4 = vld [vmem:[#allocation2 + $0x10] sm:$0x3] }
0x32cb   :  { %v9761_v32 = vpop.eup %9760 }
0x32cc   :  { %v5173_v9 = vsub.f32 1.0, %v9761_v32 }
0x331c   :  { %v5164_v40 = vpop.permute.xlu0 %5163 }
0x331d   :  { %v5166_v41 = vmul.f32 %v9761_v32, %v5164_v40 }
0x331f   :  { %5168 = vrot.lane.b32.xlu0 %v5166_v41, %s10072_s23 }
0x3329   :  { %v5207_v10 = vpop.permute.xlu1 %5206 }
0x332a   :  { %v5209_v42 = vadd.f32 %v5207_v10, %v5003_v34 }
0x332c   :  { %9762 = vtanh.f32 %v5209_v42 }
0x332d   :  { %9764 = vpow2.f32 %v8294_v38 }
0x3339   :  { %v9763_v43 = vpop.eup %9762 }
0x333a   :  { %5213 = vrot.lane.b32.xlu1 %v9763_v43, %s10073_s25  ;;  %v9765_v5 = vpop.eup %9764 }
0x333b   :  { %v5198_v54 = vadd.f32 1.0, %v9765_v5 }
0x3391   :  { %v5169_v18 = vpop.permute.xlu0 %5168 }
0x3392   :  { %v5171_v62 = vadd.f32 %v5169_v18, %v5001_v35  ;;  %v5228_v35 = vld [vmem:[#allocation2 + $0x8] sm:$0xc0] }
0x3394   :  { %9766 = vtanh.f32 %v5171_v62 }
0x3395   :  { %9768 = vrcp.f32 %v5198_v54 }
0x33a1   :  { %v9767_v59 = vpop.eup %9766 }
0x33a2   :  { %5175 = vrot.lane.b32.xlu0 %v9767_v59, %s10073_s25  ;;  %v9769_v45 = vpop.eup %9768 }
0x33a3   :  { %v5211_v2 = vsub.f32 1.0, %v9769_v45  ;;  %v5218_v8 = vmul.f32 %v9769_v45, %v5080_v6  ;;  %v5179_v6 = vrot.slane %v11471_v14, 6 }
0x33a5   :  { %v5181_v13 = vmul.f32 %v9761_v32, %v5179_v6 }
0x33ac   :  { %v5214_v46 = vpop.permute.xlu1 %5213 }
0x33ad   :  { %v5216_v12 = vmul.f32 %v5214_v46, %v5211_v2 }
0x33af   :  { %v11497_v51 = vadd.f32 %v5218_v8, %v5216_v12 }
0x33b1   :  { %5225 = vst.msk [vmem:[#allocation4 + $0x8] sm:$0x3] %vm516_vm8, %v11497_v51  ;;  %9193 = vmatmul.mubr.msk.f32.vlgmr.msra.gmra.mxu0 %vm206_vm5, %v11497_v51  ;;  %v5439_v59 = vrot.slane %v11497_v51, 2 }
0x33b2   :  { %9207 = vmatpush3.msra.mxu0 %v11252_v26  ;;  %9214 = vmatprep.mubr.msk.f32.mxu0 %vm10071_vm4, %v10070_v1 }
0x33b3   :  { %9208 = vmatprep.subr.mxu0 %v10070_v1 }
0x33b4   :  { %9209 = vmatpush3.msra.mxu0 %v11261_v37 }
0x33b5   :  { %9210 = vmatprep.subr.mxu0 %v10070_v1 }
0x33b6   :  { %9211 = vmatpush3.msra.mxu0 %v11269_v63 }
0x33b7   :  { %9212 = vmatprep.subr.mxu0 %v10070_v1 }
0x33b8   :  { %9213 = vmatpush3.msra.mxu0 %v11276_v3 }
0x33b9   :  { %9228 = vmatprep.subr.mxu0 %v10070_v1 }
0x3414   :  { %v5176_v24 = vpop.permute.xlu0 %5175 }
0x3415   :  { %v5178_v15 = vmul.f32 %v5176_v24, %v5173_v9 }
0x3417   :  { %v11514_v16 = vadd.f32 %v5181_v13, %v5178_v15 }
0x3419   :  { %v5229_v47 = vrot.slane %v11514_v16, 6 }
0x341b   :  { %5230 = vrot.lane.b32.xlu1 %v5229_v47, %s10073_s25 }
0x3471   :  { %v5373_v11 = vpop.f32.mrf.mxu0 }
0x3472   :  { %v5374_v19 = vadd.f32 %v11358_v23, %v5373_v11 }
0x3473   :  { %v9194_v52 = vpop.f32.mrf.mxu0 }
0x3474   :  { %v5405_v20 = vrot.slane %v5374_v19, 2 }
0x3476   :  { %5423 = vrot.lane.b32.xlu1 %v5405_v20, %s10074_s26  ;;  %5406 = vrot.lane.b32.xlu0 %v5405_v20, %s10073_s25 }
0x348d   :  { %v5231_v21 = vpop.permute.xlu1 %5230 }
0x348e   :  { %9182 = vmatmul.mubr.msk.f32.vlgmr.msra.gmra.mxu1 %vm206_vm5, %v5231_v21 }
0x348f   :  { %9196 = vmatpush3.msra.mxu1 %v11282_v48  ;;  %9203 = vmatprep.mubr.msk.f32.mxu1 %vm10071_vm4, %v10070_v1 }
0x3490   :  { %9197 = vmatprep.subr.mxu1 %v10070_v1 }
0x3491   :  { %9198 = vmatpush3.msra.mxu1 %v11290_v39 }
0x3492   :  { %9199 = vmatprep.subr.mxu1 %v10070_v1 }
0x3493   :  { %9200 = vmatpush3.msra.mxu1 %v11299_v50 }
0x3494   :  { %9201 = vmatprep.subr.mxu1 %v10070_v1 }
0x3495   :  { %9202 = vmatpush3.msra.mxu1 %v11307_v57 }
0x3496   :  { %9217 = vmatprep.subr.mxu1 %v10070_v1 }
0x34e8   :  { %v5407_v56 = vpop.permute.xlu0 %5406  ;;  %v5424_v61 = vpop.permute.xlu1 %5423 }
0x34e9   :  { %v5409_v27 = vadd.f32 %v5407_v56, %v5227_v22  ;;  %v5416_v49 = vadd.f32 %v5407_v56, %v5228_v35 }
0x34eb   :  { %v8298_v28 = vmul.f32 -1.442695, %v5409_v27  ;;  %v8299_v38 = vmul.f32 -1.442695, %v5416_v49 }
0x34ed   :  { %9770 = vpow2.f32 %v8298_v28 }
0x34fa   :  { %v9771_v53 = vpop.eup %9770 }
0x34fb   :  { %v5413_v17 = vadd.f32 1.0, %v9771_v53 }
0x34fd   :  { %9772 = vrcp.f32 %v5413_v17 }
0x350a   :  { %v9773_v29 = vpop.eup %9772 }
0x350b   :  { %v5426_v55 = vmul.f32 %v9773_v29, %v5424_v61 }
0x350d   :  { %5428 = vrot.lane.b32.xlu0 %v5426_v55, %s10072_s23 }
0x354e   :  { %v5300_v33 = vpop.f32.mrf.mxu1 }
0x354f   :  { %v5301_v7 = vadd.f32 %v11350_v0, %v5300_v33 }
0x3550   :  { %v9183_v25 = vpop.f32.mrf.mxu1 }
0x3551   :  { %5385 = vrot.lane.b32.xlu1 %v5301_v7, %s10072_s23  ;;  %v5377_v32 = vadd.f32 %v5301_v7, %v5226_v4 }
0x3553   :  { %v8297_v40 = vmul.f32 -1.442695, %v5377_v32 }
0x357f   :  { %v5429_v30 = vpop.permute.xlu0 %5428 }
0x3580   :  { %v5431_v31 = vadd.f32 %v5429_v30, %v5228_v35  ;;  %v5449_v35 = vld [vmem:[#allocation2 + $0x10] sm:$0xc] }
0x3582   :  { %9774 = vtanh.f32 %v5431_v31 }
0x3583   :  { %9776 = vpow2.f32 %v8297_v40 }
0x358f   :  { %v9775_v36 = vpop.eup %9774 }
0x3590   :  { %5435 = vrot.lane.b32.xlu1 %v9775_v36, %s10073_s25  ;;  %v9777_v41 = vpop.eup %9776 }
0x3591   :  { %v5381_v34 = vadd.f32 1.0, %v9777_v41 }
0x3593   :  { %9778 = vrcp.f32 %v5381_v34 }
0x3594   :  { %9780 = vpow2.f32 %v8299_v38 }
0x35a0   :  { %v9779_v10 = vpop.eup %9778 }
0x35a1   :  { %v9781_v18 = vpop.eup %9780  ;;  %v5395_v6 = vsub.f32 1.0, %v9779_v10 }
0x35a2   :  { %v5420_v62 = vadd.f32 1.0, %v9781_v18  ;;  %v9982_v18 = vld [vmem:[%s12231_s7 + $0xb8] sm:$0xff] }
0x35a4   :  { %9782 = vrcp.f32 %v5420_v62  ;;  %v9983_v62 = vld [vmem:[%s12231_s7 + $0xb0] sm:$0xff] }
0x35b1   :  { %v9783_v5 = vpop.eup %9782 }
0x35b2   :  { %v5433_v54 = vsub.f32 1.0, %v9783_v5  ;;  %v5441_v2 = vmul.f32 %v9783_v5, %v5439_v59  ;;  %v9984_v5 = vld [vmem:[%s12231_s7 + $0xa8] sm:$0xff] }
0x35c3   :  { %v5386_v42 = vpop.permute.xlu1 %5385 }
0x35c4   :  { %v5388_v43 = vmul.f32 %v9779_v10, %v5386_v42 }
0x35c6   :  { %5390 = vrot.lane.b32.xlu0 %v5388_v43, %s10072_s23 }
0x3602   :  { %v5436_v45 = vpop.permute.xlu1 %5435 }
0x3603   :  { %v5438_v46 = vmul.f32 %v5436_v45, %v5433_v54  ;;  %v9985_v54 = vld [vmem:[%s12231_s7 + $0xa0] sm:$0xff] }
0x3605   :  { %v11540_v8 = vadd.f32 %v5441_v2, %v5438_v46 }
0x3607   :  { %5448 = vst.msk [vmem:[#allocation4] sm:$0xc0] %vm518_vm7, %v11540_v8  ;;  %v5525_v12 = vrot.slane %v11540_v8, 6 }
0x3609   :  { %9215 = vmatmul.mubr.msk.f32.vlgmr.msra.gmra.mxu0 %vm206_vm5, %v5525_v12 }
0x360a   :  { %9229 = vmatpush3.msra.mxu0 %v11252_v26  ;;  %9236 = vmatprep.mubr.msk.f32.mxu0 %vm10071_vm4, %v10070_v1 }
0x360b   :  { %9230 = vmatprep.subr.mxu0 %v10070_v1 }
0x360c   :  { %9231 = vmatpush3.msra.mxu0 %v11261_v37  ;;  %v5402_v37 = vmul.f32 %v9779_v10, %v5229_v47  ;;  %v5450_v47 = vld [vmem:[#allocation2] sm:$0x30] }
0x360d   :  { %9232 = vmatprep.subr.mxu0 %v10070_v1 }
0x360e   :  { %9233 = vmatpush3.msra.mxu0 %v11269_v63 }
0x360f   :  { %9234 = vmatprep.subr.mxu0 %v10070_v1 }
0x3610   :  { %9235 = vmatpush3.msra.mxu0 %v11276_v3 }
0x3611   :  { %9250 = vmatprep.subr.mxu0 %v10070_v1 }
0x3638   :  { %v5391_v51 = vpop.permute.xlu0 %5390 }
0x3639   :  { %v5393_v9 = vadd.f32 %v5391_v51, %v5226_v4 }
0x363b   :  { %9784 = vtanh.f32 %v5393_v9 }
0x3648   :  { %v9785_v26 = vpop.eup %9784 }
0x3649   :  { %5397 = vrot.lane.b32.xlu0 %v9785_v26, %s10073_s25 }
0x36bb   :  { %v5398_v24 = vpop.permute.xlu0 %5397 }
0x36bc   :  { %v5400_v13 = vmul.f32 %v5398_v24, %v5395_v6 }
0x36be   :  { %v11559_v15 = vadd.f32 %v5402_v37, %v5400_v13 }
0x36c0   :  { %5444 = vrot.lane.b32.xlu1 %v11559_v15, %s10073_s25  ;;  %v5624_v24 = vrot.slane %v11559_v15, 6 }
0x36c9   :  { %v5594_v63 = vpop.f32.mrf.mxu0 }
0x36ca   :  { %v5595_v3 = vadd.f32 %v11358_v23, %v5594_v63 }
0x36cb   :  { %v9216_v11 = vpop.f32.mrf.mxu0 }
0x36cc   :  { %v5629_v19 = vrot.slane %v5595_v3, 4 }
0x36ce   :  { %5647 = vrot.lane.b32.xlu1 %v5629_v19, %s10074_s26  ;;  %5630 = vrot.lane.b32.xlu0 %v5629_v19, %s10073_s25 }
0x3732   :  { %v5445_v52 = vpop.permute.xlu1 %5444 }
0x3733   :  { %5447 = vst.msk [vmem:[#allocation3 + $0x8] sm:$0x3] %vm516_vm8, %v5445_v52  ;;  %9204 = vmatmul.mubr.msk.f32.vlgmr.msra.gmra.mxu1 %vm206_vm5, %v5445_v52 }
0x3734   :  { %9218 = vmatpush3.msra.mxu1 %v11282_v48  ;;  %9225 = vmatprep.mubr.msk.f32.mxu1 %vm10071_vm4, %v10070_v1 }
0x3735   :  { %9219 = vmatprep.subr.mxu1 %v10070_v1 }
0x3736   :  { %9220 = vmatpush3.msra.mxu1 %v11290_v39 }
0x3737   :  { %9221 = vmatprep.subr.mxu1 %v10070_v1 }
0x3738   :  { %9222 = vmatpush3.msra.mxu1 %v11299_v50  ;;  %v5451_v50 = vld [vmem:[#allocation2 + $0x8] sm:$0x30] }
0x3739   :  { %9223 = vmatprep.subr.mxu1 %v10070_v1 }
0x373a   :  { %9224 = vmatpush3.msra.mxu1 %v11307_v57 }
0x373b   :  { %9239 = vmatprep.subr.mxu1 %v10070_v1 }
0x3740   :  { %v5631_v20 = vpop.permute.xlu0 %5630  ;;  %v5648_v39 = vpop.permute.xlu1 %5647 }
0x3741   :  { %v5633_v48 = vadd.f32 %v5631_v20, %v5450_v47  ;;  %v5640_v7 = vadd.f32 %v5631_v20, %v5451_v50 }
0x3743   :  { %v8303_v21 = vmul.f32 -1.442695, %v5633_v48  ;;  %v8304_v25 = vmul.f32 -1.442695, %v5640_v7 }
0x3745   :  { %9786 = vpow2.f32 %v8303_v21 }
0x3752   :  { %v9787_v22 = vpop.eup %9786 }
0x3753   :  { %v5637_v56 = vadd.f32 1.0, %v9787_v22  ;;  %v9986_v22 = vld [vmem:[%s12231_s7 + $0x98] sm:$0xff] }
0x3755   :  { %9788 = vrcp.f32 %v5637_v56 }
0x3762   :  { %v9789_v27 = vpop.eup %9788 }
0x3763   :  { %v5650_v28 = vmul.f32 %v9789_v27, %v5648_v39  ;;  %v9987_v39 = vld [vmem:[%s12231_s7 + $0x90] sm:$0xff] }
0x3765   :  { %5652 = vrot.lane.b32.xlu0 %v5650_v28, %s10072_s23 }
0x37d7   :  { %v5653_v53 = vpop.permute.xlu0 %5652 }
0x37d8   :  { %v5655_v17 = vadd.f32 %v5653_v53, %v5451_v50  ;;  %v9988_v50 = vld [vmem:[%s12231_s7 + $0x88] sm:$0xff]  ;;  %v9989_v53 = vld [vmem:[%s12231_s7 + $0x80] sm:$0xff] }
0x37da   :  { %9790 = vtanh.f32 %v5655_v17  ;;  %v5675_v17 = vld [vmem:[#allocation2 + $0x8] sm:$0xc] }
0x37db   :  { %9792 = vpow2.f32 %v8304_v25 }
0x37e7   :  { %v9791_v57 = vpop.eup %9790 }
0x37e8   :  { %5659 = vrot.lane.b32.xlu0 %v9791_v57, %s10073_s25  ;;  %v9793_v30 = vpop.eup %9792 }
0x37e9   :  { %v5644_v36 = vadd.f32 1.0, %v9793_v30 }
0x37eb   :  { %9794 = vrcp.f32 %v5644_v36 }
0x37f3   :  { %v5520_v29 = vpop.f32.mrf.mxu1 }
0x37f4   :  { %v5521_v61 = vadd.f32 %v11350_v0, %v5520_v29  ;;  %v5663_v0 = vrot.slane %v11540_v8, 2 }
0x37f5   :  { %v9205_v55 = vpop.f32.mrf.mxu1 }
0x37f6   :  { %v5599_v33 = vrot.slane %v5521_v61, 6 }
0x37f8   :  { %5608 = vrot.lane.b32.xlu1 %v5599_v33, %s10072_s23  ;;  %v5601_v31 = vadd.f32 %v5599_v33, %v5449_v35  ;;  %v9795_v32 = vpop.eup %9794  ;;  %v11639_v33 = vld [vmem:[%s12232_s8 + $0x4] ss:$0 sm:$0xff] }
0x37f9   :  { %v5657_v34 = vsub.f32 1.0, %v9795_v32  ;;  %v5665_v42 = vmul.f32 %v9795_v32, %v5663_v0 }
0x37fa   :  { %v8302_v4 = vmul.f32 -1.442695, %v5601_v31 }
0x37fc   :  { %9796 = vpow2.f32 %v8302_v4 }
0x3809   :  { %v9797_v40 = vpop.eup %9796 }
0x380a   :  { %v5605_v41 = vadd.f32 1.0, %v9797_v40 }
0x380c   :  { %9798 = vrcp.f32 %v5605_v41 }
0x3819   :  { %v9799_v59 = vpop.eup %9798 }
0x381a   :  { %v5618_v37 = vsub.f32 1.0, %v9799_v59  ;;  %v5626_v63 = vmul.f32 %v9799_v59, %v5624_v24 }
0x385a   :  { %v5660_v10 = vpop.permute.xlu0 %5659 }
0x385b   :  { %v5662_v43 = vmul.f32 %v5660_v10, %v5657_v34 }
0x385d   :  { %v11583_v49 = vadd.f32 %v5665_v42, %v5662_v43 }
0x385f   :  { %5672 = vst.msk [vmem:[#allocation4] sm:$0x30] %vm744_vm9, %v11583_v49  ;;  %v5752_v38 = vrot.slane %v11583_v49, 4  ;;  %v5890_v41 = vrot.slane %v11583_v49, 2 }
0x3861   :  { %9237 = vmatmul.mubr.msk.f32.vlgmr.msra.gmra.mxu0 %vm206_vm5, %v5752_v38  ;;  %v5673_v38 = vld [vmem:[#allocation2 + $0x10] sm:$0x30] }
0x3862   :  { %9251 = vmatpush3.msra.mxu0 %v9982_v18  ;;  %9258 = vmatprep.mubr.msk.f32.mxu0 %vm10071_vm4, %v10070_v1 }
0x3863   :  { %9252 = vmatprep.subr.mxu0 %v10070_v1 }
0x3864   :  { %9253 = vmatpush3.msra.mxu0 %v9983_v62 }
0x3865   :  { %9254 = vmatprep.subr.mxu0 %v10070_v1 }
0x3866   :  { %9255 = vmatpush3.msra.mxu0 %v9984_v5 }
0x3867   :  { %9256 = vmatprep.subr.mxu0 %v10070_v1 }
0x3868   :  { %9257 = vmatpush3.msra.mxu0 %v9985_v54 }
0x386a   :  { %v5609_v45 = vpop.permute.xlu1 %5608 }
0x386b   :  { %v5611_v2 = vmul.f32 %v9799_v59, %v5609_v45 }
0x386d   :  { %5613 = vrot.lane.b32.xlu1 %v5611_v2, %s10072_s23 }
0x38df   :  { %v5614_v46 = vpop.permute.xlu1 %5613 }
0x38e0   :  { %v5616_v8 = vadd.f32 %v5614_v46, %v5449_v35 }
0x38e2   :  { %9800 = vtanh.f32 %v5616_v8 }
0x38ef   :  { %v9801_v12 = vpop.eup %9800 }
0x38f0   :  { %5620 = vrot.lane.b32.xlu0 %v9801_v12, %s10073_s25 }
0x3921   :  { %v5821_v51 = vpop.f32.mrf.mxu0 }
0x3922   :  { %v5822_v9 = vadd.f32 %v11358_v23, %v5821_v51  ;;  %v5674_v23 = vld [vmem:[#allocation2] sm:$0xc]  ;;  %v9991_v51 = vld [vmem:[%s12232_s8 + $0x5] ss:$0 sm:$0xff] }
0x3923   :  { %v9238_v26 = vpop.f32.mrf.mxu0 }
0x3924   :  { %v5856_v6 = vrot.slane %v5822_v9, 6 }
0x3926   :  { %5857 = vrot.lane.b32.xlu0 %v5856_v6, %s10073_s25 }
0x3962   :  { %v5621_v13 = vpop.permute.xlu0 %5620 }
0x3963   :  { %v5623_v3 = vmul.f32 %v5621_v13, %v5618_v37 }
0x3965   :  { %v11611_v11 = vadd.f32 %v5626_v63, %v5623_v3 }
0x3967   :  { %v5676_v19 = vrot.slane %v11611_v11, 2  ;;  %v5851_v24 = vrot.slane %v11611_v11, 6 }
0x3969   :  { %5677 = vrot.lane.b32.xlu1 %v5676_v19, %s10073_s25 }
0x396d   :  { %5874 = vrot.lane.b32.xlu1 %v5856_v6, %s10074_s26 }
0x3998   :  { %v5858_v52 = vpop.permute.xlu0 %5857 }
0x3999   :  { %v5860_v47 = vadd.f32 %v5858_v52, %v5674_v23  ;;  %v5867_v30 = vadd.f32 %v5858_v52, %v5675_v17  ;;  %v5901_v23 = vld [vmem:[#allocation2] sm:$0x3] }
0x399b   :  { %v8308_v20 = vmul.f32 -1.442695, %v5860_v47  ;;  %v8309_v31 = vmul.f32 -1.442695, %v5867_v30  ;;  %v6146_v30 = vld [vmem:[%s12229_s5 + $0x138] sm:$0xff] }
0x399c   :  { %6272 = vmatprep.subr.mxu0 %v6146_v30 }
0x399d   :  { %9802 = vpow2.f32 %v8308_v20 }
0x39aa   :  { %v9803_v48 = vpop.eup %9802 }
0x39ab   :  { %v5864_v21 = vadd.f32 1.0, %v9803_v48 }
0x39ad   :  { %9804 = vrcp.f32 %v5864_v21 }
0x39ba   :  { %v9805_v56 = vpop.eup %9804 }
0x39db   :  { %v5678_v15 = vpop.permute.xlu1 %5677 }
0x39dc   :  { %9226 = vmatmul.mubr.msk.f32.vlgmr.msra.gmra.mxu1 %vm206_vm5, %v5678_v15 }
0x39dd   :  { %9240 = vmatpush3.msra.mxu1 %v9986_v22  ;;  %9247 = vmatprep.mubr.msk.f32.mxu1 %vm10071_vm4, %v10070_v1 }
0x39de   :  { %9241 = vmatprep.subr.mxu1 %v10070_v1 }
0x39df   :  { %v5875_v27 = vpop.permute.xlu1 %5874  ;;  %9242 = vmatpush3.msra.mxu1 %v9987_v39  ;;  %v5902_v39 = vld [vmem:[#allocation2 + $0x8] sm:$0x3] }
0x39e0   :  { %v5877_v28 = vmul.f32 %v9805_v56, %v5875_v27  ;;  %9243 = vmatprep.subr.mxu1 %v10070_v1 }
0x39e1   :  { %9244 = vmatpush3.msra.mxu1 %v9988_v50 }
0x39e2   :  { %5879 = vrot.lane.b32.xlu0 %v5877_v28, %s10072_s23  ;;  %9245 = vmatprep.subr.mxu1 %v10070_v1 }
0x39e3   :  { %9246 = vmatpush3.msra.mxu1 %v9989_v53  ;;  %v6154_v53 = vld [vmem:[%s12229_s5 + $0x178] sm:$0xff] }
0x39e4   :  { %6189 = vmatprep.subr.mxu1 %v6154_v53 }
0x3a54   :  { %v5880_v57 = vpop.permute.xlu0 %5879 }
0x3a55   :  { %v5882_v29 = vadd.f32 %v5880_v57, %v5675_v17  ;;  %v6153_v17 = vld [vmem:[%s12229_s5 + $0x170] sm:$0xff]  ;;  %v6152_v57 = vld [vmem:[%s12229_s5 + $0x168] sm:$0xff] }
0x3a57   :  { %9806 = vtanh.f32 %v5882_v29  ;;  %v6151_v29 = vld [vmem:[%s12229_s5 + $0x160] sm:$0xff] }
0x3a58   :  { %9808 = vpow2.f32 %v8309_v31  ;;  %v6145_v31 = vld [vmem:[%s12229_s5 + $0x130] sm:$0xff] }
0x3a64   :  { %v9807_v61 = vpop.eup %9806 }
0x3a65   :  { %5886 = vrot.lane.b32.xlu0 %v9807_v61, %s10073_s25  ;;  %v9809_v36 = vpop.eup %9808  ;;  %v6150_v61 = vld [vmem:[%s12229_s5 + $0x158] sm:$0xff] }
0x3a66   :  { %v5871_v4 = vadd.f32 1.0, %v9809_v36  ;;  %v6144_v36 = vld [vmem:[%s12229_s5 + $0x128] sm:$0xff] }
0x3a68   :  { %9810 = vrcp.f32 %v5871_v4  ;;  %v6141_v4 = vld [vmem:[%s12229_s5 + $0x110] sm:$0xff] }
0x3a75   :  { %v9811_v32 = vpop.eup %9810 }
0x3a76   :  { %v5884_v40 = vsub.f32 1.0, %v9811_v32  ;;  %v5892_v0 = vmul.f32 %v9811_v32, %v5890_v41 }
0x3a9c   :  { %v5747_v55 = vpop.f32.mrf.mxu1 }
0x3a9d   :  { %v5748_v7 = vadd.f32 %v11639_v33, %v5747_v55  ;;  %v6149_v55 = vld [vmem:[%s12229_s5 + $0x150] sm:$0xff] }
0x3a9e   :  { %v9227_v25 = vpop.f32.mrf.mxu1 }
0x3a9f   :  { %v5826_v35 = vrot.slane %v5748_v7, 4  ;;  %v6148_v7 = vld [vmem:[%s12229_s5 + $0x148] sm:$0xff]  ;;  %v6147_v25 = vld [vmem:[%s12229_s5 + $0x140] sm:$0xff] }
0x3aa1   :  { %5835 = vrot.lane.b32.xlu1 %v5826_v35, %s10072_s23  ;;  %v5828_v18 = vadd.f32 %v5826_v35, %v5673_v38 }
0x3aa3   :  { %v8307_v62 = vmul.f32 -1.442695, %v5828_v18 }
0x3aa5   :  { %9812 = vpow2.f32 %v8307_v62 }
0x3ab2   :  { %v9813_v49 = vpop.eup %9812 }
0x3ab3   :  { %v5832_v5 = vadd.f32 1.0, %v9813_v49 }
0x3ab5   :  { %9814 = vrcp.f32 %v5832_v5 }
0x3ac2   :  { %v9815_v54 = vpop.eup %9814 }
0x3ac3   :  { %v5845_v6 = vsub.f32 1.0, %v9815_v54  ;;  %v5853_v13 = vmul.f32 %v9815_v54, %v5851_v24 }
0x3ad7   :  { %v5887_v34 = vpop.permute.xlu0 %5886 }
0x3ad8   :  { %v5889_v10 = vmul.f32 %v5887_v34, %v5884_v40  ;;  %v6140_v40 = vld [vmem:[%s12229_s5 + $0x108] sm:$0xff]  ;;  %v6139_v34 = vld [vmem:[%s12229_s5 + $0x100] sm:$0xff] }
0x3ada   :  { %v11644_v42 = vadd.f32 %v5892_v0, %v5889_v10 }
0x3adc   :  { %5899 = vst.msk [vmem:[#allocation4] sm:$0xc] %vm742_vm10, %v11644_v42  ;;  %v5979_v43 = vrot.slane %v11644_v42, 2  ;;  %v11746_v42 = vld [vmem:[%s12231_s7 + $0xd0] sm:$0xff] }
0x3ade   :  { %9259 = vmatmul.mubr.msk.f32.vlgmr.msra.gmra.mxu0 %vm206_vm5, %v5979_v43 }
0x3adf   :  { %6312 = vmatprep.mubr.f32.mxu0 %v10070_v1  ;;  %6273 = vmatpush1.msra.mxu0 %v6145_v31 }
0x3ae0   :  { %6274 = vmatprep.subr.mxu0 %v6144_v36 }
0x3b13   :  { %v5836_v59 = vpop.permute.xlu1 %5835 }
0x3b14   :  { %v5838_v45 = vmul.f32 %v9815_v54, %v5836_v59 }
0x3b16   :  { %5840 = vrot.lane.b32.xlu1 %v5838_v45, %s10072_s23 }
0x3b88   :  { %v5841_v2 = vpop.permute.xlu1 %5840 }
0x3b89   :  { %v5843_v46 = vadd.f32 %v5841_v2, %v5673_v38 }
0x3b8b   :  { %9816 = vtanh.f32 %v5843_v46 }
0x3b98   :  { %v9817_v8 = vpop.eup %9816 }
0x3b99   :  { %5847 = vrot.lane.b32.xlu0 %v9817_v8, %s10073_s25  ;;  %v11740_v8 = vld [vmem:[%s12231_s7 + $0xd8] sm:$0xff] }
0x3b9e   :  { %v6048_v12 = vpop.f32.mrf.mxu0 }
0x3b9f   :  { %v6049_v9 = vadd.f32 %v9991_v51, %v6048_v12  ;;  %v6158_v51 = vld [vmem:[#allocation4 + $0x8] sm:$0xff] }
0x3ba0   :  { %v9260_v26 = vpop.f32.mrf.mxu0 }
0x3ba1   :  { %6083 = vrot.lane.b32.xlu0 %v6049_v9, %s10073_s25  ;;  %v5900_v26 = vld [vmem:[#allocation2 + $0x10] sm:$0xc0] }
0x3c0b   :  { %v5848_v37 = vpop.permute.xlu0 %5847 }
0x3c0c   :  { %v5850_v63 = vmul.f32 %v5848_v37, %v5845_v6 }
0x3c0e   :  { %v11660_v3 = vadd.f32 %v5853_v13, %v5850_v63 }
0x3c10   :  { %v5903_v19 = vrot.slane %v11660_v3, 4 }
0x3c12   :  { %5904 = vrot.lane.b32.xlu1 %v5903_v19, %s10073_s25 }
0x3c13   :  { %v11665_v52 = vpop.permute.xlu0 %6083 }
0x3c14   :  { %v6086_v47 = vadd.f32 %v11665_v52, %v5901_v23  ;;  %v6093_v38 = vadd.f32 %v11665_v52, %v5902_v39 }
0x3c16   :  { %6100 = vrot.lane.b32.xlu1 %v6049_v9, %s10074_s26  ;;  %v8313_v20 = vmul.f32 -1.442695, %v6086_v47  ;;  %v11762_v9 = vld [vmem:[%s12231_s7 + $0xc0] sm:$0xff] }
0x3c18   :  { %9818 = vpow2.f32 %v8313_v20 }
0x3c25   :  { %v9819_v48 = vpop.eup %9818 }
0x3c26   :  { %v6090_v21 = vadd.f32 1.0, %v9819_v48 }
0x3c28   :  { %9820 = vrcp.f32 %v6090_v21 }
0x3c35   :  { %v9821_v22 = vpop.eup %9820 }
0x3c84   :  { %v5905_v15 = vpop.permute.xlu1 %5904 }
0x3c85   :  { %9248 = vmatmul.mubr.msk.f32.vlgmr.msra.gmra.mxu1 %vm206_vm5, %v5905_v15 }
0x3c86   :  { %6229 = vmatprep.mubr.f32.mxu1 %v10070_v1  ;;  %6190 = vmatpush1.msra.mxu1 %v6153_v17  ;;  %v8315_v17 = vld [vmem:[%s12230_s6 + $0x3] ss:$4 sm:$0x3] }
0x3c87   :  { %6191 = vmatprep.subr.mxu1 %v6152_v57  ;;  %v11806_v57 = vrot.slane %v8315_v17, %v10315_v58  ;;  %v11817_v58 = vld [vmem:[%s12231_s7 + $0xf8] sm:$0xff] }
0x3c88   :  { %v6101_v56 = vpop.permute.xlu1 %6100  ;;  %6192 = vmatpush1.msra.mxu1 %v6151_v29 }
0x3c89   :  { %v6103_v27 = vmul.f32 %v9821_v22, %v6101_v56  ;;  %6193 = vmatprep.subr.mxu1 %v6150_v61 }
0x3c8a   :  { %6194 = vmatpush1.msra.mxu1 %v6149_v55  ;;  %v11809_v55 = vrot.slane %v8315_v17, %v10320_v60  ;;  %v11822_v60 = vld [vmem:[%s12231_s7 + $0xf0] sm:$0xff] }
0x3c8b   :  { %6105 = vrot.lane.b32.xlu0 %v6103_v27, %s10072_s23  ;;  %6195 = vmatprep.subr.mxu1 %v6148_v7 }
0x3c8c   :  { %6196 = vmatpush1.msra.mxu1 %v6147_v25 }
0x3c8d   :  { %9261 = vmatprep.subr.mxu1 %v10070_v1 }
0x3cfd   :  { %v6106_v28 = vpop.permute.xlu0 %6105 }
0x3cfe   :  { %v6108_v50 = vadd.f32 %v6106_v28, %v5902_v39  ;;  %v11798_v39 = vld [vmem:[%s12232_s8 + $0x6] ss:$0 sm:$0xff] }
0x3d00   :  { %9822 = vtanh.f32 %v6108_v50 }
0x3d0d   :  { %v9823_v35 = vpop.eup %9822 }
0x3d0e   :  { %6112 = vrot.lane.b32.xlu1 %v9823_v35, %s10073_s25 }
0x3d12   :  { %4769 = vrot.lane.b32.xlu1 %v11410_v44, %s10073_s25  ;;  %v6143_v44 = vld [vmem:[%s12229_s5 + $0x120] sm:$0xff] }
0x3d13   :  { %6275 = vmatpush1.msra.mxu0 %v6143_v44 }
0x3d16   :  { %5221 = vrot.lane.b32.xlu1 %v11514_v16, %s10073_s25  ;;  %v6142_v16 = vld [vmem:[%s12229_s5 + $0x118] sm:$0xff] }
0x3d17   :  { %6276 = vmatprep.subr.mxu0 %v6142_v16 }
0x3d18   :  { %6277 = vmatpush1.msra.mxu0 %v6141_v4  ;;  %v6078_v4 = vrot.slane %v11660_v3, 6 }
0x3d19   :  { %6278 = vmatprep.subr.mxu0 %v6140_v40  ;;  %v11832_v40 = vld [vmem:[%s12231_s7 + $0xe8] sm:$0xff] }
0x3d1a   :  { %6279 = vmatpush1.msra.mxu0 %v6139_v34 }
0x3d1b   :  { %9272 = vmatprep.subr.mxu0 %v10070_v1 }
0x3d45   :  { %v5974_v32 = vpop.f32.mrf.mxu1 }
0x3d46   :  { %v5975_v41 = vadd.f32 %v11639_v33, %v5974_v32  ;;  %v8314_v33 = vmul.f32 -1.442695, %v6093_v38 }
0x3d47   :  { %v9249_v0 = vpop.f32.mrf.mxu1 }
0x3d48   :  { %v6053_v10 = vrot.slane %v5975_v41, 2  ;;  %9824 = vpow2.f32 %v8314_v33  ;;  %v11837_v41 = vld [vmem:[%s12231_s7 + $0xe0] sm:$0xff] }
0x3d4a   :  { %6062 = vrot.lane.b32.xlu0 %v6053_v10, %s10072_s23  ;;  %v6055_v6 = vadd.f32 %v6053_v10, %v5900_v26 }
0x3d4c   :  { %v8312_v24 = vmul.f32 -1.442695, %v6055_v6 }
0x3d4e   :  { %4996 = vrot.lane.b32.xlu0 %v11471_v14, %s10073_s25 }
0x3d55   :  { %v9825_v18 = vpop.eup %9824 }
0x3d56   :  { %v6097_v62 = vadd.f32 1.0, %v9825_v18 }
0x3d58   :  { %9826 = vrcp.f32 %v6097_v62 }
0x3d59   :  { %9828 = vpow2.f32 %v8312_v24 }
0x3d65   :  { %v9827_v49 = vpop.eup %9826 }
0x3d66   :  { %v6110_v5 = vsub.f32 1.0, %v9827_v49  ;;  %v6117_v59 = vmul.f32 %v9827_v49, %v5979_v43  ;;  %v11754_v43 = vld [vmem:[%s12231_s7 + $0xc8] sm:$0xff]  ;;  %v9829_v37 = vpop.eup %9828 }
0x3d67   :  { %v6059_v13 = vadd.f32 1.0, %v9829_v37 }
0x3d69   :  { %9830 = vrcp.f32 %v6059_v13  ;;  %v11871_v13 = vld [vmem:[%s12232_s8 + $0x7] ss:$0 sm:$0xff] }
0x3d76   :  { %v9831_v63 = vpop.eup %9830 }
0x3d77   :  { %v6072_v16 = vsub.f32 1.0, %v9831_v63  ;;  %v6080_v34 = vmul.f32 %v9831_v63, %v6078_v4 }
0x3d80   :  { %v6113_v54 = vpop.permute.xlu1 %6112 }
0x3d81   :  { %v6115_v45 = vmul.f32 %v6113_v54, %v6110_v5 }
0x3d83   :  { %v6118_v2 = vadd.f32 %v6117_v59, %v6115_v45 }
0x3d84   :  { %v4770_v46 = vpop.permute.xlu1 %4769 }
0x3d85   :  { %6124 = vst.msk [vmem:[#allocation4] sm:$0x3] %vm516_vm8, %v6118_v2  ;;  %6126 = vst.msk [vmem:[#allocation9 + $0xa] sm:$0x3] %vm516_vm8, %v6118_v2 }
0x3d86   :  { %4772 = vst.msk [vmem:[#allocation3] sm:$0xc] %vm742_vm10, %v4770_v46 }
0x3d88   :  { %v5222_v14 = vpop.permute.xlu1 %5221 }
0x3d89   :  { %5224 = vst.msk [vmem:[#allocation3] sm:$0xc0] %vm518_vm7, %v5222_v14 }
0x3d8c   :  { %v6157_v12 = vld [vmem:[#allocation4] sm:$0xff] }
0x3d8d   :  { %8316 = vmatmul.mubr.msk.f32.vlgmr.msra.gmra.mxu1 %vm206_vm5, %v6157_v12 }
0x3d8e   :  { %9262 = vmatpush3.msra.mxu1 %v11740_v8  ;;  %6235 = vmatprep.mubr.f32.mxu1 %v10070_v1 }
0x3d8f   :  { %9263 = vmatprep.subr.mxu1 %v10070_v1 }
0x3d90   :  { %9264 = vmatpush3.msra.mxu1 %v11746_v42 }
0x3d91   :  { %9265 = vmatprep.subr.mxu1 %v10070_v1  ;;  %8317 = vmatmul.mubr.msk.f32.gmra.mxu1 %vm206_vm5, %v6158_v51 }
0x3d92   :  { %9266 = vmatpush3.msra.mxu1 %v11754_v43  ;;  %9269 = vmatprep.mubr.msk.f32.mxu1 %vm10071_vm4, %v10070_v1 }
0x3d93   :  { %9267 = vmatprep.subr.mxu1 %v10070_v1 }
0x3d94   :  { %9268 = vmatpush3.msra.mxu1 %v11762_v9 }
0x3d95   :  { %9270 = vmatmul.mubr.f32.vlgmr.msra.gmra.mxu1 %v10070_v1  ;;  %9283 = vmatprep.subr.mxu1 %v10070_v1 }
0x3d96   :  { %9284 = vmatpush3.msra.mxu1 %v11740_v8  ;;  %9291 = vmatprep.mubr.msk.f32.mxu1 %vm10071_vm4, %v10070_v1 }
0x3d97   :  { %9285 = vmatprep.subr.mxu1 %v10070_v1 }
0x3d98   :  { %9286 = vmatpush3.msra.mxu1 %v11746_v42 }
0x3d99   :  { %9287 = vmatprep.subr.mxu1 %v10070_v1 }
0x3d9a   :  { %9288 = vmatpush3.msra.mxu1 %v11754_v43 }
0x3d9b   :  { %9289 = vmatprep.subr.mxu1 %v10070_v1 }
0x3d9c   :  { %9290 = vmatpush3.msra.mxu1 %v11762_v9 }
0x3d9d   :  { %9305 = vmatprep.subr.mxu1 %v10070_v1 }
0x3dbc   :  { %v6063_v19 = vpop.permute.xlu0 %6062 }
0x3dbd   :  { %v6065_v52 = vmul.f32 %v9831_v63, %v6063_v19 }
0x3dbf   :  { %6067 = vrot.lane.b32.xlu0 %v6065_v52, %s10072_s23 }
0x3dc0   :  { %v4997_v23 = vpop.permute.xlu0 %4996 }
0x3dc1   :  { %4999 = vst.msk [vmem:[#allocation3] sm:$0x30] %vm744_vm9, %v4997_v23 }
0x3dc3   :  { %5668 = vrot.lane.b32.xlu0 %v11611_v11, %s10073_s25 }
0x3dc8   :  { %v6155_v47 = vld [vmem:[#allocation3] sm:$0xff] }
0x3dc9   :  { %8318 = vmatmul.mubr.msk.f32.vlgmr.msra.gmra.mxu0 %vm206_vm5, %v6155_v47 }
0x3dca   :  { %6318 = vmatprep.mubr.f32.mxu0 %v10070_v1  ;;  %9273 = vmatpush3.msra.mxu0 %v11817_v58 }
0x3dcb   :  { %9274 = vmatprep.subr.mxu0 %v10070_v1 }
0x3dcc   :  { %9275 = vmatpush3.msra.mxu0 %v11822_v60 }
0x3dcd   :  { %9276 = vmatprep.subr.mxu0 %v10070_v1 }
0x3dce   :  { %9277 = vmatpush3.msra.mxu0 %v11832_v40 }
0x3dcf   :  { %9278 = vmatprep.subr.mxu0 %v10070_v1 }
0x3dd0   :  { %9279 = vmatpush3.msra.mxu0 %v11837_v41 }
0x3dd1   :  { %9294 = vmatprep.subr.mxu0 %v10070_v1 }
0x3e31   :  { %v6068_v20 = vpop.permute.xlu0 %6067 }
0x3e32   :  { %v6070_v48 = vadd.f32 %v6068_v20, %v5900_v26 }
0x3e34   :  { %9832 = vtanh.f32 %v6070_v48 }
0x3e35   :  { %v5669_v21 = vpop.permute.xlu0 %5668 }
0x3e36   :  { %5671 = vst.msk [vmem:[#allocation3 + $0x8] sm:$0xc] %vm742_vm10, %v5669_v21 }
0x3e41   :  { %v9833_v15 = vpop.eup %9832 }
0x3e42   :  { %6074 = vrot.lane.b32.xlu1 %v9833_v15, %s10073_s25 }
0x3e46   :  { %5895 = vrot.lane.b32.xlu1 %v11660_v3, %s10073_s25 }
0x3e4d   :  { %v6231_v22 = vpop.f32.mrf.mxu1 }
0x3e4f   :  { %v6233_v56 = vpop.f32.mrf.mxu1 }
0x3e51   :  { %v11791_v11 = vpop.f32.mrf.mxu1 }
0x3e53   :  { %v11793_v27 = vpop.f32.mrf.mxu1 }
0x3e55   :  { %v6417_v28 = vpop.f32.mrf.mxu1 }
0x3e56   :  { %v6418_v50 = vadd.f32 %v11798_v39, %v6417_v28 }
0x3e57   :  { %v9271_v53 = vpop.f32.mrf.mxu1 }
0x3e58   :  { %6503 = vrot.lane.b32.xlu1 %v6418_v50, %s10072_s23 }
0x3e89   :  { %v6314_v29 = vpop.f32.mrf.mxu0 }
0x3e8a   :  { %v6315_v61 = vadd.f32 %v6314_v29, %v6231_v22 }
0x3e8b   :  { %v6316_v7 = vpop.f32.mrf.mxu0 }
0x3e8c   :  { %v6336_v25 = vadd.f32 %v11806_v57, %v6315_v61  ;;  %v6317_v35 = vadd.f32 %v6316_v7, %v6233_v56 }
0x3e8e   :  { %6340 = vst [vmem:[#allocation2] sm:$0xff] %v6336_v25  ;;  %v6337_v30 = vadd.f32 %v11809_v55, %v6317_v35 }
0x3e90   :  { %6341 = vst.msk [vmem:[#allocation2 + $0x8] sm:$0xff] %vm291_vm6, %v6337_v30 }
0x3e95   :  { %v6344_v31 = vld [vmem:[#allocation2] sm:$0x3] }
0x3e96   :  { %v6495_v36 = vadd.f32 %v6418_v50, %v6344_v31 }
0x3e98   :  { %v8322_v44 = vmul.f32 -1.442695, %v6495_v36 }
0x3e9a   :  { %9834 = vpow2.f32 %v8322_v44 }
0x3ea7   :  { %v9835_v10 = vpop.eup %9834 }
0x3ea8   :  { %v6499_v33 = vadd.f32 1.0, %v9835_v10 }
0x3eaa   :  { %9836 = vrcp.f32 %v6499_v33 }
0x3eb4   :  { %v6075_v32 = vpop.permute.xlu1 %6074 }
0x3eb5   :  { %v6077_v0 = vmul.f32 %v6075_v32, %v6072_v16 }
0x3eb7   :  { %v6081_v38 = vadd.f32 %v6080_v34, %v6077_v0  ;;  %v9837_v18 = vpop.eup %9836 }
0x3eb8   :  { %v5896_v3 = vpop.permute.xlu1 %5895  ;;  %v6513_v46 = vsub.f32 1.0, %v9837_v18  ;;  %v6519_v12 = vmul.f32 0.0, %v9837_v18 }
0x3eb9   :  { %5898 = vst.msk [vmem:[#allocation3 + $0x8] sm:$0x30] %vm744_vm9, %v5896_v3  ;;  %6120 = vrot.lane.b32.xlu0 %v6081_v38, %s10073_s25 }
0x3eca   :  { %v6504_v62 = vpop.permute.xlu1 %6503 }
0x3ecb   :  { %v6506_v49 = vmul.f32 %v9837_v18, %v6504_v62 }
0x3ecd   :  { %6508 = vrot.lane.b32.xlu0 %v6506_v49, %s10072_s23 }
0x3f2b   :  { %v6121_v5 = vpop.permute.xlu0 %6120 }
0x3f2c   :  { %6123 = vst.msk [vmem:[#allocation3 + $0x8] sm:$0xc0] %vm518_vm7, %v6121_v5  ;;  %6125 = vst.msk [vmem:[#allocation9 + $0x2] sm:$0xc0] %vm518_vm7, %v6121_v5 }
0x3f33   :  { %v6156_v54 = vld [vmem:[#allocation3 + $0x8] sm:$0xff] }
0x3f34   :  { %8319 = vmatmul.mubr.msk.f32.gmra.mxu0 %vm206_vm5, %v6156_v54 }
0x3f35   :  { %9280 = vmatprep.mubr.msk.f32.mxu0 %vm10071_vm4, %v10070_v1 }
0x3f38   :  { %9281 = vmatmul.mubr.f32.vlgmr.msra.gmra.mxu0 %v10070_v1 }
0x3f39   :  { %9295 = vmatpush3.msra.mxu0 %v11817_v58  ;;  %9302 = vmatprep.mubr.msk.f32.mxu0 %vm10071_vm4, %v10070_v1 }
0x3f3a   :  { %9296 = vmatprep.subr.mxu0 %v10070_v1 }
0x3f3b   :  { %9297 = vmatpush3.msra.mxu0 %v11822_v60 }
0x3f3c   :  { %9298 = vmatprep.subr.mxu0 %v10070_v1 }
0x3f3d   :  { %9299 = vmatpush3.msra.mxu0 %v11832_v40 }
0x3f3e   :  { %9300 = vmatprep.subr.mxu0 %v10070_v1 }
0x3f3f   :  { %v6509_v59 = vpop.permute.xlu0 %6508  ;;  %9301 = vmatpush3.msra.mxu0 %v11837_v41 }
0x3f40   :  { %v6511_v45 = vadd.f32 %v6509_v59, %v6344_v31  ;;  %9316 = vmatprep.subr.mxu0 %v10070_v1  ;;  %v6564_v31 = vld [vmem:[#allocation2] sm:$0xc] }
0x3f42   :  { %9838 = vtanh.f32 %v6511_v45 }
0x3f4f   :  { %v9839_v2 = vpop.eup %9838 }
0x3f50   :  { %6515 = vrot.lane.b32.xlu1 %v9839_v2, %s10073_s25 }
0x3fc2   :  { %v6516_v14 = vpop.permute.xlu1 %6515 }
0x3fc3   :  { %v6518_v51 = vmul.f32 %v6516_v14, %v6513_v46 }
0x3fc5   :  { %v11863_v26 = vadd.f32 %v6519_v12, %v6518_v51 }
0x3fc7   :  { %6559 = vrot.lane.b32.xlu1 %v11863_v26, %s10073_s25 }
0x3ff4   :  { %v6320_v6 = vpop.f32.mrf.mxu0 }
0x3ff5   :  { %v6321_v24 = vadd.f32 %v6320_v6, %v11791_v11 }
0x3ff6   :  { %v6322_v37 = vpop.f32.mrf.mxu0 }
0x3ff7   :  { %v6338_v63 = vadd.f32 %v11806_v57, %v6321_v24  ;;  %v6323_v19 = vadd.f32 %v6322_v37, %v11793_v27  ;;  %v6739_v37 = vrot.slane %v11863_v26, 6 }
0x3ff8   :  { %v6491_v52 = vpop.f32.mrf.mxu0 }
0x3ff9   :  { %6342 = vst [vmem:[#allocation2 + $0x10] sm:$0xff] %v6338_v63  ;;  %v6339_v23 = vadd.f32 %v11809_v55, %v6323_v19  ;;  %v6492_v47 = vadd.f32 %v11871_v13, %v6491_v52 }
0x3ffa   :  { %v9282_v20 = vpop.f32.mrf.mxu0 }
0x3ffb   :  { %6343 = vst.msk [vmem:[#allocation2 + $0x18] sm:$0xff] %vm291_vm6, %v6339_v23  ;;  %v6522_v48 = vrot.slane %v6492_v47, 2 }
0x3ffd   :  { %6523 = vrot.lane.b32.xlu0 %v6522_v48, %s10073_s25 }
0x4000   :  { %v6345_v15 = vld [vmem:[#allocation2 + $0x10] sm:$0xc0] }
0x4001   :  { %6540 = vrot.lane.b32.xlu0 %v6522_v48, %s10074_s26  ;;  %v6565_v48 = vld [vmem:[#allocation2 + $0x10] sm:$0x30] }
0x4002   :  { %v6346_v25 = vld [vmem:[#allocation2 + $0x18] sm:$0xc0] }
0x4039   :  { %v6560_v21 = vpop.permute.xlu1 %6559 }
0x403a   :  { %6562 = vst.msk [vmem:[#allocation3] sm:$0x3] %vm516_vm8, %v6560_v21  ;;  %9292 = vmatmul.mubr.msk.f32.vlgmr.msra.gmra.mxu1 %vm206_vm5, %v6560_v21 }
0x403b   :  { %9306 = vmatpush3.msra.mxu1 %v11740_v8  ;;  %9313 = vmatprep.mubr.msk.f32.mxu1 %vm10071_vm4, %v10070_v1 }
0x403c   :  { %9307 = vmatprep.subr.mxu1 %v10070_v1 }
0x403d   :  { %9308 = vmatpush3.msra.mxu1 %v11746_v42 }
0x403e   :  { %9309 = vmatprep.subr.mxu1 %v10070_v1 }
0x403f   :  { %9310 = vmatpush3.msra.mxu1 %v11754_v43 }
0x4040   :  { %9311 = vmatprep.subr.mxu1 %v10070_v1 }
0x4041   :  { %9312 = vmatpush3.msra.mxu1 %v11762_v9 }
0x4042   :  { %9327 = vmatprep.subr.mxu1 %v10070_v1 }
0x406f   :  { %v6524_v22 = vpop.permute.xlu0 %6523 }
0x4070   :  { %v6526_v56 = vadd.f32 %v6524_v22, %v6345_v15  ;;  %v6533_v16 = vadd.f32 %v6524_v22, %v6346_v25  ;;  %v6566_v15 = vld [vmem:[#allocation2 + $0x18] sm:$0x30] }
0x4072   :  { %v8323_v11 = vmul.f32 -1.442695, %v6526_v56  ;;  %v8324_v32 = vmul.f32 -1.442695, %v6533_v16 }
0x4073   :  { %v6541_v50 = vpop.permute.xlu0 %6540 }
0x4074   :  { %9840 = vpow2.f32 %v8323_v11 }
0x4081   :  { %v9841_v27 = vpop.eup %9840 }
0x4082   :  { %v6530_v28 = vadd.f32 1.0, %v9841_v27 }
0x4084   :  { %9842 = vrcp.f32 %v6530_v28 }
0x4091   :  { %v9843_v53 = vpop.eup %9842 }
0x4092   :  { %v6543_v17 = vmul.f32 %v9843_v53, %v6541_v50 }
0x4094   :  { %6545 = vrot.lane.b32.xlu1 %v6543_v17, %s10072_s23 }
0x40fa   :  { %v6635_v57 = vpop.f32.mrf.mxu1 }
0x40fb   :  { %v6636_v29 = vadd.f32 %v11798_v39, %v6635_v57 }
0x40fc   :  { %v9293_v61 = vpop.f32.mrf.mxu1 }
0x40fd   :  { %v6714_v55 = vrot.slane %v6636_v29, 6 }
0x40ff   :  { %6723 = vrot.lane.b32.xlu1 %v6714_v55, %s10072_s23  ;;  %v6716_v36 = vadd.f32 %v6714_v55, %v6564_v31 }
0x4101   :  { %v8327_v44 = vmul.f32 -1.442695, %v6716_v36 }
0x4106   :  { %v6546_v7 = vpop.permute.xlu1 %6545 }
0x4107   :  { %v6548_v35 = vadd.f32 %v6546_v7, %v6346_v25 }
0x4109   :  { %9844 = vtanh.f32 %v6548_v35 }
0x410a   :  { %9846 = vpow2.f32 %v8327_v44 }
0x410b   :  { %9848 = vpow2.f32 %v8324_v32 }
0x4116   :  { %v9845_v30 = vpop.eup %9844 }
0x4117   :  { %6552 = vrot.lane.b32.xlu0 %v9845_v30, %s10073_s25  ;;  %v9847_v4 = vpop.eup %9846 }
0x4118   :  { %v6720_v34 = vadd.f32 1.0, %v9847_v4  ;;  %v9849_v0 = vpop.eup %9848 }
0x4119   :  { %v6537_v33 = vadd.f32 1.0, %v9849_v0 }
0x411a   :  { %9850 = vrcp.f32 %v6720_v34 }
0x411b   :  { %9852 = vrcp.f32 %v6537_v33 }
0x4127   :  { %v9851_v10 = vpop.eup %9850 }
0x4128   :  { %v9853_v18 = vpop.eup %9852  ;;  %v6733_v63 = vsub.f32 1.0, %v9851_v10  ;;  %v6741_v52 = vmul.f32 %v9851_v10, %v6739_v37 }
0x4129   :  { %v6550_v62 = vsub.f32 1.0, %v9853_v18  ;;  %v6556_v54 = vmul.f32 0.0, %v9853_v18 }
0x4171   :  { %v6724_v38 = vpop.permute.xlu1 %6723 }
0x4172   :  { %v6726_v3 = vmul.f32 %v9851_v10, %v6724_v38 }
0x4174   :  { %6728 = vrot.lane.b32.xlu0 %v6726_v3, %s10072_s23  ;;  %v6788_v3 = vld [vmem:[#allocation2] sm:$0x30] }
0x4189   :  { %v6553_v49 = vpop.permute.xlu0 %6552 }
0x418a   :  { %v6555_v5 = vmul.f32 %v6553_v49, %v6550_v62 }
0x418c   :  { %v11897_v59 = vadd.f32 %v6556_v54, %v6555_v5 }
0x418e   :  { %6563 = vst.msk [vmem:[#allocation4 + $0x8] sm:$0xc0] %vm518_vm7, %v11897_v59  ;;  %v6640_v45 = vrot.slane %v11897_v59, 6  ;;  %v6778_v61 = vrot.slane %v11897_v59, 2 }
0x4190   :  { %9303 = vmatmul.mubr.msk.f32.vlgmr.msra.gmra.mxu0 %vm206_vm5, %v6640_v45 }
0x4191   :  { %9317 = vmatpush3.msra.mxu0 %v11817_v58  ;;  %9324 = vmatprep.mubr.msk.f32.mxu0 %vm10071_vm4, %v10070_v1 }
0x4192   :  { %9318 = vmatprep.subr.mxu0 %v10070_v1 }
0x4193   :  { %9319 = vmatpush3.msra.mxu0 %v11822_v60 }
0x4194   :  { %9320 = vmatprep.subr.mxu0 %v10070_v1 }
0x4195   :  { %9321 = vmatpush3.msra.mxu0 %v11832_v40 }
0x4196   :  { %9322 = vmatprep.subr.mxu0 %v10070_v1 }
0x4197   :  { %9323 = vmatpush3.msra.mxu0 %v11837_v41 }
0x4198   :  { %9338 = vmatprep.subr.mxu0 %v10070_v1 }
0x41e6   :  { %v6729_v2 = vpop.permute.xlu0 %6728 }
0x41e7   :  { %v6731_v46 = vadd.f32 %v6729_v2, %v6564_v31 }
0x41e9   :  { %9854 = vtanh.f32 %v6731_v46 }
0x41f6   :  { %v9855_v14 = vpop.eup %9854 }
0x41f7   :  { %6735 = vrot.lane.b32.xlu1 %v9855_v14, %s10073_s25 }
0x4250   :  { %v6709_v12 = vpop.f32.mrf.mxu0 }
0x4251   :  { %v6710_v51 = vadd.f32 %v11871_v13, %v6709_v12 }
0x4252   :  { %v9304_v6 = vpop.f32.mrf.mxu0 }
0x4253   :  { %v6744_v24 = vrot.slane %v6710_v51, 4 }
0x4255   :  { %6745 = vrot.lane.b32.xlu0 %v6744_v24, %s10073_s25 }
0x4259   :  { %6762 = vrot.lane.b32.xlu0 %v6744_v24, %s10074_s26 }
0x4269   :  { %v6736_v19 = vpop.permute.xlu1 %6735 }
0x426a   :  { %v6738_v23 = vmul.f32 %v6736_v19, %v6733_v63 }
0x426c   :  { %v11918_v47 = vadd.f32 %v6741_v52, %v6738_v23 }
0x426e   :  { %v6791_v20 = vrot.slane %v11918_v47, 2  ;;  %v6966_v37 = vrot.slane %v11918_v47, 6 }
0x4270   :  { %6792 = vrot.lane.b32.xlu1 %v6791_v20, %s10073_s25 }
0x42c7   :  { %v6746_v21 = vpop.permute.xlu0 %6745 }
0x42c8   :  { %v6748_v22 = vadd.f32 %v6746_v21, %v6565_v48  ;;  %v6755_v56 = vadd.f32 %v6746_v21, %v6566_v15  ;;  %v6789_v48 = vld [vmem:[#allocation2 + $0x10] sm:$0xc] }
0x42ca   :  { %v8328_v11 = vmul.f32 -1.442695, %v6748_v22  ;;  %v8329_v27 = vmul.f32 -1.442695, %v6755_v56 }
0x42cb   :  { %v6763_v29 = vpop.permute.xlu0 %6762 }
0x42cc   :  { %9856 = vpow2.f32 %v8328_v11 }
0x42cd   :  { %9858 = vpow2.f32 %v8329_v27 }
0x42d9   :  { %v9857_v26 = vpop.eup %9856 }
0x42da   :  { %v9859_v28 = vpop.eup %9858  ;;  %v6752_v50 = vadd.f32 1.0, %v9857_v26 }
0x42db   :  { %v6759_v53 = vadd.f32 1.0, %v9859_v28 }
0x42dc   :  { %9860 = vrcp.f32 %v6752_v50 }
0x42dd   :  { %9862 = vrcp.f32 %v6759_v53  ;;  %v6790_v53 = vld [vmem:[#allocation2 + $0x18] sm:$0xc] }
0x42e2   :  { %v6793_v17 = vpop.permute.xlu1 %6792 }
0x42e3   :  { %9314 = vmatmul.mubr.msk.f32.vlgmr.msra.gmra.mxu1 %vm206_vm5, %v6793_v17 }
0x42e4   :  { %9328 = vmatpush3.msra.mxu1 %v11740_v8  ;;  %9335 = vmatprep.mubr.msk.f32.mxu1 %vm10071_vm4, %v10070_v1 }
0x42e5   :  { %9329 = vmatprep.subr.mxu1 %v10070_v1 }
0x42e6   :  { %9330 = vmatpush3.msra.mxu1 %v11746_v42 }
0x42e7   :  { %9331 = vmatprep.subr.mxu1 %v10070_v1 }
0x42e8   :  { %9332 = vmatpush3.msra.mxu1 %v11754_v43 }
0x42e9   :  { %v9861_v57 = vpop.eup %9860  ;;  %9333 = vmatprep.subr.mxu1 %v10070_v1 }
0x42ea   :  { %v9863_v55 = vpop.eup %9862  ;;  %v6765_v7 = vmul.f32 %v9861_v57, %v6763_v29  ;;  %9334 = vmatpush3.msra.mxu1 %v11762_v9 }
0x42eb   :  { %v6780_v25 = vmul.f32 %v9863_v55, %v6778_v61  ;;  %9349 = vmatprep.subr.mxu1 %v10070_v1  ;;  %v6772_v32 = vsub.f32 1.0, %v9863_v55 }
0x42ec   :  { %6767 = vrot.lane.b32.xlu1 %v6765_v7, %s10072_s23 }
0x435e   :  { %v6768_v35 = vpop.permute.xlu1 %6767 }
0x435f   :  { %v6770_v30 = vadd.f32 %v6768_v35, %v6566_v15 }
0x4361   :  { %9864 = vtanh.f32 %v6770_v30 }
0x436e   :  { %v9865_v31 = vpop.eup %9864 }
0x436f   :  { %6774 = vrot.lane.b32.xlu0 %v9865_v31, %s10073_s25 }
0x43a3   :  { %v6862_v36 = vpop.f32.mrf.mxu1 }
0x43a4   :  { %v6863_v44 = vadd.f32 %v11798_v39, %v6862_v36 }
0x43a5   :  { %v9315_v16 = vpop.f32.mrf.mxu1 }
0x43a6   :  { %v6941_v4 = vrot.slane %v6863_v44, 4 }
0x43a8   :  { %6950 = vrot.lane.b32.xlu1 %v6941_v4, %s10072_s23  ;;  %v6943_v33 = vadd.f32 %v6941_v4, %v6788_v3 }
0x43aa   :  { %v8332_v18 = vmul.f32 -1.442695, %v6943_v33 }
0x43ac   :  { %9866 = vpow2.f32 %v8332_v18 }
0x43b9   :  { %v9867_v62 = vpop.eup %9866 }
0x43ba   :  { %v6947_v49 = vadd.f32 1.0, %v9867_v62 }
0x43bc   :  { %9868 = vrcp.f32 %v6947_v49 }
0x43c9   :  { %v9869_v5 = vpop.eup %9868 }
0x43ca   :  { %v6960_v24 = vsub.f32 1.0, %v9869_v5  ;;  %v6968_v19 = vmul.f32 %v9869_v5, %v6966_v37 }
0x43e1   :  { %v6775_v34 = vpop.permute.xlu0 %6774 }
0x43e2   :  { %v6777_v0 = vmul.f32 %v6775_v34, %v6772_v32 }
0x43e4   :  { %v11938_v10 = vadd.f32 %v6780_v25, %v6777_v0 }
0x43e6   :  { %6787 = vst.msk [vmem:[#allocation4 + $0x8] sm:$0x30] %vm744_vm9, %v11938_v10  ;;  %v6867_v38 = vrot.slane %v11938_v10, 4  ;;  %v7005_v31 = vrot.slane %v11938_v10, 2 }
0x43e8   :  { %9325 = vmatmul.mubr.msk.f32.vlgmr.msra.gmra.mxu0 %vm206_vm5, %v6867_v38 }
0x43e9   :  { %9339 = vmatpush3.msra.mxu0 %v11817_v58  ;;  %9346 = vmatprep.mubr.msk.f32.mxu0 %vm10071_vm4, %v10070_v1 }
0x43ea   :  { %9340 = vmatprep.subr.mxu0 %v10070_v1 }
0x43eb   :  { %9341 = vmatpush3.msra.mxu0 %v11822_v60 }
0x43ec   :  { %9342 = vmatprep.subr.mxu0 %v10070_v1 }
0x43ed   :  { %9343 = vmatpush3.msra.mxu0 %v11832_v40 }
0x43ee   :  { %9344 = vmatprep.subr.mxu0 %v10070_v1 }
0x43ef   :  { %9345 = vmatpush3.msra.mxu0 %v11837_v41 }
0x43f0   :  { %9360 = vmatprep.subr.mxu0 %v10070_v1 }
0x441a   :  { %v6951_v54 = vpop.permute.xlu1 %6950 }
0x441b   :  { %v6953_v59 = vmul.f32 %v9869_v5, %v6951_v54 }
0x441d   :  { %6955 = vrot.lane.b32.xlu0 %v6953_v59, %s10072_s23 }
0x448f   :  { %v6956_v45 = vpop.permute.xlu0 %6955 }
0x4490   :  { %v6958_v2 = vadd.f32 %v6956_v45, %v6788_v3  ;;  %v7015_v3 = vld [vmem:[#allocation2] sm:$0xc0] }
0x4492   :  { %9870 = vtanh.f32 %v6958_v2 }
0x449f   :  { %v9871_v46 = vpop.eup %9870 }
0x44a0   :  { %6962 = vrot.lane.b32.xlu1 %v9871_v46, %s10073_s25 }
0x44a8   :  { %v6936_v14 = vpop.f32.mrf.mxu0 }
0x44a9   :  { %v6937_v12 = vadd.f32 %v11871_v13, %v6936_v14 }
0x44aa   :  { %v9326_v51 = vpop.f32.mrf.mxu0 }
0x44ab   :  { %v6971_v6 = vrot.slane %v6937_v12, 6 }
0x44ad   :  { %6989 = vrot.lane.b32.xlu1 %v6971_v6, %s10074_s26  ;;  %6972 = vrot.lane.b32.xlu0 %v6971_v6, %s10073_s25  ;;  %v7016_v6 = vld [vmem:[#allocation2 + $0x10] sm:$0x3] }
0x4512   :  { %v6963_v63 = vpop.permute.xlu1 %6962 }
0x4513   :  { %v6965_v52 = vmul.f32 %v6963_v63, %v6960_v24 }
0x4515   :  { %v11960_v23 = vadd.f32 %v6968_v19, %v6965_v52 }
0x4517   :  { %v7018_v20 = vrot.slane %v11960_v23, 4 }
0x4519   :  { %7019 = vrot.lane.b32.xlu0 %v7018_v20, %s10073_s25 }
0x451f   :  { %v6973_v21 = vpop.permute.xlu0 %6972  ;;  %v6990_v26 = vpop.permute.xlu1 %6989 }
0x4520   :  { %v6975_v15 = vadd.f32 %v6973_v21, %v6789_v48  ;;  %v6982_v61 = vadd.f32 %v6973_v21, %v6790_v53 }
0x4522   :  { %v8333_v22 = vmul.f32 -1.442695, %v6975_v15  ;;  %v8334_v55 = vmul.f32 -1.442695, %v6982_v61 }
0x4524   :  { %9872 = vpow2.f32 %v8333_v22  ;;  %v7193_v22 = vrot.slane %v11960_v23, 6 }
0x4531   :  { %v9873_v56 = vpop.eup %9872 }
0x4532   :  { %v6979_v11 = vadd.f32 1.0, %v9873_v56 }
0x4534   :  { %9874 = vrcp.f32 %v6979_v11 }
0x4541   :  { %v9875_v27 = vpop.eup %9874 }
0x4542   :  { %v6992_v28 = vmul.f32 %v9875_v27, %v6990_v26 }
0x4544   :  { %6994 = vrot.lane.b32.xlu1 %v6992_v28, %s10072_s23 }
0x458b   :  { %v7020_v50 = vpop.permute.xlu0 %7019 }
0x458c   :  { %9336 = vmatmul.mubr.msk.f32.vlgmr.msra.gmra.mxu1 %vm206_vm5, %v7020_v50  ;;  %v7017_v50 = vld [vmem:[#allocation2 + $0x18] sm:$0x3] }
0x458d   :  { %9350 = vmatpush3.msra.mxu1 %v11740_v8  ;;  %9357 = vmatprep.mubr.msk.f32.mxu1 %vm10071_vm4, %v10070_v1 }
0x458e   :  { %9351 = vmatprep.subr.mxu1 %v10070_v1 }
0x458f   :  { %9352 = vmatpush3.msra.mxu1 %v11746_v42 }
0x4590   :  { %9353 = vmatprep.subr.mxu1 %v10070_v1 }
0x4591   :  { %9354 = vmatpush3.msra.mxu1 %v11754_v43 }
0x4592   :  { %9355 = vmatprep.subr.mxu1 %v10070_v1 }
0x4593   :  { %9356 = vmatpush3.msra.mxu1 %v11762_v9 }
0x4594   :  { %9371 = vmatprep.subr.mxu1 %v10070_v1 }
0x45b6   :  { %v6995_v17 = vpop.permute.xlu1 %6994 }
0x45b7   :  { %v6997_v57 = vadd.f32 %v6995_v17, %v6790_v53 }
0x45b9   :  { %9876 = vtanh.f32 %v6997_v57 }
0x45ba   :  { %9878 = vpow2.f32 %v8334_v55 }
0x45c6   :  { %v9877_v29 = vpop.eup %9876 }
0x45c7   :  { %7001 = vrot.lane.b32.xlu0 %v9877_v29, %s10073_s25  ;;  %v9879_v7 = vpop.eup %9878 }
0x45c8   :  { %v6986_v25 = vadd.f32 1.0, %v9879_v7 }
0x45ca   :  { %9880 = vrcp.f32 %v6986_v25 }
0x45d7   :  { %v9881_v35 = vpop.eup %9880 }
0x45d8   :  { %v6999_v30 = vsub.f32 1.0, %v9881_v35  ;;  %v7007_v44 = vmul.f32 %v9881_v35, %v7005_v31 }
0x4639   :  { %v7002_v36 = vpop.permute.xlu0 %7001 }
0x463a   :  { %v7004_v16 = vmul.f32 %v7002_v36, %v6999_v30 }
0x463c   :  { %v11978_v4 = vadd.f32 %v7007_v44, %v7004_v16  ;;  %v7240_v16 = vld [vmem:[#allocation2 + $0x10] sm:$0x3] }
0x463e   :  { %7014 = vst.msk [vmem:[#allocation4 + $0x8] sm:$0xc] %vm742_vm10, %v11978_v4  ;;  %v7094_v32 = vrot.slane %v11978_v4, 2 }
0x4640   :  { %9347 = vmatmul.mubr.msk.f32.vlgmr.msra.gmra.mxu0 %vm206_vm5, %v7094_v32 }
0x4641   :  { %9361 = vmatpush3.msra.mxu0 %v11817_v58  ;;  %9368 = vmatprep.mubr.msk.f32.mxu0 %vm10071_vm4, %v10070_v1 }
0x4642   :  { %9362 = vmatprep.subr.mxu0 %v10070_v1 }
0x4643   :  { %9363 = vmatpush3.msra.mxu0 %v11822_v60 }
0x4644   :  { %9364 = vmatprep.subr.mxu0 %v10070_v1 }
0x4645   :  { %9365 = vmatpush3.msra.mxu0 %v11832_v40 }
0x4646   :  { %9366 = vmatprep.subr.mxu0 %v10070_v1 }
0x4647   :  { %9367 = vmatpush3.msra.mxu0 %v11837_v41 }
0x4648   :  { %9382 = vmatprep.subr.mxu0 %v10070_v1 }
0x464c   :  { %v7089_v34 = vpop.f32.mrf.mxu1 }
0x464d   :  { %v7090_v0 = vadd.f32 %v11798_v39, %v7089_v34 }
0x464e   :  { %v9337_v10 = vpop.f32.mrf.mxu1 }
0x464f   :  { %v7168_v38 = vrot.slane %v7090_v0, 2 }
0x4651   :  { %7177 = vrot.lane.b32.xlu1 %v7168_v38, %s10072_s23  ;;  %v7170_v33 = vadd.f32 %v7168_v38, %v7015_v3 }
0x4653   :  { %v8337_v18 = vmul.f32 -1.442695, %v7170_v33 }
0x4655   :  { %9882 = vpow2.f32 %v8337_v18 }
0x4662   :  { %v9883_v62 = vpop.eup %9882 }
0x4663   :  { %v7174_v49 = vadd.f32 1.0, %v9883_v62 }
0x4665   :  { %9884 = vrcp.f32 %v7174_v49 }
0x4672   :  { %v9885_v5 = vpop.eup %9884 }
0x4673   :  { %v7187_v15 = vsub.f32 1.0, %v9885_v5  ;;  %v7195_v11 = vmul.f32 %v9885_v5, %v7193_v22 }
0x46c3   :  { %v7178_v54 = vpop.permute.xlu1 %7177 }
0x46c4   :  { %v7180_v59 = vmul.f32 %v9885_v5, %v7178_v54  ;;  %v7241_v5 = vld [vmem:[#allocation2] sm:$0xc0] }
0x46c6   :  { %7182 = vrot.lane.b32.xlu0 %v7180_v59, %s10072_s23 }
0x4700   :  { %v7163_v45 = vpop.f32.mrf.mxu0 }
0x4701   :  { %v7164_v2 = vadd.f32 %v11871_v13, %v7163_v45 }
0x4702   :  { %v9348_v46 = vpop.f32.mrf.mxu0 }
0x4703   :  { %7198 = vrot.lane.b32.xlu1 %v7164_v2, %s10073_s25 }
0x4707   :  { %7215 = vrot.lane.b32.xlu1 %v7164_v2, %s10074_s26 }
0x4738   :  { %v7183_v14 = vpop.permute.xlu0 %7182 }
0x4739   :  { %v7185_v12 = vadd.f32 %v7183_v14, %v7015_v3 }
0x473b   :  { %9886 = vtanh.f32 %v7185_v12 }
0x4748   :  { %v9887_v51 = vpop.eup %9886 }
0x4749   :  { %7189 = vrot.lane.b32.xlu0 %v9887_v51, %s10073_s25 }
0x4775   :  { %v7199_v24 = vpop.permute.xlu1 %7198 }
0x4776   :  { %v7201_v37 = vadd.f32 %v7199_v24, %v7016_v6  ;;  %v7208_v61 = vadd.f32 %v7199_v24, %v7017_v50 }
0x4778   :  { %v8338_v63 = vmul.f32 -1.442695, %v7201_v37  ;;  %v8339_v55 = vmul.f32 -1.442695, %v7208_v61 }
0x4779   :  { %v7216_v48 = vpop.permute.xlu1 %7215 }
0x477a   :  { %9888 = vpow2.f32 %v8338_v63 }
0x4787   :  { %v9889_v19 = vpop.eup %9888 }
0x4788   :  { %v7205_v52 = vadd.f32 1.0, %v9889_v19  ;;  %v7242_v19 = vld [vmem:[#allocation2 + $0x8] sm:$0xc0] }
0x478a   :  { %9890 = vrcp.f32 %v7205_v52 }
0x4797   :  { %v9891_v20 = vpop.eup %9890 }
0x4798   :  { %v7218_v21 = vmul.f32 %v9891_v20, %v7216_v48 }
0x479a   :  { %7220 = vrot.lane.b32.xlu1 %v7218_v21, %s10072_s23 }
0x47bb   :  { %v7190_v56 = vpop.permute.xlu0 %7189 }
0x47bc   :  { %v7192_v27 = vmul.f32 %v7190_v56, %v7187_v15 }
0x47be   :  { %v12005_v26 = vadd.f32 %v7195_v11, %v7192_v27 }
0x47c0   :  { %v7243_v28 = vrot.slane %v12005_v26, 6 }
0x47c2   :  { %7244 = vrot.lane.b32.xlu0 %v7243_v28, %s10073_s25 }
0x480c   :  { %v7221_v53 = vpop.permute.xlu1 %7220 }
0x480d   :  { %v7223_v17 = vadd.f32 %v7221_v53, %v7017_v50 }
0x480f   :  { %9892 = vtanh.f32 %v7223_v17 }
0x4810   :  { %9894 = vpow2.f32 %v8339_v55  ;;  %v12084_v55 = vld [vmem:[%s12231_s7 + $0xc0] sm:$0xff] }
0x481c   :  { %v9893_v57 = vpop.eup %9892 }
0x481d   :  { %7227 = vrot.lane.b32.xlu0 %v9893_v57, %s10073_s25  ;;  %v12070_v57 = vld [vmem:[%s12231_s7 + $0xd0] sm:$0xff] }
0x4834   :  { %v7245_v29 = vpop.permute.xlu0 %7244 }
0x4835   :  { %9358 = vmatmul.mubr.msk.f32.vlgmr.msra.gmra.mxu1 %vm206_vm5, %v7245_v29  ;;  %v12077_v29 = vld [vmem:[%s12231_s7 + $0xc8] sm:$0xff] }
0x4836   :  { %9372 = vmatpush3.msra.mxu1 %v11740_v8  ;;  %9379 = vmatprep.mubr.msk.f32.mxu1 %vm10071_vm4, %v10070_v1  ;;  %v9895_v8 = vpop.eup %9894 }
0x4837   :  { %9373 = vmatprep.subr.mxu1 %v10070_v1  ;;  %v7212_v7 = vadd.f32 1.0, %v9895_v8 }
0x4838   :  { %9374 = vmatpush3.msra.mxu1 %v11746_v42 }
0x4839   :  { %9375 = vmatprep.subr.mxu1 %v10070_v1  ;;  %9896 = vrcp.f32 %v7212_v7 }
0x483a   :  { %9376 = vmatpush3.msra.mxu1 %v11754_v43 }
0x483b   :  { %9377 = vmatprep.subr.mxu1 %v10070_v1 }
0x483c   :  { %9378 = vmatpush3.msra.mxu1 %v11762_v9 }
0x483d   :  { %9393 = vmatprep.subr.mxu1 %v10070_v1 }
0x4846   :  { %v9897_v25 = vpop.eup %9896 }
0x4847   :  { %v7225_v35 = vsub.f32 1.0, %v9897_v25  ;;  %v7232_v42 = vmul.f32 %v9897_v25, %v7094_v32 }
0x488f   :  { %v7228_v30 = vpop.permute.xlu0 %7227 }
0x4890   :  { %v7230_v31 = vmul.f32 %v7228_v30, %v7225_v35 }
0x4892   :  { %v12025_v43 = vadd.f32 %v7232_v42, %v7230_v31 }
0x4894   :  { %7239 = vst.msk [vmem:[#allocation4 + $0x8] sm:$0x3] %vm516_vm8, %v12025_v43  ;;  %9369 = vmatmul.mubr.msk.f32.vlgmr.msra.gmra.mxu0 %vm206_vm5, %v12025_v43  ;;  %v7453_v7 = vrot.slane %v12025_v43, 2 }
0x4895   :  { %9383 = vmatpush3.msra.mxu0 %v11817_v58  ;;  %9390 = vmatprep.mubr.msk.f32.mxu0 %vm10071_vm4, %v10070_v1 }
0x4896   :  { %9384 = vmatprep.subr.mxu0 %v10070_v1 }
0x4897   :  { %9385 = vmatpush3.msra.mxu0 %v11822_v60 }
0x4898   :  { %9386 = vmatprep.subr.mxu0 %v10070_v1 }
0x4899   :  { %9387 = vmatpush3.msra.mxu0 %v11832_v40 }
0x489a   :  { %9388 = vmatprep.subr.mxu0 %v10070_v1 }
0x489b   :  { %9389 = vmatpush3.msra.mxu0 %v11837_v41 }
0x489c   :  { %9404 = vmatprep.subr.mxu0 %v10070_v1 }
0x48f5   :  { %v7314_v9 = vpop.f32.mrf.mxu1 }
0x48f6   :  { %v7315_v36 = vadd.f32 %v11798_v39, %v7314_v9 }
0x48f7   :  { %v9359_v44 = vpop.f32.mrf.mxu1 }
0x48f8   :  { %7399 = vrot.lane.b32.xlu1 %v7315_v36, %s10072_s23  ;;  %v7391_v4 = vadd.f32 %v7315_v36, %v7240_v16 }
0x48fa   :  { %v8342_v32 = vmul.f32 -1.442695, %v7391_v4 }
0x48fc   :  { %9898 = vpow2.f32 %v8342_v32 }
0x4909   :  { %v9899_v10 = vpop.eup %9898 }
0x490a   :  { %v7395_v33 = vadd.f32 1.0, %v9899_v10 }
0x490c   :  { %9900 = vrcp.f32 %v7395_v33  ;;  %v7464_v33 = vld [vmem:[#allocation2] sm:$0x30] }
0x4919   :  { %v9901_v18 = vpop.eup %9900 }
0x491a   :  { %v7409_v63 = vsub.f32 1.0, %v9901_v18  ;;  %v7416_v21 = vmul.f32 %v9901_v18, %v7243_v28  ;;  %v12061_v28 = vld [vmem:[%s12231_s7 + $0xd8] sm:$0xff] }
0x4954   :  { %v7387_v34 = vpop.f32.mrf.mxu0 }
0x4955   :  { %v7388_v0 = vadd.f32 %v11871_v13, %v7387_v34 }
0x4956   :  { %v9370_v38 = vpop.f32.mrf.mxu0 }
0x4957   :  { %v7419_v3 = vrot.slane %v7388_v0, 2 }
0x4959   :  { %7420 = vrot.lane.b32.xlu1 %v7419_v3, %s10073_s25 }
0x496a   :  { %v7400_v62 = vpop.permute.xlu1 %7399 }
0x496b   :  { %v7402_v49 = vmul.f32 %v9901_v18, %v7400_v62 }
0x496d   :  { %7404 = vrot.lane.b32.xlu0 %v7402_v49, %s10072_s23 }
0x4971   :  { %7437 = vrot.lane.b32.xlu0 %v7419_v3, %s10074_s26 }
0x49cb   :  { %v7421_v54 = vpop.permute.xlu1 %7420 }
0x49cc   :  { %v7423_v59 = vadd.f32 %v7421_v54, %v7241_v5  ;;  %v7430_v11 = vadd.f32 %v7421_v54, %v7242_v19 }
0x49ce   :  { %v8343_v45 = vmul.f32 -1.442695, %v7423_v59  ;;  %v8344_v27 = vmul.f32 -1.442695, %v7430_v11 }
0x49d0   :  { %9902 = vpow2.f32 %v8343_v45 }
0x49dd   :  { %v9903_v2 = vpop.eup %9902 }
0x49de   :  { %v7427_v46 = vadd.f32 1.0, %v9903_v2 }
0x49df   :  { %v7405_v14 = vpop.permute.xlu0 %7404 }
0x49e0   :  { %9904 = vrcp.f32 %v7427_v46  ;;  %v7407_v12 = vadd.f32 %v7405_v14, %v7240_v16 }
0x49e2   :  { %9906 = vtanh.f32 %v7407_v12  ;;  %v7465_v12 = vld [vmem:[#allocation2 + $0x8] sm:$0x30] }
0x49e3   :  { %v7438_v6 = vpop.permute.xlu0 %7437 }
0x49ed   :  { %v9905_v51 = vpop.eup %9904 }
0x49ee   :  { %v7440_v24 = vmul.f32 %v9905_v51, %v7438_v6 }
0x49ef   :  { %v9907_v37 = vpop.eup %9906 }
0x49f0   :  { %7411 = vrot.lane.b32.xlu1 %v9907_v37, %s10073_s25  ;;  %7442 = vrot.lane.b32.xlu0 %v7440_v24, %s10072_s23 }
0x4a62   :  { %v7443_v52 = vpop.permute.xlu0 %7442  ;;  %v7412_v20 = vpop.permute.xlu1 %7411 }
0x4a63   :  { %v7445_v48 = vadd.f32 %v7443_v52, %v7242_v19  ;;  %v7414_v15 = vmul.f32 %v7412_v20, %v7409_v63 }
0x4a65   :  { %9908 = vtanh.f32 %v7445_v48  ;;  %v12051_v22 = vadd.f32 %v7416_v21, %v7414_v15 }
0x4a66   :  { %9910 = vpow2.f32 %v8344_v27 }
0x4a67   :  { %7458 = vrot.lane.b32.xlu1 %v12051_v22, %s10073_s25  ;;  %v7638_v24 = vrot.slane %v12051_v22, 6 }
0x4a72   :  { %v9909_v56 = vpop.eup %9908 }
0x4a73   :  { %7449 = vrot.lane.b32.xlu0 %v9909_v56, %s10073_s25  ;;  %v9911_v50 = vpop.eup %9910 }
0x4a74   :  { %v7434_v53 = vadd.f32 1.0, %v9911_v50 }
0x4a76   :  { %9912 = vrcp.f32 %v7434_v53 }
0x4a83   :  { %v9913_v61 = vpop.eup %9912 }
0x4a84   :  { %v7447_v8 = vsub.f32 1.0, %v9913_v61  ;;  %v7455_v35 = vmul.f32 %v9913_v61, %v7453_v7 }
0x4ad9   :  { %v7459_v17 = vpop.permute.xlu1 %7458 }
0x4ada   :  { %7461 = vst.msk [vmem:[#allocation3 + $0x8] sm:$0x3] %vm516_vm8, %v7459_v17  ;;  %9380 = vmatmul.mubr.msk.f32.vlgmr.msra.gmra.mxu1 %vm206_vm5, %v7459_v17 }
0x4adb   :  { %9394 = vmatpush3.msra.mxu1 %v12061_v28  ;;  %9401 = vmatprep.mubr.msk.f32.mxu1 %vm10071_vm4, %v10070_v1 }
0x4adc   :  { %9395 = vmatprep.subr.mxu1 %v10070_v1 }
0x4add   :  { %9396 = vmatpush3.msra.mxu1 %v12070_v57 }
0x4ade   :  { %9397 = vmatprep.subr.mxu1 %v10070_v1 }
0x4adf   :  { %9398 = vmatpush3.msra.mxu1 %v12077_v29 }
0x4ae0   :  { %9399 = vmatprep.subr.mxu1 %v10070_v1 }
0x4ae1   :  { %9400 = vmatpush3.msra.mxu1 %v12084_v55 }
0x4ae2   :  { %9415 = vmatprep.subr.mxu1 %v10070_v1 }
0x4ae5   :  { %v7450_v25 = vpop.permute.xlu0 %7449 }
0x4ae6   :  { %v7452_v30 = vmul.f32 %v7450_v25, %v7447_v8 }
0x4ae8   :  { %v12089_v42 = vadd.f32 %v7455_v35, %v7452_v30  ;;  %v9999_v30 = vld [vmem:[%s12231_s7 + $0xe0] sm:$0xff] }
0x4aea   :  { %7462 = vst.msk [vmem:[#allocation4] sm:$0xc0] %vm518_vm7, %v12089_v42  ;;  %v7539_v31 = vrot.slane %v12089_v42, 6  ;;  %v7677_v53 = vrot.slane %v12089_v42, 2  ;;  %v12156_v42 = vld [vmem:[%s12232_s8 + $0x6] ss:$0 sm:$0xff] }
0x4aec   :  { %9391 = vmatmul.mubr.msk.f32.vlgmr.msra.gmra.mxu0 %vm206_vm5, %v7539_v31 }
0x4aed   :  { %9405 = vmatpush3.msra.mxu0 %v11817_v58  ;;  %9412 = vmatprep.mubr.msk.f32.mxu0 %vm10071_vm4, %v10070_v1 }
0x4aee   :  { %9406 = vmatprep.subr.mxu0 %v10070_v1 }
0x4aef   :  { %9407 = vmatpush3.msra.mxu0 %v11822_v60 }
0x4af0   :  { %9408 = vmatprep.subr.mxu0 %v10070_v1 }
0x4af1   :  { %9409 = vmatpush3.msra.mxu0 %v11832_v40  ;;  %v7463_v40 = vld [vmem:[#allocation2 + $0x10] sm:$0xc] }
0x4af2   :  { %9410 = vmatprep.subr.mxu0 %v10070_v1 }
0x4af3   :  { %9411 = vmatpush3.msra.mxu0 %v11837_v41 }
0x4af4   :  { %9426 = vmatprep.subr.mxu0 %v10070_v1 }
0x4b9a   :  { %v7534_v43 = vpop.f32.mrf.mxu1 }
0x4b9b   :  { %v7535_v58 = vadd.f32 %v11798_v39, %v7534_v43 }
0x4b9c   :  { %v9381_v9 = vpop.f32.mrf.mxu1 }
0x4b9d   :  { %v7613_v36 = vrot.slane %v7535_v58, 6 }
0x4b9f   :  { %7622 = vrot.lane.b32.xlu1 %v7613_v36, %s10072_s23  ;;  %v7615_v32 = vadd.f32 %v7613_v36, %v7463_v40 }
0x4ba1   :  { %v8347_v34 = vmul.f32 -1.442695, %v7615_v32 }
0x4ba3   :  { %9914 = vpow2.f32 %v8347_v34 }
0x4bac   :  { %v7608_v44 = vpop.f32.mrf.mxu0 }
0x4bad   :  { %v7609_v60 = vadd.f32 %v11871_v13, %v7608_v44 }
0x4bae   :  { %v9392_v16 = vpop.f32.mrf.mxu0 }
0x4baf   :  { %v7643_v4 = vrot.slane %v7609_v60, 4  ;;  %v7687_v60 = vld [vmem:[#allocation2 + $0x10] sm:$0x30] }
0x4bb0   :  { %v9915_v41 = vpop.eup %9914 }
0x4bb1   :  { %7644 = vrot.lane.b32.xlu1 %v7643_v4, %s10073_s25  ;;  %v7619_v0 = vadd.f32 1.0, %v9915_v41 }
0x4bb3   :  { %9916 = vrcp.f32 %v7619_v0 }
0x4bc0   :  { %v9917_v10 = vpop.eup %9916 }
0x4bc1   :  { %v7632_v37 = vsub.f32 1.0, %v9917_v10  ;;  %v7640_v19 = vmul.f32 %v9917_v10, %v7638_v24 }
0x4c11   :  { %v7623_v39 = vpop.permute.xlu1 %7622 }
0x4c12   :  { %v7625_v38 = vmul.f32 %v9917_v10, %v7623_v39  ;;  %v7688_v10 = vld [vmem:[#allocation2] sm:$0xc]  ;;  %v7689_v39 = vld [vmem:[#allocation2 + $0x8] sm:$0xc] }
0x4c14   :  { %7627 = vrot.lane.b32.xlu0 %v7625_v38, %s10072_s23 }
0x4c18   :  { %7661 = vrot.lane.b32.xlu0 %v7643_v4, %s10074_s26 }
0x4c23   :  { %v7645_v3 = vpop.permute.xlu1 %7644 }
0x4c24   :  { %v7647_v18 = vadd.f32 %v7645_v3, %v7464_v33  ;;  %v7654_v15 = vadd.f32 %v7645_v3, %v7465_v12 }
0x4c26   :  { %v8348_v62 = vmul.f32 -1.442695, %v7647_v18  ;;  %v8349_v56 = vmul.f32 -1.442695, %v7654_v15 }
0x4c28   :  { %9918 = vpow2.f32 %v8348_v62 }
0x4c35   :  { %v9919_v49 = vpop.eup %9918 }
0x4c36   :  { %v7651_v5 = vadd.f32 1.0, %v9919_v49 }
0x4c38   :  { %9920 = vrcp.f32 %v7651_v5 }
0x4c45   :  { %v9921_v45 = vpop.eup %9920 }
0x4c86   :  { %v7628_v54 = vpop.permute.xlu0 %7627 }
0x4c87   :  { %v7630_v59 = vadd.f32 %v7628_v54, %v7463_v40 }
0x4c89   :  { %9922 = vtanh.f32 %v7630_v59 }
0x4c8a   :  { %v7662_v2 = vpop.permute.xlu0 %7661 }
0x4c8b   :  { %v7664_v46 = vmul.f32 %v9921_v45, %v7662_v2 }
0x4c8d   :  { %7666 = vrot.lane.b32.xlu0 %v7664_v46, %s10072_s23 }
0x4c96   :  { %v9923_v14 = vpop.eup %9922 }
0x4c97   :  { %7634 = vrot.lane.b32.xlu1 %v9923_v14, %s10073_s25 }
0x4cff   :  { %v7667_v51 = vpop.permute.xlu0 %7666 }
0x4d00   :  { %v7669_v6 = vadd.f32 %v7667_v51, %v7465_v12 }
0x4d02   :  { %9924 = vtanh.f32 %v7669_v6 }
0x4d03   :  { %9926 = vpow2.f32 %v8349_v56 }
0x4d09   :  { %v7635_v63 = vpop.permute.xlu1 %7634 }
0x4d0a   :  { %v7637_v52 = vmul.f32 %v7635_v63, %v7632_v37 }
0x4d0c   :  { %v12114_v20 = vadd.f32 %v7640_v19, %v7637_v52 }
0x4d0e   :  { %v7690_v48 = vrot.slane %v12114_v20, 2 }
0x4d0f   :  { %v9925_v21 = vpop.eup %9924 }
0x4d10   :  { %7673 = vrot.lane.b32.xlu0 %v9925_v21, %s10073_s25  ;;  %7691 = vrot.lane.b32.xlu1 %v7690_v48, %s10073_s25  ;;  %v9927_v11 = vpop.eup %9926  ;;  %v7865_v48 = vrot.slane %v12114_v20, 6 }
0x4d11   :  { %v7658_v27 = vadd.f32 1.0, %v9927_v11 }
0x4d13   :  { %9928 = vrcp.f32 %v7658_v27 }
0x4d20   :  { %v9929_v22 = vpop.eup %9928 }
0x4d21   :  { %v7671_v50 = vsub.f32 1.0, %v9929_v22  ;;  %v7679_v8 = vmul.f32 %v9929_v22, %v7677_v53 }
0x4d82   :  { %v7674_v17 = vpop.permute.xlu0 %7673  ;;  %v7692_v61 = vpop.permute.xlu1 %7691 }
0x4d83   :  { %v7676_v7 = vmul.f32 %v7674_v17, %v7671_v50  ;;  %9402 = vmatmul.mubr.msk.f32.vlgmr.msra.gmra.mxu1 %vm206_vm5, %v7692_v61 }
0x4d84   :  { %9416 = vmatpush3.msra.mxu1 %v12061_v28  ;;  %9423 = vmatprep.mubr.msk.f32.mxu1 %vm10071_vm4, %v10070_v1  ;;  %v9996_v28 = vld [vmem:[%s12231_s7 + $0xf8] sm:$0xff] }
0x4d85   :  { %v12124_v25 = vadd.f32 %v7679_v8, %v7676_v7  ;;  %9417 = vmatprep.subr.mxu1 %v10070_v1 }
0x4d86   :  { %9418 = vmatpush3.msra.mxu1 %v12070_v57  ;;  %v9997_v57 = vld [vmem:[%s12231_s7 + $0xf0] sm:$0xff] }
0x4d87   :  { %7686 = vst.msk [vmem:[#allocation4] sm:$0x30] %vm744_vm9, %v12124_v25  ;;  %v7766_v35 = vrot.slane %v12124_v25, 4  ;;  %9419 = vmatprep.subr.mxu1 %v10070_v1  ;;  %v7904_v2 = vrot.slane %v12124_v25, 2  ;;  %v10001_v25 = vld [vmem:[%s12232_s8 + $0x7] ss:$0 sm:$0xff] }
0x4d88   :  { %9420 = vmatpush3.msra.mxu1 %v12077_v29  ;;  %v9998_v29 = vld [vmem:[%s12231_s7 + $0xe8] sm:$0xff]  ;;  %s10075_s8 = smov [#allocation9]  }
0x4d89   :  { %9413 = vmatmul.mubr.msk.f32.vlgmr.msra.gmra.mxu0 %vm206_vm5, %v7766_v35  ;;  %9421 = vmatprep.subr.mxu1 %v10070_v1 }
0x4d8a   :  { %9427 = vmatpush3.msra.mxu0 %v9996_v28  ;;  %9434 = vmatprep.mubr.msk.f32.mxu0 %vm10071_vm4, %v10070_v1 }
0x4d8b   :  { %9428 = vmatprep.subr.mxu0 %v10070_v1  ;;  %9422 = vmatpush3.msra.mxu1 %v12084_v55 }
0x4d8c   :  { %9429 = vmatpush3.msra.mxu0 %v9997_v57 }
0x4d8d   :  { %9430 = vmatprep.subr.mxu0 %v10070_v1 }
0x4d8e   :  { %9431 = vmatpush3.msra.mxu0 %v9998_v29 }
0x4d8f   :  { %9432 = vmatprep.subr.mxu0 %v10070_v1 }
0x4d90   :  { %9433 = vmatpush3.msra.mxu0 %v9999_v30 }
0x4e43   :  { %v7761_v55 = vpop.f32.mrf.mxu1 }
0x4e44   :  { %v7762_v31 = vadd.f32 %v12156_v42, %v7761_v55 }
0x4e45   :  { %v9403_v43 = vpop.f32.mrf.mxu1 }
0x4e46   :  { %v7840_v58 = vrot.slane %v7762_v31, 4  ;;  %v7914_v31 = vld [vmem:[#allocation2 + $0x10] sm:$0xc0] }
0x4e48   :  { %7849 = vrot.lane.b32.xlu1 %v7840_v58, %s10072_s23  ;;  %v7842_v16 = vadd.f32 %v7840_v58, %v7687_v60 }
0x4e49   :  { %v7835_v9 = vpop.f32.mrf.mxu0 }
0x4e4a   :  { %v7836_v1 = vadd.f32 %v11871_v13, %v7835_v9  ;;  %v8352_v4 = vmul.f32 -1.442695, %v7842_v16  ;;  %v7915_v9 = vld [vmem:[#allocation2] sm:$0x3] }
0x4e4b   :  { %v9414_v36 = vpop.f32.mrf.mxu0 }
0x4e4c   :  { %v7870_v44 = vrot.slane %v7836_v1, 6  ;;  %9930 = vpow2.f32 %v8352_v4 }
0x4e4e   :  { %7871 = vrot.lane.b32.xlu0 %v7870_v44, %s10073_s25 }
0x4e52   :  { %7888 = vrot.lane.b32.xlu0 %v7870_v44, %s10074_s26 }
0x4e59   :  { %v9931_v40 = vpop.eup %9930 }
0x4e5a   :  { %v7846_v32 = vadd.f32 1.0, %v9931_v40 }
0x4e5c   :  { %9932 = vrcp.f32 %v7846_v32 }
0x4e69   :  { %v9933_v34 = vpop.eup %9932 }
0x4e6a   :  { %v7859_v52 = vsub.f32 1.0, %v9933_v34  ;;  %v7867_v15 = vmul.f32 %v9933_v34, %v7865_v48 }
0x4eba   :  { %v7850_v41 = vpop.permute.xlu1 %7849 }
0x4ebb   :  { %v7852_v0 = vmul.f32 %v9933_v34, %v7850_v41 }
0x4ebd   :  { %7854 = vrot.lane.b32.xlu1 %v7852_v0, %s10072_s23 }
0x4ec0   :  { %v7872_v13 = vpop.permute.xlu0 %7871 }
0x4ec1   :  { %v7874_v38 = vadd.f32 %v7872_v13, %v7688_v10  ;;  %v7881_v3 = vadd.f32 %v7872_v13, %v7689_v39 }
0x4ec3   :  { %v8353_v33 = vmul.f32 -1.442695, %v7874_v38  ;;  %v8354_v18 = vmul.f32 -1.442695, %v7881_v3  ;;  %v7916_v38 = vld [vmem:[#allocation2 + $0x8] sm:$0x3] }
0x4ec4   :  { %v7889_v45 = vpop.permute.xlu0 %7888 }
0x4ec5   :  { %9934 = vpow2.f32 %v8353_v33 }
0x4ec6   :  { %9936 = vpow2.f32 %v8354_v18 }
0x4ed2   :  { %v9935_v62 = vpop.eup %9934 }
0x4ed3   :  { %v9937_v49 = vpop.eup %9936  ;;  %v7878_v5 = vadd.f32 1.0, %v9935_v62 }
0x4ed4   :  { %v7885_v54 = vadd.f32 1.0, %v9937_v49 }
0x4ed5   :  { %9938 = vrcp.f32 %v7878_v5 }
0x4ed6   :  { %9940 = vrcp.f32 %v7885_v54 }
0x4ee2   :  { %v9939_v59 = vpop.eup %9938 }
0x4ee3   :  { %v9941_v46 = vpop.eup %9940  ;;  %v7891_v14 = vmul.f32 %v9939_v59, %v7889_v45 }
0x4ee4   :  { %v7906_v12 = vmul.f32 %v9941_v46, %v7904_v2  ;;  %v7898_v22 = vsub.f32 1.0, %v9941_v46 }
0x4ee5   :  { %7893 = vrot.lane.b32.xlu0 %v7891_v14, %s10072_s23 }
0x4f2f   :  { %v7855_v51 = vpop.permute.xlu1 %7854 }
0x4f30   :  { %v7857_v6 = vadd.f32 %v7855_v51, %v7687_v60 }
0x4f32   :  { %9942 = vtanh.f32 %v7857_v6 }
0x4f3f   :  { %v9943_v24 = vpop.eup %9942 }
0x4f40   :  { %7861 = vrot.lane.b32.xlu1 %v9943_v24, %s10073_s25 }
0x4f57   :  { %v7894_v37 = vpop.permute.xlu0 %7893 }
0x4f58   :  { %v7896_v63 = vadd.f32 %v7894_v37, %v7689_v39 }
0x4f5a   :  { %9944 = vtanh.f32 %v7896_v63 }
0x4f67   :  { %v9945_v19 = vpop.eup %9944 }
0x4f68   :  { %7900 = vrot.lane.b32.xlu0 %v9945_v19, %s10073_s25 }
0x4fb2   :  { %v7862_v21 = vpop.permute.xlu1 %7861 }
0x4fb3   :  { %v7864_v56 = vmul.f32 %v7862_v21, %v7859_v52 }
0x4fb5   :  { %v12169_v11 = vadd.f32 %v7867_v15, %v7864_v56 }
0x4fb7   :  { %v7917_v27 = vrot.slane %v12169_v11, 4  ;;  %v8092_v2 = vrot.slane %v12169_v11, 6 }
0x4fb9   :  { %7918 = vrot.lane.b32.xlu1 %v7917_v27, %s10073_s25 }
0x4fda   :  { %v7901_v50 = vpop.permute.xlu0 %7900 }
0x4fdb   :  { %v7903_v53 = vmul.f32 %v7901_v50, %v7898_v22 }
0x4fdd   :  { %v12173_v17 = vadd.f32 %v7906_v12, %v7903_v53 }
0x4fdf   :  { %7913 = vst.msk [vmem:[#allocation4] sm:$0xc] %vm742_vm10, %v12173_v17  ;;  %v7993_v61 = vrot.slane %v12173_v17, 2 }
0x4fe1   :  { %9435 = vmatmul.mubr.msk.f32.vlgmr.msra.gmra.mxu0 %vm206_vm5, %v7993_v61 }
0x502b   :  { %v7919_v8 = vpop.permute.xlu1 %7918 }
0x502c   :  { %9424 = vmatmul.mubr.msk.f32.vlgmr.msra.gmra.mxu1 %vm206_vm5, %v7919_v8 }
0x50a1   :  { %v8062_v7 = vpop.f32.mrf.mxu0 }
0x50a2   :  { %v8063_v35 = vadd.f32 %v10001_v25, %v8062_v7 }
0x50a3   :  { %v9436_v28 = vpop.f32.mrf.mxu0 }
0x50a4   :  { %8097 = vrot.lane.b32.xlu0 %v8063_v35, %s10073_s25 }
0x50ec   :  { %v7988_v57 = vpop.f32.mrf.mxu1 }
0x50ed   :  { %v7989_v29 = vadd.f32 %v12156_v42, %v7988_v57 }
0x50ee   :  { %v9425_v30 = vpop.f32.mrf.mxu1 }
0x50ef   :  { %v8067_v55 = vrot.slane %v7989_v29, 2 }
0x50f1   :  { %8076 = vrot.lane.b32.xlu1 %v8067_v55, %s10072_s23  ;;  %v8069_v43 = vadd.f32 %v8067_v55, %v7914_v31 }
0x50f3   :  { %v8357_v1 = vmul.f32 -1.442695, %v8069_v43 }
0x50f5   :  { %8114 = vrot.lane.b32.xlu1 %v8063_v35, %s10074_s26  ;;  %9946 = vpow2.f32 %v8357_v1 }
0x5102   :  { %v9947_v60 = vpop.eup %9946 }
0x5103   :  { %v8073_v16 = vadd.f32 1.0, %v9947_v60 }
0x5116   :  { %v8098_v58 = vpop.permute.xlu0 %8097 }
0x5117   :  { %v8100_v36 = vadd.f32 %v8098_v58, %v7915_v9 }
0x5119   :  { %v8358_v44 = vmul.f32 -1.442695, %v8100_v36 }
0x511b   :  { %9948 = vpow2.f32 %v8358_v44 }
0x511c   :  { %9950 = vrcp.f32 %v8073_v16 }
0x5128   :  { %v9949_v4 = vpop.eup %9948 }
0x5129   :  { %v8104_v42 = vadd.f32 1.0, %v9949_v4  ;;  %v9951_v40 = vpop.eup %9950 }
0x512a   :  { %v8086_v45 = vsub.f32 1.0, %v9951_v40  ;;  %v8094_v12 = vmul.f32 %v9951_v40, %v8092_v2 }
0x512b   :  { %9952 = vrcp.f32 %v8104_v42 }
0x5138   :  { %v9953_v41 = vpop.eup %9952 }
0x5163   :  { %v8077_v32 = vpop.permute.xlu1 %8076 }
0x5164   :  { %v8079_v34 = vmul.f32 %v9951_v40, %v8077_v32 }
0x5166   :  { %8081 = vrot.lane.b32.xlu0 %v8079_v34, %s10072_s23 }
0x5167   :  { %v8115_v0 = vpop.permute.xlu1 %8114 }
0x5168   :  { %v8117_v10 = vmul.f32 %v9953_v41, %v8115_v0 }
0x516a   :  { %8119 = vrot.lane.b32.xlu1 %v8117_v10, %s10072_s23  ;;  %s8166_s23 = sshll.u32 %s10075_s8, 4  ;;  %s8167_s23 = int_to_ptr.vmem [resolvable:$true] %s8166_s23 }
0x516b   :  { %p10027_p6 = scmp.lt.s32.totalorder %s8167_s23, %s8167_s23 }
0x516e   :  { %7010 = vrot.lane.b32.xlu1 %v11960_v23, %s10073_s25 }
0x5172   :  { %7682 = vrot.lane.b32.xlu1 %v12114_v20, %s10073_s25  ;;  %v8107_v20 = vadd.f32 %v8098_v58, %v7916_v38 }
0x5174   :  { %v8359_v5 = vmul.f32 -1.442695, %v8107_v20 }
0x51d8   :  { %v8082_v13 = vpop.permute.xlu0 %8081 }
0x51d9   :  { %v8084_v39 = vadd.f32 %v8082_v13, %v7914_v31 }
0x51db   :  { %9954 = vtanh.f32 %v8084_v39 }
0x51dc   :  { %v8120_v3 = vpop.permute.xlu1 %8119 }
0x51dd   :  { %v8122_v33 = vadd.f32 %v8120_v3, %v7916_v38 }
0x51df   :  { %9956 = vtanh.f32 %v8122_v33 }
0x51e0   :  { %v7011_v18 = vpop.permute.xlu1 %7010  ;;  %9958 = vpow2.f32 %v8359_v5 }
0x51e1   :  { %7013 = vst.msk [vmem:[#allocation3] sm:$0x30] %vm744_vm9, %v7011_v18 }
0x51e4   :  { %v7683_v62 = vpop.permute.xlu1 %7682 }
0x51e5   :  { %7685 = vst.msk [vmem:[#allocation3 + $0x8] sm:$0xc] %vm742_vm10, %v7683_v62 }
0x51e8   :  { %v9955_v49 = vpop.eup %9954 }
0x51e9   :  { %8088 = vrot.lane.b32.xlu0 %v9955_v49, %s10073_s25 }
0x51ec   :  { %v9957_v23 = vpop.eup %9956 }
0x51ed   :  { %8126 = vrot.lane.b32.xlu1 %v9957_v23, %s10073_s25  ;;  %6783 = vrot.lane.b32.xlu0 %v11918_v47, %s10073_s25  ;;  %v9959_v54 = vpop.eup %9958 }
0x51ee   :  { %v8111_v59 = vadd.f32 1.0, %v9959_v54 }
0x51f0   :  { %9960 = vrcp.f32 %v8111_v59 }
0x51f1   :  { %7235 = vrot.lane.b32.xlu0 %v12005_v26, %s10073_s25 }
0x51f5   :  { %7909 = vrot.lane.b32.xlu0 %v12169_v11, %s10073_s25 }
0x51fd   :  { %v9961_v46 = vpop.eup %9960 }
0x51fe   :  { %v8124_v6 = vsub.f32 1.0, %v9961_v46  ;;  %v8131_v37 = vmul.f32 %v9961_v46, %v7993_v61 }
0x525b   :  { %v8089_v14 = vpop.permute.xlu0 %8088 }
0x525c   :  { %v8091_v51 = vmul.f32 %v8089_v14, %v8086_v45 }
0x525e   :  { %v8095_v47 = vadd.f32 %v8094_v12, %v8091_v51 }
0x525f   :  { %v8127_v24 = vpop.permute.xlu1 %8126  ;;  %v6784_v26 = vpop.permute.xlu0 %6783 }
0x5260   :  { %v8129_v63 = vmul.f32 %v8127_v24, %v8124_v6  ;;  %6786 = vst.msk [vmem:[#allocation3] sm:$0xc] %vm742_vm10, %v6784_v26  ;;  %8134 = vrot.lane.b32.xlu1 %v8095_v47, %s10073_s25  ;;  %s10022_s25 = scalar_lea.vmem %s8167_s23, 256 }
0x5261   :  { %p10023_p5 = scmp.ne.s32.totalorder %s8167_s23, %s10022_s25  ;;  %p10028_p7 = scmp.lt.s32.totalorder %s10022_s25, %s10022_s25 }
0x5262   :  { %v8132_v19 = vadd.f32 %v8131_v37, %v8129_v63 }
0x5263   :  { %v7236_v52 = vpop.permute.xlu0 %7235  ;;  %p10029_p8 = por %p10028_p7, %p10027_p6 }
0x5264   :  { %8138 = vst.msk [vmem:[#allocation4] sm:$0x3] %vm516_vm8, %v8132_v19  ;;  %8140 = vst.msk [vmem:[#allocation9 + $0xe] sm:$0x3] %vm516_vm8, %v8132_v19 }
0x5265   :  { %7238 = vst.msk [vmem:[#allocation3] sm:$0xc0] %vm518_vm7, %v7236_v52  ;;  %p10030_p9 = pnand %p10029_p8, %p10023_p5 }
0x5267   :  { %v7910_v48 = vpop.permute.xlu0 %7909 }
0x5268   :  { %7912 = vst.msk [vmem:[#allocation3 + $0x8] sm:$0x30] %vm744_vm9, %v7910_v48 }
0x526b   :  { %v8143_v15 = vld [vmem:[#allocation4] sm:$0xff] }
0x526c   :  { %v8141_v21 = vld [vmem:[#allocation3] sm:$0xff] }
0x526d   :  { %v8145_v56 = vadd.f32 %v8143_v15, %v8141_v21 }
0x526f   :  { %8147 = vst.msk [vmem:[#allocation8] sm:$0xff] %vm206_vm5, %v8145_v56 }
0x52d2   :  { %v8135_v11 = vpop.permute.xlu1 %8134 }
0x52d3   :  { %8137 = vst.msk [vmem:[#allocation3 + $0x8] sm:$0xc0] %vm518_vm7, %v8135_v11  ;;  %8139 = vst.msk [vmem:[#allocation9 + $0x6] sm:$0xc0] %vm518_vm7, %v8135_v11 }
0x52d4   :  { %10033 = shalt.err (!%p10030_p9)
}
0x52d5   :  { %s10076_s26 = smov 128   ;;  %s10077_s2 = smov 8   ;;  %v8144_v22 = vld [vmem:[#allocation4 + $0x8] sm:$0xff] }
0x52d6   :  { %8172 = dma.vmem_to_hbm [thread:$0]  %s8167_s23, 256, %s12234_s10, [#allocation10], %s10076_s26, %s10076_s26, %s10077_s2  }
0x52d7   :  { %s10078_s24 = smov [#allocation8]  }
0x52d8   :  { %s8154_s3 = sshll.u32 %s10078_s24, 4  ;;  %s8155_s3 = int_to_ptr.vmem [resolvable:$true] %s8154_s3 }
0x52d9   :  { %s10042_s27 = scalar_lea.vmem %s8155_s3, 256  ;;  %p10047_p11 = scmp.lt.s32.totalorder %s8155_s3, %s8155_s3 }
0x52da   :  { %v8142_v27 = vld [vmem:[#allocation3 + $0x8] sm:$0xff]  ;;  %p10043_p10 = scmp.ne.s32.totalorder %s8155_s3, %s10042_s27  ;;  %p10048_p12 = scmp.lt.s32.totalorder %s10042_s27, %s10042_s27 }
0x52db   :  { %v8146_v50 = vadd.f32 %v8144_v22, %v8142_v27 }
0x52dc   :  { %p10049_p13 = por %p10048_p12, %p10047_p11 }
0x52dd   :  { %8148 = vst.msk [vmem:[#allocation8 + $0x8] sm:$0xff] %vm206_vm5, %v8146_v50 }
0x52de   :  { %p10050_p0 = pnand %p10049_p13, %p10043_p10 }
0x52e0   :  { %10053 = shalt.err (!%p10050_p0)
}
0x52e1   :  { %8160 = dma.vmem_to_hbm [thread:$0]  %s8155_s3, 256, %s12233_s9, [#allocation7], %s10076_s26, %s10076_s26, %s10077_s2  }
0x52e2   :  { %10064 = dma.done.wait [#allocation7], 256  }
0x52e3   :  { %10065 = vsyncadd [#allocation7], 4294967040 }
0x52e4   :  { %10066 = dma.done.wait [#allocation10], 256  }
0x52e5   :  { %10067 = vsyncadd [#allocation10], 4294967040 }
0x52e6   :  { %8179 = vsyncpa [#allocation6], 1 }
0x52e7   :  { %8180 = vsyncpa [#allocation7], 1 }
0x52e8   :  { %8181 = vsyncpa [#allocation10], 1 }

</bundles_post_ra>
